<compile_context>
chip_gen: v7x
topology: tpu7x:2x2x1
jax: 0.10.0
libtpu: 0.0.40
codegen_flags: <defaults>
</compile_context>

<pallas_src>
import functools

import jax
import jax.numpy as jnp
from jax import lax
from jax.experimental import pallas as pl
from jax.experimental.pallas import tpu as pltpu

_CompilerParams = getattr(pltpu, "CompilerParams",
                          getattr(pltpu, "TPUCompilerParams", None))


def _round_up(v, m):
    return (v + m - 1) // m * m


def _block_kernel(x_ref, gamma_ref, beta_ref, p_ref, w_ref, bias_ref, o_ref,
                  pad_ref, *, H, W, eps):
    # x_ref    : [1, H*W, Cin]    f32   one batch element, channels-last
    # gamma_ref: [1, Cin]         f32
    # beta_ref : [1, Cin]         f32
    # p_ref    : [Cin, Cin]       f32   group-averaging matrix (includes 1/count)
    # w_ref    : [9*Cin, Coutp]   bf16  row = (ky*3+kx)*Cin + cin, Coutp = rup(Cout,128)
    # bias_ref : [1, Coutp]       f32
    # o_ref    : [1, H*W, Coutp]  f32
    # pad_ref  : [H+2, W+2, Cin]  bf16  scratch (zero-padded swish activations)
    Cin = gamma_ref.shape[1]
    Coutp = bias_ref.shape[1]

    xf = x_ref[0].astype(jnp.float32)                               # [HW, Cin]

    # ---- GroupNorm statistics (two-pass f32; group reduce/bcast via matmul) ----
    s1 = jnp.sum(xf, axis=0, keepdims=True)                         # [1, Cin]
    mean_c = jnp.dot(s1, p_ref[...], preferred_element_type=jnp.float32)
    xc = xf - mean_c
    s2 = jnp.sum(xc * xc, axis=0, keepdims=True)                    # [1, Cin]
    var_c = jnp.dot(s2, p_ref[...], preferred_element_type=jnp.float32)
    inv_c = lax.rsqrt(var_c + eps)
    xn = xc * (inv_c * gamma_ref[...]) + beta_ref[...]              # [HW, Cin]

    # ---- Swish (f32 on VPU/EUP) ----
    h = xn * jax.nn.sigmoid(xn)                                     # [HW, Cin]

    # ---- zero-padded activations in VMEM (interior overwritten every step) ----
    hb = h.astype(jnp.bfloat16).reshape(H, W, Cin)
    pad_ref[0:1, :, :] = jnp.zeros((1, W + 2, Cin), jnp.bfloat16)
    pad_ref[H + 1:H + 2, :, :] = jnp.zeros((1, W + 2, Cin), jnp.bfloat16)
    pad_ref[1:H + 1, 0:1, :] = jnp.zeros((H, 1, Cin), jnp.bfloat16)
    pad_ref[1:H + 1, W + 1:W + 2, :] = jnp.zeros((H, 1, Cin), jnp.bfloat16)
    pad_ref[1:H + 1, 1:W + 1, :] = hb

    # ---- conv3x3 = 9 shifted MXU matmuls, f32 accumulation (no im2col buffer) ----
    acc = jnp.zeros((H * W, Coutp), jnp.float32)
    for ky in range(3):
        for kx in range(3):
            tap = ky * 3 + kx
            a = pad_ref[ky:ky + H, kx:kx + W, :].reshape(H * W, Cin)    # bf16
            acc = acc + jnp.dot(a, w_ref[tap * Cin:(tap + 1) * Cin, :],
                                preferred_element_type=jnp.float32)
    o_ref[0] = (acc + bias_ref[...]).astype(o_ref.dtype)            # lane-dense store


def block_forward(x_nchw, gamma, beta, conv_w, conv_b, *, groups=32, eps=1e-5):
    """GroupNorm(groups) -> Swish -> Conv2d(3x3, pad=1). x_nchw: [N, Cin, H, W]."""
    N, Cin, H, W = x_nchw.shape
    Cout = conv_w.shape[0]
    assert Cin % groups == 0, "GroupNorm requires dim % groups == 0"
    Cg = Cin // groups
    Coutp = _round_up(Cout, 128)     # lane-dense output columns

    # Channels-last, lane-dense activations: [N, H*W, Cin].
    x_cl = jnp.transpose(x_nchw, (0, 2, 3, 1)).reshape(N, H * W, Cin)
    x_cl = x_cl.astype(jnp.float32)

    # Group-averaging matrix: P[c, c'] = 1/(H*W*Cg) if group(c)==group(c') else 0.
    gids = jnp.arange(Cin, dtype=jnp.int32) // Cg
    gmat = (gids[:, None] == gids[None, :]).astype(jnp.float32) / float(H * W * Cg)

    # Conv weight OIHW -> [ky,kx,Cin,Cout] -> [9*Cin, Cout] -> pad Cout to Coutp, bf16.
    w_col = jnp.transpose(conv_w, (2, 3, 1, 0)).reshape(9 * Cin, Cout)
    w_col = jnp.pad(w_col, ((0, 0), (0, Coutp - Cout))).astype(jnp.bfloat16)
    bias_p = jnp.pad(conv_b, (0, Coutp - Cout)).reshape(1, Coutp).astype(jnp.float32)

    gamma2 = gamma.reshape(1, Cin).astype(jnp.float32)
    beta2 = beta.reshape(1, Cin).astype(jnp.float32)

    kernel = functools.partial(_block_kernel, H=H, W=W, eps=eps)

    # ---- VMEM budget from actual footprint, clamped to the chip's VMEM ----
    try:
        vmem_cap = int(pltpu.get_tpu_info().vmem_capacity_bytes)
    except Exception:
        vmem_cap = 64 * 2**20            # conservative (v7x per-TC size)
    lane = 128
    in_b = _round_up(H * W, 8) * _round_up(Cin, lane) * 4
    out_b = _round_up(H * W, 8) * Coutp * 4
    w_b = _round_up(9 * Cin, 16) * Coutp * 2
    pad_b = (H + 2) * _round_up(W + 2, 16) * _round_up(Cin, lane) * 2
    small_b = (2 * 8 * _round_up(Cin, lane) + 8 * Coutp
               + _round_up(Cin, 8) * _round_up(Cin, lane)) * 4
    tmp_b = 4 * _round_up(H * W, 8) * _round_up(Cin, lane) * 4     # f32 temporaries
    want = 2 * (in_b + out_b) + w_b + pad_b + small_b + tmp_b
    vmem_limit = max(32 * 2**20, 2 * want)
    vmem_limit = int(max(16 * 2**20, min(vmem_limit, int(0.85 * vmem_cap))))

    def build(single_buffer_consts):
        const_kw = {"pipeline_mode": pl.Buffered(1)} if single_buffer_consts else {}
        return pl.pallas_call(
            kernel,
            out_shape=jax.ShapeDtypeStruct((N, H * W, Coutp), jnp.float32),
            grid_spec=pltpu.PrefetchScalarGridSpec(
                num_scalar_prefetch=0,
                grid=(N,),
                in_specs=[
                    pl.BlockSpec((1, H * W, Cin), lambda n: (n, 0, 0)),
                    pl.BlockSpec((1, Cin), lambda n: (0, 0), **const_kw),
                    pl.BlockSpec((1, Cin), lambda n: (0, 0), **const_kw),
                    pl.BlockSpec((Cin, Cin), lambda n: (0, 0), **const_kw),
                    pl.BlockSpec((9 * Cin, Coutp), lambda n: (0, 0), **const_kw),
                    pl.BlockSpec((1, Coutp), lambda n: (0, 0), **const_kw),
                ],
                out_specs=pl.BlockSpec((1, H * W, Coutp), lambda n: (n, 0, 0)),
                scratch_shapes=[pltpu.VMEM((H + 2, W + 2, Cin), jnp.bfloat16)],
            ),
            compiler_params=_CompilerParams(
                dimension_semantics=("parallel",),
                vmem_limit_bytes=vmem_limit),
        )

    args = (x_cl, gamma2, beta2, gmat, w_col, bias_p)
    try:
        out_cl = jax.block_until_ready(build(True)(*args))
    except Exception:
        # Fallback if this JAX build rejects pipeline_mode / Buffered(1):
        # let the pipeline double-buffer the grid-invariant operands.
        out_cl = jax.block_until_ready(build(False)(*args))

    out = out_cl[..., :Cout].reshape(N, H, W, Cout)
    return jnp.transpose(out, (0, 3, 1, 2))          # back to NCHW


def block_reference(x, gamma, beta, conv_w, conv_b, *, groups=32, eps=1e-5):
    """Pure-JAX reference (NCHW), mirroring PyTorch semantics."""
    N, C, H, W = x.shape
    xg = x.reshape(N, groups, -1)
    mean = jnp.mean(xg, axis=-1, keepdims=True)
    var = jnp.mean((xg - mean) ** 2, axis=-1, keepdims=True)
    xn = ((xg - mean) / jnp.sqrt(var + eps)).reshape(N, C, H, W)
    xn = xn * gamma[None, :, None, None] + beta[None, :, None, None]
    h = xn * jax.nn.sigmoid(xn)
    out = lax.conv_general_dilated(
        h, conv_w, window_strides=(1, 1), padding=((1, 1), (1, 1)),
        dimension_numbers=("NCHW", "OIHW", "NCHW"))
    return out + conv_b[None, :, None, None]


if __name__ == "__main__":
    # Small shapes consistent with the module: groups=32 requires dim % 32 == 0.
    N, DIM, DIM_OUT, H, W, GROUPS = 2, 64, 32, 16, 16, 32

    key = jax.random.PRNGKey(0)
    kx, kw, kb, kg, kbe = jax.random.split(key, 5)

    x = jax.random.normal(kx, (N, DIM, H, W), dtype=jnp.float32)

    # GroupNorm affine params (perturbed from the 1/0 defaults to exercise them).
    gamma = 1.0 + 0.1 * jax.random.normal(kg, (DIM,), dtype=jnp.float32)
    beta = 0.1 * jax.random.normal(kbe, (DIM,), dtype=jnp.float32)

    fan_in = DIM * 3 * 3
    bound = 1.0 / (fan_in ** 0.5)
    conv_w = jax.random.uniform(kw, (DIM_OUT, DIM, 3, 3), jnp.float32,
                                minval=-bound, maxval=bound)
    conv_b = jax.random.uniform(kb, (DIM_OUT,), jnp.float32,
                                minval=-bound, maxval=bound)

    out = block_forward(x, gamma, beta, conv_w, conv_b, groups=GROUPS)
    out = jax.block_until_ready(out)

    ref = jax.block_until_ready(
        block_reference(x, gamma, beta, conv_w, conv_b, groups=GROUPS))

    assert out.shape == (N, DIM_OUT, H, W), out.shape
    # bf16 MXU operands (f32 accumulation) -> loosened tolerance vs f32 reference.
    max_err = float(jnp.max(jnp.abs(out - ref)))
    assert max_err < 5e-2, f"mismatch vs reference: {max_err}"

    print("KERNEL_OK")
</pallas_src>

<mosaic_0001>
module attributes {stable_mosaic.version = 11 : i64} {
  func.func @_block_kernel(%arg0: i32, %arg1: memref<1x256x64xf32, #tpu.memory_space<vmem>>, %arg2: memref<1x64xf32, #tpu.memory_space<vmem>>, %arg3: memref<1x64xf32, #tpu.memory_space<vmem>>, %arg4: memref<64x64xf32, #tpu.memory_space<vmem>>, %arg5: memref<576x128xbf16, #tpu.memory_space<vmem>>, %arg6: memref<1x128xf32, #tpu.memory_space<vmem>>, %arg7: memref<1x256x128xf32, #tpu.memory_space<vmem>>, %arg8: memref<18x18x64xbf16, #tpu.memory_space<vmem>>) attributes {dimension_semantics = [#tpu.dimension_semantics<parallel>], iteration_bounds = array<i64: 2>, scalar_prefetch = 0 : i64, scratch_operands = 1 : i64, tpu.core_type = #tpu.core_type<tc>, window_params = [{transform_indices = @transform_0, window_bounds = array<i64: 1, 256, 64>}, {pipeline_mode = #tpu.pipeline_mode<synchronous>, transform_indices = @transform_1, window_bounds = array<i64: 1, 64>}, {pipeline_mode = #tpu.pipeline_mode<synchronous>, transform_indices = @transform_2, window_bounds = array<i64: 1, 64>}, {pipeline_mode = #tpu.pipeline_mode<synchronous>, transform_indices = @transform_3, window_bounds = array<i64: 64, 64>}, {pipeline_mode = #tpu.pipeline_mode<synchronous>, transform_indices = @transform_4, window_bounds = array<i64: 576, 128>}, {pipeline_mode = #tpu.pipeline_mode<synchronous>, transform_indices = @transform_5, window_bounds = array<i64: 1, 128>}, {transform_indices = @transform_6, window_bounds = array<i64: 1, 256, 128>}]} {
    %c0 = arith.constant 0 : index
    %c0_0 = arith.constant 0 : index
    %c0_1 = arith.constant 0 : index
    %0 = vector.load %arg1[%c0, %c0_0, %c0_1] : memref<1x256x64xf32, #tpu.memory_space<vmem>>, vector<1x256x64xf32>
    %1 = vector.shape_cast %0 : vector<1x256x64xf32> to vector<256x64xf32>
    %cst = arith.constant dense<0.000000e+00> : vector<64xf32>
    %2 = vector.multi_reduction <add>, %1, %cst [0] : vector<256x64xf32> to vector<64xf32>
    %3 = vector.shape_cast %2 : vector<64xf32> to vector<1x64xf32>
    %c0_2 = arith.constant 0 : index
    %c0_3 = arith.constant 0 : index
    %4 = vector.load %arg4[%c0_2, %c0_3] : memref<64x64xf32, #tpu.memory_space<vmem>>, vector<64x64xf32>
    %cst_4 = arith.constant dense<0.000000e+00> : vector<1x64xf32>
    %5 = tpu.matmul %3, %4, %cst_4 {dimension_numbers = #tpu.dot_dimension_numbers<[1], [0], [0], [1], [0, 0, 1, 1], [], []>} : vector<1x64xf32>, vector<64x64xf32>, vector<1x64xf32> -> vector<1x64xf32>
    %6 = vector.broadcast %5 : vector<1x64xf32> to vector<256x64xf32>
    %7 = arith.subf %1, %6 : vector<256x64xf32>
    %8 = arith.mulf %7, %7 : vector<256x64xf32>
    %cst_5 = arith.constant dense<0.000000e+00> : vector<64xf32>
    %9 = vector.multi_reduction <add>, %8, %cst_5 [0] : vector<256x64xf32> to vector<64xf32>
    %10 = vector.shape_cast %9 : vector<64xf32> to vector<1x64xf32>
    %c0_6 = arith.constant 0 : index
    %c0_7 = arith.constant 0 : index
    %11 = vector.load %arg4[%c0_6, %c0_7] : memref<64x64xf32, #tpu.memory_space<vmem>>, vector<64x64xf32>
    %cst_8 = arith.constant dense<0.000000e+00> : vector<1x64xf32>
    %12 = tpu.matmul %10, %11, %cst_8 {dimension_numbers = #tpu.dot_dimension_numbers<[1], [0], [0], [1], [0, 0, 1, 1], [], []>} : vector<1x64xf32>, vector<64x64xf32>, vector<1x64xf32> -> vector<1x64xf32>
    %cst_9 = arith.constant 9.99999974E-6 : f32
    %13 = vector.broadcast %cst_9 : f32 to vector<1x64xf32>
    %14 = arith.addf %12, %13 : vector<1x64xf32>
    %15 = math.rsqrt %14 : vector<1x64xf32>
    %c0_10 = arith.constant 0 : index
    %c0_11 = arith.constant 0 : index
    %16 = vector.load %arg2[%c0_10, %c0_11] : memref<1x64xf32, #tpu.memory_space<vmem>>, vector<1x64xf32>
    %17 = arith.mulf %15, %16 : vector<1x64xf32>
    %18 = vector.broadcast %17 : vector<1x64xf32> to vector<256x64xf32>
    %19 = arith.mulf %7, %18 : vector<256x64xf32>
    %c0_12 = arith.constant 0 : index
    %c0_13 = arith.constant 0 : index
    %20 = vector.load %arg3[%c0_12, %c0_13] : memref<1x64xf32, #tpu.memory_space<vmem>>, vector<1x64xf32>
    %21 = vector.broadcast %20 : vector<1x64xf32> to vector<256x64xf32>
    %22 = arith.addf %19, %21 : vector<256x64xf32>
    %23 = arith.negf %22 : vector<256x64xf32>
    %24 = math.exp %23 : vector<256x64xf32>
    %cst_14 = arith.constant 1.000000e+00 : f32
    %25 = vector.broadcast %cst_14 : f32 to vector<256x64xf32>
    %26 = arith.addf %25, %24 : vector<256x64xf32>
    %27 = arith.divf %25, %26 : vector<256x64xf32>
    %28 = arith.mulf %22, %27 : vector<256x64xf32>
    %29 = arith.truncf %28 : vector<256x64xf32> to vector<256x64xbf16>
    %30 = vector.shape_cast %29 : vector<256x64xbf16> to vector<16x16x64xbf16>
    %cst_15 = arith.constant 0.000000e+00 : bf16
    %31 = vector.broadcast %cst_15 : bf16 to vector<1x18x64xbf16>
    %c0_16 = arith.constant 0 : index
    %c0_17 = arith.constant 0 : index
    %c0_18 = arith.constant 0 : index
    %32 = vector.load %arg8[%c0_16, %c0_17, %c0_18] : memref<18x18x64xbf16, #tpu.memory_space<vmem>>, vector<1x18x64xbf16>
    tpu.vector_store %arg8[%c0_16, %c0_17, %c0_18], %31 {strides = array<i32>} : memref<18x18x64xbf16, #tpu.memory_space<vmem>>, vector<1x18x64xbf16>,
    %cst_19 = arith.constant 0.000000e+00 : bf16
    %33 = vector.broadcast %cst_19 : bf16 to vector<1x18x64xbf16>
    %c17 = arith.constant 17 : index
    %c0_20 = arith.constant 0 : index
    %c0_21 = arith.constant 0 : index
    %34 = vector.load %arg8[%c17, %c0_20, %c0_21] : memref<18x18x64xbf16, #tpu.memory_space<vmem>>, vector<1x18x64xbf16>
    tpu.vector_store %arg8[%c17, %c0_20, %c0_21], %33 {strides = array<i32>} : memref<18x18x64xbf16, #tpu.memory_space<vmem>>, vector<1x18x64xbf16>,
    %cst_22 = arith.constant 0.000000e+00 : bf16
    %35 = vector.broadcast %cst_22 : bf16 to vector<16x1x64xbf16>
    %c1 = arith.constant 1 : index
    %c0_23 = arith.constant 0 : index
    %c0_24 = arith.constant 0 : index
    %36 = vector.load %arg8[%c1, %c0_23, %c0_24] : memref<18x18x64xbf16, #tpu.memory_space<vmem>>, vector<16x1x64xbf16>
    tpu.vector_store %arg8[%c1, %c0_23, %c0_24], %35 {strides = array<i32>} : memref<18x18x64xbf16, #tpu.memory_space<vmem>>, vector<16x1x64xbf16>,
    %cst_25 = arith.constant 0.000000e+00 : bf16
    %37 = vector.broadcast %cst_25 : bf16 to vector<16x1x64xbf16>
    %c1_26 = arith.constant 1 : index
    %c17_27 = arith.constant 17 : index
    %c0_28 = arith.constant 0 : index
    %38 = vector.load %arg8[%c1_26, %c17_27, %c0_28] : memref<18x18x64xbf16, #tpu.memory_space<vmem>>, vector<16x1x64xbf16>
    tpu.vector_store %arg8[%c1_26, %c17_27, %c0_28], %37 {strides = array<i32>} : memref<18x18x64xbf16, #tpu.memory_space<vmem>>, vector<16x1x64xbf16>,
    %c1_29 = arith.constant 1 : index
    %c1_30 = arith.constant 1 : index
    %c0_31 = arith.constant 0 : index
    %39 = vector.load %arg8[%c1_29, %c1_30, %c0_31] : memref<18x18x64xbf16, #tpu.memory_space<vmem>>, vector<16x16x64xbf16>
    tpu.vector_store %arg8[%c1_29, %c1_30, %c0_31], %30 {strides = array<i32>} : memref<18x18x64xbf16, #tpu.memory_space<vmem>>, vector<16x16x64xbf16>,
    %cst_32 = arith.constant 0.000000e+00 : f32
    %40 = vector.broadcast %cst_32 : f32 to vector<256x128xf32>
    %c0_33 = arith.constant 0 : index
    %c0_34 = arith.constant 0 : index
    %c0_35 = arith.constant 0 : index
    %41 = vector.load %arg8[%c0_33, %c0_34, %c0_35] : memref<18x18x64xbf16, #tpu.memory_space<vmem>>, vector<16x16x64xbf16>
    %42 = vector.shape_cast %41 : vector<16x16x64xbf16> to vector<256x64xbf16>
    %c0_36 = arith.constant 0 : index
    %c0_37 = arith.constant 0 : index
    %43 = vector.load %arg5[%c0_36, %c0_37] : memref<576x128xbf16, #tpu.memory_space<vmem>>, vector<64x128xbf16>
    %cst_38 = arith.constant dense<0.000000e+00> : vector<256x128xf32>
    %44 = tpu.matmul %42, %43, %cst_38 {dimension_numbers = #tpu.dot_dimension_numbers<[1], [0], [0], [1], [0, 0, 1, 1], [], []>} : vector<256x64xbf16>, vector<64x128xbf16>, vector<256x128xf32> -> vector<256x128xf32>
    %45 = arith.addf %40, %44 : vector<256x128xf32>
    %c0_39 = arith.constant 0 : index
    %c1_40 = arith.constant 1 : index
    %c0_41 = arith.constant 0 : index
    %46 = vector.load %arg8[%c0_39, %c1_40, %c0_41] : memref<18x18x64xbf16, #tpu.memory_space<vmem>>, vector<16x16x64xbf16>
    %47 = vector.shape_cast %46 : vector<16x16x64xbf16> to vector<256x64xbf16>
    %c64 = arith.constant 64 : index
    %c0_42 = arith.constant 0 : index
    %48 = vector.load %arg5[%c64, %c0_42] : memref<576x128xbf16, #tpu.memory_space<vmem>>, vector<64x128xbf16>
    %cst_43 = arith.constant dense<0.000000e+00> : vector<256x128xf32>
    %49 = tpu.matmul %47, %48, %cst_43 {dimension_numbers = #tpu.dot_dimension_numbers<[1], [0], [0], [1], [0, 0, 1, 1], [], []>} : vector<256x64xbf16>, vector<64x128xbf16>, vector<256x128xf32> -> vector<256x128xf32>
    %50 = arith.addf %45, %49 : vector<256x128xf32>
    %c0_44 = arith.constant 0 : index
    %c2 = arith.constant 2 : index
    %c0_45 = arith.constant 0 : index
    %51 = vector.load %arg8[%c0_44, %c2, %c0_45] : memref<18x18x64xbf16, #tpu.memory_space<vmem>>, vector<16x16x64xbf16>
    %52 = vector.shape_cast %51 : vector<16x16x64xbf16> to vector<256x64xbf16>
    %c128 = arith.constant 128 : index
    %c0_46 = arith.constant 0 : index
    %53 = vector.load %arg5[%c128, %c0_46] : memref<576x128xbf16, #tpu.memory_space<vmem>>, vector<64x128xbf16>
    %cst_47 = arith.constant dense<0.000000e+00> : vector<256x128xf32>
    %54 = tpu.matmul %52, %53, %cst_47 {dimension_numbers = #tpu.dot_dimension_numbers<[1], [0], [0], [1], [0, 0, 1, 1], [], []>} : vector<256x64xbf16>, vector<64x128xbf16>, vector<256x128xf32> -> vector<256x128xf32>
    %55 = arith.addf %50, %54 : vector<256x128xf32>
    %c1_48 = arith.constant 1 : index
    %c0_49 = arith.constant 0 : index
    %c0_50 = arith.constant 0 : index
    %56 = vector.load %arg8[%c1_48, %c0_49, %c0_50] : memref<18x18x64xbf16, #tpu.memory_space<vmem>>, vector<16x16x64xbf16>
    %57 = vector.shape_cast %56 : vector<16x16x64xbf16> to vector<256x64xbf16>
    %c192 = arith.constant 192 : index
    %c0_51 = arith.constant 0 : index
    %58 = vector.load %arg5[%c192, %c0_51] : memref<576x128xbf16, #tpu.memory_space<vmem>>, vector<64x128xbf16>
    %cst_52 = arith.constant dense<0.000000e+00> : vector<256x128xf32>
    %59 = tpu.matmul %57, %58, %cst_52 {dimension_numbers = #tpu.dot_dimension_numbers<[1], [0], [0], [1], [0, 0, 1, 1], [], []>} : vector<256x64xbf16>, vector<64x128xbf16>, vector<256x128xf32> -> vector<256x128xf32>
    %60 = arith.addf %55, %59 : vector<256x128xf32>
    %c1_53 = arith.constant 1 : index
    %c1_54 = arith.constant 1 : index
    %c0_55 = arith.constant 0 : index
    %61 = vector.load %arg8[%c1_53, %c1_54, %c0_55] : memref<18x18x64xbf16, #tpu.memory_space<vmem>>, vector<16x16x64xbf16>
    %62 = vector.shape_cast %61 : vector<16x16x64xbf16> to vector<256x64xbf16>
    %c256 = arith.constant 256 : index
    %c0_56 = arith.constant 0 : index
    %63 = vector.load %arg5[%c256, %c0_56] : memref<576x128xbf16, #tpu.memory_space<vmem>>, vector<64x128xbf16>
    %cst_57 = arith.constant dense<0.000000e+00> : vector<256x128xf32>
    %64 = tpu.matmul %62, %63, %cst_57 {dimension_numbers = #tpu.dot_dimension_numbers<[1], [0], [0], [1], [0, 0, 1, 1], [], []>} : vector<256x64xbf16>, vector<64x128xbf16>, vector<256x128xf32> -> vector<256x128xf32>
    %65 = arith.addf %60, %64 : vector<256x128xf32>
    %c1_58 = arith.constant 1 : index
    %c2_59 = arith.constant 2 : index
    %c0_60 = arith.constant 0 : index
    %66 = vector.load %arg8[%c1_58, %c2_59, %c0_60] : memref<18x18x64xbf16, #tpu.memory_space<vmem>>, vector<16x16x64xbf16>
    %67 = vector.shape_cast %66 : vector<16x16x64xbf16> to vector<256x64xbf16>
    %c320 = arith.constant 320 : index
    %c0_61 = arith.constant 0 : index
    %68 = vector.load %arg5[%c320, %c0_61] : memref<576x128xbf16, #tpu.memory_space<vmem>>, vector<64x128xbf16>
    %cst_62 = arith.constant dense<0.000000e+00> : vector<256x128xf32>
    %69 = tpu.matmul %67, %68, %cst_62 {dimension_numbers = #tpu.dot_dimension_numbers<[1], [0], [0], [1], [0, 0, 1, 1], [], []>} : vector<256x64xbf16>, vector<64x128xbf16>, vector<256x128xf32> -> vector<256x128xf32>
    %70 = arith.addf %65, %69 : vector<256x128xf32>
    %c2_63 = arith.constant 2 : index
    %c0_64 = arith.constant 0 : index
    %c0_65 = arith.constant 0 : index
    %71 = vector.load %arg8[%c2_63, %c0_64, %c0_65] : memref<18x18x64xbf16, #tpu.memory_space<vmem>>, vector<16x16x64xbf16>
    %72 = vector.shape_cast %71 : vector<16x16x64xbf16> to vector<256x64xbf16>
    %c384 = arith.constant 384 : index
    %c0_66 = arith.constant 0 : index
    %73 = vector.load %arg5[%c384, %c0_66] : memref<576x128xbf16, #tpu.memory_space<vmem>>, vector<64x128xbf16>
    %cst_67 = arith.constant dense<0.000000e+00> : vector<256x128xf32>
    %74 = tpu.matmul %72, %73, %cst_67 {dimension_numbers = #tpu.dot_dimension_numbers<[1], [0], [0], [1], [0, 0, 1, 1], [], []>} : vector<256x64xbf16>, vector<64x128xbf16>, vector<256x128xf32> -> vector<256x128xf32>
    %75 = arith.addf %70, %74 : vector<256x128xf32>
    %c2_68 = arith.constant 2 : index
    %c1_69 = arith.constant 1 : index
    %c0_70 = arith.constant 0 : index
    %76 = vector.load %arg8[%c2_68, %c1_69, %c0_70] : memref<18x18x64xbf16, #tpu.memory_space<vmem>>, vector<16x16x64xbf16>
    %77 = vector.shape_cast %76 : vector<16x16x64xbf16> to vector<256x64xbf16>
    %c448 = arith.constant 448 : index
    %c0_71 = arith.constant 0 : index
    %78 = vector.load %arg5[%c448, %c0_71] : memref<576x128xbf16, #tpu.memory_space<vmem>>, vector<64x128xbf16>
    %cst_72 = arith.constant dense<0.000000e+00> : vector<256x128xf32>
    %79 = tpu.matmul %77, %78, %cst_72 {dimension_numbers = #tpu.dot_dimension_numbers<[1], [0], [0], [1], [0, 0, 1, 1], [], []>} : vector<256x64xbf16>, vector<64x128xbf16>, vector<256x128xf32> -> vector<256x128xf32>
    %80 = arith.addf %75, %79 : vector<256x128xf32>
    %c2_73 = arith.constant 2 : index
    %c2_74 = arith.constant 2 : index
    %c0_75 = arith.constant 0 : index
    %81 = vector.load %arg8[%c2_73, %c2_74, %c0_75] : memref<18x18x64xbf16, #tpu.memory_space<vmem>>, vector<16x16x64xbf16>
    %82 = vector.shape_cast %81 : vector<16x16x64xbf16> to vector<256x64xbf16>
    %c512 = arith.constant 512 : index
    %c0_76 = arith.constant 0 : index
    %83 = vector.load %arg5[%c512, %c0_76] : memref<576x128xbf16, #tpu.memory_space<vmem>>, vector<64x128xbf16>
    %cst_77 = arith.constant dense<0.000000e+00> : vector<256x128xf32>
    %84 = tpu.matmul %82, %83, %cst_77 {dimension_numbers = #tpu.dot_dimension_numbers<[1], [0], [0], [1], [0, 0, 1, 1], [], []>} : vector<256x64xbf16>, vector<64x128xbf16>, vector<256x128xf32> -> vector<256x128xf32>
    %85 = arith.addf %80, %84 : vector<256x128xf32>
    %c0_78 = arith.constant 0 : index
    %c0_79 = arith.constant 0 : index
    %86 = vector.load %arg6[%c0_78, %c0_79] : memref<1x128xf32, #tpu.memory_space<vmem>>, vector<1x128xf32>
    %87 = vector.broadcast %86 : vector<1x128xf32> to vector<256x128xf32>
    %88 = arith.addf %85, %87 : vector<256x128xf32>
    %c0_80 = arith.constant 0 : index
    %c0_81 = arith.constant 0 : index
    %c0_82 = arith.constant 0 : index
    %89 = vector.load %arg7[%c0_80, %c0_81, %c0_82] : memref<1x256x128xf32, #tpu.memory_space<vmem>>, vector<1x256x128xf32>
    %90 = vector.shape_cast %89 : vector<1x256x128xf32> to vector<256x128xf32>
    %91 = vector.shape_cast %88 : vector<256x128xf32> to vector<1x256x128xf32>
    tpu.vector_store %arg7[%c0_80, %c0_81, %c0_82], %91 {strides = array<i32>} : memref<1x256x128xf32, #tpu.memory_space<vmem>>, vector<1x256x128xf32>,
    return
  }
  func.func @transform_0(%arg0: i32) -> (i32, i32, i32) {
    %c0_i32 = arith.constant 0 : i32
    %c0_i32_0 = arith.constant 0 : i32
    %c0_i32_1 = arith.constant 0 : i32
    return %arg0, %c0_i32, %c0_i32_0 : i32, i32, i32
  }
  func.func @transform_1(%arg0: i32) -> (i32, i32) {
    %c0_i32 = arith.constant 0 : i32
    %c0_i32_0 = arith.constant 0 : i32
    %c0_i32_1 = arith.constant 0 : i32
    return %c0_i32, %c0_i32_0 : i32, i32
  }
  func.func @transform_2(%arg0: i32) -> (i32, i32) {
    %c0_i32 = arith.constant 0 : i32
    %c0_i32_0 = arith.constant 0 : i32
    %c0_i32_1 = arith.constant 0 : i32
    return %c0_i32, %c0_i32_0 : i32, i32
  }
  func.func @transform_3(%arg0: i32) -> (i32, i32) {
    %c0_i32 = arith.constant 0 : i32
    %c0_i32_0 = arith.constant 0 : i32
    %c0_i32_1 = arith.constant 0 : i32
    return %c0_i32, %c0_i32_0 : i32, i32
  }
  func.func @transform_4(%arg0: i32) -> (i32, i32) {
    %c0_i32 = arith.constant 0 : i32
    %c0_i32_0 = arith.constant 0 : i32
    %c0_i32_1 = arith.constant 0 : i32
    return %c0_i32, %c0_i32_0 : i32, i32
  }
  func.func @transform_5(%arg0: i32) -> (i32, i32) {
    %c0_i32 = arith.constant 0 : i32
    %c0_i32_0 = arith.constant 0 : i32
    %c0_i32_1 = arith.constant 0 : i32
    return %c0_i32, %c0_i32_0 : i32, i32
  }
  func.func @transform_6(%arg0: i32) -> (i32, i32, i32) {
    %c0_i32 = arith.constant 0 : i32
    %c0_i32_0 = arith.constant 0 : i32
    %c0_i32_1 = arith.constant 0 : i32
    return %arg0, %c0_i32, %c0_i32_0 : i32, i32, i32
  }
}

module attributes {stable_mosaic.version = 11 : i64} {
  func.func @_block_kernel(%arg0: i32, %arg1: memref<1x256x64xf32, #tpu.memory_space<vmem>>, %arg2: memref<1x64xf32, #tpu.memory_space<vmem>>, %arg3: memref<1x64xf32, #tpu.memory_space<vmem>>, %arg4: memref<64x64xf32, #tpu.memory_space<vmem>>, %arg5: memref<576x128xbf16, #tpu.memory_space<vmem>>, %arg6: memref<1x128xf32, #tpu.memory_space<vmem>>, %arg7: memref<1x256x128xf32, #tpu.memory_space<vmem>>, %arg8: memref<18x18x64xbf16, #tpu.memory_space<vmem>>) attributes {dimension_semantics = [#tpu.dimension_semantics<parallel>], iteration_bounds = array<i64: 2>, scalar_prefetch = 0 : i64, scratch_operands = 1 : i64, tpu.core_type = #tpu.core_type<tc>, window_params = [{transform_indices = @transform_0, window_bounds = array<i64: 1, 256, 64>}, {pipeline_mode = #tpu.pipeline_mode<synchronous>, transform_indices = @transform_1, window_bounds = array<i64: 1, 64>}, {pipeline_mode = #tpu.pipeline_mode<synchronous>, transform_indices = @transform_2, window_bounds = array<i64: 1, 64>}, {pipeline_mode = #tpu.pipeline_mode<synchronous>, transform_indices = @transform_3, window_bounds = array<i64: 64, 64>}, {pipeline_mode = #tpu.pipeline_mode<synchronous>, transform_indices = @transform_4, window_bounds = array<i64: 576, 128>}, {pipeline_mode = #tpu.pipeline_mode<synchronous>, transform_indices = @transform_5, window_bounds = array<i64: 1, 128>}, {transform_indices = @transform_6, window_bounds = array<i64: 1, 256, 128>}]} {
    %c0 = arith.constant 0 : index
    %c0_0 = arith.constant 0 : index
    %c0_1 = arith.constant 0 : index
    %0 = vector.load %arg1[%c0, %c0_0, %c0_1] : memref<1x256x64xf32, #tpu.memory_space<vmem>>, vector<1x256x64xf32>
    %1 = vector.shape_cast %0 : vector<1x256x64xf32> to vector<256x64xf32>
    %cst = arith.constant dense<0.000000e+00> : vector<64xf32>
    %2 = vector.multi_reduction <add>, %1, %cst [0] : vector<256x64xf32> to vector<64xf32>
    %3 = vector.shape_cast %2 : vector<64xf32> to vector<1x64xf32>
    %c0_2 = arith.constant 0 : index
    %c0_3 = arith.constant 0 : index
    %4 = vector.load %arg4[%c0_2, %c0_3] : memref<64x64xf32, #tpu.memory_space<vmem>>, vector<64x64xf32>
    %cst_4 = arith.constant dense<0.000000e+00> : vector<1x64xf32>
    %5 = tpu.matmul %3, %4, %cst_4 {dimension_numbers = #tpu.dot_dimension_numbers<[1], [0], [0], [1], [0, 0, 1, 1], [], []>} : vector<1x64xf32>, vector<64x64xf32>, vector<1x64xf32> -> vector<1x64xf32>
    %6 = vector.broadcast %5 : vector<1x64xf32> to vector<256x64xf32>
    %7 = arith.subf %1, %6 : vector<256x64xf32>
    %8 = arith.mulf %7, %7 : vector<256x64xf32>
    %cst_5 = arith.constant dense<0.000000e+00> : vector<64xf32>
    %9 = vector.multi_reduction <add>, %8, %cst_5 [0] : vector<256x64xf32> to vector<64xf32>
    %10 = vector.shape_cast %9 : vector<64xf32> to vector<1x64xf32>
    %c0_6 = arith.constant 0 : index
    %c0_7 = arith.constant 0 : index
    %11 = vector.load %arg4[%c0_6, %c0_7] : memref<64x64xf32, #tpu.memory_space<vmem>>, vector<64x64xf32>
    %cst_8 = arith.constant dense<0.000000e+00> : vector<1x64xf32>
    %12 = tpu.matmul %10, %11, %cst_8 {dimension_numbers = #tpu.dot_dimension_numbers<[1], [0], [0], [1], [0, 0, 1, 1], [], []>} : vector<1x64xf32>, vector<64x64xf32>, vector<1x64xf32> -> vector<1x64xf32>
    %cst_9 = arith.constant 9.99999974E-6 : f32
    %13 = vector.broadcast %cst_9 : f32 to vector<1x64xf32>
    %14 = arith.addf %12, %13 : vector<1x64xf32>
    %15 = math.rsqrt %14 : vector<1x64xf32>
    %c0_10 = arith.constant 0 : index
    %c0_11 = arith.constant 0 : index
    %16 = vector.load %arg2[%c0_10, %c0_11] : memref<1x64xf32, #tpu.memory_space<vmem>>, vector<1x64xf32>
    %17 = arith.mulf %15, %16 : vector<1x64xf32>
    %18 = vector.broadcast %17 : vector<1x64xf32> to vector<256x64xf32>
    %19 = arith.mulf %7, %18 : vector<256x64xf32>
    %c0_12 = arith.constant 0 : index
    %c0_13 = arith.constant 0 : index
    %20 = vector.load %arg3[%c0_12, %c0_13] : memref<1x64xf32, #tpu.memory_space<vmem>>, vector<1x64xf32>
    %21 = vector.broadcast %20 : vector<1x64xf32> to vector<256x64xf32>
    %22 = arith.addf %19, %21 : vector<256x64xf32>
    %23 = arith.negf %22 : vector<256x64xf32>
    %24 = math.exp %23 : vector<256x64xf32>
    %cst_14 = arith.constant 1.000000e+00 : f32
    %25 = vector.broadcast %cst_14 : f32 to vector<256x64xf32>
    %26 = arith.addf %25, %24 : vector<256x64xf32>
    %27 = arith.divf %25, %26 : vector<256x64xf32>
    %28 = arith.mulf %22, %27 : vector<256x64xf32>
    %29 = arith.truncf %28 : vector<256x64xf32> to vector<256x64xbf16>
    %30 = vector.shape_cast %29 : vector<256x64xbf16> to vector<16x16x64xbf16>
    %cst_15 = arith.constant 0.000000e+00 : bf16
    %31 = vector.broadcast %cst_15 : bf16 to vector<1x18x64xbf16>
    %c0_16 = arith.constant 0 : index
    %c0_17 = arith.constant 0 : index
    %c0_18 = arith.constant 0 : index
    %32 = vector.load %arg8[%c0_16, %c0_17, %c0_18] : memref<18x18x64xbf16, #tpu.memory_space<vmem>>, vector<1x18x64xbf16>
    tpu.vector_store %arg8[%c0_16, %c0_17, %c0_18], %31 {strides = array<i32>} : memref<18x18x64xbf16, #tpu.memory_space<vmem>>, vector<1x18x64xbf16>,
    %cst_19 = arith.constant 0.000000e+00 : bf16
    %33 = vector.broadcast %cst_19 : bf16 to vector<1x18x64xbf16>
    %c17 = arith.constant 17 : index
    %c0_20 = arith.constant 0 : index
    %c0_21 = arith.constant 0 : index
    %34 = vector.load %arg8[%c17, %c0_20, %c0_21] : memref<18x18x64xbf16, #tpu.memory_space<vmem>>, vector<1x18x64xbf16>
    tpu.vector_store %arg8[%c17, %c0_20, %c0_21], %33 {strides = array<i32>} : memref<18x18x64xbf16, #tpu.memory_space<vmem>>, vector<1x18x64xbf16>,
    %cst_22 = arith.constant 0.000000e+00 : bf16
    %35 = vector.broadcast %cst_22 : bf16 to vector<16x1x64xbf16>
    %c1 = arith.constant 1 : index
    %c0_23 = arith.constant 0 : index
    %c0_24 = arith.constant 0 : index
    %36 = vector.load %arg8[%c1, %c0_23, %c0_24] : memref<18x18x64xbf16, #tpu.memory_space<vmem>>, vector<16x1x64xbf16>
    tpu.vector_store %arg8[%c1, %c0_23, %c0_24], %35 {strides = array<i32>} : memref<18x18x64xbf16, #tpu.memory_space<vmem>>, vector<16x1x64xbf16>,
    %cst_25 = arith.constant 0.000000e+00 : bf16
    %37 = vector.broadcast %cst_25 : bf16 to vector<16x1x64xbf16>
    %c1_26 = arith.constant 1 : index
    %c17_27 = arith.constant 17 : index
    %c0_28 = arith.constant 0 : index
    %38 = vector.load %arg8[%c1_26, %c17_27, %c0_28] : memref<18x18x64xbf16, #tpu.memory_space<vmem>>, vector<16x1x64xbf16>
    tpu.vector_store %arg8[%c1_26, %c17_27, %c0_28], %37 {strides = array<i32>} : memref<18x18x64xbf16, #tpu.memory_space<vmem>>, vector<16x1x64xbf16>,
    %c1_29 = arith.constant 1 : index
    %c1_30 = arith.constant 1 : index
    %c0_31 = arith.constant 0 : index
    %39 = vector.load %arg8[%c1_29, %c1_30, %c0_31] : memref<18x18x64xbf16, #tpu.memory_space<vmem>>, vector<16x16x64xbf16>
    tpu.vector_store %arg8[%c1_29, %c1_30, %c0_31], %30 {strides = array<i32>} : memref<18x18x64xbf16, #tpu.memory_space<vmem>>, vector<16x16x64xbf16>,
    %cst_32 = arith.constant 0.000000e+00 : f32
    %40 = vector.broadcast %cst_32 : f32 to vector<256x128xf32>
    %c0_33 = arith.constant 0 : index
    %c0_34 = arith.constant 0 : index
    %c0_35 = arith.constant 0 : index
    %41 = vector.load %arg8[%c0_33, %c0_34, %c0_35] : memref<18x18x64xbf16, #tpu.memory_space<vmem>>, vector<16x16x64xbf16>
    %42 = vector.shape_cast %41 : vector<16x16x64xbf16> to vector<256x64xbf16>
    %c0_36 = arith.constant 0 : index
    %c0_37 = arith.constant 0 : index
    %43 = vector.load %arg5[%c0_36, %c0_37] : memref<576x128xbf16, #tpu.memory_space<vmem>>, vector<64x128xbf16>
    %cst_38 = arith.constant dense<0.000000e+00> : vector<256x128xf32>
    %44 = tpu.matmul %42, %43, %cst_38 {dimension_numbers = #tpu.dot_dimension_numbers<[1], [0], [0], [1], [0, 0, 1, 1], [], []>} : vector<256x64xbf16>, vector<64x128xbf16>, vector<256x128xf32> -> vector<256x128xf32>
    %45 = arith.addf %40, %44 : vector<256x128xf32>
    %c0_39 = arith.constant 0 : index
    %c1_40 = arith.constant 1 : index
    %c0_41 = arith.constant 0 : index
    %46 = vector.load %arg8[%c0_39, %c1_40, %c0_41] : memref<18x18x64xbf16, #tpu.memory_space<vmem>>, vector<16x16x64xbf16>
    %47 = vector.shape_cast %46 : vector<16x16x64xbf16> to vector<256x64xbf16>
    %c64 = arith.constant 64 : index
    %c0_42 = arith.constant 0 : index
    %48 = vector.load %arg5[%c64, %c0_42] : memref<576x128xbf16, #tpu.memory_space<vmem>>, vector<64x128xbf16>
    %cst_43 = arith.constant dense<0.000000e+00> : vector<256x128xf32>
    %49 = tpu.matmul %47, %48, %cst_43 {dimension_numbers = #tpu.dot_dimension_numbers<[1], [0], [0], [1], [0, 0, 1, 1], [], []>} : vector<256x64xbf16>, vector<64x128xbf16>, vector<256x128xf32> -> vector<256x128xf32>
    %50 = arith.addf %45, %49 : vector<256x128xf32>
    %c0_44 = arith.constant 0 : index
    %c2 = arith.constant 2 : index
    %c0_45 = arith.constant 0 : index
    %51 = vector.load %arg8[%c0_44, %c2, %c0_45] : memref<18x18x64xbf16, #tpu.memory_space<vmem>>, vector<16x16x64xbf16>
    %52 = vector.shape_cast %51 : vector<16x16x64xbf16> to vector<256x64xbf16>
    %c128 = arith.constant 128 : index
    %c0_46 = arith.constant 0 : index
    %53 = vector.load %arg5[%c128, %c0_46] : memref<576x128xbf16, #tpu.memory_space<vmem>>, vector<64x128xbf16>
    %cst_47 = arith.constant dense<0.000000e+00> : vector<256x128xf32>
    %54 = tpu.matmul %52, %53, %cst_47 {dimension_numbers = #tpu.dot_dimension_numbers<[1], [0], [0], [1], [0, 0, 1, 1], [], []>} : vector<256x64xbf16>, vector<64x128xbf16>, vector<256x128xf32> -> vector<256x128xf32>
    %55 = arith.addf %50, %54 : vector<256x128xf32>
    %c1_48 = arith.constant 1 : index
    %c0_49 = arith.constant 0 : index
    %c0_50 = arith.constant 0 : index
    %56 = vector.load %arg8[%c1_48, %c0_49, %c0_50] : memref<18x18x64xbf16, #tpu.memory_space<vmem>>, vector<16x16x64xbf16>
    %57 = vector.shape_cast %56 : vector<16x16x64xbf16> to vector<256x64xbf16>
    %c192 = arith.constant 192 : index
    %c0_51 = arith.constant 0 : index
    %58 = vector.load %arg5[%c192, %c0_51] : memref<576x128xbf16, #tpu.memory_space<vmem>>, vector<64x128xbf16>
    %cst_52 = arith.constant dense<0.000000e+00> : vector<256x128xf32>
    %59 = tpu.matmul %57, %58, %cst_52 {dimension_numbers = #tpu.dot_dimension_numbers<[1], [0], [0], [1], [0, 0, 1, 1], [], []>} : vector<256x64xbf16>, vector<64x128xbf16>, vector<256x128xf32> -> vector<256x128xf32>
    %60 = arith.addf %55, %59 : vector<256x128xf32>
    %c1_53 = arith.constant 1 : index
    %c1_54 = arith.constant 1 : index
    %c0_55 = arith.constant 0 : index
    %61 = vector.load %arg8[%c1_53, %c1_54, %c0_55] : memref<18x18x64xbf16, #tpu.memory_space<vmem>>, vector<16x16x64xbf16>
    %62 = vector.shape_cast %61 : vector<16x16x64xbf16> to vector<256x64xbf16>
    %c256 = arith.constant 256 : index
    %c0_56 = arith.constant 0 : index
    %63 = vector.load %arg5[%c256, %c0_56] : memref<576x128xbf16, #tpu.memory_space<vmem>>, vector<64x128xbf16>
    %cst_57 = arith.constant dense<0.000000e+00> : vector<256x128xf32>
    %64 = tpu.matmul %62, %63, %cst_57 {dimension_numbers = #tpu.dot_dimension_numbers<[1], [0], [0], [1], [0, 0, 1, 1], [], []>} : vector<256x64xbf16>, vector<64x128xbf16>, vector<256x128xf32> -> vector<256x128xf32>
    %65 = arith.addf %60, %64 : vector<256x128xf32>
    %c1_58 = arith.constant 1 : index
    %c2_59 = arith.constant 2 : index
    %c0_60 = arith.constant 0 : index
    %66 = vector.load %arg8[%c1_58, %c2_59, %c0_60] : memref<18x18x64xbf16, #tpu.memory_space<vmem>>, vector<16x16x64xbf16>
    %67 = vector.shape_cast %66 : vector<16x16x64xbf16> to vector<256x64xbf16>
    %c320 = arith.constant 320 : index
    %c0_61 = arith.constant 0 : index
    %68 = vector.load %arg5[%c320, %c0_61] : memref<576x128xbf16, #tpu.memory_space<vmem>>, vector<64x128xbf16>
    %cst_62 = arith.constant dense<0.000000e+00> : vector<256x128xf32>
    %69 = tpu.matmul %67, %68, %cst_62 {dimension_numbers = #tpu.dot_dimension_numbers<[1], [0], [0], [1], [0, 0, 1, 1], [], []>} : vector<256x64xbf16>, vector<64x128xbf16>, vector<256x128xf32> -> vector<256x128xf32>
    %70 = arith.addf %65, %69 : vector<256x128xf32>
    %c2_63 = arith.constant 2 : index
    %c0_64 = arith.constant 0 : index
    %c0_65 = arith.constant 0 : index
    %71 = vector.load %arg8[%c2_63, %c0_64, %c0_65] : memref<18x18x64xbf16, #tpu.memory_space<vmem>>, vector<16x16x64xbf16>
    %72 = vector.shape_cast %71 : vector<16x16x64xbf16> to vector<256x64xbf16>
    %c384 = arith.constant 384 : index
    %c0_66 = arith.constant 0 : index
    %73 = vector.load %arg5[%c384, %c0_66] : memref<576x128xbf16, #tpu.memory_space<vmem>>, vector<64x128xbf16>
    %cst_67 = arith.constant dense<0.000000e+00> : vector<256x128xf32>
    %74 = tpu.matmul %72, %73, %cst_67 {dimension_numbers = #tpu.dot_dimension_numbers<[1], [0], [0], [1], [0, 0, 1, 1], [], []>} : vector<256x64xbf16>, vector<64x128xbf16>, vector<256x128xf32> -> vector<256x128xf32>
    %75 = arith.addf %70, %74 : vector<256x128xf32>
    %c2_68 = arith.constant 2 : index
    %c1_69 = arith.constant 1 : index
    %c0_70 = arith.constant 0 : index
    %76 = vector.load %arg8[%c2_68, %c1_69, %c0_70] : memref<18x18x64xbf16, #tpu.memory_space<vmem>>, vector<16x16x64xbf16>
    %77 = vector.shape_cast %76 : vector<16x16x64xbf16> to vector<256x64xbf16>
    %c448 = arith.constant 448 : index
    %c0_71 = arith.constant 0 : index
    %78 = vector.load %arg5[%c448, %c0_71] : memref<576x128xbf16, #tpu.memory_space<vmem>>, vector<64x128xbf16>
    %cst_72 = arith.constant dense<0.000000e+00> : vector<256x128xf32>
    %79 = tpu.matmul %77, %78, %cst_72 {dimension_numbers = #tpu.dot_dimension_numbers<[1], [0], [0], [1], [0, 0, 1, 1], [], []>} : vector<256x64xbf16>, vector<64x128xbf16>, vector<256x128xf32> -> vector<256x128xf32>
    %80 = arith.addf %75, %79 : vector<256x128xf32>
    %c2_73 = arith.constant 2 : index
    %c2_74 = arith.constant 2 : index
    %c0_75 = arith.constant 0 : index
    %81 = vector.load %arg8[%c2_73, %c2_74, %c0_75] : memref<18x18x64xbf16, #tpu.memory_space<vmem>>, vector<16x16x64xbf16>
    %82 = vector.shape_cast %81 : vector<16x16x64xbf16> to vector<256x64xbf16>
    %c512 = arith.constant 512 : index
    %c0_76 = arith.constant 0 : index
    %83 = vector.load %arg5[%c512, %c0_76] : memref<576x128xbf16, #tpu.memory_space<vmem>>, vector<64x128xbf16>
    %cst_77 = arith.constant dense<0.000000e+00> : vector<256x128xf32>
    %84 = tpu.matmul %82, %83, %cst_77 {dimension_numbers = #tpu.dot_dimension_numbers<[1], [0], [0], [1], [0, 0, 1, 1], [], []>} : vector<256x64xbf16>, vector<64x128xbf16>, vector<256x128xf32> -> vector<256x128xf32>
    %85 = arith.addf %80, %84 : vector<256x128xf32>
    %c0_78 = arith.constant 0 : index
    %c0_79 = arith.constant 0 : index
    %86 = vector.load %arg6[%c0_78, %c0_79] : memref<1x128xf32, #tpu.memory_space<vmem>>, vector<1x128xf32>
    %87 = vector.broadcast %86 : vector<1x128xf32> to vector<256x128xf32>
    %88 = arith.addf %85, %87 : vector<256x128xf32>
    %c0_80 = arith.constant 0 : index
    %c0_81 = arith.constant 0 : index
    %c0_82 = arith.constant 0 : index
    %89 = vector.load %arg7[%c0_80, %c0_81, %c0_82] : memref<1x256x128xf32, #tpu.memory_space<vmem>>, vector<1x256x128xf32>
    %90 = vector.shape_cast %89 : vector<1x256x128xf32> to vector<256x128xf32>
    %91 = vector.shape_cast %88 : vector<256x128xf32> to vector<1x256x128xf32>
    tpu.vector_store %arg7[%c0_80, %c0_81, %c0_82], %91 {strides = array<i32>} : memref<1x256x128xf32, #tpu.memory_space<vmem>>, vector<1x256x128xf32>,
    return
  }
  func.func @transform_0(%arg0: i32) -> (i32, i32, i32) {
    %c0_i32 = arith.constant 0 : i32
    %c0_i32_0 = arith.constant 0 : i32
    %c0_i32_1 = arith.constant 0 : i32
    return %arg0, %c0_i32, %c0_i32_0 : i32, i32, i32
  }
  func.func @transform_1(%arg0: i32) -> (i32, i32) {
    %c0_i32 = arith.constant 0 : i32
    %c0_i32_0 = arith.constant 0 : i32
    %c0_i32_1 = arith.constant 0 : i32
    return %c0_i32, %c0_i32_0 : i32, i32
  }
  func.func @transform_2(%arg0: i32) -> (i32, i32) {
    %c0_i32 = arith.constant 0 : i32
    %c0_i32_0 = arith.constant 0 : i32
    %c0_i32_1 = arith.constant 0 : i32
    return %c0_i32, %c0_i32_0 : i32, i32
  }
  func.func @transform_3(%arg0: i32) -> (i32, i32) {
    %c0_i32 = arith.constant 0 : i32
    %c0_i32_0 = arith.constant 0 : i32
    %c0_i32_1 = arith.constant 0 : i32
    return %c0_i32, %c0_i32_0 : i32, i32
  }
  func.func @transform_4(%arg0: i32) -> (i32, i32) {
    %c0_i32 = arith.constant 0 : i32
    %c0_i32_0 = arith.constant 0 : i32
    %c0_i32_1 = arith.constant 0 : i32
    return %c0_i32, %c0_i32_0 : i32, i32
  }
  func.func @transform_5(%arg0: i32) -> (i32, i32) {
    %c0_i32 = arith.constant 0 : i32
    %c0_i32_0 = arith.constant 0 : i32
    %c0_i32_1 = arith.constant 0 : i32
    return %c0_i32, %c0_i32_0 : i32, i32
  }
  func.func @transform_6(%arg0: i32) -> (i32, i32, i32) {
    %c0_i32 = arith.constant 0 : i32
    %c0_i32_0 = arith.constant 0 : i32
    %c0_i32_1 = arith.constant 0 : i32
    return %arg0, %c0_i32, %c0_i32_0 : i32, i32, i32
  }
}

</mosaic_0001>

<bundles_post_ra>
// kernel: tpu_custom_call.1
= control target key start
LH: loop header
LB: loop body
LE: loop exit
PB: predicated region body
PF: predicated region fallthrough
CT: control target
= control target key end

     0   :  { %11 = vsyncpa [#allocation4], 0  ;;  %s11086_s0 = inlined_call_operand.vmem [shape: f32[2,256,64], index: 0, kind: input, shape index: {}]   ;;  %s11087_s1 = inlined_call_operand.vmem [shape: f32[1,64], index: 1, kind: input, shape index: {}]   ;;  %s11088_s2 = inlined_call_operand.vmem [shape: f32[1,64], index: 2, kind: input, shape index: {}]   ;;  %s11089_s3 = inlined_call_operand.vmem [shape: f32[64,64], index: 3, kind: input, shape index: {}]   ;;  %s11090_s4 = inlined_call_operand.vmem [shape: bf16[576,128], index: 4, kind: input, shape index: {}]   ;;  %s11091_s5 = inlined_call_operand.vmem [shape: f32[1,128], index: 5, kind: input, shape index: {}]   ;;  %s11092_s6 = inlined_call_operand.hbm [shape: f32[2,256,128], index: 6, kind: output, shape index: {}]  }
   0x1   :  { %13 = vsyncpa [#allocation4 + $0x1], 0  ;;  %s8322_s21 = smov 0   ;;  %s8324_s22 = smov 0  }
   0x2   :  { %s8326_s23 = smov 0   ;;  %s8328_s24 = smov 0  }
   0x3 LB: > { %s8343_s25 = sadd.s32 4294967295, %s8278_s24   ;;  %s6536_s26 = sadd.s32 4294967294, %s8278_s24   ;;  %s8278_s24 = sphi %s8328_s24, %s11212_s24   ;;  %s8274_s23 = sphi %s8326_s23, %s11211_s23   ;;  %s8270_s22 = sphi %s8324_s22, %s11210_s22   ;;  %s8266_s21 = sphi %s8322_s21, %s11209_s21  }
   0x4   : > { %s8347_s27 = sadd.s32 1, %s8278_s24   ;;  %s157_s28 = sadd.s32 1, %s8274_s23 }
   0x5   : > { %s154_s29 = ssub.s32 %s8278_s24, %s8347_s27  ;;  %p167_p0 = scmp.ne.s32.totalorder %s8274_s23, %s8270_s22 }
   0x6   : > { %p155_p1 = scmp.eq.s32.totalorder %s154_s29, 0  ;;  %p168_p2 = scmp.eq.s32.totalorder %s8343_s25, 1 }
   0x7   : > { %p173_p3 = scmp.ne.s32.totalorder %s8270_s22, %s8266_s21  ;;  %p174_p4 = scmp.eq.s32.totalorder %s6536_s26, 1 }
   0x8   : > { %s8358_s30 = scalar_select %p155_p1, %s8274_s23, %s157_s28  }
   0x9   : > { %p8360_p5 = por %p168_p2, %p167_p0  ;;  %p8364_p6 = por %p174_p4, %p173_p3 }
   0xa   : > { %p6539_p7 = scmp.ge.s32.totalorder %s8278_s24, 1  ;;  %p215_p8 = scmp.lt.s32.totalorder %s8278_s24, 3 }
   0xc   : > { %p216_p9 = pnand %p6539_p7, %p215_p8 }
   0xe   : > { %219 = sbr.rel (%p216_p9) target bundleno = 1327 (0x52f), region = 44 }
  0x15   : > { %v353_v0 = vld [vmem:[%s11089_s3] sm:$0xff]  ;;  %v354_v1 = vld [vmem:[%s11089_s3 + $0x8] sm:$0xff]  ;;  %v355_v2 = vld [vmem:[%s11089_s3 + $0x10] sm:$0xff]  ;;  %v8280_v3 = vmov 0.0|0.0   ;;  %vm8281_vm0 = vmmov 0   ;;  %v8282_v6 = vmov 0.0  }
  0x16   : > { %7618 = vmatprep.subr.bf16.mxu0 %v8280_v3  ;;  %v7619_v4 = vpack.c.bf16 %v354_v1, %v353_v0  ;;  %v356_v5 = vld [vmem:[%s11089_s3 + $0x18] sm:$0xff]  ;;  %7236 = vmatprep.mubr.msk.f32.mxu0 %vm8281_vm0, %v8282_v6  ;;  %p245_p10 = scmp.lt.s32.totalorder %s8343_s25, 1  ;;  %v357_v7 = vld [vmem:[%s11089_s3 + $0x20] sm:$0xff]  ;;  %vm965_vm1 = vcmask 516096   ;;  %v358_v9 = vld [vmem:[%s11089_s3 + $0x28] sm:$0xff]  ;;  %vm283_vm3 = vcmask 523264  }
  0x17   : > { %7630 = vmatprep.subr.bf16.mxu1 %v8280_v3  ;;  %7255 = vmatprep.mubr.msk.f32.mxu1 %vm8281_vm0, %v8282_v6  ;;  %v7622_v8 = vpack.c.bf16 %v356_v5, %v355_v2  ;;  %vm973_vm2 = vsmask.f32 256  ;;  %v1005_v10 = vld [vmem:[#allocation2 + $0x84] sm:$0x1]  ;;  %v1008_v12 = vld [vmem:[#allocation2 + $0x90] sm:$0x1]  ;;  %v7625_v21 = vpack.c.bf16 %v358_v9, %v357_v7 }
  0x18   : > { %7620 = vmatpush3.bf16.msra.mxu0 %v7619_v4  ;;  %s246_s26 = scalar_select %p245_p10, %s8343_s25, 1  ;;  %7632 = vmatpush3.bf16.msra.mxu1 %v7619_v4  ;;  %vm8395_vm4 = vmand %vm965_vm1, %vm973_vm2  ;;  %v1011_v13 = vld [vmem:[#allocation2 + $0x9c] sm:$0x1]  ;;  %v1014_v17 = vld [vmem:[#allocation2 + $0xa8] sm:$0x1]  ;;  %vm962_vm7 = vcmask 519168  }
  0x19   : > { %7621 = vmatprep.subr.bf16.mxu0 %v8280_v3  ;;  %7633 = vmatprep.subr.bf16.mxu1 %v8280_v3  ;;  %v1006_v14 = vsel %vm8395_vm4, 0, %v1005_v10  ;;  %v1009_v15 = vsel %vm8395_vm4, 0, %v1008_v12  ;;  %v1012_v16 = vsel %vm8395_vm4, 0, %v1011_v13  ;;  %v1015_v18 = vsel %vm8395_vm4, 0, %v1014_v17  ;;  %v1017_v19 = vld [vmem:[#allocation2 + $0xb4] sm:$0x1] }
  0x1a   : > { %s6988_s28 = sshll.u32 %s246_s26, 8  ;;  %1007 = vst [vmem:[#allocation2 + $0x84] sm:$0x1] %v1006_v14  ;;  %1010 = vst [vmem:[#allocation2 + $0x90] sm:$0x1] %v1009_v15  ;;  %v1018_v25 = vsel %vm8395_vm4, 0, %v1017_v19 }
  0x1b   : > { %s8409_s10 = scalar_lea.vmem %s11086_s0, %s6988_s28  ;;  %1013 = vst [vmem:[#allocation2 + $0x9c] sm:$0x1] %v1012_v16  ;;  %v1020_v20 = vld [vmem:[#allocation2 + $0xc0] sm:$0x1]  ;;  %1016 = vst [vmem:[#allocation2 + $0xa8] sm:$0x1] %v1015_v18 }
  0x1c   : > { %7623 = vmatpush3.bf16.msra.mxu0 %v7622_v8  ;;  %v8414_v22 = vld [vmem:[%s8409_s10] sm:$0xff]  ;;  %v8417_v23 = vld [vmem:[%s8409_s10 + $0x8] sm:$0xff]  ;;  %v8420_v24 = vld [vmem:[%s8409_s10 + $0x10] sm:$0xff]  ;;  %v1021_v26 = vsel %vm8395_vm4, 0, %v1020_v20  ;;  %7635 = vmatpush3.bf16.msra.mxu1 %v7622_v8  ;;  %1019 = vst [vmem:[#allocation2 + $0xb4] sm:$0x1] %v1018_v25 }
  0x1d   : > { %7624 = vmatprep.subr.bf16.mxu0 %v8280_v3  ;;  %v359_v27 = vld [vmem:[%s11089_s3 + $0x30] sm:$0xff]  ;;  %v360_v28 = vld [vmem:[%s11089_s3 + $0x38] sm:$0xff]  ;;  %v284_v30 = vsel %vm283_vm3, %v8414_v22, 0.0  ;;  %v285_v31 = vsel %vm283_vm3, %v8417_v23, 0.0  ;;  %v287_v32 = vsel %vm283_vm3, %v8420_v24, 0.0  ;;  %7636 = vmatprep.subr.bf16.mxu1 %v8280_v3  ;;  %v8444_v33 = vld [vmem:[%s8409_s10 + $0x20] sm:$0xff] }
  0x1e   : > { %v8434_v29 = vld [vmem:[%s8409_s10 + $0x18] sm:$0xff]  ;;  %1022 = vst [vmem:[#allocation2 + $0xc0] sm:$0x1] %v1021_v26  ;;  %v286_v34 = vadd.f32 %v285_v31, %v284_v30  ;;  %v7628_v36 = vpack.c.bf16 %v360_v28, %v359_v27  ;;  %v8449_v37 = vld [vmem:[%s8409_s10 + $0x28] sm:$0xff]  ;;  %v291_v39 = vsel %vm283_vm3, %v8444_v33, 0.0  ;;  %v8456_v40 = vld [vmem:[%s8409_s10 + $0x30] sm:$0xff] }
  0x1f   : > { %v289_v35 = vsel %vm283_vm3, %v8434_v29, 0.0  ;;  %vm1023_vm5 = vsmask.f32 7938  ;;  %v293_v42 = vsel %vm283_vm3, %v8449_v37, 0.0  ;;  %v8461_v43 = vld [vmem:[%s8409_s10 + $0x38] sm:$0xff]  ;;  %v8464_v45 = vld [vmem:[%s8409_s10 + $0x40] sm:$0xff] }
  0x20   : > { %7626 = vmatpush3.bf16.msra.mxu0 %v7625_v21  ;;  %v288_v38 = vadd.f32 %v287_v32, %v286_v34  ;;  %7638 = vmatpush3.bf16.msra.mxu1 %v7625_v21  ;;  %v295_v46 = vsel %vm283_vm3, %v8456_v40, 0.0  ;;  %vm8470_vm6 = vmand %vm965_vm1, %vm1023_vm5  ;;  %v8475_v48 = vld [vmem:[%s8409_s10 + $0x48] sm:$0xff]  ;;  %v8478_v49 = vld [vmem:[%s8409_s10 + $0x50] sm:$0xff]  ;;  %v297_v53 = vsel %vm283_vm3, %v8461_v43, 0.0  ;;  %v299_v62 = vsel %vm283_vm3, %v8464_v45, 0.0  ;;  %s242_s15 = sand.u32 1, %s8270_s22  }
  0x21   : > { %7627 = vmatprep.subr.bf16.mxu0 %v8280_v3  ;;  %7639 = vmatprep.subr.bf16.mxu1 %v8280_v3  ;;  %v8481_v50 = vld [vmem:[%s8409_s10 + $0x58] sm:$0xff]  ;;  %v8484_v52 = vld [vmem:[%s8409_s10 + $0x60] sm:$0xff]  ;;  %v1064_v59 = vld [vmem:[#allocation2 + $0xb0] sm:$0x1]  ;;  %v301_v7 = vsel %vm283_vm3, %v8475_v48, 0.0  ;;  %v303_v8 = vsel %vm283_vm3, %v8478_v49, 0.0 }
  0x22   : > { %v290_v41 = vadd.f32 %v289_v35, %v288_v38  ;;  %v1058_v54 = vld [vmem:[#allocation2 + $0x98] sm:$0x1]  ;;  %v1061_v55 = vld [vmem:[#allocation2 + $0xa4] sm:$0x1]  ;;  %v1067_v60 = vld [vmem:[#allocation2 + $0xbc] sm:$0x1] }
  0x23   : > { %v1059_v57 = vsel %vm8470_vm6, 0, %v1058_v54  ;;  %v1062_v58 = vsel %vm8470_vm6, 0, %v1061_v55  ;;  %v8493_v61 = vld [vmem:[%s8409_s10 + $0x68] sm:$0xff]  ;;  %v1065_v63 = vsel %vm8470_vm6, 0, %v1064_v59  ;;  %v1068_v0 = vsel %vm8470_vm6, 0, %v1067_v60  ;;  %v8504_v4 = vld [vmem:[%s8409_s10 + $0x70] sm:$0xff]  ;;  %vm9241_vm13 = vmand %vm962_vm7, %vm1023_vm5 }
  0x24   : > { %7629 = vmatpush3.bf16.msra.mxu0 %v7628_v36  ;;  %v292_v44 = vadd.f32 %v291_v39, %v290_v41  ;;  %7641 = vmatpush3.bf16.msra.mxu1 %v7628_v36  ;;  %1060 = vst [vmem:[#allocation2 + $0x98] sm:$0x1] %v1059_v57  ;;  %1063 = vst [vmem:[#allocation2 + $0xa4] sm:$0x1] %v1062_v58  ;;  %v1070_v1 = vld [vmem:[#allocation2 + $0xc8] sm:$0x1] }
  0x25   : > { %1066 = vst [vmem:[#allocation2 + $0xb0] sm:$0x1] %v1065_v63  ;;  %1069 = vst [vmem:[#allocation2 + $0xbc] sm:$0x1] %v1068_v0  ;;  %v1071_v3 = vsel %vm8470_vm6, 0, %v1070_v1  ;;  %v8507_v5 = vld [vmem:[%s8409_s10 + $0x78] sm:$0xff] }
  0x26   : > { %v294_v51 = vadd.f32 %v293_v42, %v292_v44  ;;  %v8510_v6 = vld [vmem:[%s8409_s10 + $0x80] sm:$0xff]  ;;  %v305_v9 = vsel %vm283_vm3, %v8481_v50, 0.0  ;;  %v307_v10 = vsel %vm283_vm3, %v8484_v52, 0.0  ;;  %1072 = vst [vmem:[#allocation2 + $0xc8] sm:$0x1] %v1071_v3  ;;  %v8521_v12 = vld [vmem:[%s8409_s10 + $0x88] sm:$0xff] }
  0x27   : > { %v8524_v13 = vld [vmem:[%s8409_s10 + $0x90] sm:$0xff]  ;;  %v8527_v14 = vld [vmem:[%s8409_s10 + $0x98] sm:$0xff]  ;;  %v8530_v15 = vld [vmem:[%s8409_s10 + $0xa0] sm:$0xff]  ;;  %v309_v17 = vsel %vm283_vm3, %v8493_v61, 0.0  ;;  %v311_v25 = vsel %vm283_vm3, %v8504_v4, 0.0  ;;  %v313_v26 = vsel %vm283_vm3, %v8507_v5, 0.0 }
  0x28   : > { %v296_v56 = vadd.f32 %v295_v46, %v294_v51  ;;  %v8535_v18 = vld [vmem:[%s8409_s10 + $0xa8] sm:$0xff]  ;;  %v8538_v19 = vld [vmem:[%s8409_s10 + $0xb0] sm:$0xff]  ;;  %v315_v27 = vsel %vm283_vm3, %v8510_v6, 0.0  ;;  %v317_v28 = vsel %vm283_vm3, %v8521_v12, 0.0  ;;  %v319_v30 = vsel %vm283_vm3, %v8524_v13, 0.0  ;;  %s6540_s16 = sshll.u32 %s242_s15, 8 }
  0x29   : > { %v321_v31 = vsel %vm283_vm3, %v8527_v14, 0.0  ;;  %v323_v32 = vsel %vm283_vm3, %v8530_v15, 0.0  ;;  %v325_v35 = vsel %vm283_vm3, %v8535_v18, 0.0  ;;  %v327_v36 = vsel %vm283_vm3, %v8538_v19, 0.0  ;;  %v8567_v59 = vld [vmem:[%s8409_s10 + $0xc8] sm:$0xff]  ;;  %v8572_v63 = vld [vmem:[%s8409_s10 + $0xd0] sm:$0xff] }
  0x2a   : > { %v298_v2 = vadd.f32 %v297_v53, %v296_v56  ;;  %v8559_v53 = vld [vmem:[%s8409_s10 + $0xb8] sm:$0xff]  ;;  %v8562_v56 = vld [vmem:[%s8409_s10 + $0xc0] sm:$0xff]  ;;  %v333_v1 = vsel %vm283_vm3, %v8567_v59, 0.0  ;;  %vm1645_vm8 = vsmask.f32 3328  ;;  %vm2682_vm14 = vcmask 1042432  }
  0x2b   : > { %v329_v58 = vsel %vm283_vm3, %v8559_v53, 0.0  ;;  %vm1646_vm9 = vsmask.f32 7440  ;;  %vm1153_vm11 = vsmask.f32 4368  ;;  %vm2683_vm15 = vcmask 1046532  }
  0x2c   : > { %v300_v16 = vadd.f32 %v299_v62, %v298_v2  ;;  %v331_v62 = vsel %vm283_vm3, %v8562_v56, 0.0  ;;  %v8577_v2 = vld [vmem:[%s8409_s10 + $0xd8] sm:$0xff]  ;;  %vm8868_vm10 = vmor %vm1645_vm8, %vm1646_vm9  ;;  %s10970_s19 = scalar_lea.vmem [#allocation3], %s6540_s16  ;;  %s7021_s20 = sshll.u32 %s8343_s25, 12 }
  0x2d   : > { %vm9220_vm12 = vmor %vm973_vm2, %vm1153_vm11  ;;  %s6474_s26 = sshll.u32 %s10970_s19, 4  ;;  %s11035_s9 = scalar_lea.hbm %s11092_s6, %s7021_s20  ;;  %s11037_s26 = int_to_ptr.vmem [resolvable:$true] %s6474_s26 }
  0x2e   : > { %v302_v20 = vadd.f32 %v301_v7, %v300_v16  ;;  %v335_v7 = vsel %vm283_vm3, %v8572_v63, 0.0  ;;  %v8587_v16 = vld [vmem:[%s8409_s10 + $0xe8] sm:$0xff]  ;;  %vm9713_vm0 = vmor %vm2682_vm14, %vm2683_vm15  ;;  %s11045_s25 = scalar_lea.sflag [#allocation4], %s242_s15  ;;  %s8284_s11 = smov [#allocation3]  }
  0x2f   : > { %s8220_s12 = sshll.u32 %s8284_s11, 4  ;;  %s8221_s12 = int_to_ptr.vmem [resolvable:$false] %s8220_s12 }
  0x30   : > { %v304_v21 = vadd.f32 %v303_v8, %v302_v20  ;;  %v8582_v8 = vld [vmem:[%s8409_s10 + $0xe0] sm:$0xff]  ;;  %s8222_s13 = scalar_lea.vmem %s8221_s12, 8192  ;;  %p8223_p0 = scmp.lt.s32.totalorder %s11037_s26, %s8221_s12 }
  0x31   : > { %v339_v20 = vsel %vm283_vm3, %v8582_v8, 0.0 }
  0x32   : > { %v306_v34 = vadd.f32 %v305_v9, %v304_v21  ;;  %v8592_v21 = vld [vmem:[%s8409_s10 + $0xf0] sm:$0xff] }
  0x34   : > { %v308_v38 = vadd.f32 %v307_v10, %v306_v34  ;;  %v337_v10 = vsel %vm283_vm3, %v8577_v2, 0.0 }
  0x36   : > { %v310_v39 = vadd.f32 %v309_v17, %v308_v38 }
  0x38   : > { %v312_v41 = vadd.f32 %v311_v25, %v310_v39 }
  0x3a   : > { %v314_v42 = vadd.f32 %v313_v26, %v312_v41  ;;  %v341_v26 = vsel %vm283_vm3, %v8587_v16, 0.0 }
  0x3c   : > { %v316_v44 = vadd.f32 %v315_v27, %v314_v42  ;;  %v8597_v27 = vld [vmem:[%s8409_s10 + $0xf8] sm:$0xff]  ;;  %s8216_s10 = scalar_lea.vmem %s11037_s26, 4096 }
  0x3d   : > { %p8217_p11 = scmp.ne.s32.totalorder %s11037_s26, %s8216_s10  ;;  %p8224_p1 = scmp.lt.s32.totalorder %s8222_s13, %s8216_s10 }
  0x3e   : > { %v318_v46 = vadd.f32 %v317_v28, %v316_v44 }
  0x3f   : > { %p8218_p12 = pnand %p8217_p11, %p8360_p5  ;;  %p8225_p2 = por %p8224_p1, %p8223_p0 }
  0x40   : > { %v320_v51 = vadd.f32 %v319_v30, %v318_v46  ;;  %v343_v30 = vsel %vm283_vm3, %v8592_v21, 0.0  ;;  %v434_v46 = vlaneseq }
  0x41   : > { %p8219_p13 = pneg %p8218_p12 }
  0x42   : > { %v322_v54 = vadd.f32 %v321_v31, %v320_v51  ;;  %v8604_v51 = vshrl.u32 %v434_v46, 7 }
  0x43   : > { %p8226_p3 = pnand %p8225_p2, %p8219_p13 }
  0x44   : > { %v324_v55 = vadd.f32 %v323_v32, %v322_v54  ;;  %v345_v32 = vsel %vm283_vm3, %v8597_v27, 0.0 }
  0x46   : > { %v326_v57 = vadd.f32 %v325_v35, %v324_v55 }
  0x48   : > { %v328_v60 = vadd.f32 %v327_v36, %v326_v57  ;;  %v436_v57 = vsub.s32 0, %v8604_v51 }
  0x4a   : > { %v330_v0 = vadd.f32 %v329_v58, %v328_v60 }
  0x4c   : > { %v332_v3 = vadd.f32 %v331_v62, %v330_v0 }
  0x4e   : > { %v334_v9 = vadd.f32 %v333_v1, %v332_v3 }
  0x50   : > { %v336_v17 = vadd.f32 %v335_v7, %v334_v9 }
  0x52   : > { %v338_v25 = vadd.f32 %v337_v10, %v336_v17 }
  0x54   : > { %v340_v28 = vadd.f32 %v339_v20, %v338_v25 }
  0x56   : > { %v342_v31 = vadd.f32 %v341_v26, %v340_v28 }
  0x58   : > { %v344_v34 = vadd.f32 %v343_v30, %v342_v31 }
  0x5a   : > { %v346_v35 = vadd.f32 %v345_v32, %v344_v34 }
  0x5c   : > { %v347_v36 = vrot.slane %v346_v35, 4 }
  0x5e   : > { %v348_v38 = vadd.f32 %v347_v36, %v346_v35 }
  0x60   : > { %v349_v39 = vrot.slane %v348_v38, 2 }
  0x62   : > { %v350_v41 = vadd.f32 %v349_v39, %v348_v38 }
  0x64   : > { %v351_v42 = vrot.slane %v350_v41, 1 }
  0x66   : > { %v352_v44 = vadd.f32 %v351_v42, %v350_v41 }
  0x68   : > { %7237 = vmatmul.mubr.msk.f32.vlgmr.msra.gmra.mrb[0].mxu0 %vm283_vm3, %v352_v44 }
 0x13b   : > { %v430_v54 = vpop.f32.mrb[0].mxu0 }
 0x13c   : > { %v7238_v55 = vpop.f32.mrb[1].mxu0  ;;  %v8609_v58 = vrot.slane %v430_v54, %v436_v57 }
 0x13e   : > { %v8613_v60 = vsub.f32 %v8414_v22, %v8609_v58  ;;  %v8617_v62 = vsub.f32 %v8417_v23, %v8609_v58  ;;  %v8621_v0 = vsub.f32 %v8420_v24, %v8609_v58  ;;  %v8625_v1 = vsub.f32 %v8434_v29, %v8609_v58 }
 0x13f   : > { %v8633_v22 = vsub.f32 %v8444_v33, %v8609_v58  ;;  %v8639_v24 = vsub.f32 %v8449_v37, %v8609_v58  ;;  %v8647_v20 = vsub.f32 %v8456_v40, %v8609_v58  ;;  %v8654_v37 = vsub.f32 %v8461_v43, %v8609_v58 }
 0x140   : > { %v470_v3 = vmul.f32 %v8613_v60, %v8613_v60  ;;  %v471_v7 = vmul.f32 %v8617_v62, %v8617_v62  ;;  %v472_v23 = vmul.f32 %v8621_v0, %v8621_v0  ;;  %v473_v29 = vmul.f32 %v8625_v1, %v8625_v1 }
 0x141   : > { %v474_v33 = vmul.f32 %v8633_v22, %v8633_v22  ;;  %v475_v28 = vmul.f32 %v8639_v24, %v8639_v24  ;;  %v8661_v40 = vsub.f32 %v8464_v45, %v8609_v58  ;;  %v476_v32 = vmul.f32 %v8647_v20, %v8647_v20 }
 0x142   : > { %v502_v9 = vsel %vm283_vm3, %v470_v3, 0.0  ;;  %v503_v10 = vsel %vm283_vm3, %v471_v7, 0.0  ;;  %v505_v25 = vsel %vm283_vm3, %v472_v23, 0.0  ;;  %v507_v30 = vsel %vm283_vm3, %v473_v29, 0.0 }
 0x143   : > { %v504_v17 = vadd.f32 %v503_v10, %v502_v9  ;;  %v509_v34 = vsel %vm283_vm3, %v474_v33, 0.0  ;;  %v8668_v43 = vsub.f32 %v8475_v48, %v8609_v58  ;;  %v477_v36 = vmul.f32 %v8654_v37, %v8654_v37 }
 0x144   : > { %v511_v38 = vsel %vm283_vm3, %v475_v28, 0.0  ;;  %v8675_v45 = vsub.f32 %v8478_v49, %v8609_v58  ;;  %v478_v41 = vmul.f32 %v8661_v40, %v8661_v40  ;;  %v513_v42 = vsel %vm283_vm3, %v476_v32, 0.0 }
 0x145   : > { %v506_v26 = vadd.f32 %v505_v25, %v504_v17  ;;  %v8682_v48 = vsub.f32 %v8481_v50, %v8609_v58  ;;  %v479_v46 = vmul.f32 %v8668_v43, %v8668_v43  ;;  %v515_v54 = vsel %vm283_vm3, %v477_v36, 0.0 }
 0x146   : > { %v8689_v49 = vsub.f32 %v8484_v52, %v8609_v58  ;;  %v480_v3 = vmul.f32 %v8675_v45, %v8675_v45  ;;  %v517_v7 = vsel %vm283_vm3, %v478_v41, 0.0  ;;  %v8696_v50 = vsub.f32 %v8493_v61, %v8609_v58 }
 0x147   : > { %v508_v31 = vadd.f32 %v507_v30, %v506_v26  ;;  %v481_v29 = vmul.f32 %v8682_v48, %v8682_v48  ;;  %v519_v9 = vsel %vm283_vm3, %v479_v46, 0.0  ;;  %v8703_v52 = vsub.f32 %v8504_v4, %v8609_v58 }
 0x148   : > { %v482_v17 = vmul.f32 %v8689_v49, %v8689_v49  ;;  %v521_v33 = vsel %vm283_vm3, %v480_v3, 0.0  ;;  %v8710_v61 = vsub.f32 %v8507_v5, %v8609_v58  ;;  %v483_v26 = vmul.f32 %v8696_v50, %v8696_v50 }
 0x149   : > { %v510_v35 = vadd.f32 %v509_v34, %v508_v31  ;;  %v523_v28 = vsel %vm283_vm3, %v481_v29, 0.0  ;;  %v8717_v4 = vsub.f32 %v8510_v6, %v8609_v58  ;;  %v484_v31 = vmul.f32 %v8703_v52, %v8703_v52 }
 0x14a   : > { %v525_v32 = vsel %vm283_vm3, %v482_v17, 0.0  ;;  %v8724_v5 = vsub.f32 %v8521_v12, %v8609_v58  ;;  %v527_v36 = vsel %vm283_vm3, %v483_v26, 0.0  ;;  %v8731_v6 = vsub.f32 %v8524_v13, %v8609_v58 }
 0x14b   : > { %v512_v39 = vadd.f32 %v511_v38, %v510_v35  ;;  %v485_v35 = vmul.f32 %v8710_v61, %v8710_v61  ;;  %v529_v41 = vsel %vm283_vm3, %v484_v31, 0.0  ;;  %v8738_v12 = vsub.f32 %v8527_v14, %v8609_v58 }
 0x14c   : > { %v8745_v13 = vsub.f32 %v8530_v15, %v8609_v58  ;;  %v8752_v14 = vsub.f32 %v8535_v18, %v8609_v58  ;;  %v8759_v15 = vsub.f32 %v8538_v19, %v8609_v58  ;;  %v8766_v18 = vsub.f32 %v8559_v53, %v8609_v58 }
 0x14d   : > { %v514_v44 = vadd.f32 %v513_v42, %v512_v39  ;;  %v486_v39 = vmul.f32 %v8717_v4, %v8717_v4  ;;  %v531_v46 = vsel %vm283_vm3, %v485_v35, 0.0  ;;  %v8773_v19 = vsub.f32 %v8562_v56, %v8609_v58 }
 0x14e   : > { %v8780_v53 = vsub.f32 %v8567_v59, %v8609_v58  ;;  %v8787_v56 = vsub.f32 %v8572_v63, %v8609_v58  ;;  %v8794_v59 = vsub.f32 %v8577_v2, %v8609_v58  ;;  %v8801_v63 = vsub.f32 %v8582_v8, %v8609_v58 }
 0x14f   : > { %v516_v55 = vadd.f32 %v515_v54, %v514_v44  ;;  %v487_v44 = vmul.f32 %v8724_v5, %v8724_v5  ;;  %v533_v3 = vsel %vm283_vm3, %v486_v39, 0.0  ;;  %v8808_v2 = vsub.f32 %v8587_v16, %v8609_v58 }
 0x150   : > { %v8815_v8 = vsub.f32 %v8592_v21, %v8609_v58  ;;  %v8822_v16 = vsub.f32 %v8597_v27, %v8609_v58 }
 0x151   : > { %v518_v23 = vadd.f32 %v517_v7, %v516_v55  ;;  %v488_v55 = vmul.f32 %v8731_v6, %v8731_v6  ;;  %v535_v29 = vsel %vm283_vm3, %v487_v44, 0.0 }
 0x152   : > { %v500_v21 = vmul.f32 %v8815_v8, %v8815_v8 }
 0x153   : > { %v520_v10 = vadd.f32 %v519_v9, %v518_v23  ;;  %v489_v23 = vmul.f32 %v8738_v12, %v8738_v12  ;;  %v537_v17 = vsel %vm283_vm3, %v488_v55, 0.0 }
 0x154   : > { %v561_v27 = vsel %vm283_vm3, %v500_v21, 0.0 }
 0x155   : > { %v522_v25 = vadd.f32 %v521_v33, %v520_v10  ;;  %v490_v10 = vmul.f32 %v8745_v13, %v8745_v13  ;;  %v539_v26 = vsel %vm283_vm3, %v489_v23, 0.0 }
 0x157   : > { %v524_v30 = vadd.f32 %v523_v28, %v522_v25  ;;  %v491_v25 = vmul.f32 %v8752_v14, %v8752_v14  ;;  %v541_v31 = vsel %vm283_vm3, %v490_v10, 0.0 }
 0x159   : > { %v526_v34 = vadd.f32 %v525_v32, %v524_v30  ;;  %v492_v30 = vmul.f32 %v8759_v15, %v8759_v15  ;;  %v543_v35 = vsel %vm283_vm3, %v491_v25, 0.0 }
 0x15b   : > { %v528_v38 = vadd.f32 %v527_v36, %v526_v34  ;;  %v493_v34 = vmul.f32 %v8766_v18, %v8766_v18  ;;  %v545_v39 = vsel %vm283_vm3, %v492_v30, 0.0 }
 0x15d   : > { %v530_v42 = vadd.f32 %v529_v41, %v528_v38  ;;  %v494_v38 = vmul.f32 %v8773_v19, %v8773_v19  ;;  %v547_v44 = vsel %vm283_vm3, %v493_v34, 0.0 }
 0x15f   : > { %v532_v54 = vadd.f32 %v531_v46, %v530_v42  ;;  %v495_v42 = vmul.f32 %v8780_v53, %v8780_v53  ;;  %v549_v55 = vsel %vm283_vm3, %v494_v38, 0.0 }
 0x161   : > { %v534_v7 = vadd.f32 %v533_v3, %v532_v54  ;;  %v496_v54 = vmul.f32 %v8787_v56, %v8787_v56  ;;  %v551_v23 = vsel %vm283_vm3, %v495_v42, 0.0 }
 0x163   : > { %v536_v9 = vadd.f32 %v535_v29, %v534_v7  ;;  %v497_v7 = vmul.f32 %v8794_v59, %v8794_v59  ;;  %v553_v10 = vsel %vm283_vm3, %v496_v54, 0.0  ;;  %v8283_v54 = vmov 0  }
 0x164   : > { %963 = vst.msk [vmem:[#allocation2] sm:$0xf] %vm962_vm7, %v8283_v54  ;;  %964 = vst.msk [vmem:[#allocation2 + $0x4] sm:$0xf] %vm962_vm7, %v8283_v54 }
 0x165   : > { %v538_v33 = vadd.f32 %v537_v17, %v536_v9  ;;  %v498_v9 = vmul.f32 %v8801_v63, %v8801_v63  ;;  %v555_v25 = vsel %vm283_vm3, %v497_v7, 0.0  ;;  %966 = vst.msk [vmem:[#allocation2 + $0x8] sm:$0x1] %vm965_vm1, %v8283_v54  ;;  %970 = vst.msk [vmem:[#allocation2 + $0xd4] sm:$0x1] %vm965_vm1, %v8283_v54  ;;  %v7953_v7 = vld [vmem:[%s11090_s4 + $0x28] sm:$0xff]  }
 0x166   : > { %968 = vst.msk [vmem:[#allocation2 + $0xcc] sm:$0xf] %vm962_vm7, %v8283_v54  ;;  %969 = vst.msk [vmem:[#allocation2 + $0xd0] sm:$0xf] %vm962_vm7, %v8283_v54 }
 0x167   : > { %v540_v28 = vadd.f32 %v539_v26, %v538_v33  ;;  %v499_v33 = vmul.f32 %v8808_v2, %v8808_v2 }
 0x169   : > { %v542_v32 = vadd.f32 %v541_v31, %v540_v28  ;;  %v557_v28 = vsel %vm283_vm3, %v498_v9, 0.0  ;;  %v501_v31 = vmul.f32 %v8822_v16, %v8822_v16  ;;  %v7956_v9 = vld [vmem:[%s11090_s4 + $0x90] sm:$0xff]  }
 0x16b   : > { %v544_v36 = vadd.f32 %v543_v35, %v542_v32  ;;  %v559_v32 = vsel %vm283_vm3, %v499_v33, 0.0  ;;  %v563_v35 = vsel %vm283_vm3, %v501_v31, 0.0  ;;  %v7958_v31 = vld [vmem:[%s11090_s4 + $0x98] sm:$0xff]  }
 0x16c   : > { %v1629_v33 = vld [vmem:[#allocation2 + $0x8] sm:$0x1] }
 0x16d   : > { %v546_v41 = vadd.f32 %v545_v39, %v544_v36 }
 0x16f   : > { %v548_v46 = vadd.f32 %v547_v44, %v546_v41 }
 0x171   : > { %v550_v3 = vadd.f32 %v549_v55, %v548_v46  ;;  %v7951_v55 = vld [vmem:[%s11090_s4 + $0x20] sm:$0xff]  }
 0x172   : > { %7258 = vmatprep.subr.bf16.mxu1 %v7951_v55 }
 0x173   : > { %v552_v29 = vadd.f32 %v551_v23, %v550_v3  ;;  %v7952_v3 = vld [vmem:[%s11090_s4 + $0x80] sm:$0xff]   ;;  %v7954_v23 = vld [vmem:[%s11090_s4 + $0x88] sm:$0xff]  }
 0x174   : > { %7418 = vmatprep.subr.bf16.mxu0 %v7952_v3 }
 0x175   : > { %v554_v17 = vadd.f32 %v553_v10, %v552_v29  ;;  %7419 = vmatpush3.bf16.msra.mxu0 %v7952_v3  ;;  %v7955_v29 = vld [vmem:[%s11090_s4 + $0x30] sm:$0xff]   ;;  %v1589_v10 = vld [vmem:[#allocation2] sm:$0xf]  ;;  %v975_v3 = vld [vmem:[#allocation2 + $0xc] sm:$0x1] }
 0x176   : > { %7420 = vmatprep.subr.bf16.mxu0 %v7954_v23 }
 0x177   : > { %v556_v26 = vadd.f32 %v555_v25, %v554_v17  ;;  %v1590_v17 = vld [vmem:[#allocation2 + $0x4] sm:$0xf]  ;;  %v1649_v25 = vshrl.u32 %v1589_v10, 16 }
 0x178   : > { %v1658_v21 = vshll.u32 %v1590_v17, 16 }
 0x179   : > { %v558_v30 = vadd.f32 %v557_v28, %v556_v26  ;;  %7421 = vmatpush3.bf16.msra.mxu0 %v7954_v23  ;;  %v1652_v26 = vshll.u32 %v1589_v10, 16  ;;  %v1662_v28 = vshrl.u32 %v1590_v17, 16  ;;  %v976_v23 = vsel %vm8395_vm4, 0, %v975_v3 }
 0x17a   : > { %7422 = vmatprep.subr.bf16.mxu0 %v7956_v9  ;;  %977 = vst [vmem:[#allocation2 + $0xc] sm:$0x1] %v976_v23 }
 0x17b   : > { %v560_v34 = vadd.f32 %v559_v32, %v558_v30  ;;  %v7957_v30 = vld [vmem:[%s11090_s4 + $0x38] sm:$0xff]   ;;  %v1668_v32 = vshll.u32 %v1629_v33, 16 }
 0x17c   : > { %v978_v33 = vld [vmem:[#allocation2 + $0x18] sm:$0x1] }
 0x17d   : > { %v562_v58 = vadd.f32 %v561_v27, %v560_v34  ;;  %v1651_v34 = vrot.slane %v1649_v25, 4  ;;  %v1654_v27 = vrot.slane %v1652_v26, 5  ;;  %7423 = vmatpush3.bf16.msra.mxu0 %v7956_v9  ;;  %v1028_v25 = vld [vmem:[#allocation2 + $0x20] sm:$0x1]  ;;  %v979_v26 = vsel %vm8395_vm4, 0, %v978_v33 }
 0x17e   : > { %7424 = vmatprep.subr.bf16.mxu0 %v7958_v31  ;;  %980 = vst [vmem:[#allocation2 + $0x18] sm:$0x1] %v979_v26 }
 0x17f   : > { %v564_v36 = vadd.f32 %v563_v35, %v562_v58  ;;  %v1660_v58 = vrot.slane %v1658_v21, 5  ;;  %v1664_v35 = vrot.slane %v1662_v28, 4  ;;  %v1029_v21 = vsel %vm8470_vm6, 0, %v1028_v25  ;;  %v645_v28 = vld [vmem:[%s11087_s1] sm:$0x1] }
 0x180   : > { %1030 = vst [vmem:[#allocation2 + $0x20] sm:$0x1] %v1029_v21 }
 0x181   : > { %v565_v38 = vrot.slane %v564_v36, 4  ;;  %7425 = vmatpush3.bf16.msra.mxu0 %v7958_v31  ;;  %v1031_v31 = vld [vmem:[#allocation2 + $0x2c] sm:$0x1] }
 0x183   : > { %v566_v39 = vadd.f32 %v565_v38, %v564_v36  ;;  %v1655_v36 = vor.u32 %v1654_v27, %v1651_v34  ;;  %v1665_v38 = vor.u32 %v1664_v35, %v1660_v58  ;;  %v1032_v27 = vsel %vm8470_vm6, 0, %v1031_v31 }
 0x184   : > { %1033 = vst [vmem:[#allocation2 + $0x2c] sm:$0x1] %v1032_v27 }
 0x185   : > { %v567_v41 = vrot.slane %v566_v39, 2 }
 0x187   : > { %v568_v42 = vadd.f32 %v567_v41, %v566_v39  ;;  %v1670_v39 = vrot.slane %v1668_v32, 5  ;;  %v11122_v41 = vmov 0 }
 0x188   : > { %v11123_v41 = vsel %vm8868_vm10, 4294967295, %v11122_v41 }
 0x189   : > { %v569_v44 = vrot.slane %v568_v42, 1  ;;  %11124 = vst [vmem:[#allocation6_spill] sm:$0xff] %v11123_v41 }
 0x18b   : > { %v570_v46 = vadd.f32 %v569_v44, %v568_v42  ;;  %v1656_v42 = vrot.slane %v1655_v36, 4  ;;  %v1666_v44 = vrot.slane %v1665_v38, 4  ;;  %v8901_v38 = vld [vmem:[%s11088_s2] ss:$0 sm:$0xff] }
 0x18d   : > { %7256 = vmatmul.mubr.msk.f32.vlgmr.msra.gmra.mrb[0].mxu1 %vm283_vm3, %v570_v46  ;;  %v1661_v46 = vsel %vm8868_vm10, %v1656_v42, %v1660_v58  ;;  %v1671_v54 = vsel %vm8868_vm10, %v1666_v44, %v1670_v39 }
 0x18e   : > { %7259 = vmatpush3.bf16.msra.mxu1 %v7951_v55  ;;  %v6610_v55 = vcombine.low %v1661_v46, %v1671_v54 }
 0x18f   : > { %7260 = vmatprep.subr.bf16.mxu1 %v7953_v7 }
 0x190   : > { %7266 = vmatprep.mubr.msk.bf16.mxu1 %vm283_vm3, %v6610_v55 }
 0x192   : > { %7261 = vmatpush3.bf16.msra.mxu1 %v7953_v7  ;;  %v1025_v7 = vld [vmem:[#allocation2 + $0x14] sm:$0x1] }
 0x193   : > { %7262 = vmatprep.subr.bf16.mxu1 %v7955_v29 }
 0x196   : > { %7263 = vmatpush3.bf16.msra.mxu1 %v7955_v29  ;;  %v1026_v29 = vsel %vm8470_vm6, 0, %v1025_v7 }
 0x197   : > { %7264 = vmatprep.subr.bf16.mxu1 %v7957_v30  ;;  %1027 = vst [vmem:[#allocation2 + $0x14] sm:$0x1] %v1026_v29 }
 0x19a   : > { %7265 = vmatpush3.bf16.msra.mxu1 %v7957_v30  ;;  %v981_v30 = vld [vmem:[#allocation2 + $0x24] sm:$0x1] }
 0x19b   : > { %v982_v34 = vsel %vm8395_vm4, 0, %v981_v30 }
 0x19c   : > { %983 = vst [vmem:[#allocation2 + $0x24] sm:$0x1] %v982_v34 }
 0x260   : > { %v640_v9 = vpop.f32.mrb[0].mxu1 }
 0x261   : > { %v641_v10 = vadd.f32 1e-05, %v640_v9  ;;  %v7257_v17 = vpop.f32.mrb[1].mxu1 }
 0x263   : > { %8024 = vrsqrt.f32 %v641_v10 }
 0x26d   : > { %v8025_v32 = vpop.eup %8024 }
 0x26e   : > { %v646_v58 = vmul.f32 %v8025_v32, %v645_v28 }
 0x270   : > { %v8894_v35 = vrot.slane %v646_v58, %v436_v57 }
 0x272   : > { %v662_v36 = vmul.f32 %v8894_v35, %v8682_v48  ;;  %v663_v39 = vmul.f32 %v8894_v35, %v8689_v49  ;;  %v664_v42 = vmul.f32 %v8894_v35, %v8696_v50  ;;  %v665_v44 = vmul.f32 %v8894_v35, %v8703_v52 }
 0x273   : > { %v666_v51 = vmul.f32 %v8894_v35, %v8710_v61  ;;  %v667_v57 = vmul.f32 %v8894_v35, %v8717_v4  ;;  %v668_v48 = vmul.f32 %v8894_v35, %v8724_v5  ;;  %v669_v49 = vmul.f32 %v8894_v35, %v8731_v6 }
 0x274   : > { %v8916_v46 = vadd.f32 %v8901_v38, %v662_v36  ;;  %v8921_v50 = vadd.f32 %v8901_v38, %v663_v39  ;;  %v8924_v52 = vadd.f32 %v8901_v38, %v664_v42  ;;  %v8927_v61 = vadd.f32 %v8901_v38, %v665_v44  ;;  %v7960_v36 = vld [vmem:[%s11090_s4 + $0xa0] sm:$0xff]  }
 0x275   : > { %v670_v4 = vmul.f32 %v8894_v35, %v8738_v12  ;;  %v8932_v5 = vadd.f32 %v8901_v38, %v666_v51  ;;  %v671_v54 = vmul.f32 %v8894_v35, %v8745_v13  ;;  %v672_v6 = vmul.f32 %v8894_v35, %v8752_v14  ;;  %v7959_v13 = vld [vmem:[%s11090_s4] sm:$0xff]   ;;  %7458 = vmatprep.subr.bf16.mxu0 %v7960_v36 }
 0x276   : > { %v8939_v55 = vadd.f32 %v8901_v38, %v667_v57  ;;  %v673_v3 = vmul.f32 %v8894_v35, %v8759_v15  ;;  %v674_v7 = vmul.f32 %v8894_v35, %v8766_v18  ;;  %v8946_v12 = vadd.f32 %v8901_v38, %v668_v48  ;;  %7298 = vmatprep.subr.bf16.mxu1 %v7959_v13 }
 0x277   : > { %v6557_v23 = vmul.f32 -1.442695, %v8916_v46  ;;  %v8953_v14 = vadd.f32 %v8901_v38, %v669_v49  ;;  %v6558_v29 = vmul.f32 -1.442695, %v8921_v50  ;;  %v6559_v9 = vmul.f32 -1.442695, %v8924_v52 }
 0x278   : > { %v6560_v15 = vmul.f32 -1.442695, %v8927_v61  ;;  %v675_v18 = vmul.f32 %v8894_v35, %v8773_v19  ;;  %v8961_v10 = vadd.f32 %v8901_v38, %v670_v4  ;;  %v6561_v17 = vmul.f32 -1.442695, %v8932_v5 }
 0x279   : > { %8026 = vpow2.f32 %v6557_v23  ;;  %v676_v33 = vmul.f32 %v8894_v35, %v8780_v53  ;;  %v8967_v25 = vadd.f32 %v8901_v38, %v671_v54  ;;  %v6562_v26 = vmul.f32 -1.442695, %v8939_v55  ;;  %v1034_v23 = vld [vmem:[#allocation2 + $0x38] sm:$0x1] }
 0x27a   : > { %8028 = vpow2.f32 %v6558_v29  ;;  %v677_v21 = vmul.f32 %v8894_v35, %v8787_v56  ;;  %v8973_v19 = vadd.f32 %v8901_v38, %v672_v6  ;;  %v6563_v28 = vmul.f32 -1.442695, %v8946_v12 }
 0x27b   : > { %8030 = vpow2.f32 %v6559_v9  ;;  %v678_v30 = vmul.f32 %v8894_v35, %v8794_v59  ;;  %v8979_v53 = vadd.f32 %v8901_v38, %v673_v3  ;;  %v6564_v31 = vmul.f32 -1.442695, %v8953_v14 }
 0x27c   : > { %8032 = vpow2.f32 %v6560_v15  ;;  %v679_v32 = vmul.f32 %v8894_v35, %v8801_v63  ;;  %v8985_v56 = vadd.f32 %v8901_v38, %v674_v7  ;;  %v6565_v34 = vmul.f32 -1.442695, %v8961_v10  ;;  %v984_v7 = vld [vmem:[#allocation2 + $0x30] sm:$0x1] }
 0x27d   : > { %8034 = vpow2.f32 %v6561_v17  ;;  %v680_v27 = vmul.f32 %v8894_v35, %v8808_v2  ;;  %v8991_v59 = vadd.f32 %v8901_v38, %v675_v18  ;;  %v6566_v58 = vmul.f32 -1.442695, %v8967_v25 }
 0x27e   : > { %8036 = vpow2.f32 %v6562_v26  ;;  %v681_v63 = vmul.f32 %v8894_v35, %v8815_v8  ;;  %v9000_v39 = vadd.f32 %v8901_v38, %v676_v33  ;;  %v6567_v42 = vmul.f32 -1.442695, %v8973_v19 }
 0x27f   : > { %8038 = vpow2.f32 %v6563_v28  ;;  %v682_v2 = vmul.f32 %v8894_v35, %v8822_v16  ;;  %v9006_v44 = vadd.f32 %v8901_v38, %v677_v21  ;;  %v6568_v51 = vmul.f32 -1.442695, %v8979_v53 }
 0x280   : > { %8040 = vpow2.f32 %v6564_v31  ;;  %v9010_v57 = vadd.f32 %v8901_v38, %v678_v30  ;;  %v6569_v8 = vmul.f32 -1.442695, %v8985_v56  ;;  %v661_v48 = vmul.f32 %v8894_v35, %v8675_v45  ;;  %v987_v30 = vld [vmem:[#allocation2 + $0x3c] sm:$0x1] }
 0x281   : > { %8042 = vpow2.f32 %v6565_v34  ;;  %v9016_v49 = vadd.f32 %v8901_v38, %v679_v32  ;;  %v6570_v16 = vmul.f32 -1.442695, %v8991_v59  ;;  %v9020_v54 = vadd.f32 %v8901_v38, %v680_v27 }
 0x282   : > { %8044 = vpow2.f32 %v6566_v58  ;;  %v6571_v6 = vmul.f32 -1.442695, %v9000_v39  ;;  %v657_v3 = vmul.f32 %v8894_v35, %v8647_v20  ;;  %v9026_v45 = vadd.f32 %v8901_v38, %v681_v63 }
 0x283   : > { %v8027_v4 = vpop.eup %8026  ;;  %8046 = vpow2.f32 %v6567_v42  ;;  %v9029_v29 = vadd.f32 %v8901_v38, %v682_v2  ;;  %v6572_v9 = vmul.f32 -1.442695, %v9006_v44  ;;  %v6573_v18 = vmul.f32 -1.442695, %v9010_v57  ;;  %v1037_v42 = vld [vmem:[#allocation2 + $0x44] sm:$0x1] }
 0x284   : > { %v8029_v13 = vpop.eup %8028  ;;  %8048 = vpow2.f32 %v6568_v51  ;;  %v658_v17 = vmul.f32 %v8894_v35, %v8654_v37  ;;  %v9036_v20 = vadd.f32 %v8901_v38, %v657_v3  ;;  %v6574_v26 = vmul.f32 -1.442695, %v9016_v49 }
 0x285   : > { %v8031_v15 = vpop.eup %8030  ;;  %8050 = vpow2.f32 %v6569_v8  ;;  %v985_v21 = vsel %vm8395_vm4, 0, %v984_v7  ;;  %v1035_v28 = vsel %vm8470_vm6, 0, %v1034_v23  ;;  %v6575_v32 = vmul.f32 -1.442695, %v9020_v54 }
 0x286   : > { %11125 = vst [vmem:[#allocation7_spill] sm:$0xff] %v9036_v20  ;;  %v8033_v33 = vpop.eup %8032  ;;  %8052 = vpow2.f32 %v6570_v16  ;;  %v651_v37 = vmul.f32 %v8894_v35, %v8613_v60  ;;  %v9047_v34 = vadd.f32 %v8901_v38, %v658_v17  ;;  %986 = vst [vmem:[#allocation2 + $0x30] sm:$0x1] %v985_v21  ;;  %v6576_v58 = vmul.f32 -1.442695, %v9026_v45 }
 0x287   : > { %v8035_v31 = vpop.eup %8034  ;;  %8054 = vpow2.f32 %v6571_v6  ;;  %1036 = vst [vmem:[#allocation2 + $0x38] sm:$0x1] %v1035_v28  ;;  %v659_v36 = vmul.f32 %v8894_v35, %v8661_v40  ;;  %v660_v63 = vmul.f32 %v8894_v35, %v8668_v43  ;;  %v6577_v60 = vmul.f32 -1.442695, %v9029_v29 }
 0x288   : > { %11126 = vst [vmem:[#allocation8_spill] sm:$0xff] %v9047_v34  ;;  %v8037_v27 = vpop.eup %8036  ;;  %8056 = vpow2.f32 %v6572_v9  ;;  %v652_v51 = vmul.f32 %v8894_v35, %v8617_v62  ;;  %v988_v8 = vsel %vm8395_vm4, 0, %v987_v30  ;;  %v829_v6 = vadd.f32 1.0, %v8027_v4  ;;  %v990_v9 = vld [vmem:[#allocation2 + $0x48] sm:$0x1] }
 0x289   : > { %v8039_v2 = vpop.eup %8038  ;;  %8058 = vpow2.f32 %v6573_v18  ;;  %v9060_v3 = vadd.f32 %v8901_v38, %v659_v36  ;;  %v9063_v40 = vadd.f32 %v8901_v38, %v660_v63  ;;  %989 = vst [vmem:[#allocation2 + $0x3c] sm:$0x1] %v988_v8  ;;  %v830_v7 = vadd.f32 1.0, %v8029_v13  ;;  %v1040_v18 = vld [vmem:[#allocation2 + $0x50] sm:$0x1] }
 0x28a   : > { %v8041_v16 = vpop.eup %8040  ;;  %8060 = vpow2.f32 %v6574_v26  ;;  %v1038_v23 = vsel %vm8470_vm6, 0, %v1037_v42  ;;  %v9068_v62 = vadd.f32 %v8901_v38, %v661_v48  ;;  %v831_v4 = vadd.f32 1.0, %v8031_v15  ;;  %v1043_v8 = vld [vmem:[#allocation2 + $0x5c] sm:$0x1] }
 0x28b   : > { %11127 = vst [vmem:[#allocation9_spill] sm:$0xff] %v9060_v3  ;;  %11128 = vst [vmem:[#allocation10_spill] sm:$0xff] %v9063_v40  ;;  %v8043_v43 = vpop.eup %8042  ;;  %8062 = vpow2.f32 %v6575_v32  ;;  %v832_v21 = vadd.f32 1.0, %v8033_v33  ;;  %v653_v28 = vmul.f32 %v8894_v35, %v8621_v0  ;;  %v991_v13 = vsel %vm8395_vm4, 0, %v990_v9 }
 0x28c   : > { %11129 = vst [vmem:[#allocation11_spill] sm:$0xff] %v9068_v62  ;;  %v8045_v17 = vpop.eup %8044  ;;  %8064 = vpow2.f32 %v6576_v58  ;;  %1039 = vst [vmem:[#allocation2 + $0x44] sm:$0x1] %v1038_v23  ;;  %v833_v32 = vadd.f32 1.0, %v8035_v31  ;;  %v654_v48 = vmul.f32 %v8894_v35, %v8625_v1  ;;  %v1041_v15 = vsel %vm8470_vm6, 0, %v1040_v18 }
 0x28d   : > { %v8047_v26 = vpop.eup %8046  ;;  %8066 = vpow2.f32 %v6577_v60  ;;  %992 = vst [vmem:[#allocation2 + $0x48] sm:$0x1] %v991_v13  ;;  %v834_v36 = vadd.f32 1.0, %v8037_v27  ;;  %v9079_v33 = vadd.f32 %v8901_v38, %v651_v37  ;;  %v9082_v0 = vadd.f32 %v8901_v38, %v652_v51  ;;  %1042 = vst [vmem:[#allocation2 + $0x50] sm:$0x1] %v1041_v15 }
 0x28e   : > { %v8049_v30 = vpop.eup %8048  ;;  %8068 = vrcp.f32 %v829_v6  ;;  %v835_v31 = vadd.f32 1.0, %v8039_v2  ;;  %v655_v1 = vmul.f32 %v8894_v35, %v8633_v22  ;;  %v656_v42 = vmul.f32 %v8894_v35, %v8639_v24  ;;  %v993_v60 = vld [vmem:[#allocation2 + $0x54] sm:$0x1]  ;;  %v996_v24 = vld [vmem:[#allocation2 + $0x60] sm:$0x1] }
 0x28f   : > { %v8051_v58 = vpop.eup %8050  ;;  %8070 = vrcp.f32 %v830_v7  ;;  %11130 = vst [vmem:[#allocation12_spill] sm:$0xff] %v9079_v33  ;;  %11131 = vst [vmem:[#allocation13_spill] sm:$0xff] %v9082_v0  ;;  %v836_v6 = vadd.f32 1.0, %v8041_v16  ;;  %v994_v37 = vsel %vm8395_vm4, 0, %v993_v60  ;;  %v1044_v51 = vsel %vm8470_vm6, 0, %v1043_v8 }
 0x290   : > { %v8053_v63 = vpop.eup %8052  ;;  %8072 = vrcp.f32 %v831_v4  ;;  %v837_v2 = vadd.f32 1.0, %v8043_v43  ;;  %v9093_v23 = vadd.f32 %v8901_v38, %v653_v28  ;;  %v9096_v22 = vadd.f32 %v8901_v38, %v654_v48  ;;  %995 = vst [vmem:[#allocation2 + $0x54] sm:$0x1] %v994_v37  ;;  %1045 = vst [vmem:[#allocation2 + $0x5c] sm:$0x1] %v1044_v51 }
 0x291   : > { %v8055_v27 = vpop.eup %8054  ;;  %8074 = vrcp.f32 %v832_v21  ;;  %v1046_v35 = vld [vmem:[#allocation2 + $0x68] sm:$0x1]  ;;  %v838_v9 = vadd.f32 1.0, %v8045_v17  ;;  %v997_v18 = vsel %vm8395_vm4, 0, %v996_v24  ;;  %v839_v21 = vadd.f32 1.0, %v8047_v26 }
 0x292   : > { %v8057_v7 = vpop.eup %8056  ;;  %8076 = vrcp.f32 %v833_v32  ;;  %11132 = vst [vmem:[#allocation14_spill] sm:$0xff] %v9093_v23  ;;  %11133 = vst [vmem:[#allocation15_spill] sm:$0xff] %v9096_v22  ;;  %v1047_v43 = vsel %vm8470_vm6, 0, %v1046_v35  ;;  %v9103_v28 = vadd.f32 %v8901_v38, %v655_v1  ;;  %v9106_v13 = vadd.f32 %v8901_v38, %v656_v42 }
 0x293   : > { %v8059_v16 = vpop.eup %8058  ;;  %8078 = vrcp.f32 %v834_v36  ;;  %998 = vst [vmem:[#allocation2 + $0x60] sm:$0x1] %v997_v18  ;;  %1048 = vst [vmem:[#allocation2 + $0x68] sm:$0x1] %v1047_v43  ;;  %v840_v17 = vadd.f32 1.0, %v8049_v30  ;;  %v841_v15 = vadd.f32 1.0, %v8051_v58 }
 0x294   : > { %v8061_v4 = vpop.eup %8060  ;;  %8080 = vrcp.f32 %v835_v31  ;;  %11134 = vst [vmem:[#allocation16_spill] sm:$0xff] %v9103_v28  ;;  %11135 = vst [vmem:[#allocation17_spill] sm:$0xff] %v9106_v13  ;;  %v9109_v36 = vmul.f32 -1.442695, %v9079_v33  ;;  %v9112_v26 = vmul.f32 -1.442695, %v9082_v0 }
 0x295   : > { %v8063_v32 = vpop.eup %8062  ;;  %8082 = vrcp.f32 %v836_v6  ;;  %v842_v1 = vadd.f32 1.0, %v8053_v63  ;;  %v9115_v38 = vmul.f32 -1.442695, %v9093_v23  ;;  %v9118_v42 = vmul.f32 -1.442695, %v9096_v22 }
 0x296   : > { %v8065_v48 = vpop.eup %8064  ;;  %8084 = vrcp.f32 %v837_v2  ;;  %v843_v60 = vadd.f32 1.0, %v8055_v27  ;;  %v9121_v58 = vmul.f32 -1.442695, %v9103_v28  ;;  %v9124_v8 = vmul.f32 -1.442695, %v9106_v13 }
 0x297   : > { %v8067_v31 = vpop.eup %8066  ;;  %8086 = vrcp.f32 %v838_v9  ;;  %v844_v37 = vadd.f32 1.0, %v8057_v7  ;;  %v9127_v63 = vmul.f32 -1.442695, %v9036_v20  ;;  %v845_v24 = vadd.f32 1.0, %v8059_v16  ;;  %v1547_v13 = vld [vmem:[#allocation2 + $0x84] sm:$0xf] }
 0x298   : > { %v8069_v30 = vpop.eup %8068  ;;  %8088 = vrcp.f32 %v839_v21  ;;  %v9131_v27 = vmul.f32 -1.442695, %v9047_v34  ;;  %v9134_v35 = vmul.f32 -1.442695, %v9060_v3  ;;  %v846_v18 = vadd.f32 1.0, %v8061_v4 }
 0x299   : > { %v8071_v6 = vpop.eup %8070  ;;  %8090 = vrcp.f32 %v840_v17  ;;  %v925_v51 = vmul.f32 %v8069_v30, %v8916_v46  ;;  %v847_v17 = vadd.f32 1.0, %v8063_v32  ;;  %v9141_v16 = vmul.f32 -1.442695, %v9063_v40  ;;  %v1582_v23 = vld [vmem:[#allocation2 + $0xc0] sm:$0xf] }
 0x29a   : > { %v8073_v2 = vpop.eup %8072  ;;  %8092 = vrcp.f32 %v841_v15  ;;  %v926_v7 = vmul.f32 %v8071_v6, %v8921_v50  ;;  %v848_v30 = vadd.f32 1.0, %v8065_v48  ;;  %v9145_v4 = vmul.f32 -1.442695, %v9068_v62  ;;  %v1565_v0 = vld [vmem:[#allocation2 + $0xa4] sm:$0x1] }
 0x29b   : > { %v8075_v9 = vpop.eup %8074  ;;  %8094 = vrcp.f32 %v842_v1  ;;  %v9136_v43 = vpack.c.bf16 %v925_v51, %v925_v51  ;;  %v849_v51 = vadd.f32 1.0, %v8067_v31  ;;  %v927_v32 = vmul.f32 %v8073_v2, %v8924_v52  ;;  %v1572_v33 = vld [vmem:[#allocation2 + $0xb0] sm:$0x1] }
 0x29c   : > { %v8077_v21 = vpop.eup %8076  ;;  %8096 = vrcp.f32 %v843_v60  ;;  %v928_v46 = vmul.f32 %v8075_v9, %v8927_v61  ;;  %v9151_v48 = vpack.c.bf16 %v926_v7, %v926_v7 }
 0x29d   : > { %v8079_v15 = vpop.eup %8078  ;;  %8098 = vrcp.f32 %v844_v37  ;;  %v929_v3 = vmul.f32 %v8077_v21, %v8932_v5  ;;  %v1249_v6 = vshrl.u32 %v9136_v43, 16 }
 0x29e   : > { %v8081_v1 = vpop.eup %8080  ;;  %8100 = vrcp.f32 %v845_v24  ;;  %v930_v50 = vmul.f32 %v8079_v15, %v8939_v55  ;;  %v9154_v9 = vpack.c.bf16 %v928_v46, %v928_v46 }
 0x29f   : > { %v8083_v60 = vpop.eup %8082  ;;  %8102 = vrcp.f32 %v846_v18  ;;  %v931_v61 = vmul.f32 %v8081_v1, %v8946_v12  ;;  %v9157_v52 = vpack.c.bf16 %v929_v3, %v929_v3  ;;  %v9164_v1 = vpack.c.bf16 %v927_v32, %v927_v32 }
 0x2a0   : > { %v8085_v37 = vpop.eup %8084  ;;  %8104 = vrcp.f32 %v847_v17  ;;  %v932_v5 = vmul.f32 %v8083_v60, %v8953_v14  ;;  %v7005_v31 = vpack.c.bf16 %v930_v50, %v930_v50  ;;  %v9168_v60 = vrot.slane %v1249_v6, 7 }
 0x2a1   : > { %v8087_v24 = vpop.eup %8086  ;;  %8106 = vrcp.f32 %v848_v30  ;;  %v933_v55 = vmul.f32 %v8085_v37, %v8961_v10  ;;  %v9159_v2 = vpack.c.bf16 %v931_v61, %v931_v61 }
 0x2a2   : > { %v8089_v12 = vpop.eup %8088  ;;  %8108 = vrcp.f32 %v849_v51  ;;  %v934_v18 = vmul.f32 %v8087_v24, %v8967_v25  ;;  %v7007_v7 = vpack.c.bf16 %v932_v5, %v932_v5  ;;  %v1292_v21 = vshrl.u32 %v7005_v31, 16 }
 0x2a3   : > { %v8091_v17 = vpop.eup %8090  ;;  %v935_v14 = vmul.f32 %v8089_v12, %v8973_v19  ;;  %v7008_v46 = vpack.c.bf16 %v933_v55, %v933_v55  ;;  %v1300_v50 = vshrl.u32 %v9159_v2, 16  ;;  %v1295_v55 = vshll.u32 %v7005_v31, 16 }
 0x2a4   : > { %v8093_v30 = vpop.eup %8092  ;;  %v936_v10 = vmul.f32 %v8091_v17, %v8979_v53  ;;  %v7009_v3 = vpack.c.bf16 %v934_v18, %v934_v18  ;;  %v9172_v37 = vrot.slane %v1292_v21, 7  ;;  %v1309_v19 = vshrl.u32 %v7007_v7, 16 }
 0x2a5   : > { %v8095_v51 = vpop.eup %8094  ;;  %v937_v32 = vmul.f32 %v8093_v30, %v8985_v56  ;;  %v9175_v24 = vpack.c.bf16 %v935_v14, %v935_v14  ;;  %v1312_v17 = vshll.u32 %v7007_v7, 16  ;;  %v1317_v25 = vshrl.u32 %v7008_v46, 16 }
 0x2a6   : > { %v8097_v5 = vpop.eup %8096  ;;  %v938_v6 = vmul.f32 %v8095_v51, %v8991_v59  ;;  %v9179_v18 = vrot.slane %v1309_v19, 7  ;;  %v7011_v15 = vpack.c.bf16 %v936_v10, %v936_v10  ;;  %v9182_v62 = vrot.slane %v1300_v50, 7 }
 0x2a7   : > { %v8099_v12 = vpop.eup %8098  ;;  %v939_v21 = vmul.f32 %v8097_v5, %v9000_v39  ;;  %v1326_v56 = vshrl.u32 %v7009_v3, 16  ;;  %v9187_v53 = vor.u32 %v1295_v55, %v9172_v37  ;;  %v7012_v19 = vpack.c.bf16 %v937_v32, %v937_v32 }
 0x2a8   : > { %11136 = vst [vmem:[#allocation18_spill] sm:$0xff] %v9179_v18  ;;  %v8101_v61 = vpop.eup %8100  ;;  %v940_v31 = vmul.f32 %v8099_v12, %v9006_v44  ;;  %v9190_v59 = vor.u32 %v1312_v17, %v9179_v18  ;;  %v9193_v39 = vrot.slane %v1317_v25, 7  ;;  %v7013_v44 = vpack.c.bf16 %v938_v6, %v938_v6 }
 0x2a9   : > { %v8103_v14 = vpop.eup %8102  ;;  %v941_v30 = vmul.f32 %v8101_v61, %v9010_v57  ;;  %11137 = vst [vmem:[#allocation19_spill] sm:$0xff] %v9187_v53  ;;  %v9195_v10 = vrot.slane %v1326_v56, 7  ;;  %v1320_v12 = vshll.u32 %v7008_v46, 16  ;;  %v1334_v57 = vshrl.u32 %v9175_v24, 16 }
 0x2aa   : > { %11138 = vst [vmem:[#allocation20_spill] sm:$0xff] %v9190_v59  ;;  %v8105_v7 = vpop.eup %8104  ;;  %v942_v51 = vmul.f32 %v8103_v14, %v9016_v49  ;;  %v7014_v17 = vpack.c.bf16 %v939_v21, %v939_v21  ;;  %v1329_v53 = vshll.u32 %v7009_v3, 16  ;;  %v7015_v25 = vpack.c.bf16 %v940_v31, %v940_v31 }
 0x2ab   : > { %11139 = vst [vmem:[#allocation21_spill] sm:$0xff] %v9195_v10  ;;  %v8107_v50 = vpop.eup %8106  ;;  %v943_v5 = vmul.f32 %v8105_v7, %v9020_v54  ;;  %v7016_v32 = vpack.c.bf16 %v941_v30, %v941_v30  ;;  %v9205_v54 = vor.u32 %v1320_v12, %v9193_v39  ;;  %v1343_v6 = vshrl.u32 %v7011_v15, 16 }
 0x2ac   : > { %v8109_v61 = vpop.eup %8108  ;;  %v944_v55 = vmul.f32 %v8107_v50, %v9026_v45  ;;  %v7017_v56 = vpack.c.bf16 %v942_v51, %v942_v51  ;;  %v9208_v46 = vor.u32 %v1329_v53, %v9195_v10  ;;  %v9214_v21 = vrot.slane %v1334_v57, 7 }
 0x2ad   : > { %v945_v49 = vmul.f32 %v8109_v61, %v9029_v29  ;;  %v9202_v14 = vpack.c.bf16 %v943_v5, %v943_v5  ;;  %11140 = vst [vmem:[#allocation22_spill] sm:$0xff] %v9205_v54  ;;  %v1351_v3 = vshrl.u32 %v7012_v19, 16  ;;  %v1345_v29 = vrot.slane %v1343_v6, 7 }
 0x2ae   : > { %v9210_v7 = vpack.c.bf16 %v944_v55, %v944_v55  ;;  %11141 = vst [vmem:[#allocation23_spill] sm:$0xff] %v9214_v21  ;;  %v1346_v31 = vshll.u32 %v7011_v15, 16  ;;  %v1354_v30 = vshll.u32 %v7012_v19, 16  ;;  %v1360_v51 = vshrl.u32 %v7013_v44, 16 }
 0x2af   : > { %v9212_v45 = vpack.c.bf16 %v945_v49, %v945_v49  ;;  %v9216_v50 = vrot.slane %v1351_v3, 7  ;;  %v1363_v5 = vshll.u32 %v7013_v44, 16  ;;  %v1368_v12 = vshrl.u32 %v7014_v17, 16 }
 0x2b0   : > { %v1371_v61 = vshll.u32 %v7014_v17, 16  ;;  %v9224_v55 = vor.u32 %v1346_v31, %v1345_v29  ;;  %v1349_v57 = vrot.slane %v1345_v29, 4  ;;  %v1362_v49 = vrot.slane %v1360_v51, 7 }
 0x2b1   : > { %v1377_v59 = vshrl.u32 %v7015_v25, 16  ;;  %v1356_v15 = vor.u32 %v1354_v30, %v9216_v50  ;;  %v1358_v19 = vrot.slane %v9216_v50, 4  ;;  %v9228_v6 = vrot.slane %v1368_v12, 7 }
 0x2b2   : > { %v1380_v44 = vshll.u32 %v7015_v25, 16  ;;  %v1365_v3 = vor.u32 %v1363_v5, %v1362_v49  ;;  %v1366_v17 = vrot.slane %v1362_v49, 4  ;;  %v1385_v34 = vshrl.u32 %v7016_v32, 16  ;;  %v1554_v25 = vld [vmem:[#allocation2 + $0x90] sm:$0xf] }
 0x2b3   : > { %v1379_v40 = vrot.slane %v1377_v59, 7  ;;  %v1357_v20 = vsel %vm9220_vm12, %v1349_v57, %v1356_v15  ;;  %v1373_v31 = vor.u32 %v1371_v61, %v9228_v6  ;;  %v1375_v29 = vrot.slane %v9228_v6, 4  ;;  %v1558_v15 = vld [vmem:[#allocation2 + $0x98] sm:$0x1] }
 0x2b4   : > { %v1388_v51 = vshll.u32 %v7016_v32, 16  ;;  %v1387_v22 = vrot.slane %v1385_v34, 7  ;;  %v1394_v50 = vshrl.u32 %v7017_v56, 16  ;;  %1557 = vst.msk [vmem:[#allocation2 + $0x94] sm:$0xf] %vm962_vm7, %v1357_v20  ;;  %v1397_v5 = vshll.u32 %v7017_v56, 16 }
 0x2b5   : > { %v1382_v28 = vor.u32 %v1380_v44, %v1379_v40  ;;  %v1383_v30 = vrot.slane %v1379_v40, 4  ;;  %v1374_v59 = vsel %vm9220_vm12, %v1366_v17, %v1373_v31  ;;  %v1402_v12 = vshrl.u32 %v9202_v14, 16  ;;  %v1561_v40 = vld [vmem:[#allocation2 + $0x9c] sm:$0xf]  ;;  %v1568_v56 = vld [vmem:[#allocation2 + $0xa8] sm:$0xf] }
 0x2b6   : > { %v1405_v57 = vshll.u32 %v9202_v14, 16  ;;  %v1390_v34 = vor.u32 %v1388_v51, %v1387_v22  ;;  %v1392_v61 = vrot.slane %v1387_v22, 4  ;;  %v1396_v49 = vrot.slane %v1394_v50, 7  ;;  %1564 = vst.msk [vmem:[#allocation2 + $0xa0] sm:$0xf] %vm962_vm7, %v1374_v59 }
 0x2b7   : > { %v1411_v20 = vshrl.u32 %v9210_v7, 16  ;;  %v1404_v6 = vrot.slane %v1402_v12, 7  ;;  %v1414_v44 = vshll.u32 %v9210_v7, 16  ;;  %v1419_v14 = vshrl.u32 %v9212_v45, 16  ;;  %v1575_v31 = vld [vmem:[#allocation2 + $0xb4] sm:$0xf] }
 0x2b8   : > { %v1422_v17 = vshll.u32 %v9212_v45, 16  ;;  %v1391_v51 = vsel %vm9220_vm12, %v1383_v30, %v1390_v34  ;;  %v1399_v22 = vor.u32 %v1397_v5, %v1396_v49  ;;  %v1400_v50 = vrot.slane %v1396_v49, 4  ;;  %v1579_v45 = vld [vmem:[#allocation2 + $0xbc] sm:$0x1]  ;;  %v1586_v12 = vld [vmem:[#allocation2 + $0xc8] sm:$0x1] }
 0x2b9   : > { %v1413_v41 = vrot.slane %v1411_v20, 7  ;;  %v1407_v59 = vor.u32 %v1405_v57, %v1404_v6  ;;  %v1409_v18 = vrot.slane %v1404_v6, 4  ;;  %v1421_v54 = vrot.slane %v1419_v14, 7  ;;  %1571 = vst.msk [vmem:[#allocation2 + $0xac] sm:$0xf] %vm962_vm7, %v1391_v51 }
 0x2ba   : > { %v1548_v7 = vsel %vm9241_vm13, %v9208_v46, %v1547_v13  ;;  %v1555_v30 = vsel %vm9241_vm13, %v9224_v55, %v1554_v25  ;;  %v1559_v5 = vsel %vm8395_vm4, %v1358_v19, %v1558_v15  ;;  %v1562_v13 = vsel %vm9241_vm13, %v1365_v3, %v1561_v40  ;;  %v1516_v3 = vld [vmem:[#allocation2 + $0x50] sm:$0x1]  ;;  %v1519_v20 = vld [vmem:[#allocation2 + $0x54] sm:$0xf]  ;;  %v999_v51 = vld [vmem:[#allocation2 + $0x6c] sm:$0x1] }
 0x2bb   : > { %v1416_v21 = vor.u32 %v1414_v44, %v1413_v41  ;;  %v1417_v10 = vrot.slane %v1413_v41, 4  ;;  %1549 = vst [vmem:[#allocation2 + $0x84] sm:$0xf] %v1548_v7  ;;  %v1408_v57 = vsel %vm9220_vm12, %v1400_v50, %v1407_v59  ;;  %v1424_v34 = vor.u32 %v1422_v17, %v1421_v54  ;;  %1556 = vst [vmem:[#allocation2 + $0x90] sm:$0xf] %v1555_v30 }
 0x2bc   : > { %v1426_v49 = vrot.slane %v1421_v54, 4  ;;  %1560 = vst [vmem:[#allocation2 + $0x98] sm:$0x1] %v1559_v5  ;;  %1563 = vst [vmem:[#allocation2 + $0x9c] sm:$0xf] %v1562_v13  ;;  %v1566_v41 = vsel %vm8395_vm4, %v1375_v29, %v1565_v0  ;;  %v1569_v46 = vsel %vm9241_vm13, %v1382_v28, %v1568_v56  ;;  %v1573_v55 = vsel %vm8395_vm4, %v1392_v61, %v1572_v33 }
 0x2bd   : > { %v1576_v19 = vsel %vm9241_vm13, %v1399_v22, %v1575_v31  ;;  %1578 = vst.msk [vmem:[#allocation2 + $0xb8] sm:$0xf] %vm962_vm7, %v1408_v57  ;;  %v1425_v54 = vsel %vm9220_vm12, %v1417_v10, %v1424_v34  ;;  %1570 = vst [vmem:[#allocation2 + $0xa8] sm:$0xf] %v1569_v46  ;;  %v1580_v0 = vsel %vm8395_vm4, %v1409_v18, %v1579_v45  ;;  %8110 = vpow2.f32 %v9109_v36  ;;  %v1523_v56 = vld [vmem:[#allocation2 + $0x5c] sm:$0x1] }
 0x2be   : > { %1574 = vst [vmem:[#allocation2 + $0xb0] sm:$0x1] %v1573_v55  ;;  %1577 = vst [vmem:[#allocation2 + $0xb4] sm:$0xf] %v1576_v19  ;;  %v1583_v28 = vsel %vm9241_vm13, %v1416_v21, %v1582_v23  ;;  %v1587_v33 = vsel %vm8395_vm4, %v1426_v49, %v1586_v12  ;;  %v11146_v10 = vshll.u32 %v9136_v43, 16  ;;  %v1256_v18 = vrot.slane %v9168_v60, 4 }
 0x2bf   : > { %1567 = vst [vmem:[#allocation2 + $0xa4] sm:$0x1] %v1566_v41  ;;  %1581 = vst [vmem:[#allocation2 + $0xbc] sm:$0x1] %v1580_v0  ;;  %v1258_v23 = vshrl.u32 %v9151_v48, 16  ;;  %8112 = vpow2.f32 %v9112_v26  ;;  %v1261_v21 = vshll.u32 %v9151_v48, 16 }
 0x2c0   : > { %1584 = vst [vmem:[#allocation2 + $0xc0] sm:$0xf] %v1583_v28  ;;  %1585 = vst.msk [vmem:[#allocation2 + $0xc4] sm:$0xf] %vm962_vm7, %v1425_v54  ;;  %v9287_v29 = vor.u32 %v11146_v10, %v9168_v60  ;;  %v1266_v25 = vshrl.u32 %v9164_v1, 16  ;;  %v1269_v40 = vshll.u32 %v9164_v1, 16  ;;  %8114 = vpow2.f32 %v9115_v38 }
 0x2c1   : > { %1588 = vst [vmem:[#allocation2 + $0xc8] sm:$0x1] %v1587_v33  ;;  %v1517_v36 = vsel %vm8395_vm4, %v1256_v18, %v1516_v3  ;;  %v1260_v43 = vrot.slane %v1258_v23, 7  ;;  %v1275_v61 = vshrl.u32 %v9154_v9, 16  ;;  %8116 = vpow2.f32 %v9118_v42  ;;  %v1526_v44 = vld [vmem:[#allocation2 + $0x60] sm:$0xf] }
 0x2c2   : > { %1518 = vst [vmem:[#allocation2 + $0x50] sm:$0x1] %v1517_v36  ;;  %v1268_v60 = vrot.slane %v1266_v25, 7  ;;  %v11147_v26 = vshrl.u32 %v9157_v52, 16  ;;  %v1286_v15 = vshll.u32 %v9157_v52, 16  ;;  %8118 = vpow2.f32 %v9121_v58  ;;  %v11150_v19 = vld [vmem:[#allocation21_spill] sm:$0xff] }
 0x2c3   : > { %v1263_v1 = vor.u32 %v1261_v21, %v1260_v43  ;;  %v1264_v38 = vrot.slane %v1260_v43, 4  ;;  %v1277_v6 = vrot.slane %v1275_v61, 7  ;;  %8120 = vpow2.f32 %v9124_v8  ;;  %v1530_v31 = vld [vmem:[#allocation2 + $0x68] sm:$0x1]  ;;  %v1049_v59 = vld [vmem:[#allocation2 + $0x74] sm:$0x1] }
 0x2c4   : > { %v1285_v48 = vrot.slane %v11147_v26, 7  ;;  %v1271_v14 = vor.u32 %v1269_v40, %v1268_v60  ;;  %v1273_v17 = vrot.slane %v1268_v60, 4  ;;  %8122 = vpow2.f32 %v9127_v63  ;;  %v1002_v5 = vld [vmem:[#allocation2 + $0x78] sm:$0x1]  ;;  %v1052_v57 = vld [vmem:[#allocation2 + $0x80] sm:$0x1] }
 0x2c5   : > { %v1520_v22 = vsel %vm9241_vm13, %v1263_v1, %v1519_v20  ;;  %v11148_v52 = vshll.u32 %v9154_v9, 16  ;;  %v1281_v50 = vrot.slane %v1277_v6, 4  ;;  %8124 = vpow2.f32 %v9131_v27  ;;  %v11151_v0 = vld [vmem:[#allocation23_spill] sm:$0xff]  ;;  %v1055_v3 = vld [vmem:[#allocation2 + $0x8c] sm:$0x1]  ;;  %v11152_v20 = vld [vmem:[#allocation22_spill] sm:$0xff] }
 0x2c6   : > { %v1288_v42 = vor.u32 %v1286_v15, %v1285_v48  ;;  %v1272_v8 = vsel %vm9220_vm12, %v1264_v38, %v1271_v14  ;;  %1521 = vst [vmem:[#allocation2 + $0x54] sm:$0xf] %v1520_v22  ;;  %v1524_v7 = vsel %vm8395_vm4, %v1273_v17, %v1523_v56  ;;  %v1290_v45 = vrot.slane %v1285_v48, 4  ;;  %v11153_v26 = vld [vmem:[#allocation18_spill] sm:$0xff] }
 0x2c7   : > { %v1280_v58 = vor.u32 %v11148_v52, %v1277_v6  ;;  %v1324_v63 = vrot.slane %v9193_v39, 4  ;;  %8126 = vpow2.f32 %v9134_v35  ;;  %1522 = vst.msk [vmem:[#allocation2 + $0x58] sm:$0xf] %vm962_vm7, %v1272_v8  ;;  %1525 = vst [vmem:[#allocation2 + $0x5c] sm:$0x1] %v1524_v7  ;;  %v1337_v12 = vshll.u32 %v9175_v24, 16  ;;  %v8111_v34 = vpop.eup %8110 }
 0x2c8   : > { %v1289_v9 = vsel %vm9220_vm12, %v1281_v50, %v1288_v42  ;;  %8128 = vpow2.f32 %v9141_v16  ;;  %v1531_v30 = vsel %vm8395_vm4, %v1290_v45, %v1530_v31  ;;  %v1000_v35 = vsel %vm8395_vm4, 0, %v999_v51 }
 0x2c9   : > { %v1527_v27 = vsel %vm9241_vm13, %v1280_v58, %v1526_v44  ;;  %1529 = vst.msk [vmem:[#allocation2 + $0x64] sm:$0xf] %vm962_vm7, %v1289_v9  ;;  %8130 = vpow2.f32 %v9145_v4  ;;  %v9330_v49 = vld [vmem:[#allocation2 + $0x50] sm:$0x1]  ;;  %1532 = vst [vmem:[#allocation2 + $0x68] sm:$0x1] %v1531_v30  ;;  %v8113_v55 = vpop.eup %8112  ;;  %v1339_v4 = vor.u32 %v1337_v12, %v11151_v0 }
 0x2ca   : > { %1528 = vst [vmem:[#allocation2 + $0x60] sm:$0xf] %v1527_v27  ;;  %v9332_v13 = vld [vmem:[#allocation2 + $0x50] sm:$0x1]  ;;  %1001 = vst [vmem:[#allocation2 + $0x6c] sm:$0x1] %v1000_v35  ;;  %v8115_v10 = vpop.eup %8114 }
 0x2cb   : > { %v1050_v16 = vsel %vm8470_vm6, 0, %v1049_v59  ;;  %v1298_v24 = vrot.slane %v9172_v37, 4  ;;  %v11149_v41 = vshll.u32 %v9159_v2, 16  ;;  %v1332_v54 = vrot.slane %v11150_v19, 4  ;;  %v8117_v21 = vpop.eup %8116 }
 0x2cc   : > { %v1341_v28 = vrot.slane %v11151_v0, 4  ;;  %v818_v33 = vadd.f32 1.0, %v8111_v34  ;;  %1051 = vst [vmem:[#allocation2 + $0x74] sm:$0x1] %v1050_v16  ;;  %v819_v18 = vadd.f32 1.0, %v8113_v55  ;;  %v1003_v37 = vsel %vm8395_vm4, 0, %v1002_v5  ;;  %v8119_v43 = vpop.eup %8118 }
 0x2cd   : > { %v1305_v46 = vor.u32 %v11149_v41, %v9182_v62  ;;  %v1053_v2 = vsel %vm8470_vm6, 0, %v1052_v57  ;;  %v820_v25 = vadd.f32 1.0, %v8115_v10  ;;  %v1812_v40 = vshll.u32 %v9330_v49, 16  ;;  %1004 = vst [vmem:[#allocation2 + $0x78] sm:$0x1] %v1003_v37  ;;  %v8121_v38 = vpop.eup %8120 }
 0x2ce   : > { %8132 = vrcp.f32 %v818_v33  ;;  %v3691_v36 = vshll.u32 %v9332_v13, 16  ;;  %1054 = vst [vmem:[#allocation2 + $0x80] sm:$0x1] %v1053_v2  ;;  %v821_v61 = vadd.f32 1.0, %v8117_v21  ;;  %v3521_v60 = vld [vmem:[#allocation2 + $0x54] sm:$0xf]  ;;  %v1340_v14 = vsel %vm9220_vm12, %v1332_v54, %v1339_v4  ;;  %v8123_v17 = vpop.eup %8122 }
 0x2cf   : > { %v1306_v23 = vsel %vm9220_vm12, %v1298_v24, %v1305_v46  ;;  %8134 = vrcp.f32 %v819_v18  ;;  %v11154_v48 = vrot.slane %v11153_v26, 4  ;;  %v1056_v1 = vsel %vm8470_vm6, 0, %v1055_v3  ;;  %v3522_v6 = vld [vmem:[#allocation2 + $0x58] sm:$0xf]  ;;  %v1603_v22 = vld [vmem:[#allocation2 + $0x54] sm:$0xf]  ;;  %v8125_v47 = vpop.eup %8124 }
 0x2d0   : > { %1536 = vst.msk [vmem:[#allocation2 + $0x70] sm:$0xf] %vm962_vm7, %v1306_v23  ;;  %8136 = vrcp.f32 %v820_v25  ;;  %v822_v56 = vadd.f32 1.0, %v8119_v43  ;;  %v3696_v44 = vshrl.u32 %v3521_v60, 16  ;;  %1057 = vst [vmem:[#allocation2 + $0x8c] sm:$0x1] %v1056_v1 }
 0x2d1   : > { %v1323_v15 = vsel %vm9220_vm12, %v11154_v48, %v11152_v20  ;;  %8138 = vrcp.f32 %v821_v61  ;;  %v823_v42 = vadd.f32 1.0, %v8121_v38  ;;  %v3699_v31 = vshll.u32 %v3521_v60, 16  ;;  %1550 = vst.msk [vmem:[#allocation2 + $0x88] sm:$0xf] %vm962_vm7, %v1340_v14  ;;  %v3523_v58 = vld [vmem:[#allocation2 + $0x5c] sm:$0x1]  ;;  %v8127_v8 = vpop.eup %8126 }
 0x2d2   : > { %1543 = vst.msk [vmem:[#allocation2 + $0x7c] sm:$0xf] %vm962_vm7, %v1323_v15  ;;  %v3705_v51 = vshll.u32 %v3522_v6, 16  ;;  %8140 = vrcp.f32 %v822_v56  ;;  %v824_v52 = vadd.f32 1.0, %v8123_v17  ;;  %v3698_v50 = vrot.slane %v3696_v44, 4  ;;  %v8129_v27 = vpop.eup %8128  ;;  %v11155_v2 = vld [vmem:[#allocation12_spill] sm:$0xff] }
 0x2d3   : > { %v3709_v59 = vshrl.u32 %v3522_v6, 16  ;;  %8142 = vrcp.f32 %v823_v42  ;;  %v825_v7 = vadd.f32 1.0, %v8125_v47  ;;  %v3701_v45 = vrot.slane %v3699_v31, 5  ;;  %v8131_v5 = vpop.eup %8130  ;;  %v1604_v13 = vld [vmem:[#allocation2 + $0x58] sm:$0xf]  ;;  %v11156_v43 = vld [vmem:[#allocation13_spill] sm:$0xff] }
 0x2d4   : > { %v9363_v9 = vrot.slane %v3705_v51, 5  ;;  %8144 = vrcp.f32 %v824_v52  ;;  %v826_v12 = vadd.f32 1.0, %v8127_v8  ;;  %v1307_v35 = vrot.slane %v9182_v62, 4  ;;  %v9373_v54 = vld [vmem:[#allocation2 + $0x5c] sm:$0x1]  ;;  %v11159_v17 = vld [vmem:[#allocation15_spill] sm:$0xff] }
 0x2d5   : > { %v3711_v30 = vrot.slane %v3709_v59, 4  ;;  %v827_v57 = vadd.f32 1.0, %v8129_v27  ;;  %v3702_v34 = vor.u32 %v3701_v45, %v3698_v50  ;;  %v3715_v49 = vshll.u32 %v3523_v58, 16  ;;  %v11158_v1 = vld [vmem:[#allocation14_spill] sm:$0xff]  ;;  %v11160_v50 = vld [vmem:[#allocation16_spill] sm:$0xff] }
 0x2d6   : > { %v1817_v16 = vshrl.u32 %v1603_v22, 16  ;;  %8146 = vrcp.f32 %v825_v7  ;;  %v828_v24 = vadd.f32 1.0, %v8131_v5  ;;  %v9366_v41 = vrot.slane %v1812_v40, 5 }
 0x2d7   : > { %v3712_v46 = vor.u32 %v3711_v30, %v9363_v9  ;;  %8148 = vrcp.f32 %v826_v12  ;;  %v9369_v55 = vrot.slane %v3691_v36, 5  ;;  %v9371_v19 = vrot.slane %v3702_v34, 4  ;;  %v11161_v12 = vld [vmem:[#allocation17_spill] sm:$0xff] }
 0x2d8   : > { %v1820_v4 = vshll.u32 %v1603_v22, 16  ;;  %v8133_v33 = vpop.eup %8132  ;;  %v9377_v10 = vrot.slane %v1817_v16, 4  ;;  %v1826_v18 = vshll.u32 %v1604_v13, 16  ;;  %v1830_v23 = vshrl.u32 %v1604_v13, 16 }
 0x2d9   : > { %v9375_v3 = vrot.slane %v3712_v46, 4  ;;  %v8135_v37 = vpop.eup %8134  ;;  %v914_v21 = vmul.f32 %v8133_v33, %v11155_v2  ;;  %8150 = vrcp.f32 %v827_v57  ;;  %v9380_v25 = vrot.slane %v3715_v49, 5  ;;  %v1481_v2 = vld [vmem:[#allocation2 + $0x14] sm:$0x1] }
 0x2da   : > { %v9382_v40 = vrot.slane %v1820_v4, 5  ;;  %v8137_v36 = vpop.eup %8136  ;;  %v915_v61 = vmul.f32 %v8135_v37, %v11156_v43  ;;  %8152 = vrcp.f32 %v828_v24  ;;  %v3708_v20 = vsel %vm8868_vm10, %v9371_v19, %v9363_v9  ;;  %v1477_v24 = vld [vmem:[#allocation2 + $0xc] sm:$0xf] }
 0x2db   : > { %v1836_v26 = vshll.u32 %v9373_v54, 16  ;;  %v8139_v48 = vpop.eup %8138  ;;  %v6989_v15 = vpack.c.bf16 %v914_v21, %v914_v21  ;;  %v916_v38 = vmul.f32 %v8137_v36, %v11158_v1  ;;  %v3718_v56 = vsel %vm8868_vm10, %v9375_v3, %v9380_v25 }
 0x2dc   : > { %v9395_v6 = vrot.slane %v1826_v18, 5  ;;  %v8141_v44 = vpop.eup %8140  ;;  %v6990_v14 = vpack.c.bf16 %v915_v61, %v915_v61  ;;  %v917_v42 = vmul.f32 %v8139_v48, %v11159_v17  ;;  %v1823_v31 = vor.u32 %v9382_v40, %v9377_v10 }
 0x2dd   : > { %v9400_v51 = vrot.slane %v1830_v23, 4  ;;  %v8143_v22 = vpop.eup %8142  ;;  %v1156_v47 = vshrl.u32 %v6989_v15, 16  ;;  %v1159_v52 = vshll.u32 %v6989_v15, 16  ;;  %v6991_v58 = vpack.c.bf16 %v916_v38, %v916_v38  ;;  %v1484_v15 = vld [vmem:[#allocation2 + $0x18] sm:$0xf] }
 0x2de   : > { %v918_v59 = vmul.f32 %v8141_v44, %v11160_v50  ;;  %v8145_v8 = vpop.eup %8144  ;;  %v1164_v7 = vshrl.u32 %v6990_v14, 16  ;;  %v1167_v45 = vshll.u32 %v6990_v14, 16  ;;  %v6992_v27 = vpack.c.bf16 %v917_v42, %v917_v42  ;;  %v1488_v42 = vld [vmem:[#allocation2 + $0x20] sm:$0x1] }
 0x2df   : > { %v919_v30 = vmul.f32 %v8143_v22, %v11161_v12  ;;  %v1158_v5 = vrot.slane %v1156_v47, 7  ;;  %v1173_v57 = vshrl.u32 %v6991_v58, 16  ;;  %v1176_v34 = vshll.u32 %v6991_v58, 16 }
 0x2e0   : > { %v6993_v49 = vpack.c.bf16 %v918_v59, %v918_v59  ;;  %v8147_v13 = vpop.eup %8146  ;;  %v1166_v16 = vrot.slane %v1164_v7, 7  ;;  %v1181_v46 = vshrl.u32 %v6992_v27, 16  ;;  %v1184_v4 = vshll.u32 %v6992_v27, 16  ;;  %v1491_v7 = vld [vmem:[#allocation2 + $0x24] sm:$0xf] }
 0x2e1   : > { %v6994_v33 = vpack.c.bf16 %v919_v30, %v919_v30  ;;  %v8149_v18 = vpop.eup %8148  ;;  %v1161_v23 = vor.u32 %v1159_v52, %v1158_v5  ;;  %v1162_v37 = vrot.slane %v1158_v5, 4  ;;  %v1175_v21 = vrot.slane %v1173_v57, 7 }
 0x2e2   : > { %v1190_v36 = vshrl.u32 %v6993_v49, 16  ;;  %v1169_v43 = vor.u32 %v1167_v45, %v1166_v16  ;;  %v1171_v61 = vrot.slane %v1166_v16, 4  ;;  %v1183_v48 = vrot.slane %v1181_v46, 7 }
 0x2e3   : > { %v1193_v1 = vshll.u32 %v6993_v49, 16  ;;  %v8151_v38 = vpop.eup %8150  ;;  %v1478_v44 = vsel %vm9241_vm13, %v1161_v23, %v1477_v24  ;;  %v1178_v14 = vor.u32 %v1176_v34, %v1175_v21  ;;  %v1179_v17 = vrot.slane %v1175_v21, 4  ;;  %v11162_v49 = vld [vmem:[#allocation7_spill] sm:$0xff]  ;;  %v1495_v21 = vld [vmem:[#allocation2 + $0x2c] sm:$0x1] }
 0x2e4   : > { %v1192_v22 = vrot.slane %v1190_v36, 7  ;;  %v8153_v47 = vpop.eup %8152  ;;  %v1170_v52 = vsel %vm9220_vm12, %v1162_v37, %v1169_v43  ;;  %1479 = vst [vmem:[#allocation2 + $0xc] sm:$0xf] %v1478_v44  ;;  %v1482_v58 = vsel %vm8395_vm4, %v1171_v61, %v1481_v2  ;;  %v1186_v50 = vor.u32 %v1184_v4, %v1183_v48  ;;  %v11163_v4 = vld [vmem:[#allocation8_spill] sm:$0xff]  ;;  %v11164_v37 = vld [vmem:[#allocation9_spill] sm:$0xff]  ;;  %v11165_v43 = vld [vmem:[#allocation10_spill] sm:$0xff] }
 0x2e5   : > { %v1188_v59 = vrot.slane %v1183_v48, 4  ;;  %1480 = vst.msk [vmem:[#allocation2 + $0x10] sm:$0xf] %vm962_vm7, %v1170_v52  ;;  %1483 = vst [vmem:[#allocation2 + $0x14] sm:$0x1] %v1482_v58  ;;  %v1485_v45 = vsel %vm9241_vm13, %v1178_v14, %v1484_v15  ;;  %v1198_v30 = vshrl.u32 %v6994_v33, 16  ;;  %v920_v16 = vmul.f32 %v8145_v8, %v11162_v49 }
 0x2e6   : > { %v1195_v27 = vor.u32 %v1193_v1, %v1192_v22  ;;  %v1196_v12 = vrot.slane %v1192_v22, 4  ;;  %v1187_v5 = vsel %vm9220_vm12, %v1179_v17, %v1186_v50  ;;  %1486 = vst [vmem:[#allocation2 + $0x18] sm:$0xf] %v1485_v45  ;;  %v1201_v34 = vshll.u32 %v6994_v33, 16  ;;  %v11166_v33 = vld [vmem:[#allocation11_spill] sm:$0xff] }
 0x2e7   : > { %v1489_v57 = vsel %vm8395_vm4, %v1188_v59, %v1488_v42  ;;  %1487 = vst.msk [vmem:[#allocation2 + $0x1c] sm:$0xf] %vm962_vm7, %v1187_v5  ;;  %v1200_v24 = vrot.slane %v1198_v30, 7  ;;  %v921_v23 = vmul.f32 %v8147_v13, %v11163_v4  ;;  %v922_v2 = vmul.f32 %v8149_v18, %v11164_v37 }
 0x2e8   : > { %1490 = vst [vmem:[#allocation2 + $0x20] sm:$0x1] %v1489_v57  ;;  %v1492_v46 = vsel %vm9241_vm13, %v1195_v27, %v1491_v7  ;;  %v9423_v36 = vpack.c.bf16 %v920_v16, %v920_v16  ;;  %v923_v61 = vmul.f32 %v8151_v38, %v11165_v43  ;;  %v924_v48 = vmul.f32 %v8153_v47, %v11166_v33  ;;  %v1533_v38 = vld [vmem:[#allocation2 + $0x6c] sm:$0xf] }
 0x2e9   : > { %1493 = vst [vmem:[#allocation2 + $0x24] sm:$0xf] %v1492_v46  ;;  %v9437_v8 = vcombine.low %v3708_v20, %v3718_v56  ;;  %v1203_v13 = vor.u32 %v1201_v34, %v1200_v24  ;;  %v1205_v18 = vrot.slane %v1200_v24, 4  ;;  %v9439_v15 = vpack.c.bf16 %v921_v23, %v921_v23 }
 0x2ea   : > { %v1833_v1 = vor.u32 %v9400_v51, %v9395_v6  ;;  %v1207_v44 = vshrl.u32 %v9423_v36, 16  ;;  %v9444_v14 = vpack.c.bf16 %v922_v2, %v922_v2  ;;  %v9449_v3 = vrot.slane %v1823_v31, 4 }
 0x2eb   : > { %v9453_v9 = vrot.slane %v1836_v26, 5  ;;  %v1591_v19 = vld [vmem:[#allocation2 + $0xc] sm:$0xf]  ;;  %v1204_v20 = vsel %vm9220_vm12, %v1196_v12, %v1203_v13  ;;  %v1496_v56 = vsel %vm8395_vm4, %v1205_v18, %v1495_v21  ;;  %v1210_v17 = vshll.u32 %v9423_v36, 16  ;;  %v11167_v26 = vld [vmem:[#allocation19_spill] sm:$0xff] }
 0x2ec   : > { %v3503_v25 = vld [vmem:[#allocation2 + $0xc] sm:$0xf]  ;;  %v9460_v42 = vpack.c.bf16 %v923_v61, %v923_v61  ;;  %v1592_v22 = vld [vmem:[#allocation2 + $0x10] sm:$0xf]  ;;  %v1630_v10 = vld [vmem:[#allocation2 + $0x14] sm:$0x1]  ;;  %v9463_v54 = vpack.c.bf16 %v924_v48, %v924_v48  ;;  %v1534_v47 = vsel %vm9241_vm13, %v11167_v26, %v1533_v38 }
 0x2ed   : > { %v1673_v40 = vshrl.u32 %v1591_v19, 16  ;;  %v1676_v31 = vshll.u32 %v1591_v19, 16  ;;  %1494 = vst.msk [vmem:[#allocation2 + $0x28] sm:$0xf] %vm962_vm7, %v1204_v20  ;;  %1497 = vst [vmem:[#allocation2 + $0x2c] sm:$0x1] %v1496_v56 }
 0x2ee   : > { %v1682_v52 = vshll.u32 %v1592_v22, 16  ;;  %v1686_v58 = vshrl.u32 %v1592_v22, 16  ;;  %v9468_v50 = vld [vmem:[#allocation2 + $0x10] sm:$0xf]  ;;  %v1215_v59 = vshrl.u32 %v9439_v15, 16  ;;  %v1218_v7 = vshll.u32 %v9439_v15, 16 }
 0x2ef   : > { %1535 = vst [vmem:[#allocation2 + $0x6c] sm:$0xf] %v1534_v47  ;;  %v1675_v45 = vrot.slane %v1673_v40, 4  ;;  %v1678_v27 = vrot.slane %v1676_v31, 5  ;;  %v9472_v12 = vld [vmem:[#allocation2 + $0x14] sm:$0x1] }
 0x2f0   : > { %v3552_v30 = vshrl.u32 %v3503_v25, 16  ;;  %v3555_v5 = vshll.u32 %v3503_v25, 16  ;;  %v1684_v57 = vrot.slane %v1682_v52, 5  ;;  %v1688_v34 = vrot.slane %v1686_v58, 4  ;;  %v1593_v24 = vld [vmem:[#allocation2 + $0x18] sm:$0xf] }
 0x2f1   : > { %v1692_v49 = vshll.u32 %v1630_v10, 16  ;;  %v3561_v16 = vshll.u32 %v9468_v50, 16  ;;  %v1679_v46 = vor.u32 %v1678_v27, %v1675_v45  ;;  %v3565_v37 = vshrl.u32 %v9468_v50, 16  ;;  %v1594_v2 = vld [vmem:[#allocation2 + $0x1c] sm:$0xf] }
 0x2f2   : > { %v3554_v4 = vrot.slane %v3552_v30, 4  ;;  %v3557_v23 = vrot.slane %v3555_v5, 5  ;;  %v1689_v21 = vor.u32 %v1688_v34, %v1684_v57  ;;  %v3571_v61 = vshll.u32 %v9472_v12, 16  ;;  %v1631_v31 = vld [vmem:[#allocation2 + $0x20] sm:$0x1] }
 0x2f3   : > { %v3563_v43 = vrot.slane %v3561_v16, 5  ;;  %v1697_v33 = vshrl.u32 %v1593_v24, 16  ;;  %v1680_v48 = vrot.slane %v1679_v46, 4  ;;  %v3567_v18 = vrot.slane %v3565_v37, 4  ;;  %v3506_v47 = vld [vmem:[#allocation2 + $0x18] sm:$0xf] }
 0x2f4   : > { %v3558_v13 = vor.u32 %v3557_v23, %v3554_v4  ;;  %v1700_v38 = vshll.u32 %v1593_v24, 16  ;;  %v1690_v19 = vrot.slane %v1689_v21, 4  ;;  %v1694_v25 = vrot.slane %v1692_v49, 5  ;;  %v9481_v30 = vld [vmem:[#allocation2 + $0x1c] sm:$0xf] }
 0x2f5   : > { %v1699_v20 = vrot.slane %v1697_v33, 4  ;;  %v1706_v56 = vshll.u32 %v1594_v2, 16  ;;  %v1685_v22 = vsel %vm8868_vm10, %v1680_v48, %v1684_v57  ;;  %v3568_v40 = vor.u32 %v3567_v18, %v3563_v43  ;;  %v7962_v57 = vld [vmem:[%s11090_s4 + $0x8] sm:$0xff]   ;;  %v9488_v4 = vld [vmem:[#allocation2 + $0x20] sm:$0x1] }
 0x2f6   : > { %v3559_v10 = vrot.slane %v3558_v13, 4  ;;  %v1702_v26 = vrot.slane %v1700_v38, 5  ;;  %v1695_v52 = vsel %vm8868_vm10, %v1690_v19, %v1694_v25  ;;  %v3573_v58 = vrot.slane %v3571_v61, 5  ;;  %v8154_v13 = vld [vmem:[%s11090_s4] sm:$0xff]  }
 0x2f7   : > { %v1708_v45 = vrot.slane %v1706_v56, 5  ;;  %v1710_v27 = vshrl.u32 %v1594_v2, 16  ;;  %v6611_v5 = vcombine.low %v1685_v22, %v1695_v52  ;;  %v3569_v49 = vrot.slane %v3568_v40, 4  ;;  %v3509_v19 = vld [vmem:[#allocation2 + $0x24] sm:$0xf]  ;;  %v7965_v40 = vld [vmem:[%s11090_s4 + $0x10] sm:$0xff]  }
 0x2f8   : > { %v3564_v34 = vsel %vm8868_vm10, %v3559_v10, %v3563_v43  ;;  %v1703_v16 = vor.u32 %v1702_v26, %v1699_v20  ;;  %v1716_v46 = vshll.u32 %v1631_v31, 16  ;;  %v3576_v23 = vshrl.u32 %v3506_v47, 16  ;;  %v9499_v22 = vld [vmem:[#allocation2 + $0x28] sm:$0xf] }
 0x2f9   : > { %v1712_v24 = vrot.slane %v1710_v27, 4  ;;  %v3579_v37 = vshll.u32 %v3506_v47, 16  ;;  %7267 = vmatmul.mubr.msk.bf16.vlgmr.msra.gmra.mrb[4].mxu1 %vm283_vm3, %v6611_v5  ;;  %v3574_v2 = vsel %vm8868_vm10, %v3569_v49, %v3573_v58  ;;  %v3585_v43 = vshll.u32 %v9481_v30, 16  ;;  %v9511_v58 = vld [vmem:[#allocation2 + $0x2c] sm:$0x1] }
 0x2fa   : > { %v1704_v21 = vrot.slane %v1703_v16, 4  ;;  %v3589_v61 = vshrl.u32 %v9481_v30, 16  ;;  %v6770_v33 = vcombine.low %v3564_v34, %v3574_v2  ;;  %7299 = vmatpush3.bf16.msra.mxu1 %v8154_v13  ;;  %v3578_v18 = vrot.slane %v3576_v23, 4  ;;  %v1595_v27 = vld [vmem:[#allocation2 + $0x24] sm:$0xf] }
 0x2fb   : > { %v1713_v48 = vor.u32 %v1712_v24, %v1708_v45  ;;  %v3581_v38 = vrot.slane %v3579_v37, 5  ;;  %v3587_v25 = vrot.slane %v3585_v43, 5  ;;  %v3595_v56 = vshll.u32 %v9488_v4, 16  ;;  %7300 = vmatprep.subr.bf16.mxu1 %v7962_v57  ;;  %v1596_v24 = vld [vmem:[#allocation2 + $0x28] sm:$0xf] }
 0x2fc   : > { %v3591_v20 = vrot.slane %v3589_v61, 4  ;;  %v1829_v10 = vsel %vm8868_vm10, %v9449_v3, %v9395_v6  ;;  %7426 = vmatprep.mubr.msk.bf16.mxu0 %vm283_vm3, %v6770_v33  ;;  %v1709_v31 = vsel %vm8868_vm10, %v1704_v21, %v1708_v45  ;;  %v1718_v47 = vrot.slane %v1716_v46, 5  ;;  %v1632_v33 = vld [vmem:[#allocation2 + $0x2c] sm:$0x1] }
 0x2fd   : > { %v1714_v26 = vrot.slane %v1713_v48, 4  ;;  %v3582_v52 = vor.u32 %v3581_v38, %v3578_v18  ;;  %v3597_v34 = vrot.slane %v3595_v56, 5  ;;  %v3600_v49 = vshrl.u32 %v3509_v19, 16  ;;  %v7967_v48 = vld [vmem:[%s11090_s4 + $0x18] sm:$0xff]  }
 0x2fe   : > { %v3592_v5 = vor.u32 %v3591_v20, %v3587_v25  ;;  %v3603_v16 = vshll.u32 %v3509_v19, 16  ;;  %v3609_v2 = vshll.u32 %v9499_v22, 16  ;;  %v3613_v43 = vshrl.u32 %v9499_v22, 16  ;;  %7301 = vmatpush3.bf16.msra.mxu1 %v7962_v57  ;;  %v7961_v57 = vld [vmem:[%s11090_s4 + $0xa8] sm:$0xff]  }
 0x2ff   : > { %v1719_v23 = vsel %vm8868_vm10, %v1714_v26, %v1718_v47  ;;  %v3583_v37 = vrot.slane %v3582_v52, 4  ;;  %v3602_v21 = vrot.slane %v3600_v49, 4  ;;  %7302 = vmatprep.subr.bf16.mxu1 %v7965_v40  ;;  %v3619_v19 = vshll.u32 %v9511_v58, 16 }
 0x300   : > { %v6612_v45 = vcombine.low %v1709_v31, %v1719_v23  ;;  %v3593_v46 = vrot.slane %v3592_v5, 4  ;;  %v3605_v61 = vrot.slane %v3603_v16, 5  ;;  %v3611_v18 = vrot.slane %v3609_v2, 5 }
 0x301   : > { %v3588_v13 = vsel %vm8868_vm10, %v3583_v37, %v3587_v25  ;;  %v3615_v38 = vrot.slane %v3613_v43, 4  ;;  %v1721_v31 = vshrl.u32 %v1595_v27, 16  ;;  %v1724_v26 = vshll.u32 %v1595_v27, 16  ;;  %v7969_v25 = vld [vmem:[%s11090_s4 + $0x40] sm:$0xff]  }
 0x302   : > { %7270 = vmatprep.mubr.msk.bf16.mxu1 %vm283_vm3, %v6612_v45  ;;  %v3598_v20 = vsel %vm8868_vm10, %v3593_v46, %v3597_v34  ;;  %v3606_v56 = vor.u32 %v3605_v61, %v3602_v21  ;;  %v3621_v5 = vrot.slane %v3619_v19, 5  ;;  %v1730_v49 = vshll.u32 %v1596_v24, 16  ;;  %7303 = vmatpush3.bf16.msra.mxu1 %v7965_v40  ;;  %v8155_v46 = vld [vmem:[%s11090_s4 + $0xa0] sm:$0xff]  }
 0x303   : > { %v6771_v47 = vcombine.low %v3588_v13, %v3598_v20  ;;  %v3616_v52 = vor.u32 %v3615_v38, %v3611_v18  ;;  %v1723_v23 = vrot.slane %v1721_v31, 4  ;;  %v1726_v37 = vrot.slane %v1724_v26, 5  ;;  %7304 = vmatprep.subr.bf16.mxu1 %v7967_v48  ;;  %v1498_v13 = vld [vmem:[#allocation2 + $0x30] sm:$0xf]  ;;  %v1502_v26 = vld [vmem:[#allocation2 + $0x38] sm:$0x1] }
 0x304   : > { %v3607_v16 = vrot.slane %v3606_v56, 4  ;;  %v1734_v2 = vshrl.u32 %v1596_v24, 16  ;;  %v1732_v43 = vrot.slane %v1730_v49, 5  ;;  %v1740_v45 = vshll.u32 %v1632_v33, 16  ;;  %v7963_v20 = vld [vmem:[%s11090_s4 + $0xb0] sm:$0xff]  }
 0x305   : > { %7427 = vmatmul.mubr.msk.bf16.vlgmr.msra.gmra.mrb[4].mxu0 %vm283_vm3, %v6771_v47  ;;  %v3617_v34 = vrot.slane %v3616_v52, 4  ;;  %v1209_v27 = vrot.slane %v1207_v44, 7  ;;  %v1727_v21 = vor.u32 %v1726_v37, %v1723_v23  ;;  %v1217_v24 = vrot.slane %v1215_v59, 7  ;;  %v7964_v37 = vld [vmem:[%s11090_s4 + $0xb8] sm:$0xff]  }
 0x306   : > { %7459 = vmatpush3.bf16.msra.mxu0 %v8155_v46  ;;  %v3612_v40 = vsel %vm8868_vm10, %v3607_v16, %v3611_v18  ;;  %v1736_v61 = vrot.slane %v1734_v2, 4  ;;  %v1742_v38 = vrot.slane %v1740_v45, 5  ;;  %7305 = vmatpush3.bf16.msra.mxu1 %v7967_v48  ;;  %v1224_v36 = vshrl.u32 %v9444_v14, 16  ;;  %v9569_v2 = vld [vmem:[#allocation2 + $0x60] sm:$0xf] }
 0x307   : > { %v3622_v33 = vsel %vm8868_vm10, %v3617_v34, %v3621_v5  ;;  %7460 = vmatprep.subr.bf16.mxu0 %v7961_v57  ;;  %v1212_v44 = vor.u32 %v1210_v17, %v1209_v27  ;;  %v1213_v19 = vrot.slane %v1209_v27, 4  ;;  %v1728_v56 = vrot.slane %v1727_v21, 4  ;;  %7338 = vmatprep.subr.bf16.mxu1 %v7969_v25  ;;  %v1505_v25 = vld [vmem:[#allocation2 + $0x3c] sm:$0xf] }
 0x308   : > { %v6772_v18 = vcombine.low %v3612_v40, %v3622_v33  ;;  %v1737_v31 = vor.u32 %v1736_v61, %v1732_v43  ;;  %v1220_v59 = vor.u32 %v1218_v7, %v1217_v24  ;;  %v1222_v47 = vrot.slane %v1217_v24, 4  ;;  %v1512_v61 = vld [vmem:[#allocation2 + $0x48] sm:$0xf]  ;;  %v9580_v24 = vld [vmem:[%s11090_s4 + $0xc0] sm:$0xff]  }
 0x309   : > { %v1499_v52 = vsel %vm9241_vm13, %v1212_v44, %v1498_v13  ;;  %v1227_v17 = vshll.u32 %v9444_v14, 16  ;;  %v1733_v48 = vsel %vm8868_vm10, %v1728_v56, %v1732_v43  ;;  %v1232_v7 = vshrl.u32 %v9460_v42, 16  ;;  %v1509_v43 = vld [vmem:[#allocation2 + $0x44] sm:$0x1] }
 0x30a   : > { %7430 = vmatprep.mubr.msk.bf16.mxu0 %vm283_vm3, %v6772_v18  ;;  %v1738_v5 = vrot.slane %v1737_v31, 4  ;;  %v1221_v15 = vsel %vm9220_vm12, %v1213_v19, %v1220_v59  ;;  %1500 = vst [vmem:[#allocation2 + $0x30] sm:$0xf] %v1499_v52  ;;  %7461 = vmatpush3.bf16.msra.mxu0 %v7961_v57  ;;  %v1503_v49 = vsel %vm8395_vm4, %v1222_v47, %v1502_v26  ;;  %v1226_v14 = vrot.slane %v1224_v36, 7  ;;  %v1544_v31 = vld [vmem:[#allocation2 + $0x80] sm:$0x1] }
 0x30b   : > { %1501 = vst.msk [vmem:[#allocation2 + $0x34] sm:$0xf] %vm962_vm7, %v1221_v15  ;;  %v1235_v16 = vshll.u32 %v9460_v42, 16  ;;  %7462 = vmatprep.subr.bf16.mxu0 %v7963_v20  ;;  %v1241_v23 = vshrl.u32 %v9463_v54, 16  ;;  %1504 = vst [vmem:[#allocation2 + $0x38] sm:$0x1] %v1503_v49  ;;  %v1545_v62 = vsel %vm8395_vm4, %v1324_v63, %v1544_v31 }
 0x30c   : > { %v1743_v57 = vsel %vm8868_vm10, %v1738_v5, %v1742_v38  ;;  %v1234_v34 = vrot.slane %v1232_v7, 7  ;;  %v1244_v45 = vshll.u32 %v9463_v54, 16  ;;  %v1834_v42 = vrot.slane %v1833_v1, 4  ;;  %v1537_v1 = vld [vmem:[#allocation2 + $0x74] sm:$0x1] }
 0x30d   : > { %v6613_v27 = vcombine.low %v1733_v48, %v1743_v57  ;;  %v1229_v46 = vor.u32 %v1227_v17, %v1226_v14  ;;  %v1230_v40 = vrot.slane %v1226_v14, 4  ;;  %v1243_v21 = vrot.slane %v1241_v23, 7  ;;  %v1540_v38 = vld [vmem:[#allocation2 + $0x78] sm:$0xf]  ;;  %v9621_v23 = vld [vmem:[#allocation2 + $0x64] sm:$0xf] }
 0x30e   : > { %v1237_v13 = vor.u32 %v1235_v16, %v1234_v34  ;;  %v1239_v33 = vrot.slane %v1234_v34, 4  ;;  %7463 = vmatpush3.bf16.msra.mxu0 %v7963_v20  ;;  %v1839_v54 = vsel %vm8868_vm10, %v1834_v42, %v9453_v9  ;;  %v1841_v51 = vshrl.u32 %v9569_v2, 16  ;;  %v1551_v20 = vld [vmem:[#allocation2 + $0x8c] sm:$0x1]  ;;  %1546 = vst [vmem:[#allocation2 + $0x80] sm:$0x1] %v1545_v62 }
 0x30f   : > { %v4329_v44 = vrot.slane %v9481_v30, 5  ;;  %7271 = vmatmul.mubr.msk.bf16.gmra.mrb[8].mxu1 %vm283_vm3, %v6613_v27  ;;  %v1506_v19 = vsel %vm9241_vm13, %v1229_v46, %v1505_v25  ;;  %v1246_v18 = vor.u32 %v1244_v45, %v1243_v21  ;;  %v1247_v56 = vrot.slane %v1243_v21, 4  ;;  %7464 = vmatprep.subr.bf16.mxu0 %v7964_v37 }
 0x310   : > { %v4332_v59 = vrot.slane %v9488_v4, 5  ;;  %v1238_v9 = vsel %vm9220_vm12, %v1230_v40, %v1237_v13  ;;  %1507 = vst [vmem:[#allocation2 + $0x3c] sm:$0xf] %v1506_v19  ;;  %v1510_v26 = vsel %vm8395_vm4, %v1239_v33, %v1509_v43  ;;  %v9600_v47 = vcombine.low %v1829_v10, %v1839_v54 }
 0x311   : > { %v1597_v52 = vld [vmem:[#allocation2 + $0x30] sm:$0xf]  ;;  %1508 = vst.msk [vmem:[#allocation2 + $0x40] sm:$0xf] %vm962_vm7, %v1238_v9  ;;  %1511 = vst [vmem:[#allocation2 + $0x44] sm:$0x1] %v1510_v26  ;;  %v1255_v17 = vsel %vm9220_vm12, %v1247_v56, %v9287_v29  ;;  %v1513_v48 = vsel %vm9241_vm13, %v1246_v18, %v1512_v61  ;;  %v1538_v53 = vsel %vm8395_vm4, %v1307_v35, %v1537_v1 }
 0x312   : > { %v3512_v36 = vld [vmem:[#allocation2 + $0x30] sm:$0xf]  ;;  %v9608_v5 = vrot.slane %v1841_v51, 4  ;;  %v1844_v15 = vshll.u32 %v9569_v2, 16  ;;  %v1598_v7 = vld [vmem:[#allocation2 + $0x34] sm:$0xf]  ;;  %7465 = vmatpush3.bf16.msra.mxu0 %v7964_v37  ;;  %v1552_v32 = vsel %vm8395_vm4, %v1341_v28, %v1551_v20 }
 0x313   : > { %v1745_v6 = vshrl.u32 %v1597_v52, 16  ;;  %v1748_v3 = vshll.u32 %v1597_v52, 16  ;;  %v9611_v10 = vld [vmem:[#allocation2 + $0x34] sm:$0xf]  ;;  %1514 = vst [vmem:[#allocation2 + $0x48] sm:$0xf] %v1513_v48  ;;  %7498 = vmatprep.subr.bf16.mxu0 %v9580_v24 }
 0x314   : > { %1515 = vst.msk [vmem:[#allocation2 + $0x4c] sm:$0xf] %vm962_vm7, %v1255_v17  ;;  %v11168_v29 = vld [vmem:[#allocation20_spill] sm:$0xff]  ;;  %v1633_v49 = vld [vmem:[#allocation2 + $0x38] sm:$0x1]  ;;  %v1754_v14 = vshll.u32 %v1598_v7, 16 }
 0x315   : > { %v1541_v25 = vsel %vm9241_vm13, %v11168_v29, %v1540_v38  ;;  %v1758_v16 = vshrl.u32 %v1598_v7, 16  ;;  %1539 = vst [vmem:[#allocation2 + $0x74] sm:$0x1] %v1538_v53  ;;  %v1747_v35 = vrot.slane %v1745_v6, 4  ;;  %v1750_v37 = vrot.slane %v1748_v3, 5 }
 0x316   : > { %1542 = vst [vmem:[#allocation2 + $0x78] sm:$0xf] %v1541_v25  ;;  %v1764_v57 = vshll.u32 %v1633_v49, 16  ;;  %v9632_v34 = vld [vmem:[#allocation2 + $0x38] sm:$0x1]  ;;  %v3624_v43 = vshrl.u32 %v3512_v36, 16 }
 0x317   : > { %1553 = vst [vmem:[#allocation2 + $0x8c] sm:$0x1] %v1552_v32  ;;  %v1756_v45 = vrot.slane %v1754_v14, 5  ;;  %v1760_v42 = vrot.slane %v1758_v16, 4  ;;  %v3627_v27 = vshll.u32 %v3512_v36, 16  ;;  %v3633_v39 = vshll.u32 %v9611_v10, 16 }
 0x318   : > { %v1751_v46 = vor.u32 %v1750_v37, %v1747_v35  ;;  %v3626_v63 = vrot.slane %v3624_v43, 4  ;;  %v3637_v0 = vshrl.u32 %v9611_v10, 16  ;;  %v1850_v11 = vshll.u32 %v9621_v23, 16  ;;  %v3515_v13 = vld [vmem:[#allocation2 + $0x3c] sm:$0xf] }
 0x319   : > { %v1761_v28 = vor.u32 %v1760_v42, %v1756_v45  ;;  %v3629_v40 = vrot.slane %v3627_v27, 5  ;;  %v3635_v21 = vrot.slane %v3633_v39, 5  ;;  %v3643_v61 = vshll.u32 %v9632_v34, 16  ;;  %v9638_v1 = vld [vmem:[#allocation2 + $0x40] sm:$0xf] }
 0x31a   : > { %v1752_v33 = vrot.slane %v1751_v46, 4  ;;  %v1766_v54 = vrot.slane %v1764_v57, 5  ;;  %v3639_v51 = vrot.slane %v3637_v0, 4  ;;  %v1854_v38 = vshrl.u32 %v9621_v23, 16  ;;  %v9643_v26 = vld [vmem:[#allocation2 + $0x44] sm:$0x1] }
 0x31b   : > { %v1762_v19 = vrot.slane %v1761_v28, 4  ;;  %v3630_v18 = vor.u32 %v3629_v40, %v3626_v63  ;;  %v3645_v56 = vrot.slane %v3643_v61, 5  ;;  %v3648_v31 = vshrl.u32 %v3515_v13, 16  ;;  %v9646_v17 = vld [vmem:[#allocation2 + $0x3c] sm:$0xf] }
 0x31c   : > { %v1757_v20 = vsel %vm8868_vm10, %v1752_v33, %v1756_v45  ;;  %v3640_v9 = vor.u32 %v3639_v51, %v3635_v21  ;;  %v3651_v52 = vshll.u32 %v3515_v13, 16  ;;  %v3657_v36 = vshll.u32 %v9638_v1, 16  ;;  %v9651_v53 = vld [vmem:[#allocation2 + $0x40] sm:$0xf]  ;;  %v1634_v43 = vld [vmem:[#allocation2 + $0x44] sm:$0x1] }
 0x31d   : > { %v1767_v48 = vsel %vm8868_vm10, %v1762_v19, %v1766_v54  ;;  %v3631_v7 = vrot.slane %v3630_v18, 4  ;;  %v3650_v6 = vrot.slane %v3648_v31, 4  ;;  %v3661_v3 = vshrl.u32 %v9638_v1, 16  ;;  %v9662_v27 = vld [vmem:[#allocation2 + $0x48] sm:$0xf] }
 0x31e   : > { %v6614_v29 = vcombine.low %v1757_v20, %v1767_v48  ;;  %v3641_v25 = vrot.slane %v3640_v9, 4  ;;  %v3653_v49 = vrot.slane %v3651_v52, 5  ;;  %v3659_v14 = vrot.slane %v3657_v36, 5  ;;  %v9664_v28 = vld [vmem:[#allocation2 + $0x4c] sm:$0xf] }
 0x31f   : > { %v3636_v16 = vsel %vm8868_vm10, %v3631_v7, %v3635_v21  ;;  %v3663_v62 = vrot.slane %v3661_v3, 4  ;;  %v3667_v32 = vshll.u32 %v9643_v26, 16  ;;  %v1769_v35 = vshrl.u32 %v9646_v17, 16  ;;  %v3518_v9 = vld [vmem:[#allocation2 + $0x48] sm:$0xf] }
 0x320   : > { %7274 = vmatprep.mubr.msk.bf16.mxu1 %vm283_vm3, %v6614_v29  ;;  %v3646_v37 = vsel %vm8868_vm10, %v3641_v25, %v3645_v56  ;;  %v3654_v57 = vor.u32 %v3653_v49, %v3650_v6  ;;  %v1772_v45 = vshll.u32 %v9646_v17, 16  ;;  %v1778_v42 = vshll.u32 %v9651_v53, 16  ;;  %v9675_v6 = vld [vmem:[#allocation2 + $0x4c] sm:$0xf] }
 0x321   : > { %v6773_v39 = vcombine.low %v3636_v16, %v3646_v37  ;;  %v3664_v46 = vor.u32 %v3663_v62, %v3659_v14  ;;  %v3669_v63 = vrot.slane %v3667_v32, 5  ;;  %v1771_v0 = vrot.slane %v1769_v35, 4 }
 0x322   : > { %v3655_v40 = vrot.slane %v3654_v57, 4  ;;  %v1774_v21 = vrot.slane %v1772_v45, 5  ;;  %v1780_v61 = vrot.slane %v1778_v42, 5  ;;  %v1782_v13 = vshrl.u32 %v9651_v53, 16  ;;  %v1637_v45 = vld [vmem:[#allocation2 + $0x68] sm:$0x1] }
 0x323   : > { %7431 = vmatmul.mubr.msk.bf16.gmra.mrb[8].mxu0 %vm283_vm3, %v6773_v39  ;;  %v3665_v33 = vrot.slane %v3664_v46, 4  ;;  %v1788_v54 = vshll.u32 %v1634_v43, 16  ;;  %v1793_v51 = vshrl.u32 %v9662_v27, 16  ;;  %v1796_v19 = vshll.u32 %v9662_v27, 16  ;;  %v3524_v42 = vld [vmem:[#allocation2 + $0x60] sm:$0xf] }
 0x324   : > { %v3660_v18 = vsel %vm8868_vm10, %v3655_v40, %v3659_v14  ;;  %v1775_v56 = vor.u32 %v1774_v21, %v1771_v0  ;;  %v1784_v31 = vrot.slane %v1782_v13, 4  ;;  %v1802_v20 = vshll.u32 %v9664_v28, 16 }
 0x325   : > { %v3670_v52 = vsel %vm8868_vm10, %v3665_v33, %v3669_v63  ;;  %v1790_v36 = vrot.slane %v1788_v54, 5  ;;  %v1795_v48 = vrot.slane %v1793_v51, 4  ;;  %v1798_v7 = vrot.slane %v1796_v19, 5 }
 0x326   : > { %v6774_v3 = vcombine.low %v3660_v18, %v3670_v52  ;;  %v1776_v29 = vrot.slane %v1775_v56, 4  ;;  %v1785_v25 = vor.u32 %v1784_v31, %v1780_v61  ;;  %v1804_v49 = vrot.slane %v1802_v20, 5 }
 0x327   : > { %v1799_v14 = vor.u32 %v1798_v7, %v1795_v48  ;;  %v1806_v16 = vshrl.u32 %v9664_v28, 16  ;;  %v3672_v62 = vshrl.u32 %v3518_v9, 16  ;;  %v3675_v32 = vshll.u32 %v3518_v9, 16 }
 0x328   : > { %7434 = vmatprep.mubr.msk.bf16.mxu0 %vm283_vm3, %v6774_v3  ;;  %v1781_v35 = vsel %vm8868_vm10, %v1776_v29, %v1780_v61  ;;  %v1786_v37 = vrot.slane %v1785_v25, 4  ;;  %v3681_v57 = vshll.u32 %v9675_v6, 16  ;;  %v3685_v43 = vshrl.u32 %v9675_v6, 16  ;;  %v9695_v3 = vld [vmem:[#allocation2 + $0x64] sm:$0xf] }
 0x329   : > { %v1800_v39 = vrot.slane %v1799_v14, 4  ;;  %v1808_v46 = vrot.slane %v1806_v16, 4  ;;  %v3674_v63 = vrot.slane %v3672_v62, 4  ;;  %v3677_v0 = vrot.slane %v3675_v32, 5 }
 0x32a   : > { %v1791_v40 = vsel %vm8868_vm10, %v1786_v37, %v1790_v36  ;;  %v3683_v21 = vrot.slane %v3681_v57, 5  ;;  %v3687_v13 = vrot.slane %v3685_v43, 4  ;;  %v1846_v33 = vrot.slane %v1844_v15, 5  ;;  %v3533_v43 = vld [vmem:[#allocation2 + $0x84] sm:$0xf] }
 0x32b   : > { %v6615_v61 = vcombine.low %v1781_v35, %v1791_v40  ;;  %v1805_v54 = vsel %vm8868_vm10, %v1800_v39, %v1804_v49  ;;  %v1809_v51 = vor.u32 %v1808_v46, %v1804_v49  ;;  %v3678_v19 = vor.u32 %v3677_v0, %v3674_v63  ;;  %v4256_v49 = vld [vmem:[#allocation2 + $0xc] sm:$0xe] }
 0x32c   : > { %v3688_v18 = vor.u32 %v3687_v13, %v3683_v21  ;;  %v1847_v56 = vor.u32 %v1846_v33, %v9608_v5  ;;  %v1852_v31 = vrot.slane %v1850_v11, 5  ;;  %v1856_v20 = vrot.slane %v1854_v38, 4  ;;  %v9702_v38 = vld [vmem:[#allocation2 + $0x68] sm:$0x1]  ;;  %v9722_v46 = vld [vmem:[#allocation2 + $0x6c] sm:$0xf] }
 0x32d   : > { %7275 = vmatmul.mubr.msk.bf16.gmra.mrb[12].mxu1 %vm283_vm3, %v6615_v61  ;;  %v1810_v9 = vrot.slane %v1809_v51, 4  ;;  %v3679_v2 = vrot.slane %v3678_v19, 4  ;;  %v1860_v15 = vshll.u32 %v1637_v45, 16  ;;  %v3720_v52 = vshrl.u32 %v3524_v42, 16  ;;  %v9725_v13 = vld [vmem:[#allocation2 + $0x70] sm:$0xf] }
 0x32e   : > { %v3689_v36 = vrot.slane %v3688_v18, 4  ;;  %v1848_v48 = vrot.slane %v1847_v56, 4  ;;  %v1857_v7 = vor.u32 %v1856_v20, %v1852_v31  ;;  %v3723_v29 = vshll.u32 %v3524_v42, 16  ;;  %v1638_v33 = vld [vmem:[#allocation2 + $0x74] sm:$0x1] }
 0x32f   : > { %v1815_v5 = vsel %vm8868_vm10, %v1810_v9, %v9366_v41  ;;  %v3684_v23 = vsel %vm8868_vm10, %v3679_v2, %v3683_v21  ;;  %v1862_v11 = vrot.slane %v1860_v15, 5  ;;  %v3722_v25 = vrot.slane %v3720_v52, 4  ;;  %v9736_v20 = vld [vmem:[#allocation2 + $0x7c] sm:$0xf]  ;;  %v9743_v15 = vld [vmem:[#allocation2 + $0x78] sm:$0xf] }
 0x330   : > { %v6616_v14 = vcombine.low %v1805_v54, %v1815_v5  ;;  %v3694_v16 = vsel %vm8868_vm10, %v3689_v36, %v9369_v55  ;;  %v1853_v62 = vsel %vm8868_vm10, %v1848_v48, %v1852_v31  ;;  %v1858_v32 = vrot.slane %v1857_v7, 4 }
 0x331   : > { %v6775_v35 = vcombine.low %v3684_v23, %v3694_v16  ;;  %v3725_v37 = vrot.slane %v3723_v29, 5  ;;  %v3729_v41 = vshll.u32 %v9695_v3, 16  ;;  %v3733_v57 = vshrl.u32 %v9695_v3, 16 }
 0x332   : > { %7278 = vmatprep.mubr.msk.bf16.mxu1 %vm283_vm3, %v6616_v14  ;;  %v1863_v55 = vsel %vm8868_vm10, %v1858_v32, %v1862_v11  ;;  %v3739_v45 = vshll.u32 %v9702_v38, 16  ;;  %v6806_v42 = vrot.slane %v4256_v49, 9  ;;  %v4322_v39 = vrot.slane %v9468_v50, 5  ;;  %v9747_v11 = vld [vmem:[#allocation2 + $0x80] sm:$0x1] }
 0x333   : > { %7435 = vmatmul.mubr.msk.bf16.gmra.mrb[12].mxu0 %vm283_vm3, %v6775_v35  ;;  %v6618_v63 = vcombine.low %v1853_v62, %v1863_v55  ;;  %v3726_v0 = vor.u32 %v3725_v37, %v3722_v25  ;;  %v3731_v40 = vrot.slane %v3729_v41, 5  ;;  %v3735_v21 = vrot.slane %v3733_v57, 4  ;;  %v4257_v62 = vld [vmem:[#allocation2 + $0x18] sm:$0xe]  ;;  %v4258_v57 = vld [vmem:[#allocation2 + $0x24] sm:$0xe] }
 0x334   : > { %7438 = vmatprep.mubr.msk.bf16.mxu0 %vm283_vm3, %v9437_v8  ;;  %v3741_v61 = vrot.slane %v3739_v45, 5  ;;  %v4323_v54 = vsel %vm9713_vm0, %v6806_v42, %v4322_v39  ;;  %v4324_v51 = vrot.slane %v4322_v39, 4  ;;  %v4325_v50 = vrot.slane %v9472_v12, 5 }
 0x335   : > { %7279 = vmatmul.mubr.msk.bf16.gmra.mrb[16].mxu1 %vm283_vm3, %v9600_v47  ;;  %v3727_v19 = vrot.slane %v3726_v0, 4  ;;  %v3736_v18 = vor.u32 %v3735_v21, %v3731_v40  ;;  %v1865_v56 = vshrl.u32 %v9722_v46, 16  ;;  %v1868_v31 = vshll.u32 %v9722_v46, 16 }
 0x336   : > { %7282 = vmatprep.mubr.msk.bf16.mxu1 %vm283_vm3, %v6618_v63  ;;  %v4326_v8 = vsel %vm9713_vm0, %v4324_v51, %v4325_v50  ;;  %v1874_v9 = vshll.u32 %v9725_v13, 16  ;;  %v1878_v12 = vshrl.u32 %v9725_v13, 16  ;;  %v1884_v2 = vshll.u32 %v1638_v33, 16  ;;  %v9760_v50 = vld [vmem:[#allocation2 + $0x84] sm:$0xf] }
 0x337   : > { %v3732_v47 = vsel %vm8868_vm10, %v3727_v19, %v3731_v40  ;;  %v3737_v52 = vrot.slane %v3736_v18, 4  ;;  %v6822_v36 = vcombine.low %v4323_v54, %v4326_v8  ;;  %v1867_v48 = vrot.slane %v1865_v56, 4 }
 0x338   : > { %v1870_v7 = vrot.slane %v1868_v31, 5  ;;  %v1876_v29 = vrot.slane %v1874_v9, 5  ;;  %v1880_v5 = vrot.slane %v1878_v12, 4  ;;  %v1886_v23 = vrot.slane %v1884_v2, 5 }
 0x339   : > { %v3742_v25 = vsel %vm8868_vm10, %v3737_v52, %v3741_v61  ;;  %v1889_v49 = vshrl.u32 %v9743_v15, 16  ;;  %v1892_v14 = vshll.u32 %v9743_v15, 16  ;;  %v1898_v16 = vshll.u32 %v9736_v20, 16  ;;  %v1640_v52 = vld [vmem:[#allocation2 + $0x8c] sm:$0x1] }
 0x33a   : > { %v6777_v32 = vcombine.low %v3732_v47, %v3742_v25  ;;  %v1871_v35 = vor.u32 %v1870_v7, %v1867_v48  ;;  %v1881_v37 = vor.u32 %v1880_v5, %v1876_v29  ;;  %v1902_v41 = vshrl.u32 %v9736_v20, 16  ;;  %v9775_v47 = vld [vmem:[#allocation2 + $0x88] sm:$0xf] }
 0x33b   : > { %v1891_v55 = vrot.slane %v1889_v49, 4  ;;  %v1894_v45 = vrot.slane %v1892_v14, 5  ;;  %v1900_v42 = vrot.slane %v1898_v16, 5  ;;  %v1908_v39 = vshll.u32 %v9747_v11, 16  ;;  %v7968_v14 = vld [vmem:[%s11090_s4 + $0xc8] sm:$0xff]  }
 0x33c   : > { %7439 = vmatmul.mubr.msk.bf16.gmra.mrb[16].mxu0 %vm283_vm3, %v6777_v32  ;;  %v1872_v63 = vrot.slane %v1871_v35, 4  ;;  %v1882_v0 = vrot.slane %v1881_v37, 4  ;;  %v1904_v40 = vrot.slane %v1902_v41, 4  ;;  %v6807_v21 = vrot.slane %v4257_v62, 9  ;;  %v1641_v37 = vld [vmem:[#allocation2 + $0x98] sm:$0x1] }
 0x33d   : > { %7466 = vmatprep.mubr.msk.bf16.mxu0 %vm283_vm3, %v6822_v36  ;;  %v1895_v33 = vor.u32 %v1894_v45, %v1891_v55  ;;  %v1910_v61 = vrot.slane %v1908_v39, 5  ;;  %v4331_v54 = vrot.slane %v4329_v44, 4  ;;  %v6808_v51 = vrot.slane %v4258_v57, 9  ;;  %v9777_v36 = vld [vmem:[#allocation2 + $0x90] sm:$0xf] }
 0x33e   : > { %v1877_v19 = vsel %vm8868_vm10, %v1872_v63, %v1876_v29  ;;  %v1887_v18 = vsel %vm8868_vm10, %v1882_v0, %v1886_v23  ;;  %v1905_v56 = vor.u32 %v1904_v40, %v1900_v42  ;;  %v4330_v31 = vsel %vm9713_vm0, %v6807_v21, %v4329_v44  ;;  %v9781_v29 = vld [vmem:[#allocation2 + $0x94] sm:$0xf] }
 0x33f   : > { %v6619_v8 = vcombine.low %v1877_v19, %v1887_v18  ;;  %v1896_v9 = vrot.slane %v1895_v33, 4  ;;  %v4333_v12 = vsel %vm9713_vm0, %v4331_v54, %v4332_v59  ;;  %v4336_v2 = vrot.slane %v9499_v22, 5  ;;  %v7970_v19 = vld [vmem:[%s11090_s4 + $0xd0] sm:$0xff]  }
 0x340   : > { %v1906_v48 = vrot.slane %v1905_v56, 4  ;;  %v6823_v7 = vcombine.low %v4330_v31, %v4333_v12  ;;  %v4339_v30 = vrot.slane %v9511_v58, 5  ;;  %v1913_v44 = vshrl.u32 %v9760_v50, 16 }
 0x341   : > { %7283 = vmatmul.mubr.msk.bf16.gmra.mrb[20].mxu1 %vm283_vm3, %v6619_v8  ;;  %v1901_v4 = vsel %vm8868_vm10, %v1896_v9, %v1900_v42  ;;  %v4337_v22 = vsel %vm9713_vm0, %v6808_v51, %v4336_v2  ;;  %v4338_v59 = vrot.slane %v4336_v2, 4  ;;  %v1916_v5 = vshll.u32 %v9760_v50, 16  ;;  %v4259_v42 = vld [vmem:[#allocation2 + $0x30] sm:$0xe]  ;;  %v4260_v51 = vld [vmem:[#allocation2 + $0x3c] sm:$0xe] }
 0x342   : > { %v1911_v23 = vsel %vm8868_vm10, %v1906_v48, %v1910_v61  ;;  %v1915_v25 = vrot.slane %v1913_v44, 4  ;;  %v1922_v58 = vshll.u32 %v9775_v47, 16  ;;  %v1926_v49 = vshrl.u32 %v9775_v47, 16  ;;  %v9809_v8 = vld [vmem:[#allocation2 + $0x9c] sm:$0xf] }
 0x343   : > { %v6620_v16 = vcombine.low %v1901_v4, %v1911_v23  ;;  %v4340_v62 = vsel %vm9713_vm0, %v4338_v59, %v4339_v30  ;;  %v1918_v32 = vrot.slane %v1916_v5, 5  ;;  %v1932_v35 = vshll.u32 %v1640_v52, 16 }
 0x344   : > { %7467 = vmatmul.mubr.msk.bf16.vlgmr.msra.gmra.mrb[4].mxu0 %vm283_vm3, %v6823_v7  ;;  %v6824_v41 = vcombine.low %v4337_v22, %v4340_v62  ;;  %v1924_v57 = vrot.slane %v1922_v58, 5  ;;  %v1928_v55 = vrot.slane %v1926_v49, 4  ;;  %v1937_v45 = vshrl.u32 %v9777_v36, 16  ;;  %v9824_v49 = vld [vmem:[#allocation2 + $0xa0] sm:$0xf] }
 0x345   : > { %7286 = vmatprep.mubr.msk.bf16.mxu1 %vm283_vm3, %v6620_v16  ;;  %7499 = vmatpush3.bf16.msra.mxu0 %v9580_v24  ;;  %v1919_v39 = vor.u32 %v1918_v32, %v1915_v25  ;;  %v1934_v63 = vrot.slane %v1932_v35, 5  ;;  %v1940_v0 = vshll.u32 %v9777_v36, 16  ;;  %v1946_v40 = vshll.u32 %v9781_v29, 16  ;;  %v1642_v62 = vld [vmem:[#allocation2 + $0xa4] sm:$0x1] }
 0x346   : > { %7470 = vmatprep.mubr.msk.bf16.mxu0 %vm283_vm3, %v6824_v41  ;;  %v1929_v21 = vor.u32 %v1928_v55, %v1924_v57  ;;  %v1939_v33 = vrot.slane %v1937_v45, 4  ;;  %v1950_v61 = vshrl.u32 %v9781_v29, 16  ;;  %v1956_v54 = vshll.u32 %v1641_v37, 16  ;;  %7500 = vmatprep.subr.bf16.mxu0 %v7968_v14  ;;  %v9837_v55 = vld [vmem:[#allocation2 + $0xac] sm:$0xf] }
 0x347   : > { %v1920_v24 = vrot.slane %v1919_v39, 4  ;;  %v1942_v18 = vrot.slane %v1940_v0, 5  ;;  %v1948_v56 = vrot.slane %v1946_v40, 5  ;;  %v6809_v31 = vrot.slane %v4259_v42, 9  ;;  %v1643_v0 = vld [vmem:[#allocation2 + $0xb0] sm:$0x1] }
 0x348   : > { %v1930_v9 = vrot.slane %v1929_v21, 4  ;;  %v1952_v12 = vrot.slane %v1950_v61, 4  ;;  %v1958_v2 = vrot.slane %v1956_v54, 5  ;;  %v4343_v52 = vrot.slane %v9611_v10, 5  ;;  %v7972_v10 = vld [vmem:[%s11090_s4 + $0xd8] sm:$0xff]   ;;  %v9845_v40 = vld [vmem:[%s11090_s4 + $0xe0] sm:$0xff]  }
 0x349   : > { %v1925_v48 = vsel %vm8868_vm10, %v1920_v24, %v1924_v57  ;;  %v1943_v7 = vor.u32 %v1942_v18, %v1939_v33  ;;  %v4346_v30 = vrot.slane %v9632_v34, 5  ;;  %v6810_v44 = vrot.slane %v4260_v51, 9  ;;  %7501 = vmatpush3.bf16.msra.mxu0 %v7968_v14  ;;  %v9835_v57 = vld [vmem:[#allocation2 + $0xa8] sm:$0xf] }
 0x34a   : > { %v1935_v4 = vsel %vm8868_vm10, %v1930_v9, %v1934_v63  ;;  %v1953_v22 = vor.u32 %v1952_v12, %v1948_v56  ;;  %v4344_v59 = vsel %vm9713_vm0, %v6809_v31, %v4343_v52  ;;  %v4345_v5 = vrot.slane %v4343_v52, 4  ;;  %7502 = vmatprep.subr.bf16.mxu0 %v7970_v19  ;;  %v4261_v51 = vld [vmem:[#allocation2 + $0x48] sm:$0xe] }
 0x34b   : > { %v6621_v23 = vcombine.low %v1925_v48, %v1935_v4  ;;  %v1944_v25 = vrot.slane %v1943_v7, 4  ;;  %v4350_v58 = vrot.slane %v9638_v1, 5  ;;  %v4353_v34 = vrot.slane %v9643_v26, 5 }
 0x34c   : > { %v1954_v14 = vrot.slane %v1953_v22, 4  ;;  %v4347_v16 = vsel %vm9713_vm0, %v4345_v5, %v4346_v30  ;;  %v1961_v32 = vshrl.u32 %v9809_v8, 16  ;;  %v1964_v35 = vshll.u32 %v9809_v8, 16 }
 0x34d   : > { %7287 = vmatmul.mubr.msk.bf16.gmra.mrb[24].mxu1 %vm283_vm3, %v6621_v23  ;;  %v1949_v37 = vsel %vm8868_vm10, %v1944_v25, %v1948_v56  ;;  %v6825_v41 = vcombine.low %v4344_v59, %v4347_v16  ;;  %v4351_v1 = vsel %vm9713_vm0, %v6810_v44, %v4350_v58  ;;  %v4352_v26 = vrot.slane %v4350_v58, 4  ;;  %7503 = vmatpush3.bf16.msra.mxu0 %v7970_v19  ;;  %v4262_v59 = vld [vmem:[#allocation2 + $0x54] sm:$0xe] }
 0x34e   : > { %v1959_v45 = vsel %vm8868_vm10, %v1954_v14, %v1958_v2  ;;  %v1963_v42 = vrot.slane %v1961_v32, 4  ;;  %v1966_v39 = vrot.slane %v1964_v35, 5  ;;  %v1970_v63 = vshll.u32 %v9824_v49, 16  ;;  %7504 = vmatprep.subr.bf16.mxu0 %v7972_v10  ;;  %v9861_v58 = vld [vmem:[#allocation2 + $0xb4] sm:$0xf] }
 0x34f   : > { %v6622_v21 = vcombine.low %v1949_v37, %v1959_v45  ;;  %7471 = vmatmul.mubr.msk.bf16.gmra.mrb[8].mxu0 %vm283_vm3, %v6825_v41  ;;  %v4354_v33 = vsel %vm9713_vm0, %v4352_v26, %v4353_v34  ;;  %v1974_v61 = vshrl.u32 %v9824_v49, 16  ;;  %v1980_v54 = vshll.u32 %v1642_v62, 16  ;;  %v8156_v62 = vld [vmem:[#allocation2 + $0x50] sm:$0x1]  ;;  %v9863_v45 = vld [vmem:[#allocation2 + $0xb8] sm:$0xf] }
 0x350   : > { %v6826_v19 = vcombine.low %v4351_v1, %v4354_v33  ;;  %v1967_v24 = vor.u32 %v1966_v39, %v1963_v42  ;;  %v1972_v18 = vrot.slane %v1970_v63, 5  ;;  %v1985_v56 = vshrl.u32 %v9835_v57, 16  ;;  %v8157_v1 = vld [vmem:[#allocation2 + $0x58] sm:$0xf]  ;;  %v1644_v63 = vld [vmem:[#allocation2 + $0xbc] sm:$0x1] }
 0x351   : > { %7290 = vmatprep.mubr.msk.bf16.mxu1 %vm283_vm3, %v6622_v21  ;;  %v1976_v31 = vrot.slane %v1974_v61, 4  ;;  %v1988_v9 = vshll.u32 %v9835_v57, 16  ;;  %v1994_v12 = vshll.u32 %v9837_v55, 16  ;;  %7505 = vmatpush3.bf16.msra.mxu0 %v7972_v10  ;;  %v1998_v48 = vshrl.u32 %v9837_v55, 16 }
 0x352   : > { %7474 = vmatprep.mubr.msk.bf16.mxu0 %vm283_vm3, %v6826_v19  ;;  %v1968_v2 = vrot.slane %v1967_v24, 4  ;;  %v1987_v52 = vrot.slane %v1985_v56, 4  ;;  %v2004_v7 = vshll.u32 %v1643_v0, 16  ;;  %7538 = vmatprep.subr.bf16.mxu0 %v9845_v40  ;;  %v6811_v22 = vrot.slane %v4261_v51, 9  ;;  %v4263_v19 = vld [vmem:[#allocation2 + $0x60] sm:$0xe] }
 0x353   : > { %v1977_v30 = vor.u32 %v1976_v31, %v1972_v18  ;;  %v1990_v44 = vrot.slane %v1988_v9, 5  ;;  %v1996_v4 = vrot.slane %v1994_v12, 5  ;;  %v1982_v23 = vrot.slane %v1980_v54, 5  ;;  %v8158_v54 = vld [vmem:[#allocation2 + $0x5c] sm:$0x1] }
 0x354   : > { %v1973_v5 = vsel %vm8868_vm10, %v1968_v2, %v1972_v18  ;;  %v2000_v25 = vrot.slane %v1998_v48, 4  ;;  %v4357_v10 = vrot.slane %v9675_v6, 5  ;;  %v2006_v16 = vrot.slane %v2004_v7, 5  ;;  %v3528_v9 = vld [vmem:[#allocation2 + $0x70] sm:$0xf] }
 0x355   : > { %v1978_v34 = vrot.slane %v1977_v30, 4  ;;  %v1991_v14 = vor.u32 %v1990_v44, %v1987_v52  ;;  %v4360_v32 = vrot.slane %v8156_v62, 5  ;;  %v6812_v41 = vrot.slane %v4262_v59, 9  ;;  %v4264_v12 = vld [vmem:[#allocation2 + $0x6c] sm:$0xe] }
 0x356   : > { %v2001_v35 = vor.u32 %v2000_v25, %v1996_v4  ;;  %v4359_v37 = vrot.slane %v4357_v10, 4  ;;  %v4364_v26 = vrot.slane %v8157_v1, 5  ;;  %v4358_v6 = vsel %vm9713_vm0, %v6811_v22, %v4357_v10 }
 0x357   : > { %v1983_v42 = vsel %vm8868_vm10, %v1978_v34, %v1982_v23  ;;  %v1992_v39 = vrot.slane %v1991_v14, 4  ;;  %v2009_v0 = vshrl.u32 %v9861_v58, 16  ;;  %v4367_v51 = vrot.slane %v8158_v54, 5  ;;  %v3529_v14 = vld [vmem:[#allocation2 + $0x74] sm:$0x1] }
 0x358   : > { %v6623_v21 = vcombine.low %v1973_v5, %v1983_v42  ;;  %v2002_v33 = vrot.slane %v2001_v35, 4  ;;  %v4361_v61 = vsel %vm9713_vm0, %v4359_v37, %v4360_v32  ;;  %v4366_v56 = vrot.slane %v4364_v26, 4  ;;  %v9898_v54 = vld [vmem:[#allocation2 + $0x7c] sm:$0xf] }
 0x359   : > { %v1997_v24 = vsel %vm8868_vm10, %v1992_v39, %v1996_v4  ;;  %v6827_v18 = vcombine.low %v4358_v6, %v4361_v61  ;;  %v2011_v31 = vrot.slane %v2009_v0, 4  ;;  %v2012_v52 = vshll.u32 %v9861_v58, 16 }
 0x35a   : > { %7291 = vmatmul.mubr.msk.bf16.gmra.mrb[28].mxu1 %vm283_vm3, %v6623_v21  ;;  %v2007_v2 = vsel %vm8868_vm10, %v2002_v33, %v2006_v16  ;;  %v2018_v48 = vshll.u32 %v9863_v45, 16  ;;  %v2022_v7 = vshrl.u32 %v9863_v45, 16  ;;  %v4365_v44 = vsel %vm9713_vm0, %v6812_v41, %v4364_v26  ;;  %v8159_v21 = vld [vmem:[#allocation2] sm:$0xf]  ;;  %v9895_v33 = vld [vmem:[#allocation2 + $0x4] sm:$0xf] }
 0x35b   : > { %v6624_v30 = vcombine.low %v1997_v24, %v2007_v2  ;;  %7475 = vmatmul.mubr.msk.bf16.gmra.mrb[12].mxu0 %vm283_vm3, %v6827_v18  ;;  %v4368_v4 = vsel %vm9713_vm0, %v4366_v56, %v4367_v51  ;;  %v2028_v22 = vshll.u32 %v1644_v63, 16  ;;  %v2014_v5 = vrot.slane %v2012_v52, 5  ;;  %v3534_v51 = vld [vmem:[#allocation2 + $0x88] sm:$0xf]  ;;  %v4266_v2 = vld [vmem:[#allocation2 + $0x84] sm:$0xe] }
 0x35c   : > { %v6828_v59 = vcombine.low %v4365_v44, %v4368_v4  ;;  %v2020_v23 = vrot.slane %v2018_v48, 5  ;;  %v2024_v25 = vrot.slane %v2022_v7, 4  ;;  %v6813_v10 = vrot.slane %v4263_v19, 9  ;;  %v3537_v52 = vld [vmem:[#allocation2 + $0x94] sm:$0xf] }
 0x35d   : > { %7294 = vmatprep.mubr.msk.bf16.mxu1 %vm283_vm3, %v6624_v30  ;;  %v4371_v34 = vrot.slane %v9695_v3, 5  ;;  %v6814_v16 = vrot.slane %v4264_v12, 9  ;;  %v2015_v62 = vor.u32 %v2014_v5, %v2011_v31  ;;  %v2030_v35 = vrot.slane %v2028_v22, 5  ;;  %v9906_v12 = vld [vmem:[#allocation2 + $0x80] sm:$0x1] }
 0x35e   : > { %7478 = vmatprep.mubr.msk.bf16.mxu0 %vm283_vm3, %v6828_v59  ;;  %v2025_v32 = vor.u32 %v2024_v25, %v2020_v23  ;;  %v4378_v37 = vrot.slane %v3528_v9, 5  ;;  %v4374_v1 = vrot.slane %v9702_v38, 5  ;;  %v4381_v6 = vrot.slane %v3529_v14, 5  ;;  %v4265_v38 = vld [vmem:[#allocation2 + $0x78] sm:$0xe] }
 0x35f   : > { %v4373_v41 = vrot.slane %v4371_v34, 4  ;;  %v2016_v26 = vrot.slane %v2015_v62, 4  ;;  %v4372_v63 = vsel %vm9713_vm0, %v6813_v10, %v4371_v34  ;;  %v6646_v61 = vcombine.low %v8159_v21, %v9895_v33  ;;  %v3535_v7 = vld [vmem:[#allocation2 + $0x8c] sm:$0x1]  ;;  %v3540_v4 = vld [vmem:[#allocation2 + $0xa0] sm:$0xf] }
 0x360   : > { %v2026_v42 = vrot.slane %v2025_v32, 4  ;;  %v4380_v39 = vrot.slane %v4378_v37, 4  ;;  %v4379_v0 = vsel %vm9713_vm0, %v6814_v16, %v4378_v37  ;;  %v4385_v48 = vrot.slane %v9898_v54, 5  ;;  %v3538_v37 = vld [vmem:[#allocation2 + $0x98] sm:$0x1] }
 0x361   : > { %v4375_v3 = vsel %vm9713_vm0, %v4373_v41, %v4374_v1  ;;  %v2021_v19 = vsel %vm8868_vm10, %v2016_v26, %v2020_v23  ;;  %v6815_v30 = vrot.slane %v4265_v38, 9  ;;  %v4392_v44 = vrot.slane %v3534_v51, 5  ;;  %v4267_v41 = vld [vmem:[#allocation2 + $0x90] sm:$0xe]  ;;  %v8161_v1 = vld [vmem:[#allocation2 + $0xc] sm:$0xf] }
 0x362   : > { %v2031_v24 = vsel %vm8868_vm10, %v2026_v42, %v2030_v35  ;;  %v6829_v18 = vcombine.low %v4372_v63, %v4375_v3  ;;  %v4382_v56 = vsel %vm9713_vm0, %v4380_v39, %v4381_v6  ;;  %v4387_v22 = vrot.slane %v4385_v48, 4  ;;  %v9922_v26 = vld [vmem:[#allocation2 + $0x10] sm:$0xf]  ;;  %v3541_v63 = vld [vmem:[#allocation2 + $0xa4] sm:$0x1] }
 0x363   : > { %v6625_v31 = vcombine.low %v2021_v19, %v2031_v24  ;;  %v6830_v9 = vcombine.low %v4379_v0, %v4382_v56  ;;  %v4388_v59 = vrot.slane %v9906_v12, 5  ;;  %v6816_v5 = vrot.slane %v4266_v2, 9  ;;  %v4268_v3 = vld [vmem:[#allocation2 + $0x9c] sm:$0xe]  ;;  %v7971_v0 = vld [vmem:[%s11090_s4 + $0x48] sm:$0xff]  }
 0x364   : > { %7479 = vmatmul.mubr.msk.bf16.gmra.mrb[16].mxu0 %vm283_vm3, %v6829_v18  ;;  %v4394_v23 = vrot.slane %v4392_v44, 4  ;;  %v4395_v25 = vrot.slane %v3535_v7, 5  ;;  %v4399_v10 = vrot.slane %v3537_v52, 5  ;;  %v4406_v14 = vrot.slane %v3540_v4, 5  ;;  %v8163_v21 = vld [vmem:[#allocation2 + $0x18] sm:$0xf] }
 0x365   : > { %7295 = vmatmul.mubr.msk.bf16.gmra.mrb[32].mxu1 %vm283_vm3, %v6625_v31  ;;  %7482 = vmatprep.mubr.msk.bf16.mxu0 %vm283_vm3, %v6830_v9  ;;  %v4389_v34 = vsel %vm9713_vm0, %v4387_v22, %v4388_v59  ;;  %v4386_v16 = vsel %vm9713_vm0, %v6815_v30, %v4385_v48  ;;  %v4393_v35 = vsel %vm9713_vm0, %v6816_v5, %v4392_v44  ;;  %v3543_v19 = vld [vmem:[#allocation2 + $0xac] sm:$0xf]  ;;  %v6817_v24 = vrot.slane %v4267_v41, 9  ;;  %v3546_v56 = vld [vmem:[#allocation2 + $0xb8] sm:$0xf]  ;;  %v8165_v31 = vld [vmem:[%s11090_s4 + $0x40] sm:$0xff]  }
 0x366   : > { %7306 = vmatprep.mubr.msk.bf16.mxu1 %vm283_vm3, %v6646_v61  ;;  %v4396_v62 = vsel %vm9713_vm0, %v4394_v23, %v4395_v25  ;;  %v6831_v32 = vcombine.low %v4386_v16, %v4389_v34  ;;  %v6647_v42 = vcombine.low %v8161_v1, %v9922_v26  ;;  %v4401_v6 = vrot.slane %v4399_v10, 4  ;;  %v9928_v61 = vld [vmem:[#allocation2 + $0x1c] sm:$0xf]  ;;  %v7974_v7 = vld [vmem:[%s11090_s4 + $0x50] sm:$0xff]   ;;  %v4269_v23 = vld [vmem:[#allocation2 + $0xa8] sm:$0xe] }
 0x367   : > { %v6832_v39 = vcombine.low %v4393_v35, %v4396_v62  ;;  %v6648_v38 = vcombine.low %v8163_v21, %v9928_v61  ;;  %v4408_v51 = vrot.slane %v4406_v14, 4  ;;  %v4402_v18 = vrot.slane %v3538_v37, 5  ;;  %v3544_v5 = vld [vmem:[#allocation2 + $0xb0] sm:$0x1]  ;;  %v8166_v25 = vld [vmem:[#allocation2 + $0x24] sm:$0xf] }
 0x368   : > { %v6818_v9 = vrot.slane %v4268_v3, 9  ;;  %v4409_v2 = vrot.slane %v3541_v63, 5  ;;  %v4413_v48 = vrot.slane %v3543_v19, 5  ;;  %v4420_v44 = vrot.slane %v3546_v56, 5  ;;  %v9949_v34 = vld [vmem:[#allocation2 + $0x28] sm:$0xf] }
 0x369   : > { %v4403_v52 = vsel %vm9713_vm0, %v4401_v6, %v4402_v18  ;;  %v4400_v4 = vsel %vm9713_vm0, %v6817_v24, %v4399_v10  ;;  %v6649_v16 = vcombine.low %v8166_v25, %v9949_v34  ;;  %v3547_v35 = vld [vmem:[#allocation2 + $0xbc] sm:$0x1]  ;;  %v4270_v37 = vld [vmem:[#allocation2 + $0xb4] sm:$0xe]  ;;  %v8168_v41 = vld [vmem:[#allocation2 + $0x30] sm:$0xf] }
 0x36a   : > { %v4410_v30 = vsel %vm9713_vm0, %v4408_v51, %v4409_v2  ;;  %v6833_v22 = vcombine.low %v4400_v4, %v4403_v52  ;;  %v4407_v59 = vsel %vm9713_vm0, %v6818_v9, %v4406_v14  ;;  %v7983_v10 = vld [vmem:[%s11090_s4 + $0x58] sm:$0xff]   ;;  %v9955_v1 = vld [vmem:[#allocation2 + $0x34] sm:$0xf]  ;;  %v6819_v6 = vrot.slane %v4269_v23, 9  ;;  %v9967_v51 = vld [vmem:[%s11090_s4 + $0x60] sm:$0xff]  }
 0x36b   : > { %v6834_v62 = vcombine.low %v4407_v59, %v4410_v30  ;;  %v6650_v14 = vcombine.low %v8168_v41, %v9955_v1  ;;  %v4416_v63 = vrot.slane %v3544_v5, 5  ;;  %v6820_v3 = vrot.slane %v4270_v37, 9  ;;  %v4271_v9 = vld [vmem:[#allocation2 + $0xc0] sm:$0xe]  ;;  %v8170_v5 = vld [vmem:[#allocation2 + $0x54] sm:$0xf] }
 0x36c   : > { %7483 = vmatmul.mubr.msk.bf16.gmra.mrb[20].mxu0 %vm283_vm3, %v6831_v32  ;;  %v4415_v32 = vrot.slane %v4413_v48, 4  ;;  %v4414_v24 = vsel %vm9713_vm0, %v6819_v6, %v4413_v48  ;;  %v6651_v2 = vcombine.low %v9646_v17, %v9651_v53  ;;  %v6652_v30 = vcombine.low %v9662_v27, %v9664_v28  ;;  %v7973_v25 = vld [vmem:[#allocation2 + $0x18] sm:$0xff]   ;;  %v8174_v6 = vld [vmem:[#allocation2 + $0x14] sm:$0x1] }
 0x36d   : > { %7307 = vmatmul.mubr.msk.bf16.vlgmr.msra.gmra.mrb[4].mxu1 %vm283_vm3, %v6647_v42  ;;  %7486 = vmatprep.mubr.msk.bf16.mxu0 %vm283_vm3, %v6832_v39  ;;  %v4422_v42 = vrot.slane %v4420_v44, 4  ;;  %v3549_v39 = vld [vmem:[#allocation2 + $0xc4] sm:$0xf]  ;;  %v4421_v56 = vsel %vm9713_vm0, %v6820_v3, %v4420_v44  ;;  %v3777_v48 = vshll.u32 %v9898_v54, 16  ;;  %v3781_v4 = vshrl.u32 %v9898_v54, 16 }
 0x36e   : > { %7310 = vmatprep.mubr.msk.bf16.mxu1 %vm283_vm3, %v6648_v38  ;;  %7339 = vmatpush3.bf16.msra.mxu1 %v8165_v31  ;;  %v4417_v21 = vsel %vm9713_vm0, %v4415_v32, %v4416_v63  ;;  %v4427_v38 = vrot.slane %v3549_v39, 5  ;;  %v3550_v31 = vld [vmem:[#allocation2 + $0xc8] sm:$0x1]  ;;  %v6821_v44 = vrot.slane %v4271_v9, 9  ;;  %v9992_v54 = vld [vmem:[#allocation2 + $0x58] sm:$0xf]  ;;  %v6657_v9 = vcombine.low %v9760_v50, %v9775_v47 }
 0x36f   : > { %7340 = vmatprep.subr.bf16.mxu1 %v7971_v0  ;;  %v6835_v18 = vcombine.low %v4414_v24, %v4417_v21  ;;  %v9988_v53 = vrot.slane %v3777_v48, 5  ;;  %v3783_v27 = vrot.slane %v3781_v4, 4  ;;  %v6653_v23 = vcombine.low %v8170_v5, %v9992_v54  ;;  %v2635_v3 = vld [vmem:[#allocation2 + $0xc] sm:$0xe]  ;;  %v7976_v21 = vld [vmem:[#allocation2 + $0x24] sm:$0xff]  }
 0x370   : > { %v4428_v28 = vsel %vm9713_vm0, %v6821_v44, %v4427_v38  ;;  %v3787_v37 = vshll.u32 %v9906_v12, 16  ;;  %v2687_v41 = vrot.slane %v9895_v33, 5  ;;  %v2708_v39 = vrot.slane %v9949_v34, 5 }
 0x371   : > { %11171 = vst [vmem:[#allocation21_spill] sm:$0xff] %v9988_v53  ;;  %v2697_v63 = vrot.slane %v8174_v6, 5  ;;  %v6656_v34 = vcombine.low %v9743_v15, %v9736_v20  ;;  %v6683_v48 = vrot.slane %v2635_v3, 9  ;;  %v6659_v15 = vcombine.low %v9809_v8, %v9824_v49  ;;  %v10054_v6 = vld [vmem:[#allocation2 + $0x4c] sm:$0xf] }
 0x372   : > { %7341 = vmatpush3.bf16.msra.mxu1 %v7971_v0  ;;  %v4423_v0 = vrot.slane %v3547_v35, 5  ;;  %v3784_v35 = vor.u32 %v3783_v27, %v9988_v53  ;;  %v10010_v12 = vrot.slane %v3787_v37, 5  ;;  %v2689_v24 = vrot.slane %v2687_v41, 4 }
 0x373   : > { %7342 = vmatprep.subr.bf16.mxu1 %v7974_v7  ;;  %v6660_v3 = vcombine.low %v9835_v57, %v9837_v55  ;;  %v2760_v57 = vrot.slane %v9747_v11, 5 }
 0x374   : > { %7487 = vmatmul.mubr.msk.bf16.gmra.mrb[24].mxu0 %vm283_vm3, %v6833_v22  ;;  %v4424_v19 = vsel %vm9713_vm0, %v4422_v42, %v4423_v0  ;;  %v4430_v22 = vrot.slane %v3550_v31, 5  ;;  %v2701_v42 = vrot.slane %v9928_v61, 5  ;;  %v10008_v0 = vrot.slane %v3784_v35, 4  ;;  %11173 = vst [vmem:[#allocation22_spill] sm:$0xff] %v10010_v12 }
 0x375   : > { %7311 = vmatmul.mubr.msk.bf16.gmra.mrb[8].mxu1 %vm283_vm3, %v6649_v16  ;;  %7490 = vmatprep.mubr.msk.bf16.mxu0 %vm283_vm3, %v6834_v62  ;;  %v6836_v52 = vcombine.low %v4421_v56, %v4424_v19  ;;  %v8172_v16 = vld [vmem:[#allocation2 + $0x60] sm:$0xf]  ;;  %v9995_v62 = vld [vmem:[#allocation2 + $0x64] sm:$0xf]  ;;  %v2636_v19 = vld [vmem:[#allocation2 + $0x18] sm:$0xe]  ;;  %v6655_v61 = vcombine.low %v9722_v46, %v9725_v13 }
 0x376   : > { %7314 = vmatprep.mubr.msk.bf16.mxu1 %vm283_vm3, %v6650_v14  ;;  %7343 = vmatpush3.bf16.msra.mxu1 %v7974_v7  ;;  %v4429_v7 = vrot.slane %v4427_v38, 4  ;;  %v6654_v32 = vcombine.low %v8172_v16, %v9995_v62  ;;  %v2694_v14 = vrot.slane %v9922_v26, 5  ;;  %11172 = vst [vmem:[#allocation23_spill] sm:$0xff] %v10008_v0  ;;  %v2703_v31 = vrot.slane %v2701_v42, 4  ;;  %v2637_v26 = vld [vmem:[#allocation2 + $0x24] sm:$0xe] }
 0x377   : > { %7344 = vmatprep.subr.bf16.mxu1 %v7983_v10  ;;  %v6684_v4 = vrot.slane %v2636_v19, 9  ;;  %v8176_v46 = vld [vmem:[#allocation2 + $0x20] sm:$0x1]  ;;  %v6685_v27 = vrot.slane %v2637_v26, 9  ;;  %v2715_v16 = vrot.slane %v9955_v1, 5 }
 0x378   : > { %v4431_v17 = vsel %vm9713_vm0, %v4429_v7, %v4430_v22  ;;  %v2696_v33 = vrot.slane %v2694_v14, 4  ;;  %v7977_v7 = vld [vmem:[#allocation2 + $0x30] sm:$0xff]   ;;  %v2704_v44 = vrot.slane %v8176_v46, 5  ;;  %v10063_v1 = vsel %vm9713_vm0, %v6683_v48, %v2694_v14  ;;  %v5140_v14 = vld [vmem:[#allocation2 + $0x1c] sm:$0xf]  ;;  %v7981_v48 = vld [vmem:[#allocation2 + $0x48] sm:$0xff]  }
 0x379   : > { %v6837_v59 = vcombine.low %v4428_v28, %v4431_v17  ;;  %v2638_v22 = vld [vmem:[#allocation2 + $0x30] sm:$0xe]  ;;  %v8177_v28 = vld [vmem:[#allocation2 + $0x2c] sm:$0x1]  ;;  %v7980_v26 = vld [vmem:[#allocation2 + $0x3c] sm:$0xff]  }
 0x37a   : > { %7345 = vmatpush3.bf16.msra.mxu1 %v7983_v10  ;;  %v2634_v10 = vld [vmem:[#allocation2] sm:$0xe]  ;;  %v6686_v37 = vrot.slane %v2638_v22, 9  ;;  %v7998_v46 = vld [vmem:[%s11090_s4 + $0xf8] sm:$0xff]   ;;  %v2736_v22 = vrot.slane %v9992_v54, 5 }
 0x37b   : > { %7378 = vmatprep.subr.bf16.mxu1 %v9967_v51  ;;  %v6682_v38 = vrot.slane %v2634_v10, 9  ;;  %v8178_v10 = vld [vmem:[#allocation2 + $0x40] sm:$0xf]  ;;  %v5144_v19 = vld [vmem:[#allocation2 + $0x2c] sm:$0x1] }
 0x37c   : > { %7491 = vmatmul.mubr.msk.bf16.gmra.mrb[28].mxu0 %vm283_vm3, %v6835_v18  ;;  %v8175_v18 = vld [vmem:[#allocation2 + $0x8] sm:$0x1] }
 0x37d   : > { %7315 = vmatmul.mubr.msk.bf16.gmra.mrb[12].mxu1 %vm283_vm3, %v6651_v2  ;;  %7494 = vmatprep.mubr.msk.bf16.mxu0 %vm283_vm3, %v6836_v52  ;;  %v2690_v56 = vrot.slane %v8175_v18, 5  ;;  %v7984_v2 = vld [vmem:[%s11090_s4 + $0xe8] sm:$0xff]   ;;  %v2710_v52 = vrot.slane %v2708_v39, 4  ;;  %v10030_v17 = vsel %vm9713_vm0, %v6682_v38, %v2687_v41  ;;  %v2722_v41 = vrot.slane %v8178_v10, 5 }
 0x37e   : > { %7318 = vmatprep.mubr.msk.bf16.mxu1 %vm283_vm3, %v6652_v30  ;;  %v6658_v30 = vcombine.low %v9777_v36, %v9781_v29  ;;  %v10067_v38 = vsel %vm9713_vm0, %v6684_v4, %v2701_v42  ;;  %v10075_v18 = vsel %vm9713_vm0, %v6685_v27, %v2708_v39  ;;  %v10083_v39 = vsel %vm9713_vm0, %v6686_v37, %v2715_v16  ;;  %v2642_v27 = vld [vmem:[#allocation2 + $0x60] sm:$0xe]  ;;  %v8181_v37 = vld [vmem:[#allocation2 + $0x44] sm:$0x1] }
 0x37f   : > { %v10036_v5 = vsel %vm9713_vm0, %v2689_v24, %v2690_v56  ;;  %v2724_v4 = vrot.slane %v2722_v41, 4  ;;  %v5201_v10 = vshrl.u32 %v5140_v14, 16  ;;  %v2725_v54 = vrot.slane %v8181_v37, 5 }
 0x384   : > { %7495 = vmatmul.mubr.msk.bf16.gmra.mrb[32].mxu0 %vm283_vm3, %v6837_v59  ;;  %v2711_v59 = vrot.slane %v8177_v28, 5 }
 0x385   : > { %7319 = vmatmul.mubr.msk.bf16.gmra.mrb[16].mxu1 %vm283_vm3, %v6653_v23  ;;  %7506 = vmatprep.mubr.msk.bf16.mxu0 %vm283_vm3, %v7973_v25  ;;  %v7992_v23 = vld [vmem:[%s11090_s4 + $0xf0] sm:$0xff]   ;;  %v10047_v25 = vsel %vm9713_vm0, %v2703_v31, %v2704_v44  ;;  %v5139_v31 = vld [vmem:[#allocation2 + $0x18] sm:$0xf] }
 0x386   : > { %7322 = vmatprep.mubr.msk.bf16.mxu1 %vm283_vm3, %v6654_v32  ;;  %v2639_v32 = vld [vmem:[#allocation2 + $0x3c] sm:$0xe]  ;;  %v10052_v35 = vsel %vm9713_vm0, %v2710_v52, %v2711_v59  ;;  %v5188_v28 = vshrl.u32 %v5139_v31, 16  ;;  %v5191_v59 = vshll.u32 %v5139_v31, 16  ;;  %v8183_v31 = vld [vmem:[#allocation2 + $0x5c] sm:$0x1] }
 0x387   : > { %v6687_v56 = vrot.slane %v2639_v32, 9  ;;  %v5197_v32 = vshll.u32 %v5140_v14, 16  ;;  %v2739_v14 = vrot.slane %v8183_v31, 5  ;;  %v7987_v31 = vld [vmem:[#allocation2 + $0x60] sm:$0xff]  }
 0x38c   : > { %7507 = vmatmul.mubr.msk.bf16.vlgmr.msra.gmra.mrb[4].mxu0 %vm283_vm3, %v7976_v21 }
 0x38d   : > { %7323 = vmatmul.mubr.msk.bf16.gmra.mrb[20].mxu1 %vm283_vm3, %v6655_v61  ;;  %7539 = vmatpush3.bf16.msra.mxu0 %v9845_v40  ;;  %v10040_v40 = vsel %vm9713_vm0, %v2696_v33, %v2697_v63  ;;  %v2729_v63 = vrot.slane %v10054_v6, 5  ;;  %v2641_v33 = vld [vmem:[#allocation2 + $0x54] sm:$0xe]  ;;  %v2643_v61 = vld [vmem:[#allocation2 + $0x6c] sm:$0xe] }
 0x38e   : > { %7326 = vmatprep.mubr.msk.bf16.mxu1 %vm283_vm3, %v6656_v34  ;;  %7510 = vmatprep.mubr.msk.bf16.mxu0 %vm283_vm3, %v7977_v7  ;;  %v2717_v34 = vrot.slane %v2715_v16, 4  ;;  %v2640_v7 = vld [vmem:[#allocation2 + $0x48] sm:$0xe]  ;;  %v10097_v16 = vsel %vm9713_vm0, %v6687_v56, %v2722_v41  ;;  %v2743_v41 = vrot.slane %v9995_v62, 5  ;;  %v5142_v56 = vld [vmem:[#allocation2 + $0x24] sm:$0xf] }
 0x38f   : > { %7540 = vmatprep.subr.bf16.mxu0 %v7984_v2  ;;  %v2731_v44 = vrot.slane %v2729_v63, 4  ;;  %v6688_v6 = vrot.slane %v2640_v7, 9  ;;  %v10110_v7 = vsel %vm9713_vm0, %v2724_v4, %v2725_v54  ;;  %v10121_v62 = vrot.slane %v5197_v32, 5 }
 0x390   : > { %v5212_v54 = vshrl.u32 %v5142_v56, 16  ;;  %v2750_v32 = vrot.slane %v9725_v13, 5 }
 0x391   : > { %7541 = vmatpush3.bf16.msra.mxu0 %v7984_v2  ;;  %v8180_v2 = vld [vmem:[#allocation2 + $0x38] sm:$0x1]  ;;  %v10127_v37 = vsel %vm9713_vm0, %v6688_v6, %v2729_v63 }
 0x392   : > { %7542 = vmatprep.subr.bf16.mxu0 %v7992_v23  ;;  %v2718_v52 = vrot.slane %v8180_v2, 5 }
 0x394   : > { %7511 = vmatmul.mubr.msk.bf16.gmra.mrb[8].mxu0 %vm283_vm3, %v7980_v26  ;;  %v8182_v26 = vld [vmem:[#allocation2 + $0x50] sm:$0x1]  ;;  %v10105_v50 = vsel %vm9713_vm0, %v2717_v34, %v2718_v52  ;;  %v5190_v34 = vrot.slane %v5188_v28, 4  ;;  %v5193_v52 = vrot.slane %v5191_v59, 5  ;;  %v2745_v59 = vrot.slane %v2743_v41, 4 }
 0x395   : > { %7327 = vmatmul.mubr.msk.bf16.gmra.mrb[24].mxu1 %vm283_vm3, %v6657_v9  ;;  %7514 = vmatprep.mubr.msk.bf16.mxu0 %vm283_vm3, %v7981_v48  ;;  %v2732_v2 = vrot.slane %v8182_v26, 5  ;;  %v6689_v9 = vrot.slane %v2641_v33, 9  ;;  %v10119_v33 = vld [vmem:[%s11090_s4 + $0x100] sm:$0xff]   ;;  %v5203_v48 = vrot.slane %v5201_v10, 4  ;;  %v7986_v26 = vld [vmem:[#allocation2 + $0x54] sm:$0xff]  }
 0x396   : > { %7330 = vmatprep.mubr.msk.bf16.mxu1 %vm283_vm3, %v6658_v30  ;;  %7543 = vmatpush3.bf16.msra.mxu0 %v7992_v23  ;;  %v2738_v30 = vrot.slane %v2736_v22, 4  ;;  %v6690_v23 = vrot.slane %v2642_v27, 9  ;;  %v5215_v27 = vshll.u32 %v5142_v56, 16  ;;  %v5143_v10 = vld [vmem:[#allocation2 + $0x28] sm:$0xf] }
 0x397   : > { %7544 = vmatprep.subr.bf16.mxu0 %v7998_v46  ;;  %v10114_v36 = vsel %vm9713_vm0, %v2731_v44, %v2732_v2  ;;  %v5141_v44 = vld [vmem:[#allocation2 + $0x20] sm:$0x1]  ;;  %v10133_v28 = vsel %vm9713_vm0, %v6689_v9, %v2736_v22  ;;  %v8184_v56 = vld [vmem:[#allocation2 + $0x68] sm:$0x1]  ;;  %v5145_v22 = vld [vmem:[#allocation2 + $0x30] sm:$0xf]  ;;  %v5194_v9 = vor.u32 %v5193_v52, %v5190_v34  ;;  %v5204_v63 = vor.u32 %v5203_v48, %v10121_v62 }
 0x398   : > { %v10140_v6 = vsel %vm9713_vm0, %v2738_v30, %v2739_v14  ;;  %v2746_v4 = vrot.slane %v8184_v56, 5  ;;  %v10147_v13 = vsel %vm9713_vm0, %v6690_v23, %v2743_v41  ;;  %v5207_v2 = vshll.u32 %v5141_v44, 16  ;;  %v5146_v14 = vld [vmem:[#allocation2 + $0x34] sm:$0xf] }
 0x399   : > { %v5214_v30 = vrot.slane %v5212_v54, 4  ;;  %v5221_v56 = vshll.u32 %v5143_v10, 16  ;;  %v5225_v42 = vshrl.u32 %v5143_v10, 16  ;;  %v2752_v23 = vrot.slane %v2750_v32, 4 }
 0x39a   : > { %7545 = vmatpush3.bf16.msra.mxu0 %v7998_v46  ;;  %v2757_v46 = vrot.slane %v9736_v20, 5  ;;  %v2644_v20 = vld [vmem:[#allocation2 + $0x78] sm:$0xe]  ;;  %v10161_v41 = vsel %vm9713_vm0, %v2745_v59, %v2746_v4  ;;  %v5236_v8 = vshrl.u32 %v5145_v22, 16  ;;  %v5239_v34 = vshll.u32 %v5145_v22, 16  ;;  %v7989_v59 = vld [vmem:[#allocation2 + $0x6c] sm:$0xff]  }
 0x39b   : > { %7578 = vmatprep.subr.bf16.mxu0 %v10119_v33  ;;  %v5245_v48 = vshll.u32 %v5146_v14, 16  ;;  %v5249_v44 = vshrl.u32 %v5146_v14, 16  ;;  %v5195_v54 = vrot.slane %v5194_v9, 4  ;;  %v6692_v24 = vrot.slane %v2644_v20, 9  ;;  %v7990_v9 = vld [vmem:[#allocation2 + $0x78] sm:$0xff]  }
 0x39c   : > { %7515 = vmatmul.mubr.msk.bf16.gmra.mrb[12].mxu0 %vm283_vm3, %v7986_v26  ;;  %v5217_v26 = vrot.slane %v5215_v27, 5  ;;  %v2759_v52 = vrot.slane %v2757_v46, 4  ;;  %v5205_v27 = vrot.slane %v5204_v63, 4  ;;  %v10164_v21 = vrot.slane %v5221_v56, 5 }
 0x39d   : > { %7331 = vmatmul.mubr.msk.bf16.gmra.mrb[28].mxu1 %vm283_vm3, %v6659_v15  ;;  %7518 = vmatprep.mubr.msk.bf16.mxu0 %vm283_vm3, %v7987_v31  ;;  %v6691_v15 = vrot.slane %v2643_v61, 9  ;;  %v8185_v31 = vld [vmem:[#allocation2 + $0x74] sm:$0x1]  ;;  %v5227_v4 = vrot.slane %v5225_v42, 4  ;;  %v5209_v53 = vrot.slane %v5207_v2, 5  ;;  %v5238_v22 = vrot.slane %v5236_v8, 4 }
 0x39e   : > { %7334 = vmatprep.mubr.msk.bf16.mxu1 %vm283_vm3, %v6660_v3  ;;  %v2753_v10 = vrot.slane %v8185_v31, 5  ;;  %v5218_v3 = vor.u32 %v5217_v26, %v5214_v30  ;;  %v5241_v14 = vrot.slane %v5239_v34, 5  ;;  %v10172_v63 = vsel %vm9713_vm0, %v2759_v52, %v2760_v57  ;;  %v5149_v34 = vld [vmem:[#allocation2 + $0x40] sm:$0xf]  ;;  %v8186_v2 = vld [vmem:[#allocation2 + $0x8c] sm:$0x1] }
 0x39f   : > { %v5231_v20 = vshll.u32 %v5144_v19, 16  ;;  %v10174_v31 = vrot.slane %v5245_v48, 5  ;;  %v5251_v11 = vrot.slane %v5249_v44, 4  ;;  %v5200_v30 = vsel %vm8868_vm10, %v5195_v54, %v10121_v62 }
 0x3a0   : > { %v10168_v61 = vsel %vm9713_vm0, %v2752_v23, %v2753_v10  ;;  %v5210_v26 = vsel %vm8868_vm10, %v5205_v27, %v5209_v53  ;;  %v11174_v19 = vcombine.low %v9861_v58, %v9863_v45  ;;  %v10193_v56 = vsel %vm9713_vm0, %v6691_v15, %v2750_v32  ;;  %v5148_v53 = vld [vmem:[#allocation2 + $0x3c] sm:$0xf]  ;;  %v10210_v15 = vld [vmem:[#allocation2 + $0x38] sm:$0x1] }
 0x3a1   : > { %v10197_v23 = vsel %vm9713_vm0, %v6692_v24, %v2757_v46  ;;  %v10199_v8 = vrot.slane %v5218_v3, 4  ;;  %v5228_v62 = vor.u32 %v5227_v4, %v10164_v21  ;;  %v11175_v58 = vcombine.low %v10030_v17, %v10036_v5  ;;  %11176 = vst [vmem:[#allocation18_spill] sm:$0xff] %v10210_v15  ;;  %v2645_v46 = vld [vmem:[#allocation2 + $0x84] sm:$0xe]  ;;  %v5151_v5 = vld [vmem:[#allocation2 + $0x48] sm:$0xf] }
 0x3a2   : > { %v5242_v24 = vor.u32 %v5241_v14, %v5238_v22  ;;  %v2764_v52 = vrot.slane %v9775_v47, 5  ;;  %v10213_v48 = vcombine.low %v5200_v30, %v5210_v26  ;;  %v5233_v44 = vrot.slane %v5231_v20, 5  ;;  %v10217_v4 = vld [vmem:[#allocation2 + $0x4c] sm:$0xf] }
 0x3a3   : > { %v5252_v54 = vor.u32 %v5251_v11, %v10174_v31  ;;  %v2771_v17 = vrot.slane %v9781_v29, 5  ;;  %v5260_v27 = vshrl.u32 %v5148_v53, 16  ;;  %v5263_v10 = vshll.u32 %v5148_v53, 16  ;;  %v2646_v29 = vld [vmem:[#allocation2 + $0x90] sm:$0xe]  ;;  %v7997_v53 = vld [vmem:[%s11090_s4 + $0x68] sm:$0xff]  }
 0x3a4   : > { %7519 = vmatmul.mubr.msk.bf16.gmra.mrb[16].mxu0 %vm283_vm3, %v7989_v59  ;;  %v5269_v57 = vshll.u32 %v5149_v34, 16  ;;  %v5273_v3 = vshrl.u32 %v5149_v34, 16  ;;  %v7993_v59 = vld [vmem:[#allocation2 + $0x84] sm:$0xff]   ;;  %v5224_v47 = vsel %vm8868_vm10, %v10199_v8, %v10164_v21  ;;  %v5229_v22 = vrot.slane %v5228_v62, 4 }
 0x3a5   : > { %7335 = vmatmul.mubr.msk.bf16.gmra.mrb[32].mxu1 %vm283_vm3, %v11174_v19  ;;  %7522 = vmatprep.mubr.msk.bf16.mxu0 %vm283_vm3, %v7990_v9  ;;  %v5255_v14 = vshll.u32 %v10210_v15, 16  ;;  %v6693_v9 = vrot.slane %v2645_v46, 9  ;;  %v5243_v20 = vrot.slane %v5242_v24, 4  ;;  %v2766_v11 = vrot.slane %v2764_v52, 4  ;;  %v7994_v19 = vld [vmem:[#allocation2 + $0x90] sm:$0xff]  }
 0x3a6   : > { %7346 = vmatprep.mubr.msk.bf16.mxu1 %vm283_vm3, %v11175_v58  ;;  %v5284_v30 = vshrl.u32 %v5151_v5, 16  ;;  %v5287_v26 = vshll.u32 %v5151_v5, 16  ;;  %v5253_v34 = vrot.slane %v5252_v54, 4  ;;  %v2773_v58 = vrot.slane %v2771_v17, 4  ;;  %v10396_v15 = vld [vmem:[#allocation2 + $0x94] sm:$0xf] }
 0x3a7   : > { %v5293_v32 = vshll.u32 %v10217_v4, 16  ;;  %v5297_v21 = vshrl.u32 %v10217_v4, 16  ;;  %v5262_v8 = vrot.slane %v5260_v27, 4  ;;  %v5265_v62 = vrot.slane %v5263_v10, 5  ;;  %v10241_v27 = vld [vmem:[#allocation2 + $0x44] sm:$0x1] }
 0x3a8   : > { %v10230_v24 = vrot.slane %v5269_v57, 5  ;;  %v5275_v46 = vrot.slane %v5273_v3, 4  ;;  %v11177_v5 = vcombine.low %v10063_v1, %v10040_v40  ;;  %v5257_v54 = vrot.slane %v5255_v14, 5  ;;  %11178 = vst [vmem:[#allocation12_spill] sm:$0xff] %v10241_v27  ;;  %v8187_v1 = vld [vmem:[#allocation2 + $0x98] sm:$0x1] }
 0x3a9   : > { %v10239_v45 = vsel %vm9713_vm0, %v6693_v9, %v2764_v52  ;;  %v2767_v42 = vrot.slane %v8186_v2, 5  ;;  %v11179_v10 = vcombine.low %v10067_v38, %v10047_v25  ;;  %v5234_v40 = vsel %vm8868_vm10, %v5229_v22, %v5233_v44  ;;  %v5154_v14 = vld [vmem:[#allocation2 + $0x54] sm:$0xf]  ;;  %v10260_v38 = vld [vmem:[#allocation2 + $0x50] sm:$0x1] }
 0x3aa   : > { %v2774_v57 = vrot.slane %v8187_v1, 5  ;;  %v5286_v3 = vrot.slane %v5284_v30, 4  ;;  %v5289_v52 = vrot.slane %v5287_v26, 5  ;;  %v8002_v2 = vld [vmem:[%s11090_s4 + $0x70] sm:$0xff]   ;;  %v5248_v25 = vsel %vm8868_vm10, %v5243_v20, %v10174_v31  ;;  %v2647_v20 = vld [vmem:[#allocation2 + $0x9c] sm:$0xe] }
 0x3ab   : > { %v10262_v44 = vrot.slane %v5293_v32, 5  ;;  %v5299_v22 = vrot.slane %v5297_v21, 4  ;;  %v5258_v9 = vsel %vm8868_vm10, %v5253_v34, %v5257_v54  ;;  %v5266_v30 = vor.u32 %v5265_v62, %v5262_v8  ;;  %v10280_v62 = vld [vmem:[#allocation2 + $0x58] sm:$0xf]  ;;  %v5157_v1 = vld [vmem:[#allocation2 + $0x60] sm:$0xf] }
 0x3ac   : > { %7523 = vmatmul.mubr.msk.bf16.gmra.mrb[20].mxu0 %vm283_vm3, %v7993_v59  ;;  %v6694_v59 = vrot.slane %v2646_v29, 9  ;;  %v10268_v29 = vsel %vm9713_vm0, %v2773_v58, %v2774_v57  ;;  %v5276_v26 = vor.u32 %v5275_v46, %v10230_v24  ;;  %v10271_v31 = vcombine.low %v5224_v47, %v5234_v40  ;;  %v7996_v47 = vld [vmem:[#allocation2 + $0xa8] sm:$0xff]   ;;  %v8004_v54 = vld [vmem:[%s11090_s4 + $0x78] sm:$0xff]  }
 0x3ad   : > { %7347 = vmatmul.mubr.msk.bf16.vlgmr.msra.gmra.mrb[4].mxu1 %vm283_vm3, %v11177_v5  ;;  %7526 = vmatprep.mubr.msk.bf16.mxu0 %vm283_vm3, %v7994_v19  ;;  %v5308_v32 = vshrl.u32 %v5154_v14, 16  ;;  %v7995_v19 = vld [vmem:[#allocation2 + $0x9c] sm:$0xff]   ;;  %v5279_v34 = vshll.u32 %v10241_v27, 16  ;;  %v5290_v21 = vor.u32 %v5289_v52, %v5286_v3  ;;  %v5303_v58 = vshll.u32 %v10260_v38, 16  ;;  %v2648_v3 = vld [vmem:[#allocation2 + $0xa8] sm:$0xe] }
 0x3ae   : > { %7350 = vmatprep.mubr.msk.bf16.mxu1 %vm283_vm3, %v11179_v10  ;;  %7379 = vmatpush3.bf16.msra.mxu1 %v9967_v51  ;;  %v10258_v51 = vsel %vm9713_vm0, %v2766_v11, %v2767_v42  ;;  %v10275_v42 = vsel %vm9713_vm0, %v6694_v59, %v2771_v17  ;;  %v5311_v11 = vshll.u32 %v5154_v14, 16  ;;  %v2778_v8 = vrot.slane %v9824_v49, 5  ;;  %v8001_v5 = vld [vmem:[#allocation2 + $0xcc] sm:$0xff]  }
 0x3af   : > { %7380 = vmatprep.subr.bf16.mxu1 %v7997_v53  ;;  %v10282_v46 = vcombine.low %v5248_v25, %v5258_v9  ;;  %v5267_v49 = vrot.slane %v5266_v30, 4  ;;  %v5277_v59 = vrot.slane %v5276_v26, 4  ;;  %v6695_v10 = vrot.slane %v2647_v20, 9  ;;  %v8188_v20 = vld [vmem:[#allocation2 + $0xa4] sm:$0x1] }
 0x3b0   : > { %v2785_v40 = vrot.slane %v9837_v55, 5  ;;  %v11180_v57 = vcombine.low %v10075_v18, %v10052_v35  ;;  %v5310_v52 = vrot.slane %v5308_v32, 4  ;;  %v5313_v14 = vrot.slane %v5311_v11, 5  ;;  %v10305_v32 = vld [vmem:[#allocation2 + $0x64] sm:$0xf] }
 0x3b1   : > { %v5317_v25 = vshll.u32 %v10280_v62, 16  ;;  %v11181_v9 = vcombine.low %v10083_v39, %v10105_v50  ;;  %v5281_v55 = vrot.slane %v5279_v34, 5  ;;  %v5291_v30 = vrot.slane %v5290_v21, 4  ;;  %v10316_v34 = vld [vmem:[#allocation2 + $0x5c] sm:$0x1] }
 0x3b2   : > { %7381 = vmatpush3.bf16.msra.mxu1 %v7997_v53  ;;  %v5300_v53 = vor.u32 %v5299_v22, %v10262_v44  ;;  %v5321_v22 = vshrl.u32 %v10280_v62, 16  ;;  %v5305_v35 = vrot.slane %v5303_v58, 5  ;;  %v2780_v18 = vrot.slane %v2778_v8, 4 }
 0x3b3   : > { %7382 = vmatprep.subr.bf16.mxu1 %v8002_v2  ;;  %v5332_v11 = vshrl.u32 %v5157_v1, 16  ;;  %v5282_v39 = vsel %vm8868_vm10, %v5277_v59, %v5281_v55  ;;  %v10314_v50 = vsel %vm9713_vm0, %v6695_v10, %v2778_v8  ;;  %v2787_v21 = vrot.slane %v2785_v40, 4  ;;  %v8189_v8 = vld [vmem:[#allocation2 + $0xb0] sm:$0x1] }
 0x3b4   : > { %7527 = vmatmul.mubr.msk.bf16.gmra.mrb[24].mxu0 %vm283_vm3, %v7995_v19  ;;  %v5301_v26 = vrot.slane %v5300_v53, 4  ;;  %v2781_v19 = vrot.slane %v8188_v20, 5  ;;  %v5314_v58 = vor.u32 %v5313_v14, %v5310_v52  ;;  %v10318_v53 = vrot.slane %v5317_v25, 5  ;;  %v7999_v20 = vld [vmem:[#allocation2 + $0xb4] sm:$0xff]   ;;  %v8000_v52 = vld [vmem:[#allocation2 + $0xc0] sm:$0xff]  }
 0x3b5   : > { %7351 = vmatmul.mubr.msk.bf16.gmra.mrb[8].mxu1 %vm283_vm3, %v11180_v57  ;;  %7530 = vmatprep.mubr.msk.bf16.mxu0 %vm283_vm3, %v7996_v47  ;;  %v5335_v47 = vshll.u32 %v5157_v1, 16  ;;  %v5272_v57 = vsel %vm8868_vm10, %v5267_v49, %v10230_v24  ;;  %v10320_v1 = vld [vmem:[#allocation2 + $0x68] sm:$0x1]  ;;  %v5296_v24 = vsel %vm8868_vm10, %v5291_v30, %v10262_v44  ;;  %v2788_v59 = vrot.slane %v8189_v8, 5  ;;  %v10336_v44 = vld [vmem:[%s11090_s4 + $0x80] sm:$0xff]  }
 0x3b6   : > { %7354 = vmatprep.mubr.msk.bf16.mxu1 %vm283_vm3, %v11181_v9  ;;  %7383 = vmatpush3.bf16.msra.mxu1 %v8002_v2  ;;  %v6696_v2 = vrot.slane %v2648_v3, 9  ;;  %v5323_v9 = vrot.slane %v5321_v22, 4  ;;  %v10327_v49 = vsel %vm9713_vm0, %v2780_v18, %v2781_v19  ;;  %v5341_v10 = vshll.u32 %v10305_v32, 16  ;;  %v5160_v3 = vld [vmem:[#allocation2 + $0x6c] sm:$0xf]  ;;  %11182 = vst [vmem:[#allocation13_spill] sm:$0xff] %v10336_v44 }
 0x3b7   : > { %7384 = vmatprep.subr.bf16.mxu1 %v8004_v54  ;;  %v5306_v14 = vsel %vm8868_vm10, %v5301_v26, %v5305_v35  ;;  %v5334_v25 = vrot.slane %v5332_v11, 4  ;;  %v5337_v22 = vrot.slane %v5335_v47, 5  ;;  %v5345_v55 = vshrl.u32 %v10305_v32, 16  ;;  %v2649_v26 = vld [vmem:[#allocation2 + $0xb4] sm:$0xe] }
 0x3b8   : > { %v10344_v30 = vsel %vm9713_vm0, %v6696_v2, %v2785_v40  ;;  %v5327_v35 = vshll.u32 %v10316_v34, 16  ;;  %v5351_v18 = vshll.u32 %v10320_v1, 16  ;;  %v11183_v19 = vcombine.low %v10097_v16, %v10110_v7  ;;  %v10384_v16 = vld [vmem:[#allocation2 + $0x88] sm:$0xf] }
 0x3b9   : > { %v10355_v11 = vsel %vm9713_vm0, %v2787_v21, %v2788_v59  ;;  %v10357_v47 = vrot.slane %v5314_v58, 4  ;;  %v5324_v40 = vor.u32 %v5323_v9, %v10318_v53  ;;  %v10364_v2 = vcombine.low %v5296_v24, %v5306_v14  ;;  %v8191_v9 = vld [vmem:[#allocation2 + $0xb8] sm:$0xf]  ;;  %v8192_v14 = vld [vmem:[#allocation2 + $0xbc] sm:$0x1]  ;;  %11187 = vst [vmem:[#allocation15_spill] sm:$0xff] %v10384_v16 }
 0x3ba   : > { %7385 = vmatpush3.bf16.msra.mxu1 %v8004_v54  ;;  %v10340_v54 = vcombine.low %v5272_v57, %v5282_v39  ;;  %v5356_v57 = vshrl.u32 %v5160_v3, 16  ;;  %v11184_v39 = vcombine.low %v10127_v37, %v10114_v36  ;;  %v10368_v7 = vrot.slane %v5341_v10, 5  ;;  %v10376_v10 = vld [vmem:[#allocation2 + $0x7c] sm:$0xf] }
 0x3bb   : > { %7642 = vmatprep.subr.bf16.mxu1 %v10336_v44  ;;  %v5359_v21 = vshll.u32 %v5160_v3, 16  ;;  %v5338_v58 = vor.u32 %v5337_v22, %v5334_v25  ;;  %v5347_v8 = vrot.slane %v5345_v55, 4  ;;  %v6697_v59 = vrot.slane %v2649_v26, 9  ;;  %11186 = vst [vmem:[#allocation14_spill] sm:$0xff] %v10376_v10  ;;  %v5166_v26 = vld [vmem:[#allocation2 + $0x84] sm:$0xf] }
 0x3bc   : > { %7531 = vmatmul.mubr.msk.bf16.gmra.mrb[28].mxu0 %vm283_vm3, %v7999_v20  ;;  %v10370_v20 = vld [vmem:[#allocation2 + $0x70] sm:$0xf]  ;;  %v5329_v37 = vrot.slane %v5327_v35, 5  ;;  %v10374_v24 = vrot.slane %v5351_v18, 5  ;;  %v5320_v3 = vsel %vm8868_vm10, %v10357_v47, %v10318_v53  ;;  %v5325_v25 = vrot.slane %v5324_v40, 4 }
 0x3bd   : > { %7355 = vmatmul.mubr.msk.bf16.gmra.mrb[12].mxu1 %vm283_vm3, %v11183_v19  ;;  %7534 = vmatprep.mubr.msk.bf16.mxu0 %vm283_vm3, %v8000_v52  ;;  %11185 = vst [vmem:[#allocation6_spill] sm:$0xff] %v10370_v20  ;;  %v2792_v52 = vrot.slane %v8191_v9, 5  ;;  %v5163_v19 = vld [vmem:[#allocation2 + $0x78] sm:$0xf]  ;;  %v5358_v22 = vrot.slane %v5356_v57, 4  ;;  %v5365_v55 = vshll.u32 %v10370_v20, 16  ;;  %v5348_v17 = vor.u32 %v5347_v8, %v10368_v7 }
 0x3be   : > { %7358 = vmatprep.mubr.msk.bf16.mxu1 %vm283_vm3, %v11184_v39  ;;  %v2795_v39 = vrot.slane %v8192_v14, 5  ;;  %v5361_v9 = vrot.slane %v5359_v21, 5  ;;  %v5369_v36 = vshrl.u32 %v10370_v20, 16  ;;  %v5380_v35 = vshrl.u32 %v5163_v19, 16  ;;  %v5169_v47 = vld [vmem:[#allocation2 + $0x90] sm:$0xf] }
 0x3bf   : > { %v5383_v18 = vshll.u32 %v5163_v19, 16  ;;  %v10386_v14 = vrot.slane %v5338_v58, 4  ;;  %v10391_v27 = vsel %vm9713_vm0, %v6697_v59, %v2792_v52  ;;  %v2794_v53 = vrot.slane %v2792_v52, 4 }
 0x3c0   : > { %v5389_v40 = vshll.u32 %v10376_v10, 16  ;;  %v5393_v57 = vshrl.u32 %v10376_v10, 16  ;;  %v5404_v21 = vshrl.u32 %v5166_v26, 16  ;;  %v5407_v19 = vshll.u32 %v5166_v26, 16 }
 0x3c1   : > { %v11188_v58 = vcombine.low %v10133_v28, %v10140_v6  ;;  %v5330_v8 = vsel %vm8868_vm10, %v5325_v25, %v5329_v37  ;;  %v5413_v59 = vshll.u32 %v10384_v16, 16  ;;  %v5417_v52 = vshrl.u32 %v10384_v16, 16 }
 0x3c2   : > { %v11189_v26 = vcombine.low %v10147_v13, %v10161_v41  ;;  %v5362_v28 = vor.u32 %v5361_v9, %v5358_v22  ;;  %v5371_v6 = vrot.slane %v5369_v36, 4  ;;  %v5385_v44 = vrot.slane %v5383_v18, 5  ;;  %v10422_v41 = vld [vmem:[#allocation2 + $0x74] sm:$0x1] }
 0x3c3   : > { %v5428_v0 = vshrl.u32 %v5169_v47, 16  ;;  %v5437_v12 = vshll.u32 %v10396_v15, 16  ;;  %v5441_v37 = vshrl.u32 %v10396_v15, 16  ;;  %v10416_v25 = vrot.slane %v5389_v40, 5  ;;  %v10437_v40 = vld [vmem:[#allocation2 + $0xa0] sm:$0xf] }
 0x3c4   : > { %7535 = vmatmul.mubr.msk.bf16.gmra.mrb[32].mxu0 %vm283_vm3, %v8001_v5  ;;  %v10406_v5 = vrot.slane %v5365_v55, 5  ;;  %v5395_v55 = vrot.slane %v5393_v57, 4  ;;  %v5406_v10 = vrot.slane %v5404_v21, 4  ;;  %v5409_v16 = vrot.slane %v5407_v19, 5  ;;  %v8005_v57 = vld [vmem:[%s11090_s4 + $0x108] sm:$0xff]  }
 0x3c5   : > { %7359 = vmatmul.mubr.msk.bf16.gmra.mrb[16].mxu1 %vm283_vm3, %v11188_v58  ;;  %7546 = vmatprep.mubr.msk.bf16.mxu0 %vm283_vm3, %v10213_v48  ;;  %v5382_v58 = vrot.slane %v5380_v35, 4  ;;  %v5431_v48 = vshll.u32 %v5169_v47, 16  ;;  %v10418_v20 = vcombine.low %v5320_v3, %v5330_v8  ;;  %v10420_v13 = vrot.slane %v5348_v17, 4  ;;  %v10435_v3 = vld [vmem:[#allocation2 + $0x80] sm:$0x1] }
 0x3c6   : > { %7362 = vmatprep.mubr.msk.bf16.mxu1 %vm283_vm3, %v11189_v26  ;;  %v10424_v36 = vrot.slane %v5413_v59, 5  ;;  %v5419_v22 = vrot.slane %v5417_v52, 4  ;;  %v10432_v35 = vsel %vm9713_vm0, %v2794_v53, %v2795_v39  ;;  %v5372_v18 = vor.u32 %v5371_v6, %v10406_v5  ;;  %v5172_v47 = vld [vmem:[#allocation2 + $0x9c] sm:$0xf]  ;;  %v10450_v52 = vld [vmem:[#allocation2 + $0x8c] sm:$0x1] }
 0x3c7   : > { %v5386_v17 = vor.u32 %v5385_v44, %v5382_v58  ;;  %v5430_v21 = vrot.slane %v5428_v0, 4  ;;  %v5433_v19 = vrot.slane %v5431_v48, 5  ;;  %v10442_v8 = vrot.slane %v5437_v12, 5 }
 0x3c8   : > { %v5443_v59 = vrot.slane %v5441_v37, 4  ;;  %v10446_v39 = vrot.slane %v5362_v28, 4  ;;  %v5375_v53 = vshll.u32 %v10422_v41, 16  ;;  %v5396_v44 = vor.u32 %v5395_v55, %v10416_v25 }
 0x3c9   : > { %v5410_v26 = vor.u32 %v5409_v16, %v5406_v10  ;;  %v11190_v6 = vcombine.low %v10193_v56, %v10168_v61  ;;  %v5354_v0 = vsel %vm8868_vm10, %v10420_v13, %v10374_v24  ;;  %v5420_v12 = vor.u32 %v5419_v22, %v10424_v36  ;;  %v8008_v56 = vld [vmem:[%s11090_s4 + $0x110] sm:$0xff]  }
 0x3ca   : > { %v5452_v28 = vshrl.u32 %v5172_v47, 16  ;;  %v5455_v58 = vshll.u32 %v5172_v47, 16  ;;  %v11191_v16 = vcombine.low %v10197_v23, %v10172_v63  ;;  %v5399_v61 = vshll.u32 %v10435_v3, 16 }
 0x3cb   : > { %v5461_v24 = vshll.u32 %v10437_v40, 16  ;;  %v5465_v10 = vshrl.u32 %v10437_v40, 16  ;;  %v5387_v48 = vrot.slane %v5386_v17, 4  ;;  %v5423_v63 = vshll.u32 %v10450_v52, 16  ;;  %v5175_v17 = vld [vmem:[#allocation2 + $0xa8] sm:$0xf] }
 0x3cc   : > { %7547 = vmatmul.mubr.msk.bf16.vlgmr.msra.gmra.mrb[4].mxu0 %vm283_vm3, %v10271_v31  ;;  %v10462_v31 = vld [vmem:[#allocation2 + $0x98] sm:$0x1]  ;;  %v5434_v23 = vor.u32 %v5433_v19, %v5430_v21  ;;  %v5444_v37 = vor.u32 %v5443_v59, %v10442_v8  ;;  %v5377_v55 = vrot.slane %v5375_v53, 5  ;;  %v5397_v13 = vrot.slane %v5396_v44, 4  ;;  %v10485_v59 = vld [vmem:[#allocation2 + $0xa4] sm:$0x1] }
 0x3cd   : > { %7363 = vmatmul.mubr.msk.bf16.gmra.mrb[20].mxu1 %vm283_vm3, %v11190_v6  ;;  %7579 = vmatpush3.bf16.msra.mxu0 %v10119_v33  ;;  %v5373_v33 = vrot.slane %v5372_v18, 4  ;;  %v5411_v22 = vrot.slane %v5410_v26, 4  ;;  %v5421_v18 = vrot.slane %v5420_v12, 4  ;;  %v5447_v47 = vshll.u32 %v10462_v31, 16  ;;  %v10492_v26 = vld [vmem:[#allocation2 + $0xac] sm:$0xf] }
 0x3ce   : > { %7366 = vmatprep.mubr.msk.bf16.mxu1 %vm283_vm3, %v11191_v16  ;;  %7550 = vmatprep.mubr.msk.bf16.mxu0 %vm283_vm3, %v10282_v46  ;;  %v5368_v46 = vsel %vm8868_vm10, %v10446_v39, %v10406_v5  ;;  %v5454_v6 = vrot.slane %v5452_v28, 4  ;;  %v5457_v16 = vrot.slane %v5455_v58, 5  ;;  %v5401_v19 = vrot.slane %v5399_v61, 5  ;;  %v8013_v12 = vld [vmem:[%s11090_s4 + $0x118] sm:$0xff]  }
 0x3cf   : > { %7580 = vmatprep.subr.bf16.mxu0 %v8005_v57  ;;  %v5378_v21 = vsel %vm8868_vm10, %v5373_v33, %v5377_v55  ;;  %v10487_v9 = vrot.slane %v5461_v24, 5  ;;  %v5467_v5 = vrot.slane %v5465_v10, 4  ;;  %v5425_v39 = vrot.slane %v5423_v63, 5 }
 0x3d0   : > { %v5435_v53 = vrot.slane %v5434_v23, 4  ;;  %v5445_v44 = vrot.slane %v5444_v37, 4  ;;  %v5402_v28 = vsel %vm8868_vm10, %v5397_v13, %v5401_v19  ;;  %v5416_v58 = vsel %vm8868_vm10, %v5411_v22, %v10424_v36  ;;  %v5896_v23 = vld [vmem:[#allocation2 + $0x48] sm:$0xe] }
 0x3d1   : > { %7581 = vmatpush3.bf16.msra.mxu0 %v8005_v57  ;;  %v5392_v57 = vsel %vm8868_vm10, %v5387_v48, %v10416_v25  ;;  %v5476_v25 = vshrl.u32 %v5175_v17, 16  ;;  %v5479_v33 = vshll.u32 %v5175_v17, 16  ;;  %v11192_v61 = vcombine.low %v10239_v45, %v10258_v51 }
 0x3d2   : > { %7582 = vmatprep.subr.bf16.mxu0 %v8008_v56  ;;  %v5449_v24 = vrot.slane %v5447_v47, 5  ;;  %v5458_v10 = vor.u32 %v5457_v16, %v5454_v6  ;;  %v5471_v48 = vshll.u32 %v10485_v59, 16  ;;  %v11193_v36 = vcombine.low %v10275_v42, %v10268_v29  ;;  %v5178_v6 = vld [vmem:[#allocation2 + $0xb4] sm:$0xf] }
 0x3d3   : > { %v6713_v45 = vcombine.low %v10391_v27, %v10432_v35  ;;  %v5468_v51 = vor.u32 %v5467_v5, %v10487_v9  ;;  %v5489_v63 = vshrl.u32 %v10492_v26, 16  ;;  %v11194_v37 = vsel %vm8868_vm10, %v10386_v14, %v10368_v7  ;;  %v5897_v16 = vld [vmem:[#allocation2 + $0x54] sm:$0xe] }
 0x3d4   : > { %7551 = vmatmul.mubr.msk.bf16.gmra.mrb[8].mxu0 %vm283_vm3, %v10340_v54  ;;  %v5426_v54 = vsel %vm8868_vm10, %v5421_v18, %v5425_v39  ;;  %v6900_v55 = vcombine.low %v11194_v37, %v5354_v0  ;;  %v10527_v29 = vcombine.low %v5368_v46, %v5378_v21  ;;  %v5440_v42 = vsel %vm8868_vm10, %v5435_v53, %v10442_v8  ;;  %v5898_v8 = vld [vmem:[#allocation2 + $0x60] sm:$0xe] }
 0x3d5   : > { %7367 = vmatmul.mubr.msk.bf16.gmra.mrb[24].mxu1 %vm283_vm3, %v11192_v61  ;;  %7554 = vmatprep.mubr.msk.bf16.mxu0 %vm283_vm3, %v10364_v2  ;;  %v5485_v2 = vshll.u32 %v10492_v26, 16  ;;  %v10534_v13 = vcombine.low %v5392_v57, %v5402_v28  ;;  %v10536_v22 = vcombine.low %v5416_v58, %v5426_v54  ;;  %v5478_v18 = vrot.slane %v5476_v25, 4  ;;  %v10553_v28 = vld [vmem:[#allocation2 + $0xb0] sm:$0x1] }
 0x3d6   : > { %7370 = vmatprep.mubr.msk.bf16.mxu1 %vm283_vm3, %v11193_v36  ;;  %7583 = vmatpush3.bf16.msra.mxu0 %v8008_v56  ;;  %v5450_v56 = vsel %vm8868_vm10, %v5445_v44, %v5449_v24  ;;  %v5481_v47 = vrot.slane %v5479_v33, 5  ;;  %v10538_v7 = vrot.slane %v5458_v10, 4  ;;  %v10540_v14 = vrot.slane %v5471_v48, 5 }
 0x3d7   : > { %7584 = vmatprep.subr.bf16.mxu0 %v8013_v12  ;;  %v6934_v0 = vrot.slane %v5896_v23, 9  ;;  %v5986_v46 = vrot.slane %v10217_v4, 5  ;;  %v10543_v17 = vcombine.low %v5440_v42, %v5450_v56  ;;  %v10545_v21 = vrot.slane %v5468_v51, 4  ;;  %v5900_v23 = vld [vmem:[#allocation2 + $0x78] sm:$0xe] }
 0x3d8   : > { %v10547_v19 = vrot.slane %v5485_v2, 5  ;;  %v5491_v5 = vrot.slane %v5489_v63, 4  ;;  %v5989_v39 = vrot.slane %v10260_v38, 5  ;;  %v6935_v53 = vrot.slane %v5897_v16, 9  ;;  %v5181_v56 = vld [vmem:[#allocation2 + $0xc0] sm:$0xf] }
 0x3d9   : > { %v5988_v57 = vrot.slane %v5986_v46, 4  ;;  %v5993_v44 = vrot.slane %v10280_v62, 5  ;;  %v5482_v4 = vor.u32 %v5481_v47, %v5478_v18  ;;  %v5500_v58 = vshrl.u32 %v5178_v6, 16  ;;  %v10610_v18 = vld [vmem:[#allocation2 + $0xc4] sm:$0xf] }
 0x3da   : > { %7585 = vmatpush3.bf16.msra.mxu0 %v8013_v12  ;;  %v6936_v25 = vrot.slane %v5898_v8, 9  ;;  %v6000_v33 = vrot.slane %v10305_v32, 5  ;;  %v11195_v61 = vcombine.low %v10314_v50, %v10327_v49  ;;  %v10563_v38 = vsel %vm9713_vm0, %v6934_v0, %v5986_v46  ;;  %v10574_v50 = vld [vmem:[#allocation2 + $0xb8] sm:$0xf] }
 0x3db   : > { %v10567_v62 = vsel %vm9713_vm0, %v5988_v57, %v5989_v39  ;;  %v5996_v12 = vrot.slane %v10316_v34, 5  ;;  %v11196_v32 = vcombine.low %v10344_v30, %v10355_v11  ;;  %v5503_v49 = vshll.u32 %v5178_v6, 16  ;;  %v5899_v11 = vld [vmem:[#allocation2 + $0x6c] sm:$0xe]  ;;  %v11197_v46 = vld [vmem:[#allocation6_spill] sm:$0xff] }
 0x3dc   : > { %7555 = vmatmul.mubr.msk.bf16.gmra.mrb[12].mxu0 %vm283_vm3, %v10418_v20  ;;  %v5995_v20 = vrot.slane %v5993_v44, 4  ;;  %v6950_v54 = vcombine.low %v10563_v38, %v10567_v62  ;;  %v6002_v24 = vrot.slane %v6000_v33, 4  ;;  %v6003_v10 = vrot.slane %v10320_v1, 5  ;;  %v3539_v38 = vld [vmem:[#allocation2 + $0x9c] sm:$0xf]  ;;  %v8022_v62 = vld [vmem:[#allocation2 + $0xb4] sm:$0xff]  }
 0x3dd   : > { %7371 = vmatmul.mubr.msk.bf16.gmra.mrb[28].mxu1 %vm283_vm3, %v11195_v61  ;;  %7558 = vmatprep.mubr.msk.bf16.mxu0 %vm283_vm3, %v6900_v55  ;;  %v5492_v48 = vor.u32 %v5491_v5, %v10547_v19  ;;  %v5495_v36 = vshll.u32 %v10553_v28, 16  ;;  %v10583_v34 = vsel %vm9713_vm0, %v6935_v53, %v5993_v44  ;;  %v5464_v51 = vsel %vm8868_vm10, %v10538_v7, %v10487_v9  ;;  %v3530_v5 = vld [vmem:[#allocation2 + $0x78] sm:$0xf]  ;;  %v8194_v9 = vld [vmem:[%s11090_s4 + $0x90] sm:$0xff]  }
 0x3de   : > { %7374 = vmatprep.mubr.msk.bf16.mxu1 %vm283_vm3, %v11196_v32  ;;  %v10587_v30 = vsel %vm9713_vm0, %v5995_v20, %v5996_v12  ;;  %v10597_v2 = vsel %vm9713_vm0, %v6936_v25, %v6000_v33  ;;  %v10601_v63 = vsel %vm9713_vm0, %v6002_v24, %v6003_v10  ;;  %v5474_v37 = vsel %vm8868_vm10, %v10545_v21, %v10540_v14  ;;  %v11198_v44 = vld [vmem:[#allocation14_spill] sm:$0xff]  ;;  %v8006_v25 = vld [vmem:[#allocation2 + $0xc] sm:$0xff]  }
 0x3df   : > { %v6951_v1 = vcombine.low %v10583_v34, %v10587_v30  ;;  %v10607_v55 = vrot.slane %v5482_v4, 4  ;;  %v5509_v42 = vshll.u32 %v10574_v50, 16  ;;  %v10614_v6 = vrot.slane %v5500_v58, 4 }
 0x3e0   : > { %v10616_v16 = vrot.slane %v5503_v49, 5  ;;  %v6937_v0 = vrot.slane %v5899_v11, 9  ;;  %v6007_v8 = vrot.slane %v11197_v46, 5  ;;  %v10619_v57 = vrot.slane %v5492_v48, 4 }
 0x3e1   : > { %v5513_v39 = vshrl.u32 %v10574_v50, 16  ;;  %v6938_v53 = vrot.slane %v5900_v23, 9  ;;  %v6014_v4 = vrot.slane %v11198_v44, 5  ;;  %v5524_v33 = vshrl.u32 %v5181_v56, 16 }
 0x3e2   : > { %v5527_v58 = vshll.u32 %v5181_v56, 16  ;;  %v6009_v61 = vrot.slane %v6007_v8, 4  ;;  %v6010_v20 = vrot.slane %v10422_v41, 5  ;;  %v5533_v12 = vshll.u32 %v10610_v18, 16 }
 0x3e3   : > { %v6016_v32 = vrot.slane %v6014_v4, 4  ;;  %v6017_v49 = vrot.slane %v10435_v3, 5  ;;  %v3768_v24 = vshrl.u32 %v3530_v5, 16  ;;  %v10639_v41 = vsel %vm9713_vm0, %v6937_v0, %v6007_v8 }
 0x3e4   : > { %7559 = vmatmul.mubr.msk.bf16.gmra.mrb[16].mxu0 %vm283_vm3, %v10527_v29  ;;  %v10635_v29 = vld [vmem:[#allocation2 + $0xbc] sm:$0x1]  ;;  %v10643_v27 = vsel %vm9713_vm0, %v6009_v61, %v6010_v20  ;;  %v3771_v35 = vshll.u32 %v3530_v5, 16  ;;  %v10653_v48 = vsel %vm9713_vm0, %v6938_v53, %v6014_v4  ;;  %v5497_v56 = vrot.slane %v5495_v36, 5  ;;  %v5901_v5 = vld [vmem:[#allocation2 + $0x84] sm:$0xe] }
 0x3e5   : > { %7375 = vmatmul.mubr.msk.bf16.gmra.mrb[32].mxu1 %vm283_vm3, %v6713_v45  ;;  %7562 = vmatprep.mubr.msk.bf16.mxu0 %vm283_vm3, %v10534_v13  ;;  %v11199_v45 = vld [vmem:[#allocation22_spill] sm:$0xff]  ;;  %v11200_v13 = vld [vmem:[#allocation23_spill] sm:$0xff]  ;;  %v10657_v11 = vsel %vm9713_vm0, %v6016_v32, %v6017_v49  ;;  %v3770_v23 = vrot.slane %v3768_v24, 4  ;;  %v5537_v0 = vshrl.u32 %v10610_v18, 16  ;;  %v5488_v44 = vsel %vm8868_vm10, %v10607_v55, %v10547_v19  ;;  %v5184_v36 = vld [vmem:[#allocation2 + $0xcc] sm:$0xf] }
 0x3e6   : > { %7386 = vmatprep.mubr.msk.bf16.mxu1 %vm283_vm3, %v8006_v25  ;;  %v3790_v10 = vsel %vm8868_vm10, %v11200_v13, %v11199_v45  ;;  %v3773_v8 = vrot.slane %v3771_v35, 5  ;;  %v5506_v53 = vor.u32 %v10616_v16, %v10614_v6  ;;  %v10668_v4 = vrot.slane %v5509_v42, 5  ;;  %v8007_v61 = vld [vmem:[#allocation2 + $0x18] sm:$0xff]   ;;  %v10674_v24 = vld [vmem:[#allocation2 + $0xd0] sm:$0xf]  ;;  %v11201_v6 = vld [vmem:[#allocation15_spill] sm:$0xff] }
 0x3e7   : > { %v5519_v25 = vshll.u32 %v10635_v29, 16  ;;  %v5498_v20 = vsel %vm8868_vm10, %v10619_v57, %v5497_v56  ;;  %v5515_v32 = vrot.slane %v5513_v39, 4  ;;  %v5526_v49 = vrot.slane %v5524_v33, 4  ;;  %v5902_v16 = vld [vmem:[#allocation2 + $0x90] sm:$0xe]  ;;  %v8009_v13 = vld [vmem:[#allocation2 + $0x24] sm:$0xff]  }
 0x3e8   : > { %v3774_v35 = vor.u32 %v3773_v8, %v3770_v23  ;;  %v5529_v45 = vrot.slane %v5527_v58, 5  ;;  %v10676_v19 = vrot.slane %v5533_v12, 5  ;;  %v6939_v55 = vrot.slane %v5901_v5, 9  ;;  %v11202_v23 = vld [vmem:[#allocation13_spill] sm:$0xff]  ;;  %v8193_v5 = vld [vmem:[%s11090_s4 + $0x88] sm:$0xff]  }
 0x3e9   : > { %v6021_v42 = vrot.slane %v11201_v6, 5  ;;  %v5539_v46 = vrot.slane %v5537_v0, 4  ;;  %v5548_v3 = vshrl.u32 %v5184_v36, 16  ;;  %v5551_v47 = vshll.u32 %v5184_v36, 16  ;;  %v11203_v56 = vld [vmem:[#allocation21_spill] sm:$0xff] }
 0x3ea   : > { %v3775_v57 = vrot.slane %v3774_v35, 4  ;;  %v5557_v39 = vshll.u32 %v10674_v24, 16  ;;  %v5561_v33 = vshrl.u32 %v10674_v24, 16  ;;  %v6024_v12 = vrot.slane %v10450_v52, 5  ;;  %v10697_v36 = vld [vmem:[#allocation2 + $0xc8] sm:$0x1] }
 0x3eb   : > { %v6023_v58 = vrot.slane %v6021_v42, 4  ;;  %v6940_v8 = vrot.slane %v5902_v16, 9  ;;  %v5530_v52 = vor.u32 %v5529_v45, %v5526_v49  ;;  %v5553_v49 = vrot.slane %v5551_v47, 5 }
 0x3ec   : > { %7563 = vmatmul.mubr.msk.bf16.gmra.mrb[20].mxu0 %vm283_vm3, %v10536_v22  ;;  %v5516_v22 = vor.u32 %v5515_v32, %v10668_v4  ;;  %v3780_v0 = vsel %vm8868_vm10, %v3775_v57, %v11203_v56  ;;  %v10703_v32 = vsel %vm9713_vm0, %v6939_v55, %v6021_v42  ;;  %v10713_v57 = vld [vmem:[#allocation2 + $0xd4] sm:$0x1]  ;;  %v10715_v45 = vrot.slane %v5557_v39, 5 }
 0x3ed   : > { %7387 = vmatmul.mubr.msk.bf16.vlgmr.msra.gmra.mrb[4].mxu1 %vm283_vm3, %v8007_v61  ;;  %7566 = vmatprep.mubr.msk.bf16.mxu0 %vm283_vm3, %v10543_v17  ;;  %v6028_v17 = vrot.slane %v10396_v15, 5  ;;  %v10699_v61 = vcombine.low %v3780_v0, %v3790_v10  ;;  %v10707_v35 = vsel %vm9713_vm0, %v6023_v58, %v6024_v12  ;;  %v5540_v15 = vor.u32 %v5539_v46, %v10676_v19  ;;  %v8010_v42 = vld [vmem:[#allocation2 + $0x30] sm:$0xff]   ;;  %v5903_v12 = vld [vmem:[#allocation2 + $0x9c] sm:$0xe] }
 0x3ee   : > { %7390 = vmatprep.mubr.msk.bf16.mxu1 %vm283_vm3, %v8009_v13  ;;  %7646 = vmatpush3.bf16.msra.mxu1 %v11202_v23  ;;  %v6955_v6 = vcombine.low %v10703_v32, %v10707_v35  ;;  %v6031_v13 = vrot.slane %v10462_v31, 5  ;;  %v5550_v10 = vrot.slane %v5548_v3, 4  ;;  %v5563_v55 = vrot.slane %v5561_v33, 4  ;;  %v8195_v0 = vld [vmem:[%s11090_s4 + $0x98] sm:$0xff]  }
 0x3ef   : > { %7643 = vmatprep.subr.bf16.mxu1 %v8193_v5  ;;  %v6030_v16 = vrot.slane %v6028_v17, 4  ;;  %v6905_v46 = vcombine.low %v5464_v51, %v5474_v37  ;;  %v5543_v31 = vshll.u32 %v10697_v36, 16  ;;  %v10730_v47 = vsel %vm9713_vm0, %v6940_v8, %v6028_v17  ;;  %v8011_v51 = vld [vmem:[#allocation2 + $0x3c] sm:$0xff]   ;;  %v5904_v17 = vld [vmem:[#allocation2 + $0xa8] sm:$0xe] }
 0x3f0   : > { %v6906_v39 = vcombine.low %v5488_v44, %v5498_v20  ;;  %v5507_v14 = vrot.slane %v5506_v53, 4  ;;  %v5517_v21 = vrot.slane %v5516_v22, 4  ;;  %v5531_v37 = vrot.slane %v5530_v52, 4 }
 0x3f1   : > { %v10734_v3 = vsel %vm9713_vm0, %v6030_v16, %v6031_v13  ;;  %v5541_v33 = vrot.slane %v5540_v15, 4  ;;  %v5567_v58 = vshll.u32 %v10713_v57, 16  ;;  %v5521_v44 = vrot.slane %v5519_v25, 5  ;;  %v8196_v15 = vld [vmem:[#allocation2 + $0x1c] sm:$0xf] }
 0x3f2   : > { %7647 = vmatpush3.bf16.msra.mxu1 %v8193_v5  ;;  %v6956_v7 = vcombine.low %v10730_v47, %v10734_v3  ;;  %v5554_v53 = vor.u32 %v5553_v49, %v5550_v10  ;;  %v5564_v20 = vor.u32 %v5563_v55, %v10715_v45  ;;  %v5545_v23 = vrot.slane %v5543_v31, 5 }
 0x3f3   : > { %7644 = vmatprep.subr.bf16.mxu1 %v8194_v9  ;;  %v5512_v22 = vsel %vm8868_vm10, %v5507_v14, %v10668_v4  ;;  %v5522_v56 = vsel %vm8868_vm10, %v5517_v21, %v5521_v44  ;;  %v6941_v25 = vrot.slane %v5903_v12, 9  ;;  %v6035_v8 = vrot.slane %v10437_v40, 5  ;;  %v5892_v14 = vld [vmem:[#allocation2 + $0x18] sm:$0xe]  ;;  %v8197_v44 = vld [vmem:[#allocation2 + $0x20] sm:$0x1] }
 0x3f4   : > { %7567 = vmatmul.mubr.msk.bf16.gmra.mrb[24].mxu0 %vm283_vm3, %v6905_v46  ;;  %v5536_v5 = vsel %vm8868_vm10, %v5531_v37, %v10676_v19  ;;  %v5546_v52 = vsel %vm8868_vm10, %v5541_v33, %v5545_v23  ;;  %v5569_v4 = vrot.slane %v5567_v58, 5  ;;  %v5958_v16 = vrot.slane %v8196_v15, 5  ;;  %v8198_v23 = vld [vmem:[#allocation2 + $0x28] sm:$0xf]  ;;  %v8015_v15 = vld [vmem:[#allocation2 + $0x60] sm:$0xff]  }
 0x3f5   : > { %7391 = vmatmul.mubr.msk.bf16.gmra.mrb[8].mxu1 %vm283_vm3, %v8010_v42  ;;  %7570 = vmatprep.mubr.msk.bf16.mxu0 %vm283_vm3, %v6906_v39  ;;  %v5555_v13 = vrot.slane %v5554_v53, 4  ;;  %v5565_v10 = vrot.slane %v5564_v20, 4  ;;  %v6037_v49 = vrot.slane %v6035_v8, 4  ;;  %v6038_v55 = vrot.slane %v10485_v59, 5  ;;  %v8012_v42 = vld [vmem:[#allocation2 + $0x48] sm:$0xff]  }
 0x3f6   : > { %7394 = vmatprep.mubr.msk.bf16.mxu1 %vm283_vm3, %v8011_v51  ;;  %7648 = vmatpush3.bf16.msra.mxu1 %v8194_v9  ;;  %v6907_v46 = vcombine.low %v5512_v22, %v5522_v56  ;;  %v6942_v31 = vrot.slane %v5904_v17, 9  ;;  %v6042_v40 = vrot.slane %v10492_v26, 5  ;;  %v6908_v39 = vcombine.low %v5536_v5, %v5546_v52  ;;  %v8014_v9 = vld [vmem:[#allocation2 + $0x54] sm:$0xff]   ;;  %v5893_v5 = vld [vmem:[#allocation2 + $0x24] sm:$0xe] }
 0x3f7   : > { %7645 = vmatprep.subr.bf16.mxu1 %v8195_v0  ;;  %v10767_v19 = vsel %vm9713_vm0, %v6941_v25, %v6035_v8  ;;  %v10771_v21 = vsel %vm9713_vm0, %v6037_v49, %v6038_v55  ;;  %v5960_v59 = vrot.slane %v5958_v16, 4  ;;  %v6045_v26 = vrot.slane %v10553_v28, 5  ;;  %v8199_v25 = vld [vmem:[#allocation2 + $0x34] sm:$0xf] }
 0x3f8   : > { %v6957_v51 = vcombine.low %v10767_v19, %v10771_v21  ;;  %v6044_v37 = vrot.slane %v6042_v40, 4  ;;  %v5560_v33 = vsel %vm8868_vm10, %v5555_v13, %v10715_v45  ;;  %v5570_v58 = vsel %vm8868_vm10, %v5565_v10, %v5569_v4  ;;  %v5905_v17 = vld [vmem:[#allocation2 + $0xb4] sm:$0xe]  ;;  %v5894_v4 = vld [vmem:[#allocation2 + $0x30] sm:$0xe] }
 0x3f9   : > { %v6930_v12 = vrot.slane %v5892_v14, 9  ;;  %v5961_v53 = vrot.slane %v8197_v44, 5  ;;  %v10787_v20 = vsel %vm9713_vm0, %v6942_v31, %v6042_v40  ;;  %v5965_v22 = vrot.slane %v8198_v23, 5  ;;  %v8016_v31 = vld [vmem:[#allocation2 + $0x6c] sm:$0xff]  }
 0x3fa   : > { %7649 = vmatpush3.bf16.msra.mxu1 %v8195_v0  ;;  %v10791_v28 = vsel %vm9713_vm0, %v6044_v37, %v6045_v26  ;;  %v6909_v56 = vcombine.low %v5560_v33, %v5570_v58  ;;  %v5972_v8 = vrot.slane %v8199_v25, 5  ;;  %v6943_v49 = vrot.slane %v5905_v17, 9  ;;  %v11204_v37 = vld [vmem:[#allocation18_spill] sm:$0xff]  ;;  %v8201_v26 = vld [vmem:[#allocation2 + $0x40] sm:$0xf] }
 0x3fb   : > { %v6958_v45 = vcombine.low %v10787_v20, %v10791_v28  ;;  %v5962_v0 = vsel %vm9713_vm0, %v5960_v59, %v5961_v53  ;;  %v5959_v52 = vsel %vm9713_vm0, %v6930_v12, %v5958_v16  ;;  %v5967_v10 = vrot.slane %v5965_v22, 4  ;;  %v5907_v25 = vld [vmem:[#allocation2 + $0xcc] sm:$0xe]  ;;  %v8215_v28 = vld [vmem:[#allocation2 + $0xc8] sm:$0x1] }
 0x3fc   : > { %7571 = vmatmul.mubr.msk.bf16.gmra.mrb[28].mxu0 %vm283_vm3, %v6907_v46  ;;  %v6946_v13 = vcombine.low %v5959_v52, %v5962_v0  ;;  %v6049_v55 = vrot.slane %v10574_v50, 5  ;;  %v5906_v46 = vld [vmem:[#allocation2 + $0xc0] sm:$0xe]  ;;  %v6931_v40 = vrot.slane %v5893_v5, 9  ;;  %v6932_v16 = vrot.slane %v5894_v4, 9 }
 0x3fd   : > { %7395 = vmatmul.mubr.msk.bf16.gmra.mrb[12].mxu1 %vm283_vm3, %v8012_v42  ;;  %7574 = vmatprep.mubr.msk.bf16.mxu0 %vm283_vm3, %v6908_v39  ;;  %v5974_v42 = vrot.slane %v5972_v8, 4  ;;  %v8200_v39 = vld [vmem:[#allocation2 + $0x2c] sm:$0x1]  ;;  %v6052_v59 = vrot.slane %v10635_v29, 5  ;;  %v5975_v50 = vrot.slane %v11204_v37, 5  ;;  %v5979_v33 = vrot.slane %v8201_v26, 5 }
 0x3fe   : > { %7398 = vmatprep.mubr.msk.bf16.mxu1 %vm283_vm3, %v8014_v9  ;;  %v5968_v14 = vrot.slane %v8200_v39, 5  ;;  %v6051_v9 = vrot.slane %v6049_v55, 4  ;;  %v6944_v58 = vrot.slane %v5906_v46, 9  ;;  %v6056_v12 = vrot.slane %v10610_v18, 5  ;;  %v5895_v4 = vld [vmem:[#allocation2 + $0x3c] sm:$0xe] }
 0x3ff   : > { %v10811_v53 = vsel %vm9713_vm0, %v6943_v49, %v6049_v55  ;;  %v5976_v29 = vsel %vm9713_vm0, %v5974_v42, %v5975_v50  ;;  %v6059_v18 = vrot.slane %v10697_v36, 5  ;;  %v5966_v17 = vsel %vm9713_vm0, %v6931_v40, %v5965_v22  ;;  %v8017_v49 = vld [vmem:[#allocation2 + $0x78] sm:$0xff]   ;;  %v8018_v46 = vld [vmem:[#allocation2 + $0x84] sm:$0xff]   ;;  %v3527_v40 = vld [vmem:[#allocation2 + $0x6c] sm:$0xf] }
 0x400   : > { %v5969_v44 = vsel %vm9713_vm0, %v5967_v10, %v5968_v14  ;;  %v10815_v23 = vsel %vm9713_vm0, %v6051_v9, %v6052_v59  ;;  %v6058_v0 = vrot.slane %v6056_v12, 4  ;;  %v5973_v5 = vsel %vm9713_vm0, %v6932_v16, %v5972_v8  ;;  %v11205_v8 = vld [vmem:[#allocation12_spill] sm:$0xff] }
 0x401   : > { %v6947_v52 = vcombine.low %v5966_v17, %v5969_v44  ;;  %v6948_v36 = vcombine.low %v5973_v5, %v5976_v29  ;;  %v6945_v22 = vrot.slane %v5907_v25, 9  ;;  %v6063_v42 = vrot.slane %v10674_v24, 5  ;;  %v8202_v24 = vld [vmem:[#allocation2 + $0x70] sm:$0xf] }
 0x402   : > { %v10832_v10 = vsel %vm9713_vm0, %v6058_v0, %v6059_v18  ;;  %v6066_v39 = vrot.slane %v10713_v57, 5  ;;  %v6933_v14 = vrot.slane %v5895_v4, 9  ;;  %v3744_v37 = vshrl.u32 %v3527_v40, 16  ;;  %v8019_v0 = vld [vmem:[#allocation2 + $0x90] sm:$0xff]  }
 0x403   : > { %v10847_v9 = vsel %vm9713_vm0, %v6945_v22, %v6063_v42  ;;  %v6065_v59 = vrot.slane %v6063_v42, 4  ;;  %v3747_v50 = vshll.u32 %v3527_v40, 16  ;;  %v3753_v26 = vshll.u32 %v8202_v24, 16  ;;  %v3536_v40 = vld [vmem:[#allocation2 + $0x90] sm:$0xf]  ;;  %v8021_v42 = vld [vmem:[#allocation2 + $0xa8] sm:$0xff]  }
 0x404   : > { %7575 = vmatmul.mubr.msk.bf16.gmra.mrb[32].mxu0 %vm283_vm3, %v6909_v56  ;;  %v6959_v56 = vcombine.low %v10811_v53, %v10815_v23  ;;  %v3757_v57 = vshrl.u32 %v8202_v24, 16  ;;  %v3746_v18 = vrot.slane %v3744_v37, 4  ;;  %v3795_v22 = vshll.u32 %v3533_v43, 16 }
 0x405   : > { %7399 = vmatmul.mubr.msk.bf16.gmra.mrb[16].mxu1 %vm283_vm3, %v8015_v15  ;;  %7586 = vmatprep.mubr.msk.bf16.mxu0 %vm283_vm3, %v6946_v13  ;;  %v5981_v15 = vrot.slane %v5979_v33, 4  ;;  %v10828_v13 = vsel %vm9713_vm0, %v6944_v58, %v6056_v12  ;;  %v10851_v58 = vsel %vm9713_vm0, %v6065_v59, %v6066_v39  ;;  %v5980_v12 = vsel %vm9713_vm0, %v6933_v14, %v5979_v33 }
 0x406   : > { %7402 = vmatprep.mubr.msk.bf16.mxu1 %vm283_vm3, %v8016_v31  ;;  %v6960_v55 = vcombine.low %v10828_v13, %v10832_v10  ;;  %v5982_v31 = vrot.slane %v11205_v8, 5  ;;  %v6961_v44 = vcombine.low %v10847_v9, %v10851_v58  ;;  %v3749_v25 = vrot.slane %v3747_v50, 5 }
 0x407   : > { %v3755_v17 = vrot.slane %v3753_v26, 5  ;;  %v3759_v5 = vrot.slane %v3757_v57, 4  ;;  %v3797_v59 = vrot.slane %v3795_v22, 5  ;;  %v11206_v24 = vcombine.low %v10597_v2, %v10601_v63 }
 0x408   : > { %v5983_v16 = vsel %vm9713_vm0, %v5981_v15, %v5982_v31  ;;  %v3750_v33 = vor.u32 %v3749_v25, %v3746_v18  ;;  %v8203_v15 = vld [vmem:[#allocation2 + $0x74] sm:$0x1]  ;;  %v3816_v26 = vshrl.u32 %v3536_v40, 16  ;;  %v3819_v57 = vshll.u32 %v3536_v40, 16  ;;  %v8023_v40 = vld [vmem:[#allocation2 + $0xc0] sm:$0xff]  }
 0x409   : > { %v6949_v29 = vcombine.low %v5980_v12, %v5983_v16  ;;  %v3760_v4 = vor.u32 %v3759_v5, %v3755_v17  ;;  %v8205_v12 = vld [vmem:[#allocation2 + $0x94] sm:$0xf]  ;;  %v3840_v34 = vshrl.u32 %v3539_v38, 16  ;;  %v3843_v30 = vshll.u32 %v3539_v38, 16 }
 0x40a   : > { %v3751_v39 = vrot.slane %v3750_v33, 4  ;;  %v11208_v38 = vcombine.low %v10653_v48, %v10657_v11 }
 0x40b   : > { %v3761_v14 = vrot.slane %v3760_v4, 4  ;;  %v3818_v4 = vrot.slane %v3816_v26, 4  ;;  %v3842_v22 = vrot.slane %v3840_v34, 4 }
 0x40c   : > { %7587 = vmatmul.mubr.msk.bf16.vlgmr.msra.gmra.mrb[4].mxu0 %vm283_vm3, %v6947_v52  ;;  %v8020_v52 = vld [vmem:[#allocation2 + $0x9c] sm:$0xff]   ;;  %v3756_v5 = vsel %vm8868_vm10, %v3751_v39, %v3755_v17 }
 0x40d   : > { %7403 = vmatmul.mubr.msk.bf16.gmra.mrb[20].mxu1 %vm283_vm3, %v8017_v49  ;;  %7590 = vmatprep.mubr.msk.bf16.mxu0 %vm283_vm3, %v6948_v36  ;;  %v3763_v49 = vshll.u32 %v8203_v15, 16  ;;  %v3792_v36 = vshrl.u32 %v3533_v43, 16  ;;  %v8207_v43 = vld [vmem:[#allocation2 + $0x8c] sm:$0x1]  ;;  %v3821_v15 = vrot.slane %v3819_v57, 5 }
 0x40e   : > { %7406 = vmatprep.mubr.msk.bf16.mxu1 %vm283_vm3, %v8018_v46  ;;  %v8204_v46 = vld [vmem:[#allocation2 + $0x88] sm:$0xf]  ;;  %v3811_v33 = vshll.u32 %v8207_v43, 16  ;;  %v8208_v57 = vld [vmem:[#allocation2 + $0xac] sm:$0xf] }
 0x40f   : > { %v3801_v8 = vshll.u32 %v8204_v46, 16  ;;  %v3805_v31 = vshrl.u32 %v8204_v46, 16  ;;  %v3765_v16 = vrot.slane %v3763_v49, 5  ;;  %v3845_v46 = vrot.slane %v3843_v30, 5  ;;  %v8210_v30 = vld [vmem:[#allocation2 + $0xa4] sm:$0x1] }
 0x411   : > { %v10868_v37 = vrot.slane %v3801_v8, 5  ;;  %v3807_v50 = vrot.slane %v3805_v31, 4  ;;  %v3766_v2 = vsel %vm8868_vm10, %v3761_v14, %v3765_v16  ;;  %v3542_v16 = vld [vmem:[#allocation2 + $0xa8] sm:$0xf] }
 0x412   : > { %v6778_v17 = vcombine.low %v3756_v5, %v3766_v2  ;;  %v3867_v26 = vshll.u32 %v3542_v16, 16  ;;  %v8211_v5 = vld [vmem:[#allocation2 + $0xb8] sm:$0xf] }
 0x413   : > { %v3897_v2 = vshll.u32 %v8211_v5, 16 }
 0x414   : > { %7591 = vmatmul.mubr.msk.bf16.gmra.mrb[8].mxu0 %vm283_vm3, %v6949_v29  ;;  %v3825_v29 = vshll.u32 %v8205_v12, 16 }
 0x415   : > { %7407 = vmatmul.mubr.msk.bf16.gmra.mrb[24].mxu1 %vm283_vm3, %v8019_v0  ;;  %7594 = vmatprep.mubr.msk.bf16.mxu0 %vm283_vm3, %v6950_v54  ;;  %v3794_v54 = vrot.slane %v3792_v36, 4  ;;  %v3829_v0 = vshrl.u32 %v8205_v12, 16  ;;  %v3873_v12 = vshll.u32 %v8208_v57, 16 }
 0x416   : > { %7410 = vmatprep.mubr.msk.bf16.mxu1 %vm283_vm3, %v8020_v52  ;;  %v3808_v52 = vor.u32 %v3807_v50, %v10868_v37  ;;  %v10881_v49 = vrot.slane %v3825_v29, 5  ;;  %v3846_v50 = vor.u32 %v3845_v46, %v3842_v22  ;;  %v3877_v29 = vshrl.u32 %v8208_v57, 16 }
 0x417   : > { %v3798_v63 = vor.u32 %v3797_v59, %v3794_v54  ;;  %v3831_v36 = vrot.slane %v3829_v0, 4  ;;  %v3822_v54 = vor.u32 %v3821_v15, %v3818_v4  ;;  %v8209_v0 = vld [vmem:[#allocation2 + $0x98] sm:$0x1]  ;;  %v3875_v22 = vrot.slane %v3873_v12, 5 }
 0x418   : > { %v3809_v14 = vrot.slane %v3808_v52, 4  ;;  %v3835_v34 = vshll.u32 %v8209_v0, 16 }
 0x419   : > { %v3799_v39 = vrot.slane %v3798_v63, 4  ;;  %v3832_v59 = vor.u32 %v3831_v36, %v10881_v49  ;;  %v3901_v63 = vshrl.u32 %v8211_v5, 16  ;;  %v3823_v52 = vrot.slane %v3822_v54, 4 }
 0x41a   : > { %v3869_v36 = vrot.slane %v3867_v26, 5 }
 0x41b   : > { %v3804_v48 = vsel %vm8868_vm10, %v3799_v39, %v10868_v37  ;;  %v3833_v43 = vrot.slane %v3832_v59, 4  ;;  %v3879_v37 = vrot.slane %v3877_v29, 4  ;;  %v3899_v39 = vrot.slane %v3897_v2, 5  ;;  %v8214_v29 = vld [vmem:[#allocation2 + $0xbc] sm:$0x1] }
 0x41c   : > { %7595 = vmatmul.mubr.msk.bf16.gmra.mrb[12].mxu0 %vm283_vm3, %v6951_v1  ;;  %v8206_v1 = vld [vmem:[#allocation2 + $0xa0] sm:$0xf]  ;;  %v3828_v32 = vsel %vm8868_vm10, %v3823_v52, %v10881_v49 }
 0x41d   : > { %7411 = vmatmul.mubr.msk.bf16.gmra.mrb[28].mxu1 %vm283_vm3, %v8021_v42  ;;  %7598 = vmatprep.mubr.msk.bf16.mxu0 %vm283_vm3, %v11206_v24  ;;  %v3849_v18 = vshll.u32 %v8206_v1, 16  ;;  %v3853_v25 = vshrl.u32 %v8206_v1, 16  ;;  %v11207_v42 = vcombine.low %v10639_v41, %v10643_v27  ;;  %v3545_v27 = vld [vmem:[#allocation2 + $0xb4] sm:$0xf]  ;;  %v3864_v24 = vshrl.u32 %v3542_v16, 16 }
 0x41e   : > { %7414 = vmatprep.mubr.msk.bf16.mxu1 %vm283_vm3, %v8022_v62  ;;  %v3813_v62 = vrot.slane %v3811_v33, 5  ;;  %v3859_v1 = vshll.u32 %v8210_v30, 16  ;;  %v3847_v33 = vrot.slane %v3846_v50, 4  ;;  %v3548_v16 = vld [vmem:[#allocation2 + $0xc0] sm:$0xf]  ;;  %v3880_v3 = vor.u32 %v3879_v37, %v3875_v22 }
 0x41f   : > { %v10883_v8 = vrot.slane %v3849_v18, 5  ;;  %v3855_v31 = vrot.slane %v3853_v25, 4  ;;  %v3888_v18 = vshrl.u32 %v3545_v27, 16  ;;  %v3891_v25 = vshll.u32 %v3545_v27, 16  ;;  %v8213_v27 = vld [vmem:[#allocation2 + $0xb0] sm:$0x1] }
 0x420   : > { %v3814_v11 = vsel %vm8868_vm10, %v3809_v14, %v3813_v62  ;;  %v3866_v15 = vrot.slane %v3864_v24, 4  ;;  %v3903_v14 = vrot.slane %v3901_v63, 4  ;;  %v8212_v62 = vld [vmem:[#allocation2 + $0xc4] sm:$0xf]  ;;  %v3883_v24 = vshll.u32 %v8213_v27, 16 }
 0x421   : > { %v3856_v41 = vor.u32 %v3855_v31, %v10883_v8  ;;  %v6780_v46 = vcombine.low %v3804_v48, %v3814_v11  ;;  %v3837_v31 = vrot.slane %v3835_v34, 5  ;;  %v3921_v54 = vshll.u32 %v8212_v62, 16 }
 0x422   : > { %v3870_v47 = vor.u32 %v3869_v36, %v3866_v15  ;;  %v3925_v59 = vshrl.u32 %v8212_v62, 16  ;;  %v3881_v12 = vrot.slane %v3880_v3, 4 }
 0x423   : > { %v3857_v4 = vrot.slane %v3856_v41, 4  ;;  %v3838_v35 = vsel %vm8868_vm10, %v3833_v43, %v3837_v31  ;;  %v3904_v41 = vor.u32 %v3903_v14, %v3899_v39  ;;  %v3923_v0 = vrot.slane %v3921_v54, 5  ;;  %v10966_v14 = vld [vmem:[%s11091_s5] ss:$0 sm:$0xff] }
 0x424   : > { %7599 = vmatmul.mubr.msk.bf16.gmra.mrb[16].mxu0 %vm283_vm3, %v11207_v42  ;;  %v3893_v42 = vrot.slane %v3891_v25, 5  ;;  %v6781_v49 = vcombine.low %v3828_v32, %v3838_v35  ;;  %v3871_v57 = vrot.slane %v3870_v47, 4  ;;  %v3927_v34 = vrot.slane %v3925_v59, 4 }
 0x425   : > { %7415 = vmatmul.mubr.msk.bf16.gmra.mrb[32].mxu1 %vm283_vm3, %v8023_v40  ;;  %7602 = vmatprep.mubr.msk.bf16.mxu0 %vm283_vm3, %v11208_v38  ;;  %v3861_v40 = vrot.slane %v3859_v1, 5  ;;  %v3915_v38 = vshll.u32 %v3548_v16, 16  ;;  %v3905_v1 = vrot.slane %v3904_v41, 4 }
 0x426   : > { %7442 = vmatprep.mubr.msk.bf16.mxu1 %vm283_vm3, %v6778_v17  ;;  %v3890_v17 = vrot.slane %v3888_v18, 4  ;;  %v3885_v18 = vrot.slane %v3883_v24, 5  ;;  %v3876_v19 = vsel %vm8868_vm10, %v3871_v57, %v3875_v22  ;;  %v3928_v5 = vor.u32 %v3927_v34, %v3923_v0 }
 0x427   : > { %v3917_v11 = vrot.slane %v3915_v38, 5 }
 0x428   : > { %v3894_v50 = vor.u32 %v3893_v42, %v3890_v17  ;;  %v3886_v21 = vsel %vm8868_vm10, %v3881_v12, %v3885_v18 }
 0x429   : > { %v6783_v63 = vcombine.low %v3876_v19, %v3886_v21 }
 0x42a   : > { %v3895_v30 = vrot.slane %v3894_v50, 4 }
 0x42c   : > { %7603 = vmatmul.mubr.msk.bf16.gmra.mrb[20].mxu0 %vm283_vm3, %v6955_v6  ;;  %v3862_v6 = vsel %vm8868_vm10, %v3857_v4, %v3861_v40  ;;  %v3900_v2 = vsel %vm8868_vm10, %v3895_v30, %v3899_v39 }
 0x42d   : > { %7443 = vmatmul.mubr.msk.bf16.vlgmr.msra.gmra.mrb[20].mxu1 %vm283_vm3, %v10699_v61  ;;  %7606 = vmatprep.mubr.msk.bf16.mxu0 %vm283_vm3, %v6956_v7  ;;  %v3852_v61 = vsel %vm8868_vm10, %v3847_v33, %v10883_v8  ;;  %v3912_v7 = vshrl.u32 %v3548_v16, 16  ;;  %v3907_v8 = vshll.u32 %v8214_v29, 16  ;;  %v3929_v33 = vrot.slane %v3928_v5, 4 }
 0x42e   : > { %7446 = vmatprep.mubr.msk.bf16.mxu1 %vm283_vm3, %v6780_v46  ;;  %v6782_v26 = vcombine.low %v3852_v61, %v3862_v6 }
 0x42f   : > { %v3914_v48 = vrot.slane %v3912_v7, 4  ;;  %v3909_v25 = vrot.slane %v3907_v8, 5 }
 0x431   : > { %v3910_v20 = vsel %vm8868_vm10, %v3905_v1, %v3909_v25 }
 0x432   : > { %v6784_v52 = vcombine.low %v3900_v2, %v3910_v20 }
 0x434   : > { %7607 = vmatmul.mubr.msk.bf16.gmra.mrb[24].mxu0 %vm283_vm3, %v6957_v51  ;;  %v3918_v51 = vor.u32 %v3917_v11, %v3914_v48 }
 0x435   : > { %7447 = vmatmul.mubr.msk.bf16.gmra.mrb[24].mxu1 %vm283_vm3, %v6781_v49  ;;  %7610 = vmatprep.mubr.msk.bf16.mxu0 %vm283_vm3, %v6958_v45  ;;  %v3931_v45 = vshll.u32 %v8215_v28, 16 }
 0x436   : > { %7450 = vmatprep.mubr.msk.bf16.mxu1 %vm283_vm3, %v6782_v26  ;;  %v3919_v43 = vrot.slane %v3918_v51, 4 }
 0x437   : > { %v3933_v4 = vrot.slane %v3931_v45, 5 }
 0x438   : > { %v3924_v15 = vsel %vm8868_vm10, %v3919_v43, %v3923_v0 }
 0x439   : > { %v3934_v53 = vsel %vm8868_vm10, %v3929_v33, %v3933_v4 }
 0x43a   : > { %v6785_v23 = vcombine.low %v3924_v15, %v3934_v53 }
 0x43c   : > { %7611 = vmatmul.mubr.msk.bf16.gmra.mrb[28].mxu0 %vm283_vm3, %v6959_v56 }
 0x43d   : > { %7451 = vmatmul.mubr.msk.bf16.gmra.mrb[28].mxu1 %vm283_vm3, %v6783_v63  ;;  %7614 = vmatprep.mubr.msk.bf16.mxu0 %vm283_vm3, %v6960_v55 }
 0x43e   : > { %7454 = vmatprep.mubr.msk.bf16.mxu1 %vm283_vm3, %v6784_v52 }
 0x444   : > { %7615 = vmatmul.mubr.msk.bf16.gmra.mrb[32].mxu0 %vm283_vm3, %v6961_v44 }
 0x445   : > { %7455 = vmatmul.mubr.msk.bf16.gmra.mrb[32].mxu1 %vm283_vm3, %v6785_v23 }
 0x4c0   : > { %v7388_v56 = vpop.f32.mrb[4].mxu1 }
 0x4c1   : > { %v3344_v13 = vpop.f32.mrb[5].mxu1 }
 0x4c2   : > { %v7389_v10 = vpop.f32.mrb[6].mxu1 }
 0x4c3   : > { %v3347_v55 = vpop.f32.mrb[7].mxu1 }
 0x4c8   : > { %v7392_v36 = vpop.f32.mrb[8].mxu1 }
 0x4c9   : > { %v3360_v22 = vpop.f32.mrb[9].mxu1 }
 0x4ca   : > { %v7393_v37 = vpop.f32.mrb[10].mxu1 }
 0x4cb   : > { %v3363_v46 = vpop.f32.mrb[11].mxu1 }
 0x4d0   : > { %v7396_v60 = vpop.f32.mrb[12].mxu1 }
 0x4d1   : > { %v3376_v31 = vpop.f32.mrb[13].mxu1 }
 0x4d2   : > { %v7397_v40 = vpop.f32.mrb[14].mxu1 }
 0x4d3   : > { %v3379_v17 = vpop.f32.mrb[15].mxu1 }
 0x4d8   : > { %v7400_v42 = vpop.f32.mrb[16].mxu1 }
 0x4d9   : > { %v3392_v9 = vpop.f32.mrb[17].mxu1 }
 0x4da   : > { %v7401_v58 = vpop.f32.mrb[18].mxu1 }
 0x4db   : > { %v3395_v44 = vpop.f32.mrb[19].mxu1 }
 0x4df   : > { %v7588_v39 = vpop.f32.mrb[4].mxu0 }
 0x4e0   : > { %v7650_v16 = vadd.f32 %v7588_v39, %v7388_v56  ;;  %v6230_v32 = vpop.f32.mrb[5].mxu0 }
 0x4e1   : > { %v7651_v35 = vadd.f32 %v6230_v32, %v3344_v13  ;;  %v7589_v61 = vpop.f32.mrb[6].mxu0 }
 0x4e2   : > { %v6398_v6 = vadd.f32 %v7650_v16, %v10966_v14  ;;  %v7652_v47 = vadd.f32 %v7589_v61, %v7389_v10  ;;  %v6233_v3 = vpop.f32.mrb[7].mxu0 }
 0x4e3   : > { %v6396_v7 = vadd.f32 %v7651_v35, %v10966_v14  ;;  %v7653_v38 = vadd.f32 %v6233_v3, %v3347_v55 }
 0x4e4   : > { %6430 = vst [vmem:[%s10970_s19 + $0x10] sm:$0xff] %v6398_v6  ;;  %v6399_v62 = vadd.f32 %v7652_v47, %v10966_v14 }
 0x4e5   : > { %6428 = vst [vmem:[%s10970_s19] sm:$0xff] %v6396_v7  ;;  %v6397_v54 = vadd.f32 %v7653_v38, %v10966_v14 }
 0x4e6   : > { %6431 = vst [vmem:[%s10970_s19 + $0x18] sm:$0xff] %v6399_v62 }
 0x4e7   : > { %6429 = vst [vmem:[%s10970_s19 + $0x8] sm:$0xff] %v6397_v54  ;;  %v7592_v59 = vpop.f32.mrb[8].mxu0 }
 0x4e8   : > { %v7654_v50 = vadd.f32 %v7592_v59, %v7392_v36  ;;  %v6246_v41 = vpop.f32.mrb[9].mxu0 }
 0x4e9   : > { %v7655_v49 = vadd.f32 %v6246_v41, %v3360_v22  ;;  %v7593_v27 = vpop.f32.mrb[10].mxu0 }
 0x4ea   : > { %v6402_v24 = vadd.f32 %v7654_v50, %v10966_v14  ;;  %v7656_v26 = vadd.f32 %v7593_v27, %v7393_v37  ;;  %v6249_v57 = vpop.f32.mrb[11].mxu0 }
 0x4eb   : > { %v6400_v12 = vadd.f32 %v7655_v49, %v10966_v14  ;;  %v7657_v29 = vadd.f32 %v6249_v57, %v3363_v46 }
 0x4ec   : > { %6434 = vst [vmem:[%s10970_s19 + $0x30] sm:$0xff] %v6402_v24  ;;  %v6403_v8 = vadd.f32 %v7656_v26, %v10966_v14 }
 0x4ed   : > { %6432 = vst [vmem:[%s10970_s19 + $0x20] sm:$0xff] %v6400_v12  ;;  %v6401_v48 = vadd.f32 %v7657_v29, %v10966_v14 }
 0x4ee   : > { %6435 = vst [vmem:[%s10970_s19 + $0x38] sm:$0xff] %v6403_v8 }
 0x4ef   : > { %6433 = vst [vmem:[%s10970_s19 + $0x28] sm:$0xff] %v6401_v48  ;;  %v7596_v11 = vpop.f32.mrb[12].mxu0 }
 0x4f0   : > { %v7658_v0 = vadd.f32 %v7596_v11, %v7396_v60  ;;  %v6262_v34 = vpop.f32.mrb[13].mxu0 }
 0x4f1   : > { %v7659_v30 = vadd.f32 %v6262_v34, %v3376_v31  ;;  %v7597_v1 = vpop.f32.mrb[14].mxu0 }
 0x4f2   : > { %v6406_v18 = vadd.f32 %v7658_v0, %v10966_v14  ;;  %v7660_v25 = vadd.f32 %v7597_v1, %v7397_v40  ;;  %v6265_v19 = vpop.f32.mrb[15].mxu0 }
 0x4f3   : > { %v6404_v21 = vadd.f32 %v7659_v30, %v10966_v14  ;;  %v7661_v51 = vadd.f32 %v6265_v19, %v3379_v17 }
 0x4f4   : > { %6438 = vst [vmem:[%s10970_s19 + $0x50] sm:$0xff] %v6406_v18  ;;  %v6407_v5 = vadd.f32 %v7660_v25, %v10966_v14 }
 0x4f5   : > { %6436 = vst [vmem:[%s10970_s19 + $0x40] sm:$0xff] %v6404_v21  ;;  %v6405_v2 = vadd.f32 %v7661_v51, %v10966_v14 }
 0x4f6   : > { %6439 = vst [vmem:[%s10970_s19 + $0x58] sm:$0xff] %v6407_v5 }
 0x4f7   : > { %6437 = vst [vmem:[%s10970_s19 + $0x48] sm:$0xff] %v6405_v2  ;;  %v7600_v20 = vpop.f32.mrb[16].mxu0 }
 0x4f8   : > { %v7662_v28 = vadd.f32 %v7600_v20, %v7400_v42  ;;  %v6278_v45 = vpop.f32.mrb[17].mxu0 }
 0x4f9   : > { %v7663_v63 = vadd.f32 %v6278_v45, %v3392_v9  ;;  %v7601_v52 = vpop.f32.mrb[18].mxu0 }
 0x4fa   : > { %v6410_v43 = vadd.f32 %v7662_v28, %v10966_v14  ;;  %v7664_v33 = vadd.f32 %v7601_v52, %v7401_v58  ;;  %v6281_v4 = vpop.f32.mrb[19].mxu0 }
 0x4fb   : > { %v6408_v15 = vadd.f32 %v7663_v63, %v10966_v14  ;;  %v7665_v53 = vadd.f32 %v6281_v4, %v3395_v44 }
 0x4fc   : > { %6442 = vst [vmem:[%s10970_s19 + $0x70] sm:$0xff] %v6410_v43  ;;  %v6411_v23 = vadd.f32 %v7664_v33, %v10966_v14 }
 0x4fd   : > { %6440 = vst [vmem:[%s10970_s19 + $0x60] sm:$0xff] %v6408_v15  ;;  %v6409_v56 = vadd.f32 %v7665_v53, %v10966_v14 }
 0x4fe   : > { %6443 = vst [vmem:[%s10970_s19 + $0x78] sm:$0xff] %v6411_v23 }
 0x4ff   : > { %6441 = vst [vmem:[%s10970_s19 + $0x68] sm:$0xff] %v6409_v56  ;;  %v7604_v13 = vpop.f32.mrb[20].mxu0 }
 0x500   : > { %v7444_v10 = vpop.f32.mrb[20].mxu1  ;;  %v6294_v55 = vpop.f32.mrb[21].mxu0 }
 0x501   : > { %v4161_v36 = vpop.f32.mrb[21].mxu1  ;;  %v7666_v22 = vadd.f32 %v7604_v13, %v7444_v10  ;;  %v7605_v37 = vpop.f32.mrb[22].mxu0 }
 0x502   : > { %v7445_v46 = vpop.f32.mrb[22].mxu1  ;;  %v7667_v60 = vadd.f32 %v6294_v55, %v4161_v36  ;;  %v6297_v31 = vpop.f32.mrb[23].mxu0 }
 0x503   : > { %v6414_v40 = vadd.f32 %v7666_v22, %v10966_v14  ;;  %v4164_v17 = vpop.f32.mrb[23].mxu1  ;;  %v7668_v42 = vadd.f32 %v7605_v37, %v7445_v46 }
 0x504   : > { %v6412_v9 = vadd.f32 %v7667_v60, %v10966_v14  ;;  %v7669_v58 = vadd.f32 %v6297_v31, %v4164_v17 }
 0x505   : > { %6446 = vst [vmem:[%s10970_s19 + $0x90] sm:$0xff] %v6414_v40  ;;  %v6415_v44 = vadd.f32 %v7668_v42, %v10966_v14 }
 0x506   : > { %6444 = vst [vmem:[%s10970_s19 + $0x80] sm:$0xff] %v6412_v9  ;;  %v6413_v39 = vadd.f32 %v7669_v58, %v10966_v14 }
 0x507   : > { %6447 = vst [vmem:[%s10970_s19 + $0x98] sm:$0xff] %v6415_v44  ;;  %v7608_v16 = vpop.f32.mrb[24].mxu0 }
 0x508   : > { %6445 = vst [vmem:[%s10970_s19 + $0x88] sm:$0xff] %v6413_v39  ;;  %v7448_v32 = vpop.f32.mrb[24].mxu1  ;;  %v6310_v35 = vpop.f32.mrb[25].mxu0 }
 0x509   : > { %v4177_v61 = vpop.f32.mrb[25].mxu1  ;;  %v7670_v6 = vadd.f32 %v7608_v16, %v7448_v32  ;;  %v7609_v47 = vpop.f32.mrb[26].mxu0 }
 0x50a   : > { %v7449_v3 = vpop.f32.mrb[26].mxu1  ;;  %v7671_v7 = vadd.f32 %v6310_v35, %v4177_v61  ;;  %v6313_v38 = vpop.f32.mrb[27].mxu0 }
 0x50b   : > { %v6418_v62 = vadd.f32 %v7670_v6, %v10966_v14  ;;  %v4180_v54 = vpop.f32.mrb[27].mxu1  ;;  %v7672_v59 = vadd.f32 %v7609_v47, %v7449_v3 }
 0x50c   : > { %v6416_v50 = vadd.f32 %v7671_v7, %v10966_v14  ;;  %v7673_v41 = vadd.f32 %v6313_v38, %v4180_v54 }
 0x50d   : > { %6450 = vst [vmem:[%s10970_s19 + $0xb0] sm:$0xff] %v6418_v62  ;;  %v6419_v49 = vadd.f32 %v7672_v59, %v10966_v14 }
 0x50e   : > { %6448 = vst [vmem:[%s10970_s19 + $0xa0] sm:$0xff] %v6416_v50  ;;  %v6417_v27 = vadd.f32 %v7673_v41, %v10966_v14 }
 0x50f   : > { %6451 = vst [vmem:[%s10970_s19 + $0xb8] sm:$0xff] %v6419_v49  ;;  %v7612_v24 = vpop.f32.mrb[28].mxu0 }
 0x510   : > { %6449 = vst [vmem:[%s10970_s19 + $0xa8] sm:$0xff] %v6417_v27  ;;  %v7452_v26 = vpop.f32.mrb[28].mxu1  ;;  %v6326_v57 = vpop.f32.mrb[29].mxu0 }
 0x511   : > { %v4193_v12 = vpop.f32.mrb[29].mxu1  ;;  %v7674_v29 = vadd.f32 %v7612_v24, %v7452_v26  ;;  %v7613_v8 = vpop.f32.mrb[30].mxu0 }
 0x512   : > { %v7453_v48 = vpop.f32.mrb[30].mxu1  ;;  %v7675_v11 = vadd.f32 %v6326_v57, %v4193_v12  ;;  %v6329_v0 = vpop.f32.mrb[31].mxu0 }
 0x513   : > { %v6422_v34 = vadd.f32 %v7674_v29, %v10966_v14  ;;  %v4196_v30 = vpop.f32.mrb[31].mxu1  ;;  %v7676_v1 = vadd.f32 %v7613_v8, %v7453_v48 }
 0x514   : > { %v6420_v18 = vadd.f32 %v7675_v11, %v10966_v14  ;;  %v7677_v25 = vadd.f32 %v6329_v0, %v4196_v30 }
 0x515   : > { %6454 = vst [vmem:[%s10970_s19 + $0xd0] sm:$0xff] %v6422_v34  ;;  %v6423_v19 = vadd.f32 %v7676_v1, %v10966_v14 }
 0x516   : > { %6452 = vst [vmem:[%s10970_s19 + $0xc0] sm:$0xff] %v6420_v18  ;;  %v6421_v21 = vadd.f32 %v7677_v25, %v10966_v14 }
 0x517   : > { %6455 = vst [vmem:[%s10970_s19 + $0xd8] sm:$0xff] %v6423_v19  ;;  %v7616_v51 = vpop.f32.mrb[32].mxu0 }
 0x518   : > { %6453 = vst [vmem:[%s10970_s19 + $0xc8] sm:$0xff] %v6421_v21  ;;  %v7456_v5 = vpop.f32.mrb[32].mxu1  ;;  %v6342_v2 = vpop.f32.mrb[33].mxu0 }
 0x519   : > { %v4209_v20 = vpop.f32.mrb[33].mxu1  ;;  %v7678_v28 = vadd.f32 %v7616_v51, %v7456_v5  ;;  %v7617_v45 = vpop.f32.mrb[34].mxu0 }
 0x51a   : > { %v7457_v63 = vpop.f32.mrb[34].mxu1  ;;  %v7679_v52 = vadd.f32 %v6342_v2, %v4209_v20  ;;  %v6345_v43 = vpop.f32.mrb[35].mxu0 }
 0x51b   : > { %v6426_v33 = vadd.f32 %v7678_v28, %v10966_v14  ;;  %v4212_v4 = vpop.f32.mrb[35].mxu1  ;;  %v7680_v15 = vadd.f32 %v7617_v45, %v7457_v63 }
 0x51c   : > { %v6424_v53 = vadd.f32 %v7679_v52, %v10966_v14  ;;  %v7681_v23 = vadd.f32 %v6345_v43, %v4212_v4 }
 0x51d   : > { %6458 = vst [vmem:[%s10970_s19 + $0xf0] sm:$0xff] %v6426_v33  ;;  %v6427_v56 = vadd.f32 %v7680_v15, %v10966_v14 }
 0x51e   : > { %6456 = vst [vmem:[%s10970_s19 + $0xe0] sm:$0xff] %v6424_v53  ;;  %v6425_v13 = vadd.f32 %v7681_v23, %v10966_v14 }
 0x51f   : > { %6459 = vst [vmem:[%s10970_s19 + $0xf8] sm:$0xff] %v6427_v56 }
 0x520   : > { %6457 = vst [vmem:[%s10970_s19 + $0xe8] sm:$0xff] %v6425_v13 }
 0x521   : > { %8229 = shalt.err (!%p8226_p3)
}
 0x522   : > { %s8230_s14 = scalar_lea.hbm %s11035_s9, 4096  ;;  %s8234_s17 = scalar_lea.hbm %s11092_s6, 8192 }
 0x523   : > { %p8231_p4 = scmp.ne.s32.totalorder %s11035_s9, %s8230_s14  ;;  %p8235_p9 = scmp.lt.u32.totalorder %s11035_s9, %s11092_s6 }
 0x524   : > { %p8236_p10 = scmp.lt.u32.totalorder %s8234_s17, %s8230_s14  ;;  %p8238_p12 = scmp.lt.u32.totalorder %s8230_s14, %s11035_s9 }
 0x525   : > { %p8232_p7 = pnand %p8231_p4, %p8360_p5 }
 0x526   : > { %p8237_p11 = por %p8236_p10, %p8235_p9 }
 0x527   : > { %p8233_p8 = pneg %p8232_p7 }
 0x528   : > { %p8239_p13 = por %p8238_p12, %p8237_p11 }
 0x52a   : > { %p8240_p0 = pnand %p8239_p13, %p8233_p8 }
 0x52c   : > { %8243 = shalt.err (!%p8240_p0)
}
 0x52d   : > { %s8285_s20 = smov 128   ;;  %s8286_s28 = smov 8  }
 0x52e   : > { %7906 = dma.vmem_to_hbm [thread:$0]  (%p8360_p5), %s11037_s26, 4096, %s11035_s9, %s11045_s25, %s8285_s20, %s8285_s20, %s8286_s28  }
 0x52f PF: > { %p7912_p1 = scmp.ge.s32.totalorder %s8278_s24, 2  ;;  %s6489_s29 = sand.u32 1, %s8266_s21  }
 0x530   : > { %s6490_s10 = scalar_lea.sflag [#allocation4], %s6489_s29 }
 0x531   : > { %p7909_p2 = pnand %p7912_p1, %p8364_p6 }
 0x533   : > { %8261 = dma.done.wait (!%p7909_p2), %s6490_s10, 4096  }
 0x534   : > { %8263 = vsyncadd (!%p7909_p2), %s6490_s10, 4294963200  ;;  %p16_p3 = scmp.ge.s32.totalorder %s8347_s27, 4   ;;  %s11209_s21 = smov %s8270_s22 }
 0x535   : > { %s11210_s22 = smov %s8274_s23  ;;  %s11211_s23 = smov %s8358_s30 }
 0x536   : > { %s11212_s24 = smov %s8347_s27  ;;  %18 = sbr.rel (!%p16_p3) target bundleno = 3 (0x3), region = 82 }
 0x53d   :  { %6495 = vsyncpa [#allocation4], 1 }
 0x53e   :  { %6497 = vsyncpa [#allocation4 + $0x1], 1 }

// kernel: tpu_custom_call.1
= control target key start
LH: loop header
LB: loop body
LE: loop exit
PB: predicated region body
PF: predicated region fallthrough
CT: control target
= control target key end

     0   :  { %11 = vsyncpa [#allocation4], 0  ;;  %s11086_s0 = inlined_call_operand.vmem [shape: f32[2,256,64], index: 0, kind: input, shape index: {}]   ;;  %s11087_s1 = inlined_call_operand.vmem [shape: f32[1,64], index: 1, kind: input, shape index: {}]   ;;  %s11088_s2 = inlined_call_operand.vmem [shape: f32[1,64], index: 2, kind: input, shape index: {}]   ;;  %s11089_s3 = inlined_call_operand.vmem [shape: f32[64,64], index: 3, kind: input, shape index: {}]   ;;  %s11090_s4 = inlined_call_operand.vmem [shape: bf16[576,128], index: 4, kind: input, shape index: {}]   ;;  %s11091_s5 = inlined_call_operand.vmem [shape: f32[1,128], index: 5, kind: input, shape index: {}]   ;;  %s11092_s6 = inlined_call_operand.hbm [shape: f32[2,256,128], index: 6, kind: output, shape index: {}]  }
   0x1   :  { %13 = vsyncpa [#allocation4 + $0x1], 0  ;;  %s8322_s21 = smov 0   ;;  %s8324_s22 = smov 0  }
   0x2   :  { %s8326_s23 = smov 0   ;;  %s8328_s24 = smov 0  }
   0x3 LB: > { %s8343_s25 = sadd.s32 4294967295, %s8278_s24   ;;  %s6536_s26 = sadd.s32 4294967294, %s8278_s24   ;;  %s8278_s24 = sphi %s8328_s24, %s11212_s24   ;;  %s8274_s23 = sphi %s8326_s23, %s11211_s23   ;;  %s8270_s22 = sphi %s8324_s22, %s11210_s22   ;;  %s8266_s21 = sphi %s8322_s21, %s11209_s21  }
   0x4   : > { %s8347_s27 = sadd.s32 1, %s8278_s24   ;;  %s157_s28 = sadd.s32 1, %s8274_s23 }
   0x5   : > { %s154_s29 = ssub.s32 %s8278_s24, %s8347_s27  ;;  %p167_p0 = scmp.ne.s32.totalorder %s8274_s23, %s8270_s22 }
   0x6   : > { %p155_p1 = scmp.eq.s32.totalorder %s154_s29, 0  ;;  %p168_p2 = scmp.eq.s32.totalorder %s8343_s25, 1 }
   0x7   : > { %p173_p3 = scmp.ne.s32.totalorder %s8270_s22, %s8266_s21  ;;  %p174_p4 = scmp.eq.s32.totalorder %s6536_s26, 1 }
   0x8   : > { %s8358_s30 = scalar_select %p155_p1, %s8274_s23, %s157_s28  }
   0x9   : > { %p8360_p5 = por %p168_p2, %p167_p0  ;;  %p8364_p6 = por %p174_p4, %p173_p3 }
   0xa   : > { %p6539_p7 = scmp.ge.s32.totalorder %s8278_s24, 1  ;;  %p215_p8 = scmp.lt.s32.totalorder %s8278_s24, 3 }
   0xc   : > { %p216_p9 = pnand %p6539_p7, %p215_p8 }
   0xe   : > { %219 = sbr.rel (%p216_p9) target bundleno = 1327 (0x52f), region = 44 }
  0x15   : > { %v353_v0 = vld [vmem:[%s11089_s3] sm:$0xff]  ;;  %v354_v1 = vld [vmem:[%s11089_s3 + $0x8] sm:$0xff]  ;;  %v355_v2 = vld [vmem:[%s11089_s3 + $0x10] sm:$0xff]  ;;  %v8280_v3 = vmov 0.0|0.0   ;;  %vm8281_vm0 = vmmov 0   ;;  %v8282_v6 = vmov 0.0  }
  0x16   : > { %7618 = vmatprep.subr.bf16.mxu0 %v8280_v3  ;;  %v7619_v4 = vpack.c.bf16 %v354_v1, %v353_v0  ;;  %v356_v5 = vld [vmem:[%s11089_s3 + $0x18] sm:$0xff]  ;;  %7236 = vmatprep.mubr.msk.f32.mxu0 %vm8281_vm0, %v8282_v6  ;;  %p245_p10 = scmp.lt.s32.totalorder %s8343_s25, 1  ;;  %v357_v7 = vld [vmem:[%s11089_s3 + $0x20] sm:$0xff]  ;;  %vm965_vm1 = vcmask 516096   ;;  %v358_v9 = vld [vmem:[%s11089_s3 + $0x28] sm:$0xff]  ;;  %vm283_vm3 = vcmask 523264  }
  0x17   : > { %7630 = vmatprep.subr.bf16.mxu1 %v8280_v3  ;;  %7255 = vmatprep.mubr.msk.f32.mxu1 %vm8281_vm0, %v8282_v6  ;;  %v7622_v8 = vpack.c.bf16 %v356_v5, %v355_v2  ;;  %vm973_vm2 = vsmask.f32 256  ;;  %v1005_v10 = vld [vmem:[#allocation2 + $0x84] sm:$0x1]  ;;  %v1008_v12 = vld [vmem:[#allocation2 + $0x90] sm:$0x1]  ;;  %v7625_v21 = vpack.c.bf16 %v358_v9, %v357_v7 }
  0x18   : > { %7620 = vmatpush3.bf16.msra.mxu0 %v7619_v4  ;;  %s246_s26 = scalar_select %p245_p10, %s8343_s25, 1  ;;  %7632 = vmatpush3.bf16.msra.mxu1 %v7619_v4  ;;  %vm8395_vm4 = vmand %vm965_vm1, %vm973_vm2  ;;  %v1011_v13 = vld [vmem:[#allocation2 + $0x9c] sm:$0x1]  ;;  %v1014_v17 = vld [vmem:[#allocation2 + $0xa8] sm:$0x1]  ;;  %vm962_vm7 = vcmask 519168  }
  0x19   : > { %7621 = vmatprep.subr.bf16.mxu0 %v8280_v3  ;;  %7633 = vmatprep.subr.bf16.mxu1 %v8280_v3  ;;  %v1006_v14 = vsel %vm8395_vm4, 0, %v1005_v10  ;;  %v1009_v15 = vsel %vm8395_vm4, 0, %v1008_v12  ;;  %v1012_v16 = vsel %vm8395_vm4, 0, %v1011_v13  ;;  %v1015_v18 = vsel %vm8395_vm4, 0, %v1014_v17  ;;  %v1017_v19 = vld [vmem:[#allocation2 + $0xb4] sm:$0x1] }
  0x1a   : > { %s6988_s28 = sshll.u32 %s246_s26, 8  ;;  %1007 = vst [vmem:[#allocation2 + $0x84] sm:$0x1] %v1006_v14  ;;  %1010 = vst [vmem:[#allocation2 + $0x90] sm:$0x1] %v1009_v15  ;;  %v1018_v25 = vsel %vm8395_vm4, 0, %v1017_v19 }
  0x1b   : > { %s8409_s10 = scalar_lea.vmem %s11086_s0, %s6988_s28  ;;  %1013 = vst [vmem:[#allocation2 + $0x9c] sm:$0x1] %v1012_v16  ;;  %v1020_v20 = vld [vmem:[#allocation2 + $0xc0] sm:$0x1]  ;;  %1016 = vst [vmem:[#allocation2 + $0xa8] sm:$0x1] %v1015_v18 }
  0x1c   : > { %7623 = vmatpush3.bf16.msra.mxu0 %v7622_v8  ;;  %v8414_v22 = vld [vmem:[%s8409_s10] sm:$0xff]  ;;  %v8417_v23 = vld [vmem:[%s8409_s10 + $0x8] sm:$0xff]  ;;  %v8420_v24 = vld [vmem:[%s8409_s10 + $0x10] sm:$0xff]  ;;  %v1021_v26 = vsel %vm8395_vm4, 0, %v1020_v20  ;;  %7635 = vmatpush3.bf16.msra.mxu1 %v7622_v8  ;;  %1019 = vst [vmem:[#allocation2 + $0xb4] sm:$0x1] %v1018_v25 }
  0x1d   : > { %7624 = vmatprep.subr.bf16.mxu0 %v8280_v3  ;;  %v359_v27 = vld [vmem:[%s11089_s3 + $0x30] sm:$0xff]  ;;  %v360_v28 = vld [vmem:[%s11089_s3 + $0x38] sm:$0xff]  ;;  %v284_v30 = vsel %vm283_vm3, %v8414_v22, 0.0  ;;  %v285_v31 = vsel %vm283_vm3, %v8417_v23, 0.0  ;;  %v287_v32 = vsel %vm283_vm3, %v8420_v24, 0.0  ;;  %7636 = vmatprep.subr.bf16.mxu1 %v8280_v3  ;;  %v8444_v33 = vld [vmem:[%s8409_s10 + $0x20] sm:$0xff] }
  0x1e   : > { %v8434_v29 = vld [vmem:[%s8409_s10 + $0x18] sm:$0xff]  ;;  %1022 = vst [vmem:[#allocation2 + $0xc0] sm:$0x1] %v1021_v26  ;;  %v286_v34 = vadd.f32 %v285_v31, %v284_v30  ;;  %v7628_v36 = vpack.c.bf16 %v360_v28, %v359_v27  ;;  %v8449_v37 = vld [vmem:[%s8409_s10 + $0x28] sm:$0xff]  ;;  %v291_v39 = vsel %vm283_vm3, %v8444_v33, 0.0  ;;  %v8456_v40 = vld [vmem:[%s8409_s10 + $0x30] sm:$0xff] }
  0x1f   : > { %v289_v35 = vsel %vm283_vm3, %v8434_v29, 0.0  ;;  %vm1023_vm5 = vsmask.f32 7938  ;;  %v293_v42 = vsel %vm283_vm3, %v8449_v37, 0.0  ;;  %v8461_v43 = vld [vmem:[%s8409_s10 + $0x38] sm:$0xff]  ;;  %v8464_v45 = vld [vmem:[%s8409_s10 + $0x40] sm:$0xff] }
  0x20   : > { %7626 = vmatpush3.bf16.msra.mxu0 %v7625_v21  ;;  %v288_v38 = vadd.f32 %v287_v32, %v286_v34  ;;  %7638 = vmatpush3.bf16.msra.mxu1 %v7625_v21  ;;  %v295_v46 = vsel %vm283_vm3, %v8456_v40, 0.0  ;;  %vm8470_vm6 = vmand %vm965_vm1, %vm1023_vm5  ;;  %v8475_v48 = vld [vmem:[%s8409_s10 + $0x48] sm:$0xff]  ;;  %v8478_v49 = vld [vmem:[%s8409_s10 + $0x50] sm:$0xff]  ;;  %v297_v53 = vsel %vm283_vm3, %v8461_v43, 0.0  ;;  %v299_v62 = vsel %vm283_vm3, %v8464_v45, 0.0  ;;  %s242_s15 = sand.u32 1, %s8270_s22  }
  0x21   : > { %7627 = vmatprep.subr.bf16.mxu0 %v8280_v3  ;;  %7639 = vmatprep.subr.bf16.mxu1 %v8280_v3  ;;  %v8481_v50 = vld [vmem:[%s8409_s10 + $0x58] sm:$0xff]  ;;  %v8484_v52 = vld [vmem:[%s8409_s10 + $0x60] sm:$0xff]  ;;  %v1064_v59 = vld [vmem:[#allocation2 + $0xb0] sm:$0x1]  ;;  %v301_v7 = vsel %vm283_vm3, %v8475_v48, 0.0  ;;  %v303_v8 = vsel %vm283_vm3, %v8478_v49, 0.0 }
  0x22   : > { %v290_v41 = vadd.f32 %v289_v35, %v288_v38  ;;  %v1058_v54 = vld [vmem:[#allocation2 + $0x98] sm:$0x1]  ;;  %v1061_v55 = vld [vmem:[#allocation2 + $0xa4] sm:$0x1]  ;;  %v1067_v60 = vld [vmem:[#allocation2 + $0xbc] sm:$0x1] }
  0x23   : > { %v1059_v57 = vsel %vm8470_vm6, 0, %v1058_v54  ;;  %v1062_v58 = vsel %vm8470_vm6, 0, %v1061_v55  ;;  %v8493_v61 = vld [vmem:[%s8409_s10 + $0x68] sm:$0xff]  ;;  %v1065_v63 = vsel %vm8470_vm6, 0, %v1064_v59  ;;  %v1068_v0 = vsel %vm8470_vm6, 0, %v1067_v60  ;;  %v8504_v4 = vld [vmem:[%s8409_s10 + $0x70] sm:$0xff]  ;;  %vm9241_vm13 = vmand %vm962_vm7, %vm1023_vm5 }
  0x24   : > { %7629 = vmatpush3.bf16.msra.mxu0 %v7628_v36  ;;  %v292_v44 = vadd.f32 %v291_v39, %v290_v41  ;;  %7641 = vmatpush3.bf16.msra.mxu1 %v7628_v36  ;;  %1060 = vst [vmem:[#allocation2 + $0x98] sm:$0x1] %v1059_v57  ;;  %1063 = vst [vmem:[#allocation2 + $0xa4] sm:$0x1] %v1062_v58  ;;  %v1070_v1 = vld [vmem:[#allocation2 + $0xc8] sm:$0x1] }
  0x25   : > { %1066 = vst [vmem:[#allocation2 + $0xb0] sm:$0x1] %v1065_v63  ;;  %1069 = vst [vmem:[#allocation2 + $0xbc] sm:$0x1] %v1068_v0  ;;  %v1071_v3 = vsel %vm8470_vm6, 0, %v1070_v1  ;;  %v8507_v5 = vld [vmem:[%s8409_s10 + $0x78] sm:$0xff] }
  0x26   : > { %v294_v51 = vadd.f32 %v293_v42, %v292_v44  ;;  %v8510_v6 = vld [vmem:[%s8409_s10 + $0x80] sm:$0xff]  ;;  %v305_v9 = vsel %vm283_vm3, %v8481_v50, 0.0  ;;  %v307_v10 = vsel %vm283_vm3, %v8484_v52, 0.0  ;;  %1072 = vst [vmem:[#allocation2 + $0xc8] sm:$0x1] %v1071_v3  ;;  %v8521_v12 = vld [vmem:[%s8409_s10 + $0x88] sm:$0xff] }
  0x27   : > { %v8524_v13 = vld [vmem:[%s8409_s10 + $0x90] sm:$0xff]  ;;  %v8527_v14 = vld [vmem:[%s8409_s10 + $0x98] sm:$0xff]  ;;  %v8530_v15 = vld [vmem:[%s8409_s10 + $0xa0] sm:$0xff]  ;;  %v309_v17 = vsel %vm283_vm3, %v8493_v61, 0.0  ;;  %v311_v25 = vsel %vm283_vm3, %v8504_v4, 0.0  ;;  %v313_v26 = vsel %vm283_vm3, %v8507_v5, 0.0 }
  0x28   : > { %v296_v56 = vadd.f32 %v295_v46, %v294_v51  ;;  %v8535_v18 = vld [vmem:[%s8409_s10 + $0xa8] sm:$0xff]  ;;  %v8538_v19 = vld [vmem:[%s8409_s10 + $0xb0] sm:$0xff]  ;;  %v315_v27 = vsel %vm283_vm3, %v8510_v6, 0.0  ;;  %v317_v28 = vsel %vm283_vm3, %v8521_v12, 0.0  ;;  %v319_v30 = vsel %vm283_vm3, %v8524_v13, 0.0  ;;  %s6540_s16 = sshll.u32 %s242_s15, 8 }
  0x29   : > { %v321_v31 = vsel %vm283_vm3, %v8527_v14, 0.0  ;;  %v323_v32 = vsel %vm283_vm3, %v8530_v15, 0.0  ;;  %v325_v35 = vsel %vm283_vm3, %v8535_v18, 0.0  ;;  %v327_v36 = vsel %vm283_vm3, %v8538_v19, 0.0  ;;  %v8567_v59 = vld [vmem:[%s8409_s10 + $0xc8] sm:$0xff]  ;;  %v8572_v63 = vld [vmem:[%s8409_s10 + $0xd0] sm:$0xff] }
  0x2a   : > { %v298_v2 = vadd.f32 %v297_v53, %v296_v56  ;;  %v8559_v53 = vld [vmem:[%s8409_s10 + $0xb8] sm:$0xff]  ;;  %v8562_v56 = vld [vmem:[%s8409_s10 + $0xc0] sm:$0xff]  ;;  %v333_v1 = vsel %vm283_vm3, %v8567_v59, 0.0  ;;  %vm1645_vm8 = vsmask.f32 3328  ;;  %vm2682_vm14 = vcmask 1042432  }
  0x2b   : > { %v329_v58 = vsel %vm283_vm3, %v8559_v53, 0.0  ;;  %vm1646_vm9 = vsmask.f32 7440  ;;  %vm1153_vm11 = vsmask.f32 4368  ;;  %vm2683_vm15 = vcmask 1046532  }
  0x2c   : > { %v300_v16 = vadd.f32 %v299_v62, %v298_v2  ;;  %v331_v62 = vsel %vm283_vm3, %v8562_v56, 0.0  ;;  %v8577_v2 = vld [vmem:[%s8409_s10 + $0xd8] sm:$0xff]  ;;  %vm8868_vm10 = vmor %vm1645_vm8, %vm1646_vm9  ;;  %s10970_s19 = scalar_lea.vmem [#allocation3], %s6540_s16  ;;  %s7021_s20 = sshll.u32 %s8343_s25, 12 }
  0x2d   : > { %vm9220_vm12 = vmor %vm973_vm2, %vm1153_vm11  ;;  %s6474_s26 = sshll.u32 %s10970_s19, 4  ;;  %s11035_s9 = scalar_lea.hbm %s11092_s6, %s7021_s20  ;;  %s11037_s26 = int_to_ptr.vmem [resolvable:$true] %s6474_s26 }
  0x2e   : > { %v302_v20 = vadd.f32 %v301_v7, %v300_v16  ;;  %v335_v7 = vsel %vm283_vm3, %v8572_v63, 0.0  ;;  %v8587_v16 = vld [vmem:[%s8409_s10 + $0xe8] sm:$0xff]  ;;  %vm9713_vm0 = vmor %vm2682_vm14, %vm2683_vm15  ;;  %s11045_s25 = scalar_lea.sflag [#allocation4], %s242_s15  ;;  %s8284_s11 = smov [#allocation3]  }
  0x2f   : > { %s8220_s12 = sshll.u32 %s8284_s11, 4  ;;  %s8221_s12 = int_to_ptr.vmem [resolvable:$false] %s8220_s12 }
  0x30   : > { %v304_v21 = vadd.f32 %v303_v8, %v302_v20  ;;  %v8582_v8 = vld [vmem:[%s8409_s10 + $0xe0] sm:$0xff]  ;;  %s8222_s13 = scalar_lea.vmem %s8221_s12, 8192  ;;  %p8223_p0 = scmp.lt.s32.totalorder %s11037_s26, %s8221_s12 }
  0x31   : > { %v339_v20 = vsel %vm283_vm3, %v8582_v8, 0.0 }
  0x32   : > { %v306_v34 = vadd.f32 %v305_v9, %v304_v21  ;;  %v8592_v21 = vld [vmem:[%s8409_s10 + $0xf0] sm:$0xff] }
  0x34   : > { %v308_v38 = vadd.f32 %v307_v10, %v306_v34  ;;  %v337_v10 = vsel %vm283_vm3, %v8577_v2, 0.0 }
  0x36   : > { %v310_v39 = vadd.f32 %v309_v17, %v308_v38 }
  0x38   : > { %v312_v41 = vadd.f32 %v311_v25, %v310_v39 }
  0x3a   : > { %v314_v42 = vadd.f32 %v313_v26, %v312_v41  ;;  %v341_v26 = vsel %vm283_vm3, %v8587_v16, 0.0 }
  0x3c   : > { %v316_v44 = vadd.f32 %v315_v27, %v314_v42  ;;  %v8597_v27 = vld [vmem:[%s8409_s10 + $0xf8] sm:$0xff]  ;;  %s8216_s10 = scalar_lea.vmem %s11037_s26, 4096 }
  0x3d   : > { %p8217_p11 = scmp.ne.s32.totalorder %s11037_s26, %s8216_s10  ;;  %p8224_p1 = scmp.lt.s32.totalorder %s8222_s13, %s8216_s10 }
  0x3e   : > { %v318_v46 = vadd.f32 %v317_v28, %v316_v44 }
  0x3f   : > { %p8218_p12 = pnand %p8217_p11, %p8360_p5  ;;  %p8225_p2 = por %p8224_p1, %p8223_p0 }
  0x40   : > { %v320_v51 = vadd.f32 %v319_v30, %v318_v46  ;;  %v343_v30 = vsel %vm283_vm3, %v8592_v21, 0.0  ;;  %v434_v46 = vlaneseq }
  0x41   : > { %p8219_p13 = pneg %p8218_p12 }
  0x42   : > { %v322_v54 = vadd.f32 %v321_v31, %v320_v51  ;;  %v8604_v51 = vshrl.u32 %v434_v46, 7 }
  0x43   : > { %p8226_p3 = pnand %p8225_p2, %p8219_p13 }
  0x44   : > { %v324_v55 = vadd.f32 %v323_v32, %v322_v54  ;;  %v345_v32 = vsel %vm283_vm3, %v8597_v27, 0.0 }
  0x46   : > { %v326_v57 = vadd.f32 %v325_v35, %v324_v55 }
  0x48   : > { %v328_v60 = vadd.f32 %v327_v36, %v326_v57  ;;  %v436_v57 = vsub.s32 0, %v8604_v51 }
  0x4a   : > { %v330_v0 = vadd.f32 %v329_v58, %v328_v60 }
  0x4c   : > { %v332_v3 = vadd.f32 %v331_v62, %v330_v0 }
  0x4e   : > { %v334_v9 = vadd.f32 %v333_v1, %v332_v3 }
  0x50   : > { %v336_v17 = vadd.f32 %v335_v7, %v334_v9 }
  0x52   : > { %v338_v25 = vadd.f32 %v337_v10, %v336_v17 }
  0x54   : > { %v340_v28 = vadd.f32 %v339_v20, %v338_v25 }
  0x56   : > { %v342_v31 = vadd.f32 %v341_v26, %v340_v28 }
  0x58   : > { %v344_v34 = vadd.f32 %v343_v30, %v342_v31 }
  0x5a   : > { %v346_v35 = vadd.f32 %v345_v32, %v344_v34 }
  0x5c   : > { %v347_v36 = vrot.slane %v346_v35, 4 }
  0x5e   : > { %v348_v38 = vadd.f32 %v347_v36, %v346_v35 }
  0x60   : > { %v349_v39 = vrot.slane %v348_v38, 2 }
  0x62   : > { %v350_v41 = vadd.f32 %v349_v39, %v348_v38 }
  0x64   : > { %v351_v42 = vrot.slane %v350_v41, 1 }
  0x66   : > { %v352_v44 = vadd.f32 %v351_v42, %v350_v41 }
  0x68   : > { %7237 = vmatmul.mubr.msk.f32.vlgmr.msra.gmra.mrb[0].mxu0 %vm283_vm3, %v352_v44 }
 0x13b   : > { %v430_v54 = vpop.f32.mrb[0].mxu0 }
 0x13c   : > { %v7238_v55 = vpop.f32.mrb[1].mxu0  ;;  %v8609_v58 = vrot.slane %v430_v54, %v436_v57 }
 0x13e   : > { %v8613_v60 = vsub.f32 %v8414_v22, %v8609_v58  ;;  %v8617_v62 = vsub.f32 %v8417_v23, %v8609_v58  ;;  %v8621_v0 = vsub.f32 %v8420_v24, %v8609_v58  ;;  %v8625_v1 = vsub.f32 %v8434_v29, %v8609_v58 }
 0x13f   : > { %v8633_v22 = vsub.f32 %v8444_v33, %v8609_v58  ;;  %v8639_v24 = vsub.f32 %v8449_v37, %v8609_v58  ;;  %v8647_v20 = vsub.f32 %v8456_v40, %v8609_v58  ;;  %v8654_v37 = vsub.f32 %v8461_v43, %v8609_v58 }
 0x140   : > { %v470_v3 = vmul.f32 %v8613_v60, %v8613_v60  ;;  %v471_v7 = vmul.f32 %v8617_v62, %v8617_v62  ;;  %v472_v23 = vmul.f32 %v8621_v0, %v8621_v0  ;;  %v473_v29 = vmul.f32 %v8625_v1, %v8625_v1 }
 0x141   : > { %v474_v33 = vmul.f32 %v8633_v22, %v8633_v22  ;;  %v475_v28 = vmul.f32 %v8639_v24, %v8639_v24  ;;  %v8661_v40 = vsub.f32 %v8464_v45, %v8609_v58  ;;  %v476_v32 = vmul.f32 %v8647_v20, %v8647_v20 }
 0x142   : > { %v502_v9 = vsel %vm283_vm3, %v470_v3, 0.0  ;;  %v503_v10 = vsel %vm283_vm3, %v471_v7, 0.0  ;;  %v505_v25 = vsel %vm283_vm3, %v472_v23, 0.0  ;;  %v507_v30 = vsel %vm283_vm3, %v473_v29, 0.0 }
 0x143   : > { %v504_v17 = vadd.f32 %v503_v10, %v502_v9  ;;  %v509_v34 = vsel %vm283_vm3, %v474_v33, 0.0  ;;  %v8668_v43 = vsub.f32 %v8475_v48, %v8609_v58  ;;  %v477_v36 = vmul.f32 %v8654_v37, %v8654_v37 }
 0x144   : > { %v511_v38 = vsel %vm283_vm3, %v475_v28, 0.0  ;;  %v8675_v45 = vsub.f32 %v8478_v49, %v8609_v58  ;;  %v478_v41 = vmul.f32 %v8661_v40, %v8661_v40  ;;  %v513_v42 = vsel %vm283_vm3, %v476_v32, 0.0 }
 0x145   : > { %v506_v26 = vadd.f32 %v505_v25, %v504_v17  ;;  %v8682_v48 = vsub.f32 %v8481_v50, %v8609_v58  ;;  %v479_v46 = vmul.f32 %v8668_v43, %v8668_v43  ;;  %v515_v54 = vsel %vm283_vm3, %v477_v36, 0.0 }
 0x146   : > { %v8689_v49 = vsub.f32 %v8484_v52, %v8609_v58  ;;  %v480_v3 = vmul.f32 %v8675_v45, %v8675_v45  ;;  %v517_v7 = vsel %vm283_vm3, %v478_v41, 0.0  ;;  %v8696_v50 = vsub.f32 %v8493_v61, %v8609_v58 }
 0x147   : > { %v508_v31 = vadd.f32 %v507_v30, %v506_v26  ;;  %v481_v29 = vmul.f32 %v8682_v48, %v8682_v48  ;;  %v519_v9 = vsel %vm283_vm3, %v479_v46, 0.0  ;;  %v8703_v52 = vsub.f32 %v8504_v4, %v8609_v58 }
 0x148   : > { %v482_v17 = vmul.f32 %v8689_v49, %v8689_v49  ;;  %v521_v33 = vsel %vm283_vm3, %v480_v3, 0.0  ;;  %v8710_v61 = vsub.f32 %v8507_v5, %v8609_v58  ;;  %v483_v26 = vmul.f32 %v8696_v50, %v8696_v50 }
 0x149   : > { %v510_v35 = vadd.f32 %v509_v34, %v508_v31  ;;  %v523_v28 = vsel %vm283_vm3, %v481_v29, 0.0  ;;  %v8717_v4 = vsub.f32 %v8510_v6, %v8609_v58  ;;  %v484_v31 = vmul.f32 %v8703_v52, %v8703_v52 }
 0x14a   : > { %v525_v32 = vsel %vm283_vm3, %v482_v17, 0.0  ;;  %v8724_v5 = vsub.f32 %v8521_v12, %v8609_v58  ;;  %v527_v36 = vsel %vm283_vm3, %v483_v26, 0.0  ;;  %v8731_v6 = vsub.f32 %v8524_v13, %v8609_v58 }
 0x14b   : > { %v512_v39 = vadd.f32 %v511_v38, %v510_v35  ;;  %v485_v35 = vmul.f32 %v8710_v61, %v8710_v61  ;;  %v529_v41 = vsel %vm283_vm3, %v484_v31, 0.0  ;;  %v8738_v12 = vsub.f32 %v8527_v14, %v8609_v58 }
 0x14c   : > { %v8745_v13 = vsub.f32 %v8530_v15, %v8609_v58  ;;  %v8752_v14 = vsub.f32 %v8535_v18, %v8609_v58  ;;  %v8759_v15 = vsub.f32 %v8538_v19, %v8609_v58  ;;  %v8766_v18 = vsub.f32 %v8559_v53, %v8609_v58 }
 0x14d   : > { %v514_v44 = vadd.f32 %v513_v42, %v512_v39  ;;  %v486_v39 = vmul.f32 %v8717_v4, %v8717_v4  ;;  %v531_v46 = vsel %vm283_vm3, %v485_v35, 0.0  ;;  %v8773_v19 = vsub.f32 %v8562_v56, %v8609_v58 }
 0x14e   : > { %v8780_v53 = vsub.f32 %v8567_v59, %v8609_v58  ;;  %v8787_v56 = vsub.f32 %v8572_v63, %v8609_v58  ;;  %v8794_v59 = vsub.f32 %v8577_v2, %v8609_v58  ;;  %v8801_v63 = vsub.f32 %v8582_v8, %v8609_v58 }
 0x14f   : > { %v516_v55 = vadd.f32 %v515_v54, %v514_v44  ;;  %v487_v44 = vmul.f32 %v8724_v5, %v8724_v5  ;;  %v533_v3 = vsel %vm283_vm3, %v486_v39, 0.0  ;;  %v8808_v2 = vsub.f32 %v8587_v16, %v8609_v58 }
 0x150   : > { %v8815_v8 = vsub.f32 %v8592_v21, %v8609_v58  ;;  %v8822_v16 = vsub.f32 %v8597_v27, %v8609_v58 }
 0x151   : > { %v518_v23 = vadd.f32 %v517_v7, %v516_v55  ;;  %v488_v55 = vmul.f32 %v8731_v6, %v8731_v6  ;;  %v535_v29 = vsel %vm283_vm3, %v487_v44, 0.0 }
 0x152   : > { %v500_v21 = vmul.f32 %v8815_v8, %v8815_v8 }
 0x153   : > { %v520_v10 = vadd.f32 %v519_v9, %v518_v23  ;;  %v489_v23 = vmul.f32 %v8738_v12, %v8738_v12  ;;  %v537_v17 = vsel %vm283_vm3, %v488_v55, 0.0 }
 0x154   : > { %v561_v27 = vsel %vm283_vm3, %v500_v21, 0.0 }
 0x155   : > { %v522_v25 = vadd.f32 %v521_v33, %v520_v10  ;;  %v490_v10 = vmul.f32 %v8745_v13, %v8745_v13  ;;  %v539_v26 = vsel %vm283_vm3, %v489_v23, 0.0 }
 0x157   : > { %v524_v30 = vadd.f32 %v523_v28, %v522_v25  ;;  %v491_v25 = vmul.f32 %v8752_v14, %v8752_v14  ;;  %v541_v31 = vsel %vm283_vm3, %v490_v10, 0.0 }
 0x159   : > { %v526_v34 = vadd.f32 %v525_v32, %v524_v30  ;;  %v492_v30 = vmul.f32 %v8759_v15, %v8759_v15  ;;  %v543_v35 = vsel %vm283_vm3, %v491_v25, 0.0 }
 0x15b   : > { %v528_v38 = vadd.f32 %v527_v36, %v526_v34  ;;  %v493_v34 = vmul.f32 %v8766_v18, %v8766_v18  ;;  %v545_v39 = vsel %vm283_vm3, %v492_v30, 0.0 }
 0x15d   : > { %v530_v42 = vadd.f32 %v529_v41, %v528_v38  ;;  %v494_v38 = vmul.f32 %v8773_v19, %v8773_v19  ;;  %v547_v44 = vsel %vm283_vm3, %v493_v34, 0.0 }
 0x15f   : > { %v532_v54 = vadd.f32 %v531_v46, %v530_v42  ;;  %v495_v42 = vmul.f32 %v8780_v53, %v8780_v53  ;;  %v549_v55 = vsel %vm283_vm3, %v494_v38, 0.0 }
 0x161   : > { %v534_v7 = vadd.f32 %v533_v3, %v532_v54  ;;  %v496_v54 = vmul.f32 %v8787_v56, %v8787_v56  ;;  %v551_v23 = vsel %vm283_vm3, %v495_v42, 0.0 }
 0x163   : > { %v536_v9 = vadd.f32 %v535_v29, %v534_v7  ;;  %v497_v7 = vmul.f32 %v8794_v59, %v8794_v59  ;;  %v553_v10 = vsel %vm283_vm3, %v496_v54, 0.0  ;;  %v8283_v54 = vmov 0  }
 0x164   : > { %963 = vst.msk [vmem:[#allocation2] sm:$0xf] %vm962_vm7, %v8283_v54  ;;  %964 = vst.msk [vmem:[#allocation2 + $0x4] sm:$0xf] %vm962_vm7, %v8283_v54 }
 0x165   : > { %v538_v33 = vadd.f32 %v537_v17, %v536_v9  ;;  %v498_v9 = vmul.f32 %v8801_v63, %v8801_v63  ;;  %v555_v25 = vsel %vm283_vm3, %v497_v7, 0.0  ;;  %966 = vst.msk [vmem:[#allocation2 + $0x8] sm:$0x1] %vm965_vm1, %v8283_v54  ;;  %970 = vst.msk [vmem:[#allocation2 + $0xd4] sm:$0x1] %vm965_vm1, %v8283_v54  ;;  %v7953_v7 = vld [vmem:[%s11090_s4 + $0x28] sm:$0xff]  }
 0x166   : > { %968 = vst.msk [vmem:[#allocation2 + $0xcc] sm:$0xf] %vm962_vm7, %v8283_v54  ;;  %969 = vst.msk [vmem:[#allocation2 + $0xd0] sm:$0xf] %vm962_vm7, %v8283_v54 }
 0x167   : > { %v540_v28 = vadd.f32 %v539_v26, %v538_v33  ;;  %v499_v33 = vmul.f32 %v8808_v2, %v8808_v2 }
 0x169   : > { %v542_v32 = vadd.f32 %v541_v31, %v540_v28  ;;  %v557_v28 = vsel %vm283_vm3, %v498_v9, 0.0  ;;  %v501_v31 = vmul.f32 %v8822_v16, %v8822_v16  ;;  %v7956_v9 = vld [vmem:[%s11090_s4 + $0x90] sm:$0xff]  }
 0x16b   : > { %v544_v36 = vadd.f32 %v543_v35, %v542_v32  ;;  %v559_v32 = vsel %vm283_vm3, %v499_v33, 0.0  ;;  %v563_v35 = vsel %vm283_vm3, %v501_v31, 0.0  ;;  %v7958_v31 = vld [vmem:[%s11090_s4 + $0x98] sm:$0xff]  }
 0x16c   : > { %v1629_v33 = vld [vmem:[#allocation2 + $0x8] sm:$0x1] }
 0x16d   : > { %v546_v41 = vadd.f32 %v545_v39, %v544_v36 }
 0x16f   : > { %v548_v46 = vadd.f32 %v547_v44, %v546_v41 }
 0x171   : > { %v550_v3 = vadd.f32 %v549_v55, %v548_v46  ;;  %v7951_v55 = vld [vmem:[%s11090_s4 + $0x20] sm:$0xff]  }
 0x172   : > { %7258 = vmatprep.subr.bf16.mxu1 %v7951_v55 }
 0x173   : > { %v552_v29 = vadd.f32 %v551_v23, %v550_v3  ;;  %v7952_v3 = vld [vmem:[%s11090_s4 + $0x80] sm:$0xff]   ;;  %v7954_v23 = vld [vmem:[%s11090_s4 + $0x88] sm:$0xff]  }
 0x174   : > { %7418 = vmatprep.subr.bf16.mxu0 %v7952_v3 }
 0x175   : > { %v554_v17 = vadd.f32 %v553_v10, %v552_v29  ;;  %7419 = vmatpush3.bf16.msra.mxu0 %v7952_v3  ;;  %v7955_v29 = vld [vmem:[%s11090_s4 + $0x30] sm:$0xff]   ;;  %v1589_v10 = vld [vmem:[#allocation2] sm:$0xf]  ;;  %v975_v3 = vld [vmem:[#allocation2 + $0xc] sm:$0x1] }
 0x176   : > { %7420 = vmatprep.subr.bf16.mxu0 %v7954_v23 }
 0x177   : > { %v556_v26 = vadd.f32 %v555_v25, %v554_v17  ;;  %v1590_v17 = vld [vmem:[#allocation2 + $0x4] sm:$0xf]  ;;  %v1649_v25 = vshrl.u32 %v1589_v10, 16 }
 0x178   : > { %v1658_v21 = vshll.u32 %v1590_v17, 16 }
 0x179   : > { %v558_v30 = vadd.f32 %v557_v28, %v556_v26  ;;  %7421 = vmatpush3.bf16.msra.mxu0 %v7954_v23  ;;  %v1652_v26 = vshll.u32 %v1589_v10, 16  ;;  %v1662_v28 = vshrl.u32 %v1590_v17, 16  ;;  %v976_v23 = vsel %vm8395_vm4, 0, %v975_v3 }
 0x17a   : > { %7422 = vmatprep.subr.bf16.mxu0 %v7956_v9  ;;  %977 = vst [vmem:[#allocation2 + $0xc] sm:$0x1] %v976_v23 }
 0x17b   : > { %v560_v34 = vadd.f32 %v559_v32, %v558_v30  ;;  %v7957_v30 = vld [vmem:[%s11090_s4 + $0x38] sm:$0xff]   ;;  %v1668_v32 = vshll.u32 %v1629_v33, 16 }
 0x17c   : > { %v978_v33 = vld [vmem:[#allocation2 + $0x18] sm:$0x1] }
 0x17d   : > { %v562_v58 = vadd.f32 %v561_v27, %v560_v34  ;;  %v1651_v34 = vrot.slane %v1649_v25, 4  ;;  %v1654_v27 = vrot.slane %v1652_v26, 5  ;;  %7423 = vmatpush3.bf16.msra.mxu0 %v7956_v9  ;;  %v1028_v25 = vld [vmem:[#allocation2 + $0x20] sm:$0x1]  ;;  %v979_v26 = vsel %vm8395_vm4, 0, %v978_v33 }
 0x17e   : > { %7424 = vmatprep.subr.bf16.mxu0 %v7958_v31  ;;  %980 = vst [vmem:[#allocation2 + $0x18] sm:$0x1] %v979_v26 }
 0x17f   : > { %v564_v36 = vadd.f32 %v563_v35, %v562_v58  ;;  %v1660_v58 = vrot.slane %v1658_v21, 5  ;;  %v1664_v35 = vrot.slane %v1662_v28, 4  ;;  %v1029_v21 = vsel %vm8470_vm6, 0, %v1028_v25  ;;  %v645_v28 = vld [vmem:[%s11087_s1] sm:$0x1] }
 0x180   : > { %1030 = vst [vmem:[#allocation2 + $0x20] sm:$0x1] %v1029_v21 }
 0x181   : > { %v565_v38 = vrot.slane %v564_v36, 4  ;;  %7425 = vmatpush3.bf16.msra.mxu0 %v7958_v31  ;;  %v1031_v31 = vld [vmem:[#allocation2 + $0x2c] sm:$0x1] }
 0x183   : > { %v566_v39 = vadd.f32 %v565_v38, %v564_v36  ;;  %v1655_v36 = vor.u32 %v1654_v27, %v1651_v34  ;;  %v1665_v38 = vor.u32 %v1664_v35, %v1660_v58  ;;  %v1032_v27 = vsel %vm8470_vm6, 0, %v1031_v31 }
 0x184   : > { %1033 = vst [vmem:[#allocation2 + $0x2c] sm:$0x1] %v1032_v27 }
 0x185   : > { %v567_v41 = vrot.slane %v566_v39, 2 }
 0x187   : > { %v568_v42 = vadd.f32 %v567_v41, %v566_v39  ;;  %v1670_v39 = vrot.slane %v1668_v32, 5  ;;  %v11122_v41 = vmov 0 }
 0x188   : > { %v11123_v41 = vsel %vm8868_vm10, 4294967295, %v11122_v41 }
 0x189   : > { %v569_v44 = vrot.slane %v568_v42, 1  ;;  %11124 = vst [vmem:[#allocation6_spill] sm:$0xff] %v11123_v41 }
 0x18b   : > { %v570_v46 = vadd.f32 %v569_v44, %v568_v42  ;;  %v1656_v42 = vrot.slane %v1655_v36, 4  ;;  %v1666_v44 = vrot.slane %v1665_v38, 4  ;;  %v8901_v38 = vld [vmem:[%s11088_s2] ss:$0 sm:$0xff] }
 0x18d   : > { %7256 = vmatmul.mubr.msk.f32.vlgmr.msra.gmra.mrb[0].mxu1 %vm283_vm3, %v570_v46  ;;  %v1661_v46 = vsel %vm8868_vm10, %v1656_v42, %v1660_v58  ;;  %v1671_v54 = vsel %vm8868_vm10, %v1666_v44, %v1670_v39 }
 0x18e   : > { %7259 = vmatpush3.bf16.msra.mxu1 %v7951_v55  ;;  %v6610_v55 = vcombine.low %v1661_v46, %v1671_v54 }
 0x18f   : > { %7260 = vmatprep.subr.bf16.mxu1 %v7953_v7 }
 0x190   : > { %7266 = vmatprep.mubr.msk.bf16.mxu1 %vm283_vm3, %v6610_v55 }
 0x192   : > { %7261 = vmatpush3.bf16.msra.mxu1 %v7953_v7  ;;  %v1025_v7 = vld [vmem:[#allocation2 + $0x14] sm:$0x1] }
 0x193   : > { %7262 = vmatprep.subr.bf16.mxu1 %v7955_v29 }
 0x196   : > { %7263 = vmatpush3.bf16.msra.mxu1 %v7955_v29  ;;  %v1026_v29 = vsel %vm8470_vm6, 0, %v1025_v7 }
 0x197   : > { %7264 = vmatprep.subr.bf16.mxu1 %v7957_v30  ;;  %1027 = vst [vmem:[#allocation2 + $0x14] sm:$0x1] %v1026_v29 }
 0x19a   : > { %7265 = vmatpush3.bf16.msra.mxu1 %v7957_v30  ;;  %v981_v30 = vld [vmem:[#allocation2 + $0x24] sm:$0x1] }
 0x19b   : > { %v982_v34 = vsel %vm8395_vm4, 0, %v981_v30 }
 0x19c   : > { %983 = vst [vmem:[#allocation2 + $0x24] sm:$0x1] %v982_v34 }
 0x260   : > { %v640_v9 = vpop.f32.mrb[0].mxu1 }
 0x261   : > { %v641_v10 = vadd.f32 1e-05, %v640_v9  ;;  %v7257_v17 = vpop.f32.mrb[1].mxu1 }
 0x263   : > { %8024 = vrsqrt.f32 %v641_v10 }
 0x26d   : > { %v8025_v32 = vpop.eup %8024 }
 0x26e   : > { %v646_v58 = vmul.f32 %v8025_v32, %v645_v28 }
 0x270   : > { %v8894_v35 = vrot.slane %v646_v58, %v436_v57 }
 0x272   : > { %v662_v36 = vmul.f32 %v8894_v35, %v8682_v48  ;;  %v663_v39 = vmul.f32 %v8894_v35, %v8689_v49  ;;  %v664_v42 = vmul.f32 %v8894_v35, %v8696_v50  ;;  %v665_v44 = vmul.f32 %v8894_v35, %v8703_v52 }
 0x273   : > { %v666_v51 = vmul.f32 %v8894_v35, %v8710_v61  ;;  %v667_v57 = vmul.f32 %v8894_v35, %v8717_v4  ;;  %v668_v48 = vmul.f32 %v8894_v35, %v8724_v5  ;;  %v669_v49 = vmul.f32 %v8894_v35, %v8731_v6 }
 0x274   : > { %v8916_v46 = vadd.f32 %v8901_v38, %v662_v36  ;;  %v8921_v50 = vadd.f32 %v8901_v38, %v663_v39  ;;  %v8924_v52 = vadd.f32 %v8901_v38, %v664_v42  ;;  %v8927_v61 = vadd.f32 %v8901_v38, %v665_v44  ;;  %v7960_v36 = vld [vmem:[%s11090_s4 + $0xa0] sm:$0xff]  }
 0x275   : > { %v670_v4 = vmul.f32 %v8894_v35, %v8738_v12  ;;  %v8932_v5 = vadd.f32 %v8901_v38, %v666_v51  ;;  %v671_v54 = vmul.f32 %v8894_v35, %v8745_v13  ;;  %v672_v6 = vmul.f32 %v8894_v35, %v8752_v14  ;;  %v7959_v13 = vld [vmem:[%s11090_s4] sm:$0xff]   ;;  %7458 = vmatprep.subr.bf16.mxu0 %v7960_v36 }
 0x276   : > { %v8939_v55 = vadd.f32 %v8901_v38, %v667_v57  ;;  %v673_v3 = vmul.f32 %v8894_v35, %v8759_v15  ;;  %v674_v7 = vmul.f32 %v8894_v35, %v8766_v18  ;;  %v8946_v12 = vadd.f32 %v8901_v38, %v668_v48  ;;  %7298 = vmatprep.subr.bf16.mxu1 %v7959_v13 }
 0x277   : > { %v6557_v23 = vmul.f32 -1.442695, %v8916_v46  ;;  %v8953_v14 = vadd.f32 %v8901_v38, %v669_v49  ;;  %v6558_v29 = vmul.f32 -1.442695, %v8921_v50  ;;  %v6559_v9 = vmul.f32 -1.442695, %v8924_v52 }
 0x278   : > { %v6560_v15 = vmul.f32 -1.442695, %v8927_v61  ;;  %v675_v18 = vmul.f32 %v8894_v35, %v8773_v19  ;;  %v8961_v10 = vadd.f32 %v8901_v38, %v670_v4  ;;  %v6561_v17 = vmul.f32 -1.442695, %v8932_v5 }
 0x279   : > { %8026 = vpow2.f32 %v6557_v23  ;;  %v676_v33 = vmul.f32 %v8894_v35, %v8780_v53  ;;  %v8967_v25 = vadd.f32 %v8901_v38, %v671_v54  ;;  %v6562_v26 = vmul.f32 -1.442695, %v8939_v55  ;;  %v1034_v23 = vld [vmem:[#allocation2 + $0x38] sm:$0x1] }
 0x27a   : > { %8028 = vpow2.f32 %v6558_v29  ;;  %v677_v21 = vmul.f32 %v8894_v35, %v8787_v56  ;;  %v8973_v19 = vadd.f32 %v8901_v38, %v672_v6  ;;  %v6563_v28 = vmul.f32 -1.442695, %v8946_v12 }
 0x27b   : > { %8030 = vpow2.f32 %v6559_v9  ;;  %v678_v30 = vmul.f32 %v8894_v35, %v8794_v59  ;;  %v8979_v53 = vadd.f32 %v8901_v38, %v673_v3  ;;  %v6564_v31 = vmul.f32 -1.442695, %v8953_v14 }
 0x27c   : > { %8032 = vpow2.f32 %v6560_v15  ;;  %v679_v32 = vmul.f32 %v8894_v35, %v8801_v63  ;;  %v8985_v56 = vadd.f32 %v8901_v38, %v674_v7  ;;  %v6565_v34 = vmul.f32 -1.442695, %v8961_v10  ;;  %v984_v7 = vld [vmem:[#allocation2 + $0x30] sm:$0x1] }
 0x27d   : > { %8034 = vpow2.f32 %v6561_v17  ;;  %v680_v27 = vmul.f32 %v8894_v35, %v8808_v2  ;;  %v8991_v59 = vadd.f32 %v8901_v38, %v675_v18  ;;  %v6566_v58 = vmul.f32 -1.442695, %v8967_v25 }
 0x27e   : > { %8036 = vpow2.f32 %v6562_v26  ;;  %v681_v63 = vmul.f32 %v8894_v35, %v8815_v8  ;;  %v9000_v39 = vadd.f32 %v8901_v38, %v676_v33  ;;  %v6567_v42 = vmul.f32 -1.442695, %v8973_v19 }
 0x27f   : > { %8038 = vpow2.f32 %v6563_v28  ;;  %v682_v2 = vmul.f32 %v8894_v35, %v8822_v16  ;;  %v9006_v44 = vadd.f32 %v8901_v38, %v677_v21  ;;  %v6568_v51 = vmul.f32 -1.442695, %v8979_v53 }
 0x280   : > { %8040 = vpow2.f32 %v6564_v31  ;;  %v9010_v57 = vadd.f32 %v8901_v38, %v678_v30  ;;  %v6569_v8 = vmul.f32 -1.442695, %v8985_v56  ;;  %v661_v48 = vmul.f32 %v8894_v35, %v8675_v45  ;;  %v987_v30 = vld [vmem:[#allocation2 + $0x3c] sm:$0x1] }
 0x281   : > { %8042 = vpow2.f32 %v6565_v34  ;;  %v9016_v49 = vadd.f32 %v8901_v38, %v679_v32  ;;  %v6570_v16 = vmul.f32 -1.442695, %v8991_v59  ;;  %v9020_v54 = vadd.f32 %v8901_v38, %v680_v27 }
 0x282   : > { %8044 = vpow2.f32 %v6566_v58  ;;  %v6571_v6 = vmul.f32 -1.442695, %v9000_v39  ;;  %v657_v3 = vmul.f32 %v8894_v35, %v8647_v20  ;;  %v9026_v45 = vadd.f32 %v8901_v38, %v681_v63 }
 0x283   : > { %v8027_v4 = vpop.eup %8026  ;;  %8046 = vpow2.f32 %v6567_v42  ;;  %v9029_v29 = vadd.f32 %v8901_v38, %v682_v2  ;;  %v6572_v9 = vmul.f32 -1.442695, %v9006_v44  ;;  %v6573_v18 = vmul.f32 -1.442695, %v9010_v57  ;;  %v1037_v42 = vld [vmem:[#allocation2 + $0x44] sm:$0x1] }
 0x284   : > { %v8029_v13 = vpop.eup %8028  ;;  %8048 = vpow2.f32 %v6568_v51  ;;  %v658_v17 = vmul.f32 %v8894_v35, %v8654_v37  ;;  %v9036_v20 = vadd.f32 %v8901_v38, %v657_v3  ;;  %v6574_v26 = vmul.f32 -1.442695, %v9016_v49 }
 0x285   : > { %v8031_v15 = vpop.eup %8030  ;;  %8050 = vpow2.f32 %v6569_v8  ;;  %v985_v21 = vsel %vm8395_vm4, 0, %v984_v7  ;;  %v1035_v28 = vsel %vm8470_vm6, 0, %v1034_v23  ;;  %v6575_v32 = vmul.f32 -1.442695, %v9020_v54 }
 0x286   : > { %11125 = vst [vmem:[#allocation7_spill] sm:$0xff] %v9036_v20  ;;  %v8033_v33 = vpop.eup %8032  ;;  %8052 = vpow2.f32 %v6570_v16  ;;  %v651_v37 = vmul.f32 %v8894_v35, %v8613_v60  ;;  %v9047_v34 = vadd.f32 %v8901_v38, %v658_v17  ;;  %986 = vst [vmem:[#allocation2 + $0x30] sm:$0x1] %v985_v21  ;;  %v6576_v58 = vmul.f32 -1.442695, %v9026_v45 }
 0x287   : > { %v8035_v31 = vpop.eup %8034  ;;  %8054 = vpow2.f32 %v6571_v6  ;;  %1036 = vst [vmem:[#allocation2 + $0x38] sm:$0x1] %v1035_v28  ;;  %v659_v36 = vmul.f32 %v8894_v35, %v8661_v40  ;;  %v660_v63 = vmul.f32 %v8894_v35, %v8668_v43  ;;  %v6577_v60 = vmul.f32 -1.442695, %v9029_v29 }
 0x288   : > { %11126 = vst [vmem:[#allocation8_spill] sm:$0xff] %v9047_v34  ;;  %v8037_v27 = vpop.eup %8036  ;;  %8056 = vpow2.f32 %v6572_v9  ;;  %v652_v51 = vmul.f32 %v8894_v35, %v8617_v62  ;;  %v988_v8 = vsel %vm8395_vm4, 0, %v987_v30  ;;  %v829_v6 = vadd.f32 1.0, %v8027_v4  ;;  %v990_v9 = vld [vmem:[#allocation2 + $0x48] sm:$0x1] }
 0x289   : > { %v8039_v2 = vpop.eup %8038  ;;  %8058 = vpow2.f32 %v6573_v18  ;;  %v9060_v3 = vadd.f32 %v8901_v38, %v659_v36  ;;  %v9063_v40 = vadd.f32 %v8901_v38, %v660_v63  ;;  %989 = vst [vmem:[#allocation2 + $0x3c] sm:$0x1] %v988_v8  ;;  %v830_v7 = vadd.f32 1.0, %v8029_v13  ;;  %v1040_v18 = vld [vmem:[#allocation2 + $0x50] sm:$0x1] }
 0x28a   : > { %v8041_v16 = vpop.eup %8040  ;;  %8060 = vpow2.f32 %v6574_v26  ;;  %v1038_v23 = vsel %vm8470_vm6, 0, %v1037_v42  ;;  %v9068_v62 = vadd.f32 %v8901_v38, %v661_v48  ;;  %v831_v4 = vadd.f32 1.0, %v8031_v15  ;;  %v1043_v8 = vld [vmem:[#allocation2 + $0x5c] sm:$0x1] }
 0x28b   : > { %11127 = vst [vmem:[#allocation9_spill] sm:$0xff] %v9060_v3  ;;  %11128 = vst [vmem:[#allocation10_spill] sm:$0xff] %v9063_v40  ;;  %v8043_v43 = vpop.eup %8042  ;;  %8062 = vpow2.f32 %v6575_v32  ;;  %v832_v21 = vadd.f32 1.0, %v8033_v33  ;;  %v653_v28 = vmul.f32 %v8894_v35, %v8621_v0  ;;  %v991_v13 = vsel %vm8395_vm4, 0, %v990_v9 }
 0x28c   : > { %11129 = vst [vmem:[#allocation11_spill] sm:$0xff] %v9068_v62  ;;  %v8045_v17 = vpop.eup %8044  ;;  %8064 = vpow2.f32 %v6576_v58  ;;  %1039 = vst [vmem:[#allocation2 + $0x44] sm:$0x1] %v1038_v23  ;;  %v833_v32 = vadd.f32 1.0, %v8035_v31  ;;  %v654_v48 = vmul.f32 %v8894_v35, %v8625_v1  ;;  %v1041_v15 = vsel %vm8470_vm6, 0, %v1040_v18 }
 0x28d   : > { %v8047_v26 = vpop.eup %8046  ;;  %8066 = vpow2.f32 %v6577_v60  ;;  %992 = vst [vmem:[#allocation2 + $0x48] sm:$0x1] %v991_v13  ;;  %v834_v36 = vadd.f32 1.0, %v8037_v27  ;;  %v9079_v33 = vadd.f32 %v8901_v38, %v651_v37  ;;  %v9082_v0 = vadd.f32 %v8901_v38, %v652_v51  ;;  %1042 = vst [vmem:[#allocation2 + $0x50] sm:$0x1] %v1041_v15 }
 0x28e   : > { %v8049_v30 = vpop.eup %8048  ;;  %8068 = vrcp.f32 %v829_v6  ;;  %v835_v31 = vadd.f32 1.0, %v8039_v2  ;;  %v655_v1 = vmul.f32 %v8894_v35, %v8633_v22  ;;  %v656_v42 = vmul.f32 %v8894_v35, %v8639_v24  ;;  %v993_v60 = vld [vmem:[#allocation2 + $0x54] sm:$0x1]  ;;  %v996_v24 = vld [vmem:[#allocation2 + $0x60] sm:$0x1] }
 0x28f   : > { %v8051_v58 = vpop.eup %8050  ;;  %8070 = vrcp.f32 %v830_v7  ;;  %11130 = vst [vmem:[#allocation12_spill] sm:$0xff] %v9079_v33  ;;  %11131 = vst [vmem:[#allocation13_spill] sm:$0xff] %v9082_v0  ;;  %v836_v6 = vadd.f32 1.0, %v8041_v16  ;;  %v994_v37 = vsel %vm8395_vm4, 0, %v993_v60  ;;  %v1044_v51 = vsel %vm8470_vm6, 0, %v1043_v8 }
 0x290   : > { %v8053_v63 = vpop.eup %8052  ;;  %8072 = vrcp.f32 %v831_v4  ;;  %v837_v2 = vadd.f32 1.0, %v8043_v43  ;;  %v9093_v23 = vadd.f32 %v8901_v38, %v653_v28  ;;  %v9096_v22 = vadd.f32 %v8901_v38, %v654_v48  ;;  %995 = vst [vmem:[#allocation2 + $0x54] sm:$0x1] %v994_v37  ;;  %1045 = vst [vmem:[#allocation2 + $0x5c] sm:$0x1] %v1044_v51 }
 0x291   : > { %v8055_v27 = vpop.eup %8054  ;;  %8074 = vrcp.f32 %v832_v21  ;;  %v1046_v35 = vld [vmem:[#allocation2 + $0x68] sm:$0x1]  ;;  %v838_v9 = vadd.f32 1.0, %v8045_v17  ;;  %v997_v18 = vsel %vm8395_vm4, 0, %v996_v24  ;;  %v839_v21 = vadd.f32 1.0, %v8047_v26 }
 0x292   : > { %v8057_v7 = vpop.eup %8056  ;;  %8076 = vrcp.f32 %v833_v32  ;;  %11132 = vst [vmem:[#allocation14_spill] sm:$0xff] %v9093_v23  ;;  %11133 = vst [vmem:[#allocation15_spill] sm:$0xff] %v9096_v22  ;;  %v1047_v43 = vsel %vm8470_vm6, 0, %v1046_v35  ;;  %v9103_v28 = vadd.f32 %v8901_v38, %v655_v1  ;;  %v9106_v13 = vadd.f32 %v8901_v38, %v656_v42 }
 0x293   : > { %v8059_v16 = vpop.eup %8058  ;;  %8078 = vrcp.f32 %v834_v36  ;;  %998 = vst [vmem:[#allocation2 + $0x60] sm:$0x1] %v997_v18  ;;  %1048 = vst [vmem:[#allocation2 + $0x68] sm:$0x1] %v1047_v43  ;;  %v840_v17 = vadd.f32 1.0, %v8049_v30  ;;  %v841_v15 = vadd.f32 1.0, %v8051_v58 }
 0x294   : > { %v8061_v4 = vpop.eup %8060  ;;  %8080 = vrcp.f32 %v835_v31  ;;  %11134 = vst [vmem:[#allocation16_spill] sm:$0xff] %v9103_v28  ;;  %11135 = vst [vmem:[#allocation17_spill] sm:$0xff] %v9106_v13  ;;  %v9109_v36 = vmul.f32 -1.442695, %v9079_v33  ;;  %v9112_v26 = vmul.f32 -1.442695, %v9082_v0 }
 0x295   : > { %v8063_v32 = vpop.eup %8062  ;;  %8082 = vrcp.f32 %v836_v6  ;;  %v842_v1 = vadd.f32 1.0, %v8053_v63  ;;  %v9115_v38 = vmul.f32 -1.442695, %v9093_v23  ;;  %v9118_v42 = vmul.f32 -1.442695, %v9096_v22 }
 0x296   : > { %v8065_v48 = vpop.eup %8064  ;;  %8084 = vrcp.f32 %v837_v2  ;;  %v843_v60 = vadd.f32 1.0, %v8055_v27  ;;  %v9121_v58 = vmul.f32 -1.442695, %v9103_v28  ;;  %v9124_v8 = vmul.f32 -1.442695, %v9106_v13 }
 0x297   : > { %v8067_v31 = vpop.eup %8066  ;;  %8086 = vrcp.f32 %v838_v9  ;;  %v844_v37 = vadd.f32 1.0, %v8057_v7  ;;  %v9127_v63 = vmul.f32 -1.442695, %v9036_v20  ;;  %v845_v24 = vadd.f32 1.0, %v8059_v16  ;;  %v1547_v13 = vld [vmem:[#allocation2 + $0x84] sm:$0xf] }
 0x298   : > { %v8069_v30 = vpop.eup %8068  ;;  %8088 = vrcp.f32 %v839_v21  ;;  %v9131_v27 = vmul.f32 -1.442695, %v9047_v34  ;;  %v9134_v35 = vmul.f32 -1.442695, %v9060_v3  ;;  %v846_v18 = vadd.f32 1.0, %v8061_v4 }
 0x299   : > { %v8071_v6 = vpop.eup %8070  ;;  %8090 = vrcp.f32 %v840_v17  ;;  %v925_v51 = vmul.f32 %v8069_v30, %v8916_v46  ;;  %v847_v17 = vadd.f32 1.0, %v8063_v32  ;;  %v9141_v16 = vmul.f32 -1.442695, %v9063_v40  ;;  %v1582_v23 = vld [vmem:[#allocation2 + $0xc0] sm:$0xf] }
 0x29a   : > { %v8073_v2 = vpop.eup %8072  ;;  %8092 = vrcp.f32 %v841_v15  ;;  %v926_v7 = vmul.f32 %v8071_v6, %v8921_v50  ;;  %v848_v30 = vadd.f32 1.0, %v8065_v48  ;;  %v9145_v4 = vmul.f32 -1.442695, %v9068_v62  ;;  %v1565_v0 = vld [vmem:[#allocation2 + $0xa4] sm:$0x1] }
 0x29b   : > { %v8075_v9 = vpop.eup %8074  ;;  %8094 = vrcp.f32 %v842_v1  ;;  %v9136_v43 = vpack.c.bf16 %v925_v51, %v925_v51  ;;  %v849_v51 = vadd.f32 1.0, %v8067_v31  ;;  %v927_v32 = vmul.f32 %v8073_v2, %v8924_v52  ;;  %v1572_v33 = vld [vmem:[#allocation2 + $0xb0] sm:$0x1] }
 0x29c   : > { %v8077_v21 = vpop.eup %8076  ;;  %8096 = vrcp.f32 %v843_v60  ;;  %v928_v46 = vmul.f32 %v8075_v9, %v8927_v61  ;;  %v9151_v48 = vpack.c.bf16 %v926_v7, %v926_v7 }
 0x29d   : > { %v8079_v15 = vpop.eup %8078  ;;  %8098 = vrcp.f32 %v844_v37  ;;  %v929_v3 = vmul.f32 %v8077_v21, %v8932_v5  ;;  %v1249_v6 = vshrl.u32 %v9136_v43, 16 }
 0x29e   : > { %v8081_v1 = vpop.eup %8080  ;;  %8100 = vrcp.f32 %v845_v24  ;;  %v930_v50 = vmul.f32 %v8079_v15, %v8939_v55  ;;  %v9154_v9 = vpack.c.bf16 %v928_v46, %v928_v46 }
 0x29f   : > { %v8083_v60 = vpop.eup %8082  ;;  %8102 = vrcp.f32 %v846_v18  ;;  %v931_v61 = vmul.f32 %v8081_v1, %v8946_v12  ;;  %v9157_v52 = vpack.c.bf16 %v929_v3, %v929_v3  ;;  %v9164_v1 = vpack.c.bf16 %v927_v32, %v927_v32 }
 0x2a0   : > { %v8085_v37 = vpop.eup %8084  ;;  %8104 = vrcp.f32 %v847_v17  ;;  %v932_v5 = vmul.f32 %v8083_v60, %v8953_v14  ;;  %v7005_v31 = vpack.c.bf16 %v930_v50, %v930_v50  ;;  %v9168_v60 = vrot.slane %v1249_v6, 7 }
 0x2a1   : > { %v8087_v24 = vpop.eup %8086  ;;  %8106 = vrcp.f32 %v848_v30  ;;  %v933_v55 = vmul.f32 %v8085_v37, %v8961_v10  ;;  %v9159_v2 = vpack.c.bf16 %v931_v61, %v931_v61 }
 0x2a2   : > { %v8089_v12 = vpop.eup %8088  ;;  %8108 = vrcp.f32 %v849_v51  ;;  %v934_v18 = vmul.f32 %v8087_v24, %v8967_v25  ;;  %v7007_v7 = vpack.c.bf16 %v932_v5, %v932_v5  ;;  %v1292_v21 = vshrl.u32 %v7005_v31, 16 }
 0x2a3   : > { %v8091_v17 = vpop.eup %8090  ;;  %v935_v14 = vmul.f32 %v8089_v12, %v8973_v19  ;;  %v7008_v46 = vpack.c.bf16 %v933_v55, %v933_v55  ;;  %v1300_v50 = vshrl.u32 %v9159_v2, 16  ;;  %v1295_v55 = vshll.u32 %v7005_v31, 16 }
 0x2a4   : > { %v8093_v30 = vpop.eup %8092  ;;  %v936_v10 = vmul.f32 %v8091_v17, %v8979_v53  ;;  %v7009_v3 = vpack.c.bf16 %v934_v18, %v934_v18  ;;  %v9172_v37 = vrot.slane %v1292_v21, 7  ;;  %v1309_v19 = vshrl.u32 %v7007_v7, 16 }
 0x2a5   : > { %v8095_v51 = vpop.eup %8094  ;;  %v937_v32 = vmul.f32 %v8093_v30, %v8985_v56  ;;  %v9175_v24 = vpack.c.bf16 %v935_v14, %v935_v14  ;;  %v1312_v17 = vshll.u32 %v7007_v7, 16  ;;  %v1317_v25 = vshrl.u32 %v7008_v46, 16 }
 0x2a6   : > { %v8097_v5 = vpop.eup %8096  ;;  %v938_v6 = vmul.f32 %v8095_v51, %v8991_v59  ;;  %v9179_v18 = vrot.slane %v1309_v19, 7  ;;  %v7011_v15 = vpack.c.bf16 %v936_v10, %v936_v10  ;;  %v9182_v62 = vrot.slane %v1300_v50, 7 }
 0x2a7   : > { %v8099_v12 = vpop.eup %8098  ;;  %v939_v21 = vmul.f32 %v8097_v5, %v9000_v39  ;;  %v1326_v56 = vshrl.u32 %v7009_v3, 16  ;;  %v9187_v53 = vor.u32 %v1295_v55, %v9172_v37  ;;  %v7012_v19 = vpack.c.bf16 %v937_v32, %v937_v32 }
 0x2a8   : > { %11136 = vst [vmem:[#allocation18_spill] sm:$0xff] %v9179_v18  ;;  %v8101_v61 = vpop.eup %8100  ;;  %v940_v31 = vmul.f32 %v8099_v12, %v9006_v44  ;;  %v9190_v59 = vor.u32 %v1312_v17, %v9179_v18  ;;  %v9193_v39 = vrot.slane %v1317_v25, 7  ;;  %v7013_v44 = vpack.c.bf16 %v938_v6, %v938_v6 }
 0x2a9   : > { %v8103_v14 = vpop.eup %8102  ;;  %v941_v30 = vmul.f32 %v8101_v61, %v9010_v57  ;;  %11137 = vst [vmem:[#allocation19_spill] sm:$0xff] %v9187_v53  ;;  %v9195_v10 = vrot.slane %v1326_v56, 7  ;;  %v1320_v12 = vshll.u32 %v7008_v46, 16  ;;  %v1334_v57 = vshrl.u32 %v9175_v24, 16 }
 0x2aa   : > { %11138 = vst [vmem:[#allocation20_spill] sm:$0xff] %v9190_v59  ;;  %v8105_v7 = vpop.eup %8104  ;;  %v942_v51 = vmul.f32 %v8103_v14, %v9016_v49  ;;  %v7014_v17 = vpack.c.bf16 %v939_v21, %v939_v21  ;;  %v1329_v53 = vshll.u32 %v7009_v3, 16  ;;  %v7015_v25 = vpack.c.bf16 %v940_v31, %v940_v31 }
 0x2ab   : > { %11139 = vst [vmem:[#allocation21_spill] sm:$0xff] %v9195_v10  ;;  %v8107_v50 = vpop.eup %8106  ;;  %v943_v5 = vmul.f32 %v8105_v7, %v9020_v54  ;;  %v7016_v32 = vpack.c.bf16 %v941_v30, %v941_v30  ;;  %v9205_v54 = vor.u32 %v1320_v12, %v9193_v39  ;;  %v1343_v6 = vshrl.u32 %v7011_v15, 16 }
 0x2ac   : > { %v8109_v61 = vpop.eup %8108  ;;  %v944_v55 = vmul.f32 %v8107_v50, %v9026_v45  ;;  %v7017_v56 = vpack.c.bf16 %v942_v51, %v942_v51  ;;  %v9208_v46 = vor.u32 %v1329_v53, %v9195_v10  ;;  %v9214_v21 = vrot.slane %v1334_v57, 7 }
 0x2ad   : > { %v945_v49 = vmul.f32 %v8109_v61, %v9029_v29  ;;  %v9202_v14 = vpack.c.bf16 %v943_v5, %v943_v5  ;;  %11140 = vst [vmem:[#allocation22_spill] sm:$0xff] %v9205_v54  ;;  %v1351_v3 = vshrl.u32 %v7012_v19, 16  ;;  %v1345_v29 = vrot.slane %v1343_v6, 7 }
 0x2ae   : > { %v9210_v7 = vpack.c.bf16 %v944_v55, %v944_v55  ;;  %11141 = vst [vmem:[#allocation23_spill] sm:$0xff] %v9214_v21  ;;  %v1346_v31 = vshll.u32 %v7011_v15, 16  ;;  %v1354_v30 = vshll.u32 %v7012_v19, 16  ;;  %v1360_v51 = vshrl.u32 %v7013_v44, 16 }
 0x2af   : > { %v9212_v45 = vpack.c.bf16 %v945_v49, %v945_v49  ;;  %v9216_v50 = vrot.slane %v1351_v3, 7  ;;  %v1363_v5 = vshll.u32 %v7013_v44, 16  ;;  %v1368_v12 = vshrl.u32 %v7014_v17, 16 }
 0x2b0   : > { %v1371_v61 = vshll.u32 %v7014_v17, 16  ;;  %v9224_v55 = vor.u32 %v1346_v31, %v1345_v29  ;;  %v1349_v57 = vrot.slane %v1345_v29, 4  ;;  %v1362_v49 = vrot.slane %v1360_v51, 7 }
 0x2b1   : > { %v1377_v59 = vshrl.u32 %v7015_v25, 16  ;;  %v1356_v15 = vor.u32 %v1354_v30, %v9216_v50  ;;  %v1358_v19 = vrot.slane %v9216_v50, 4  ;;  %v9228_v6 = vrot.slane %v1368_v12, 7 }
 0x2b2   : > { %v1380_v44 = vshll.u32 %v7015_v25, 16  ;;  %v1365_v3 = vor.u32 %v1363_v5, %v1362_v49  ;;  %v1366_v17 = vrot.slane %v1362_v49, 4  ;;  %v1385_v34 = vshrl.u32 %v7016_v32, 16  ;;  %v1554_v25 = vld [vmem:[#allocation2 + $0x90] sm:$0xf] }
 0x2b3   : > { %v1379_v40 = vrot.slane %v1377_v59, 7  ;;  %v1357_v20 = vsel %vm9220_vm12, %v1349_v57, %v1356_v15  ;;  %v1373_v31 = vor.u32 %v1371_v61, %v9228_v6  ;;  %v1375_v29 = vrot.slane %v9228_v6, 4  ;;  %v1558_v15 = vld [vmem:[#allocation2 + $0x98] sm:$0x1] }
 0x2b4   : > { %v1388_v51 = vshll.u32 %v7016_v32, 16  ;;  %v1387_v22 = vrot.slane %v1385_v34, 7  ;;  %v1394_v50 = vshrl.u32 %v7017_v56, 16  ;;  %1557 = vst.msk [vmem:[#allocation2 + $0x94] sm:$0xf] %vm962_vm7, %v1357_v20  ;;  %v1397_v5 = vshll.u32 %v7017_v56, 16 }
 0x2b5   : > { %v1382_v28 = vor.u32 %v1380_v44, %v1379_v40  ;;  %v1383_v30 = vrot.slane %v1379_v40, 4  ;;  %v1374_v59 = vsel %vm9220_vm12, %v1366_v17, %v1373_v31  ;;  %v1402_v12 = vshrl.u32 %v9202_v14, 16  ;;  %v1561_v40 = vld [vmem:[#allocation2 + $0x9c] sm:$0xf]  ;;  %v1568_v56 = vld [vmem:[#allocation2 + $0xa8] sm:$0xf] }
 0x2b6   : > { %v1405_v57 = vshll.u32 %v9202_v14, 16  ;;  %v1390_v34 = vor.u32 %v1388_v51, %v1387_v22  ;;  %v1392_v61 = vrot.slane %v1387_v22, 4  ;;  %v1396_v49 = vrot.slane %v1394_v50, 7  ;;  %1564 = vst.msk [vmem:[#allocation2 + $0xa0] sm:$0xf] %vm962_vm7, %v1374_v59 }
 0x2b7   : > { %v1411_v20 = vshrl.u32 %v9210_v7, 16  ;;  %v1404_v6 = vrot.slane %v1402_v12, 7  ;;  %v1414_v44 = vshll.u32 %v9210_v7, 16  ;;  %v1419_v14 = vshrl.u32 %v9212_v45, 16  ;;  %v1575_v31 = vld [vmem:[#allocation2 + $0xb4] sm:$0xf] }
 0x2b8   : > { %v1422_v17 = vshll.u32 %v9212_v45, 16  ;;  %v1391_v51 = vsel %vm9220_vm12, %v1383_v30, %v1390_v34  ;;  %v1399_v22 = vor.u32 %v1397_v5, %v1396_v49  ;;  %v1400_v50 = vrot.slane %v1396_v49, 4  ;;  %v1579_v45 = vld [vmem:[#allocation2 + $0xbc] sm:$0x1]  ;;  %v1586_v12 = vld [vmem:[#allocation2 + $0xc8] sm:$0x1] }
 0x2b9   : > { %v1413_v41 = vrot.slane %v1411_v20, 7  ;;  %v1407_v59 = vor.u32 %v1405_v57, %v1404_v6  ;;  %v1409_v18 = vrot.slane %v1404_v6, 4  ;;  %v1421_v54 = vrot.slane %v1419_v14, 7  ;;  %1571 = vst.msk [vmem:[#allocation2 + $0xac] sm:$0xf] %vm962_vm7, %v1391_v51 }
 0x2ba   : > { %v1548_v7 = vsel %vm9241_vm13, %v9208_v46, %v1547_v13  ;;  %v1555_v30 = vsel %vm9241_vm13, %v9224_v55, %v1554_v25  ;;  %v1559_v5 = vsel %vm8395_vm4, %v1358_v19, %v1558_v15  ;;  %v1562_v13 = vsel %vm9241_vm13, %v1365_v3, %v1561_v40  ;;  %v1516_v3 = vld [vmem:[#allocation2 + $0x50] sm:$0x1]  ;;  %v1519_v20 = vld [vmem:[#allocation2 + $0x54] sm:$0xf]  ;;  %v999_v51 = vld [vmem:[#allocation2 + $0x6c] sm:$0x1] }
 0x2bb   : > { %v1416_v21 = vor.u32 %v1414_v44, %v1413_v41  ;;  %v1417_v10 = vrot.slane %v1413_v41, 4  ;;  %1549 = vst [vmem:[#allocation2 + $0x84] sm:$0xf] %v1548_v7  ;;  %v1408_v57 = vsel %vm9220_vm12, %v1400_v50, %v1407_v59  ;;  %v1424_v34 = vor.u32 %v1422_v17, %v1421_v54  ;;  %1556 = vst [vmem:[#allocation2 + $0x90] sm:$0xf] %v1555_v30 }
 0x2bc   : > { %v1426_v49 = vrot.slane %v1421_v54, 4  ;;  %1560 = vst [vmem:[#allocation2 + $0x98] sm:$0x1] %v1559_v5  ;;  %1563 = vst [vmem:[#allocation2 + $0x9c] sm:$0xf] %v1562_v13  ;;  %v1566_v41 = vsel %vm8395_vm4, %v1375_v29, %v1565_v0  ;;  %v1569_v46 = vsel %vm9241_vm13, %v1382_v28, %v1568_v56  ;;  %v1573_v55 = vsel %vm8395_vm4, %v1392_v61, %v1572_v33 }
 0x2bd   : > { %v1576_v19 = vsel %vm9241_vm13, %v1399_v22, %v1575_v31  ;;  %1578 = vst.msk [vmem:[#allocation2 + $0xb8] sm:$0xf] %vm962_vm7, %v1408_v57  ;;  %v1425_v54 = vsel %vm9220_vm12, %v1417_v10, %v1424_v34  ;;  %1570 = vst [vmem:[#allocation2 + $0xa8] sm:$0xf] %v1569_v46  ;;  %v1580_v0 = vsel %vm8395_vm4, %v1409_v18, %v1579_v45  ;;  %8110 = vpow2.f32 %v9109_v36  ;;  %v1523_v56 = vld [vmem:[#allocation2 + $0x5c] sm:$0x1] }
 0x2be   : > { %1574 = vst [vmem:[#allocation2 + $0xb0] sm:$0x1] %v1573_v55  ;;  %1577 = vst [vmem:[#allocation2 + $0xb4] sm:$0xf] %v1576_v19  ;;  %v1583_v28 = vsel %vm9241_vm13, %v1416_v21, %v1582_v23  ;;  %v1587_v33 = vsel %vm8395_vm4, %v1426_v49, %v1586_v12  ;;  %v11146_v10 = vshll.u32 %v9136_v43, 16  ;;  %v1256_v18 = vrot.slane %v9168_v60, 4 }
 0x2bf   : > { %1567 = vst [vmem:[#allocation2 + $0xa4] sm:$0x1] %v1566_v41  ;;  %1581 = vst [vmem:[#allocation2 + $0xbc] sm:$0x1] %v1580_v0  ;;  %v1258_v23 = vshrl.u32 %v9151_v48, 16  ;;  %8112 = vpow2.f32 %v9112_v26  ;;  %v1261_v21 = vshll.u32 %v9151_v48, 16 }
 0x2c0   : > { %1584 = vst [vmem:[#allocation2 + $0xc0] sm:$0xf] %v1583_v28  ;;  %1585 = vst.msk [vmem:[#allocation2 + $0xc4] sm:$0xf] %vm962_vm7, %v1425_v54  ;;  %v9287_v29 = vor.u32 %v11146_v10, %v9168_v60  ;;  %v1266_v25 = vshrl.u32 %v9164_v1, 16  ;;  %v1269_v40 = vshll.u32 %v9164_v1, 16  ;;  %8114 = vpow2.f32 %v9115_v38 }
 0x2c1   : > { %1588 = vst [vmem:[#allocation2 + $0xc8] sm:$0x1] %v1587_v33  ;;  %v1517_v36 = vsel %vm8395_vm4, %v1256_v18, %v1516_v3  ;;  %v1260_v43 = vrot.slane %v1258_v23, 7  ;;  %v1275_v61 = vshrl.u32 %v9154_v9, 16  ;;  %8116 = vpow2.f32 %v9118_v42  ;;  %v1526_v44 = vld [vmem:[#allocation2 + $0x60] sm:$0xf] }
 0x2c2   : > { %1518 = vst [vmem:[#allocation2 + $0x50] sm:$0x1] %v1517_v36  ;;  %v1268_v60 = vrot.slane %v1266_v25, 7  ;;  %v11147_v26 = vshrl.u32 %v9157_v52, 16  ;;  %v1286_v15 = vshll.u32 %v9157_v52, 16  ;;  %8118 = vpow2.f32 %v9121_v58  ;;  %v11150_v19 = vld [vmem:[#allocation21_spill] sm:$0xff] }
 0x2c3   : > { %v1263_v1 = vor.u32 %v1261_v21, %v1260_v43  ;;  %v1264_v38 = vrot.slane %v1260_v43, 4  ;;  %v1277_v6 = vrot.slane %v1275_v61, 7  ;;  %8120 = vpow2.f32 %v9124_v8  ;;  %v1530_v31 = vld [vmem:[#allocation2 + $0x68] sm:$0x1]  ;;  %v1049_v59 = vld [vmem:[#allocation2 + $0x74] sm:$0x1] }
 0x2c4   : > { %v1285_v48 = vrot.slane %v11147_v26, 7  ;;  %v1271_v14 = vor.u32 %v1269_v40, %v1268_v60  ;;  %v1273_v17 = vrot.slane %v1268_v60, 4  ;;  %8122 = vpow2.f32 %v9127_v63  ;;  %v1002_v5 = vld [vmem:[#allocation2 + $0x78] sm:$0x1]  ;;  %v1052_v57 = vld [vmem:[#allocation2 + $0x80] sm:$0x1] }
 0x2c5   : > { %v1520_v22 = vsel %vm9241_vm13, %v1263_v1, %v1519_v20  ;;  %v11148_v52 = vshll.u32 %v9154_v9, 16  ;;  %v1281_v50 = vrot.slane %v1277_v6, 4  ;;  %8124 = vpow2.f32 %v9131_v27  ;;  %v11151_v0 = vld [vmem:[#allocation23_spill] sm:$0xff]  ;;  %v1055_v3 = vld [vmem:[#allocation2 + $0x8c] sm:$0x1]  ;;  %v11152_v20 = vld [vmem:[#allocation22_spill] sm:$0xff] }
 0x2c6   : > { %v1288_v42 = vor.u32 %v1286_v15, %v1285_v48  ;;  %v1272_v8 = vsel %vm9220_vm12, %v1264_v38, %v1271_v14  ;;  %1521 = vst [vmem:[#allocation2 + $0x54] sm:$0xf] %v1520_v22  ;;  %v1524_v7 = vsel %vm8395_vm4, %v1273_v17, %v1523_v56  ;;  %v1290_v45 = vrot.slane %v1285_v48, 4  ;;  %v11153_v26 = vld [vmem:[#allocation18_spill] sm:$0xff] }
 0x2c7   : > { %v1280_v58 = vor.u32 %v11148_v52, %v1277_v6  ;;  %v1324_v63 = vrot.slane %v9193_v39, 4  ;;  %8126 = vpow2.f32 %v9134_v35  ;;  %1522 = vst.msk [vmem:[#allocation2 + $0x58] sm:$0xf] %vm962_vm7, %v1272_v8  ;;  %1525 = vst [vmem:[#allocation2 + $0x5c] sm:$0x1] %v1524_v7  ;;  %v1337_v12 = vshll.u32 %v9175_v24, 16  ;;  %v8111_v34 = vpop.eup %8110 }
 0x2c8   : > { %v1289_v9 = vsel %vm9220_vm12, %v1281_v50, %v1288_v42  ;;  %8128 = vpow2.f32 %v9141_v16  ;;  %v1531_v30 = vsel %vm8395_vm4, %v1290_v45, %v1530_v31  ;;  %v1000_v35 = vsel %vm8395_vm4, 0, %v999_v51 }
 0x2c9   : > { %v1527_v27 = vsel %vm9241_vm13, %v1280_v58, %v1526_v44  ;;  %1529 = vst.msk [vmem:[#allocation2 + $0x64] sm:$0xf] %vm962_vm7, %v1289_v9  ;;  %8130 = vpow2.f32 %v9145_v4  ;;  %v9330_v49 = vld [vmem:[#allocation2 + $0x50] sm:$0x1]  ;;  %1532 = vst [vmem:[#allocation2 + $0x68] sm:$0x1] %v1531_v30  ;;  %v8113_v55 = vpop.eup %8112  ;;  %v1339_v4 = vor.u32 %v1337_v12, %v11151_v0 }
 0x2ca   : > { %1528 = vst [vmem:[#allocation2 + $0x60] sm:$0xf] %v1527_v27  ;;  %v9332_v13 = vld [vmem:[#allocation2 + $0x50] sm:$0x1]  ;;  %1001 = vst [vmem:[#allocation2 + $0x6c] sm:$0x1] %v1000_v35  ;;  %v8115_v10 = vpop.eup %8114 }
 0x2cb   : > { %v1050_v16 = vsel %vm8470_vm6, 0, %v1049_v59  ;;  %v1298_v24 = vrot.slane %v9172_v37, 4  ;;  %v11149_v41 = vshll.u32 %v9159_v2, 16  ;;  %v1332_v54 = vrot.slane %v11150_v19, 4  ;;  %v8117_v21 = vpop.eup %8116 }
 0x2cc   : > { %v1341_v28 = vrot.slane %v11151_v0, 4  ;;  %v818_v33 = vadd.f32 1.0, %v8111_v34  ;;  %1051 = vst [vmem:[#allocation2 + $0x74] sm:$0x1] %v1050_v16  ;;  %v819_v18 = vadd.f32 1.0, %v8113_v55  ;;  %v1003_v37 = vsel %vm8395_vm4, 0, %v1002_v5  ;;  %v8119_v43 = vpop.eup %8118 }
 0x2cd   : > { %v1305_v46 = vor.u32 %v11149_v41, %v9182_v62  ;;  %v1053_v2 = vsel %vm8470_vm6, 0, %v1052_v57  ;;  %v820_v25 = vadd.f32 1.0, %v8115_v10  ;;  %v1812_v40 = vshll.u32 %v9330_v49, 16  ;;  %1004 = vst [vmem:[#allocation2 + $0x78] sm:$0x1] %v1003_v37  ;;  %v8121_v38 = vpop.eup %8120 }
 0x2ce   : > { %8132 = vrcp.f32 %v818_v33  ;;  %v3691_v36 = vshll.u32 %v9332_v13, 16  ;;  %1054 = vst [vmem:[#allocation2 + $0x80] sm:$0x1] %v1053_v2  ;;  %v821_v61 = vadd.f32 1.0, %v8117_v21  ;;  %v3521_v60 = vld [vmem:[#allocation2 + $0x54] sm:$0xf]  ;;  %v1340_v14 = vsel %vm9220_vm12, %v1332_v54, %v1339_v4  ;;  %v8123_v17 = vpop.eup %8122 }
 0x2cf   : > { %v1306_v23 = vsel %vm9220_vm12, %v1298_v24, %v1305_v46  ;;  %8134 = vrcp.f32 %v819_v18  ;;  %v11154_v48 = vrot.slane %v11153_v26, 4  ;;  %v1056_v1 = vsel %vm8470_vm6, 0, %v1055_v3  ;;  %v3522_v6 = vld [vmem:[#allocation2 + $0x58] sm:$0xf]  ;;  %v1603_v22 = vld [vmem:[#allocation2 + $0x54] sm:$0xf]  ;;  %v8125_v47 = vpop.eup %8124 }
 0x2d0   : > { %1536 = vst.msk [vmem:[#allocation2 + $0x70] sm:$0xf] %vm962_vm7, %v1306_v23  ;;  %8136 = vrcp.f32 %v820_v25  ;;  %v822_v56 = vadd.f32 1.0, %v8119_v43  ;;  %v3696_v44 = vshrl.u32 %v3521_v60, 16  ;;  %1057 = vst [vmem:[#allocation2 + $0x8c] sm:$0x1] %v1056_v1 }
 0x2d1   : > { %v1323_v15 = vsel %vm9220_vm12, %v11154_v48, %v11152_v20  ;;  %8138 = vrcp.f32 %v821_v61  ;;  %v823_v42 = vadd.f32 1.0, %v8121_v38  ;;  %v3699_v31 = vshll.u32 %v3521_v60, 16  ;;  %1550 = vst.msk [vmem:[#allocation2 + $0x88] sm:$0xf] %vm962_vm7, %v1340_v14  ;;  %v3523_v58 = vld [vmem:[#allocation2 + $0x5c] sm:$0x1]  ;;  %v8127_v8 = vpop.eup %8126 }
 0x2d2   : > { %1543 = vst.msk [vmem:[#allocation2 + $0x7c] sm:$0xf] %vm962_vm7, %v1323_v15  ;;  %v3705_v51 = vshll.u32 %v3522_v6, 16  ;;  %8140 = vrcp.f32 %v822_v56  ;;  %v824_v52 = vadd.f32 1.0, %v8123_v17  ;;  %v3698_v50 = vrot.slane %v3696_v44, 4  ;;  %v8129_v27 = vpop.eup %8128  ;;  %v11155_v2 = vld [vmem:[#allocation12_spill] sm:$0xff] }
 0x2d3   : > { %v3709_v59 = vshrl.u32 %v3522_v6, 16  ;;  %8142 = vrcp.f32 %v823_v42  ;;  %v825_v7 = vadd.f32 1.0, %v8125_v47  ;;  %v3701_v45 = vrot.slane %v3699_v31, 5  ;;  %v8131_v5 = vpop.eup %8130  ;;  %v1604_v13 = vld [vmem:[#allocation2 + $0x58] sm:$0xf]  ;;  %v11156_v43 = vld [vmem:[#allocation13_spill] sm:$0xff] }
 0x2d4   : > { %v9363_v9 = vrot.slane %v3705_v51, 5  ;;  %8144 = vrcp.f32 %v824_v52  ;;  %v826_v12 = vadd.f32 1.0, %v8127_v8  ;;  %v1307_v35 = vrot.slane %v9182_v62, 4  ;;  %v9373_v54 = vld [vmem:[#allocation2 + $0x5c] sm:$0x1]  ;;  %v11159_v17 = vld [vmem:[#allocation15_spill] sm:$0xff] }
 0x2d5   : > { %v3711_v30 = vrot.slane %v3709_v59, 4  ;;  %v827_v57 = vadd.f32 1.0, %v8129_v27  ;;  %v3702_v34 = vor.u32 %v3701_v45, %v3698_v50  ;;  %v3715_v49 = vshll.u32 %v3523_v58, 16  ;;  %v11158_v1 = vld [vmem:[#allocation14_spill] sm:$0xff]  ;;  %v11160_v50 = vld [vmem:[#allocation16_spill] sm:$0xff] }
 0x2d6   : > { %v1817_v16 = vshrl.u32 %v1603_v22, 16  ;;  %8146 = vrcp.f32 %v825_v7  ;;  %v828_v24 = vadd.f32 1.0, %v8131_v5  ;;  %v9366_v41 = vrot.slane %v1812_v40, 5 }
 0x2d7   : > { %v3712_v46 = vor.u32 %v3711_v30, %v9363_v9  ;;  %8148 = vrcp.f32 %v826_v12  ;;  %v9369_v55 = vrot.slane %v3691_v36, 5  ;;  %v9371_v19 = vrot.slane %v3702_v34, 4  ;;  %v11161_v12 = vld [vmem:[#allocation17_spill] sm:$0xff] }
 0x2d8   : > { %v1820_v4 = vshll.u32 %v1603_v22, 16  ;;  %v8133_v33 = vpop.eup %8132  ;;  %v9377_v10 = vrot.slane %v1817_v16, 4  ;;  %v1826_v18 = vshll.u32 %v1604_v13, 16  ;;  %v1830_v23 = vshrl.u32 %v1604_v13, 16 }
 0x2d9   : > { %v9375_v3 = vrot.slane %v3712_v46, 4  ;;  %v8135_v37 = vpop.eup %8134  ;;  %v914_v21 = vmul.f32 %v8133_v33, %v11155_v2  ;;  %8150 = vrcp.f32 %v827_v57  ;;  %v9380_v25 = vrot.slane %v3715_v49, 5  ;;  %v1481_v2 = vld [vmem:[#allocation2 + $0x14] sm:$0x1] }
 0x2da   : > { %v9382_v40 = vrot.slane %v1820_v4, 5  ;;  %v8137_v36 = vpop.eup %8136  ;;  %v915_v61 = vmul.f32 %v8135_v37, %v11156_v43  ;;  %8152 = vrcp.f32 %v828_v24  ;;  %v3708_v20 = vsel %vm8868_vm10, %v9371_v19, %v9363_v9  ;;  %v1477_v24 = vld [vmem:[#allocation2 + $0xc] sm:$0xf] }
 0x2db   : > { %v1836_v26 = vshll.u32 %v9373_v54, 16  ;;  %v8139_v48 = vpop.eup %8138  ;;  %v6989_v15 = vpack.c.bf16 %v914_v21, %v914_v21  ;;  %v916_v38 = vmul.f32 %v8137_v36, %v11158_v1  ;;  %v3718_v56 = vsel %vm8868_vm10, %v9375_v3, %v9380_v25 }
 0x2dc   : > { %v9395_v6 = vrot.slane %v1826_v18, 5  ;;  %v8141_v44 = vpop.eup %8140  ;;  %v6990_v14 = vpack.c.bf16 %v915_v61, %v915_v61  ;;  %v917_v42 = vmul.f32 %v8139_v48, %v11159_v17  ;;  %v1823_v31 = vor.u32 %v9382_v40, %v9377_v10 }
 0x2dd   : > { %v9400_v51 = vrot.slane %v1830_v23, 4  ;;  %v8143_v22 = vpop.eup %8142  ;;  %v1156_v47 = vshrl.u32 %v6989_v15, 16  ;;  %v1159_v52 = vshll.u32 %v6989_v15, 16  ;;  %v6991_v58 = vpack.c.bf16 %v916_v38, %v916_v38  ;;  %v1484_v15 = vld [vmem:[#allocation2 + $0x18] sm:$0xf] }
 0x2de   : > { %v918_v59 = vmul.f32 %v8141_v44, %v11160_v50  ;;  %v8145_v8 = vpop.eup %8144  ;;  %v1164_v7 = vshrl.u32 %v6990_v14, 16  ;;  %v1167_v45 = vshll.u32 %v6990_v14, 16  ;;  %v6992_v27 = vpack.c.bf16 %v917_v42, %v917_v42  ;;  %v1488_v42 = vld [vmem:[#allocation2 + $0x20] sm:$0x1] }
 0x2df   : > { %v919_v30 = vmul.f32 %v8143_v22, %v11161_v12  ;;  %v1158_v5 = vrot.slane %v1156_v47, 7  ;;  %v1173_v57 = vshrl.u32 %v6991_v58, 16  ;;  %v1176_v34 = vshll.u32 %v6991_v58, 16 }
 0x2e0   : > { %v6993_v49 = vpack.c.bf16 %v918_v59, %v918_v59  ;;  %v8147_v13 = vpop.eup %8146  ;;  %v1166_v16 = vrot.slane %v1164_v7, 7  ;;  %v1181_v46 = vshrl.u32 %v6992_v27, 16  ;;  %v1184_v4 = vshll.u32 %v6992_v27, 16  ;;  %v1491_v7 = vld [vmem:[#allocation2 + $0x24] sm:$0xf] }
 0x2e1   : > { %v6994_v33 = vpack.c.bf16 %v919_v30, %v919_v30  ;;  %v8149_v18 = vpop.eup %8148  ;;  %v1161_v23 = vor.u32 %v1159_v52, %v1158_v5  ;;  %v1162_v37 = vrot.slane %v1158_v5, 4  ;;  %v1175_v21 = vrot.slane %v1173_v57, 7 }
 0x2e2   : > { %v1190_v36 = vshrl.u32 %v6993_v49, 16  ;;  %v1169_v43 = vor.u32 %v1167_v45, %v1166_v16  ;;  %v1171_v61 = vrot.slane %v1166_v16, 4  ;;  %v1183_v48 = vrot.slane %v1181_v46, 7 }
 0x2e3   : > { %v1193_v1 = vshll.u32 %v6993_v49, 16  ;;  %v8151_v38 = vpop.eup %8150  ;;  %v1478_v44 = vsel %vm9241_vm13, %v1161_v23, %v1477_v24  ;;  %v1178_v14 = vor.u32 %v1176_v34, %v1175_v21  ;;  %v1179_v17 = vrot.slane %v1175_v21, 4  ;;  %v11162_v49 = vld [vmem:[#allocation7_spill] sm:$0xff]  ;;  %v1495_v21 = vld [vmem:[#allocation2 + $0x2c] sm:$0x1] }
 0x2e4   : > { %v1192_v22 = vrot.slane %v1190_v36, 7  ;;  %v8153_v47 = vpop.eup %8152  ;;  %v1170_v52 = vsel %vm9220_vm12, %v1162_v37, %v1169_v43  ;;  %1479 = vst [vmem:[#allocation2 + $0xc] sm:$0xf] %v1478_v44  ;;  %v1482_v58 = vsel %vm8395_vm4, %v1171_v61, %v1481_v2  ;;  %v1186_v50 = vor.u32 %v1184_v4, %v1183_v48  ;;  %v11163_v4 = vld [vmem:[#allocation8_spill] sm:$0xff]  ;;  %v11164_v37 = vld [vmem:[#allocation9_spill] sm:$0xff]  ;;  %v11165_v43 = vld [vmem:[#allocation10_spill] sm:$0xff] }
 0x2e5   : > { %v1188_v59 = vrot.slane %v1183_v48, 4  ;;  %1480 = vst.msk [vmem:[#allocation2 + $0x10] sm:$0xf] %vm962_vm7, %v1170_v52  ;;  %1483 = vst [vmem:[#allocation2 + $0x14] sm:$0x1] %v1482_v58  ;;  %v1485_v45 = vsel %vm9241_vm13, %v1178_v14, %v1484_v15  ;;  %v1198_v30 = vshrl.u32 %v6994_v33, 16  ;;  %v920_v16 = vmul.f32 %v8145_v8, %v11162_v49 }
 0x2e6   : > { %v1195_v27 = vor.u32 %v1193_v1, %v1192_v22  ;;  %v1196_v12 = vrot.slane %v1192_v22, 4  ;;  %v1187_v5 = vsel %vm9220_vm12, %v1179_v17, %v1186_v50  ;;  %1486 = vst [vmem:[#allocation2 + $0x18] sm:$0xf] %v1485_v45  ;;  %v1201_v34 = vshll.u32 %v6994_v33, 16  ;;  %v11166_v33 = vld [vmem:[#allocation11_spill] sm:$0xff] }
 0x2e7   : > { %v1489_v57 = vsel %vm8395_vm4, %v1188_v59, %v1488_v42  ;;  %1487 = vst.msk [vmem:[#allocation2 + $0x1c] sm:$0xf] %vm962_vm7, %v1187_v5  ;;  %v1200_v24 = vrot.slane %v1198_v30, 7  ;;  %v921_v23 = vmul.f32 %v8147_v13, %v11163_v4  ;;  %v922_v2 = vmul.f32 %v8149_v18, %v11164_v37 }
 0x2e8   : > { %1490 = vst [vmem:[#allocation2 + $0x20] sm:$0x1] %v1489_v57  ;;  %v1492_v46 = vsel %vm9241_vm13, %v1195_v27, %v1491_v7  ;;  %v9423_v36 = vpack.c.bf16 %v920_v16, %v920_v16  ;;  %v923_v61 = vmul.f32 %v8151_v38, %v11165_v43  ;;  %v924_v48 = vmul.f32 %v8153_v47, %v11166_v33  ;;  %v1533_v38 = vld [vmem:[#allocation2 + $0x6c] sm:$0xf] }
 0x2e9   : > { %1493 = vst [vmem:[#allocation2 + $0x24] sm:$0xf] %v1492_v46  ;;  %v9437_v8 = vcombine.low %v3708_v20, %v3718_v56  ;;  %v1203_v13 = vor.u32 %v1201_v34, %v1200_v24  ;;  %v1205_v18 = vrot.slane %v1200_v24, 4  ;;  %v9439_v15 = vpack.c.bf16 %v921_v23, %v921_v23 }
 0x2ea   : > { %v1833_v1 = vor.u32 %v9400_v51, %v9395_v6  ;;  %v1207_v44 = vshrl.u32 %v9423_v36, 16  ;;  %v9444_v14 = vpack.c.bf16 %v922_v2, %v922_v2  ;;  %v9449_v3 = vrot.slane %v1823_v31, 4 }
 0x2eb   : > { %v9453_v9 = vrot.slane %v1836_v26, 5  ;;  %v1591_v19 = vld [vmem:[#allocation2 + $0xc] sm:$0xf]  ;;  %v1204_v20 = vsel %vm9220_vm12, %v1196_v12, %v1203_v13  ;;  %v1496_v56 = vsel %vm8395_vm4, %v1205_v18, %v1495_v21  ;;  %v1210_v17 = vshll.u32 %v9423_v36, 16  ;;  %v11167_v26 = vld [vmem:[#allocation19_spill] sm:$0xff] }
 0x2ec   : > { %v3503_v25 = vld [vmem:[#allocation2 + $0xc] sm:$0xf]  ;;  %v9460_v42 = vpack.c.bf16 %v923_v61, %v923_v61  ;;  %v1592_v22 = vld [vmem:[#allocation2 + $0x10] sm:$0xf]  ;;  %v1630_v10 = vld [vmem:[#allocation2 + $0x14] sm:$0x1]  ;;  %v9463_v54 = vpack.c.bf16 %v924_v48, %v924_v48  ;;  %v1534_v47 = vsel %vm9241_vm13, %v11167_v26, %v1533_v38 }
 0x2ed   : > { %v1673_v40 = vshrl.u32 %v1591_v19, 16  ;;  %v1676_v31 = vshll.u32 %v1591_v19, 16  ;;  %1494 = vst.msk [vmem:[#allocation2 + $0x28] sm:$0xf] %vm962_vm7, %v1204_v20  ;;  %1497 = vst [vmem:[#allocation2 + $0x2c] sm:$0x1] %v1496_v56 }
 0x2ee   : > { %v1682_v52 = vshll.u32 %v1592_v22, 16  ;;  %v1686_v58 = vshrl.u32 %v1592_v22, 16  ;;  %v9468_v50 = vld [vmem:[#allocation2 + $0x10] sm:$0xf]  ;;  %v1215_v59 = vshrl.u32 %v9439_v15, 16  ;;  %v1218_v7 = vshll.u32 %v9439_v15, 16 }
 0x2ef   : > { %1535 = vst [vmem:[#allocation2 + $0x6c] sm:$0xf] %v1534_v47  ;;  %v1675_v45 = vrot.slane %v1673_v40, 4  ;;  %v1678_v27 = vrot.slane %v1676_v31, 5  ;;  %v9472_v12 = vld [vmem:[#allocation2 + $0x14] sm:$0x1] }
 0x2f0   : > { %v3552_v30 = vshrl.u32 %v3503_v25, 16  ;;  %v3555_v5 = vshll.u32 %v3503_v25, 16  ;;  %v1684_v57 = vrot.slane %v1682_v52, 5  ;;  %v1688_v34 = vrot.slane %v1686_v58, 4  ;;  %v1593_v24 = vld [vmem:[#allocation2 + $0x18] sm:$0xf] }
 0x2f1   : > { %v1692_v49 = vshll.u32 %v1630_v10, 16  ;;  %v3561_v16 = vshll.u32 %v9468_v50, 16  ;;  %v1679_v46 = vor.u32 %v1678_v27, %v1675_v45  ;;  %v3565_v37 = vshrl.u32 %v9468_v50, 16  ;;  %v1594_v2 = vld [vmem:[#allocation2 + $0x1c] sm:$0xf] }
 0x2f2   : > { %v3554_v4 = vrot.slane %v3552_v30, 4  ;;  %v3557_v23 = vrot.slane %v3555_v5, 5  ;;  %v1689_v21 = vor.u32 %v1688_v34, %v1684_v57  ;;  %v3571_v61 = vshll.u32 %v9472_v12, 16  ;;  %v1631_v31 = vld [vmem:[#allocation2 + $0x20] sm:$0x1] }
 0x2f3   : > { %v3563_v43 = vrot.slane %v3561_v16, 5  ;;  %v1697_v33 = vshrl.u32 %v1593_v24, 16  ;;  %v1680_v48 = vrot.slane %v1679_v46, 4  ;;  %v3567_v18 = vrot.slane %v3565_v37, 4  ;;  %v3506_v47 = vld [vmem:[#allocation2 + $0x18] sm:$0xf] }
 0x2f4   : > { %v3558_v13 = vor.u32 %v3557_v23, %v3554_v4  ;;  %v1700_v38 = vshll.u32 %v1593_v24, 16  ;;  %v1690_v19 = vrot.slane %v1689_v21, 4  ;;  %v1694_v25 = vrot.slane %v1692_v49, 5  ;;  %v9481_v30 = vld [vmem:[#allocation2 + $0x1c] sm:$0xf] }
 0x2f5   : > { %v1699_v20 = vrot.slane %v1697_v33, 4  ;;  %v1706_v56 = vshll.u32 %v1594_v2, 16  ;;  %v1685_v22 = vsel %vm8868_vm10, %v1680_v48, %v1684_v57  ;;  %v3568_v40 = vor.u32 %v3567_v18, %v3563_v43  ;;  %v7962_v57 = vld [vmem:[%s11090_s4 + $0x8] sm:$0xff]   ;;  %v9488_v4 = vld [vmem:[#allocation2 + $0x20] sm:$0x1] }
 0x2f6   : > { %v3559_v10 = vrot.slane %v3558_v13, 4  ;;  %v1702_v26 = vrot.slane %v1700_v38, 5  ;;  %v1695_v52 = vsel %vm8868_vm10, %v1690_v19, %v1694_v25  ;;  %v3573_v58 = vrot.slane %v3571_v61, 5  ;;  %v8154_v13 = vld [vmem:[%s11090_s4] sm:$0xff]  }
 0x2f7   : > { %v1708_v45 = vrot.slane %v1706_v56, 5  ;;  %v1710_v27 = vshrl.u32 %v1594_v2, 16  ;;  %v6611_v5 = vcombine.low %v1685_v22, %v1695_v52  ;;  %v3569_v49 = vrot.slane %v3568_v40, 4  ;;  %v3509_v19 = vld [vmem:[#allocation2 + $0x24] sm:$0xf]  ;;  %v7965_v40 = vld [vmem:[%s11090_s4 + $0x10] sm:$0xff]  }
 0x2f8   : > { %v3564_v34 = vsel %vm8868_vm10, %v3559_v10, %v3563_v43  ;;  %v1703_v16 = vor.u32 %v1702_v26, %v1699_v20  ;;  %v1716_v46 = vshll.u32 %v1631_v31, 16  ;;  %v3576_v23 = vshrl.u32 %v3506_v47, 16  ;;  %v9499_v22 = vld [vmem:[#allocation2 + $0x28] sm:$0xf] }
 0x2f9   : > { %v1712_v24 = vrot.slane %v1710_v27, 4  ;;  %v3579_v37 = vshll.u32 %v3506_v47, 16  ;;  %7267 = vmatmul.mubr.msk.bf16.vlgmr.msra.gmra.mrb[4].mxu1 %vm283_vm3, %v6611_v5  ;;  %v3574_v2 = vsel %vm8868_vm10, %v3569_v49, %v3573_v58  ;;  %v3585_v43 = vshll.u32 %v9481_v30, 16  ;;  %v9511_v58 = vld [vmem:[#allocation2 + $0x2c] sm:$0x1] }
 0x2fa   : > { %v1704_v21 = vrot.slane %v1703_v16, 4  ;;  %v3589_v61 = vshrl.u32 %v9481_v30, 16  ;;  %v6770_v33 = vcombine.low %v3564_v34, %v3574_v2  ;;  %7299 = vmatpush3.bf16.msra.mxu1 %v8154_v13  ;;  %v3578_v18 = vrot.slane %v3576_v23, 4  ;;  %v1595_v27 = vld [vmem:[#allocation2 + $0x24] sm:$0xf] }
 0x2fb   : > { %v1713_v48 = vor.u32 %v1712_v24, %v1708_v45  ;;  %v3581_v38 = vrot.slane %v3579_v37, 5  ;;  %v3587_v25 = vrot.slane %v3585_v43, 5  ;;  %v3595_v56 = vshll.u32 %v9488_v4, 16  ;;  %7300 = vmatprep.subr.bf16.mxu1 %v7962_v57  ;;  %v1596_v24 = vld [vmem:[#allocation2 + $0x28] sm:$0xf] }
 0x2fc   : > { %v3591_v20 = vrot.slane %v3589_v61, 4  ;;  %v1829_v10 = vsel %vm8868_vm10, %v9449_v3, %v9395_v6  ;;  %7426 = vmatprep.mubr.msk.bf16.mxu0 %vm283_vm3, %v6770_v33  ;;  %v1709_v31 = vsel %vm8868_vm10, %v1704_v21, %v1708_v45  ;;  %v1718_v47 = vrot.slane %v1716_v46, 5  ;;  %v1632_v33 = vld [vmem:[#allocation2 + $0x2c] sm:$0x1] }
 0x2fd   : > { %v1714_v26 = vrot.slane %v1713_v48, 4  ;;  %v3582_v52 = vor.u32 %v3581_v38, %v3578_v18  ;;  %v3597_v34 = vrot.slane %v3595_v56, 5  ;;  %v3600_v49 = vshrl.u32 %v3509_v19, 16  ;;  %v7967_v48 = vld [vmem:[%s11090_s4 + $0x18] sm:$0xff]  }
 0x2fe   : > { %v3592_v5 = vor.u32 %v3591_v20, %v3587_v25  ;;  %v3603_v16 = vshll.u32 %v3509_v19, 16  ;;  %v3609_v2 = vshll.u32 %v9499_v22, 16  ;;  %v3613_v43 = vshrl.u32 %v9499_v22, 16  ;;  %7301 = vmatpush3.bf16.msra.mxu1 %v7962_v57  ;;  %v7961_v57 = vld [vmem:[%s11090_s4 + $0xa8] sm:$0xff]  }
 0x2ff   : > { %v1719_v23 = vsel %vm8868_vm10, %v1714_v26, %v1718_v47  ;;  %v3583_v37 = vrot.slane %v3582_v52, 4  ;;  %v3602_v21 = vrot.slane %v3600_v49, 4  ;;  %7302 = vmatprep.subr.bf16.mxu1 %v7965_v40  ;;  %v3619_v19 = vshll.u32 %v9511_v58, 16 }
 0x300   : > { %v6612_v45 = vcombine.low %v1709_v31, %v1719_v23  ;;  %v3593_v46 = vrot.slane %v3592_v5, 4  ;;  %v3605_v61 = vrot.slane %v3603_v16, 5  ;;  %v3611_v18 = vrot.slane %v3609_v2, 5 }
 0x301   : > { %v3588_v13 = vsel %vm8868_vm10, %v3583_v37, %v3587_v25  ;;  %v3615_v38 = vrot.slane %v3613_v43, 4  ;;  %v1721_v31 = vshrl.u32 %v1595_v27, 16  ;;  %v1724_v26 = vshll.u32 %v1595_v27, 16  ;;  %v7969_v25 = vld [vmem:[%s11090_s4 + $0x40] sm:$0xff]  }
 0x302   : > { %7270 = vmatprep.mubr.msk.bf16.mxu1 %vm283_vm3, %v6612_v45  ;;  %v3598_v20 = vsel %vm8868_vm10, %v3593_v46, %v3597_v34  ;;  %v3606_v56 = vor.u32 %v3605_v61, %v3602_v21  ;;  %v3621_v5 = vrot.slane %v3619_v19, 5  ;;  %v1730_v49 = vshll.u32 %v1596_v24, 16  ;;  %7303 = vmatpush3.bf16.msra.mxu1 %v7965_v40  ;;  %v8155_v46 = vld [vmem:[%s11090_s4 + $0xa0] sm:$0xff]  }
 0x303   : > { %v6771_v47 = vcombine.low %v3588_v13, %v3598_v20  ;;  %v3616_v52 = vor.u32 %v3615_v38, %v3611_v18  ;;  %v1723_v23 = vrot.slane %v1721_v31, 4  ;;  %v1726_v37 = vrot.slane %v1724_v26, 5  ;;  %7304 = vmatprep.subr.bf16.mxu1 %v7967_v48  ;;  %v1498_v13 = vld [vmem:[#allocation2 + $0x30] sm:$0xf]  ;;  %v1502_v26 = vld [vmem:[#allocation2 + $0x38] sm:$0x1] }
 0x304   : > { %v3607_v16 = vrot.slane %v3606_v56, 4  ;;  %v1734_v2 = vshrl.u32 %v1596_v24, 16  ;;  %v1732_v43 = vrot.slane %v1730_v49, 5  ;;  %v1740_v45 = vshll.u32 %v1632_v33, 16  ;;  %v7963_v20 = vld [vmem:[%s11090_s4 + $0xb0] sm:$0xff]  }
 0x305   : > { %7427 = vmatmul.mubr.msk.bf16.vlgmr.msra.gmra.mrb[4].mxu0 %vm283_vm3, %v6771_v47  ;;  %v3617_v34 = vrot.slane %v3616_v52, 4  ;;  %v1209_v27 = vrot.slane %v1207_v44, 7  ;;  %v1727_v21 = vor.u32 %v1726_v37, %v1723_v23  ;;  %v1217_v24 = vrot.slane %v1215_v59, 7  ;;  %v7964_v37 = vld [vmem:[%s11090_s4 + $0xb8] sm:$0xff]  }
 0x306   : > { %7459 = vmatpush3.bf16.msra.mxu0 %v8155_v46  ;;  %v3612_v40 = vsel %vm8868_vm10, %v3607_v16, %v3611_v18  ;;  %v1736_v61 = vrot.slane %v1734_v2, 4  ;;  %v1742_v38 = vrot.slane %v1740_v45, 5  ;;  %7305 = vmatpush3.bf16.msra.mxu1 %v7967_v48  ;;  %v1224_v36 = vshrl.u32 %v9444_v14, 16  ;;  %v9569_v2 = vld [vmem:[#allocation2 + $0x60] sm:$0xf] }
 0x307   : > { %v3622_v33 = vsel %vm8868_vm10, %v3617_v34, %v3621_v5  ;;  %7460 = vmatprep.subr.bf16.mxu0 %v7961_v57  ;;  %v1212_v44 = vor.u32 %v1210_v17, %v1209_v27  ;;  %v1213_v19 = vrot.slane %v1209_v27, 4  ;;  %v1728_v56 = vrot.slane %v1727_v21, 4  ;;  %7338 = vmatprep.subr.bf16.mxu1 %v7969_v25  ;;  %v1505_v25 = vld [vmem:[#allocation2 + $0x3c] sm:$0xf] }
 0x308   : > { %v6772_v18 = vcombine.low %v3612_v40, %v3622_v33  ;;  %v1737_v31 = vor.u32 %v1736_v61, %v1732_v43  ;;  %v1220_v59 = vor.u32 %v1218_v7, %v1217_v24  ;;  %v1222_v47 = vrot.slane %v1217_v24, 4  ;;  %v1512_v61 = vld [vmem:[#allocation2 + $0x48] sm:$0xf]  ;;  %v9580_v24 = vld [vmem:[%s11090_s4 + $0xc0] sm:$0xff]  }
 0x309   : > { %v1499_v52 = vsel %vm9241_vm13, %v1212_v44, %v1498_v13  ;;  %v1227_v17 = vshll.u32 %v9444_v14, 16  ;;  %v1733_v48 = vsel %vm8868_vm10, %v1728_v56, %v1732_v43  ;;  %v1232_v7 = vshrl.u32 %v9460_v42, 16  ;;  %v1509_v43 = vld [vmem:[#allocation2 + $0x44] sm:$0x1] }
 0x30a   : > { %7430 = vmatprep.mubr.msk.bf16.mxu0 %vm283_vm3, %v6772_v18  ;;  %v1738_v5 = vrot.slane %v1737_v31, 4  ;;  %v1221_v15 = vsel %vm9220_vm12, %v1213_v19, %v1220_v59  ;;  %1500 = vst [vmem:[#allocation2 + $0x30] sm:$0xf] %v1499_v52  ;;  %7461 = vmatpush3.bf16.msra.mxu0 %v7961_v57  ;;  %v1503_v49 = vsel %vm8395_vm4, %v1222_v47, %v1502_v26  ;;  %v1226_v14 = vrot.slane %v1224_v36, 7  ;;  %v1544_v31 = vld [vmem:[#allocation2 + $0x80] sm:$0x1] }
 0x30b   : > { %1501 = vst.msk [vmem:[#allocation2 + $0x34] sm:$0xf] %vm962_vm7, %v1221_v15  ;;  %v1235_v16 = vshll.u32 %v9460_v42, 16  ;;  %7462 = vmatprep.subr.bf16.mxu0 %v7963_v20  ;;  %v1241_v23 = vshrl.u32 %v9463_v54, 16  ;;  %1504 = vst [vmem:[#allocation2 + $0x38] sm:$0x1] %v1503_v49  ;;  %v1545_v62 = vsel %vm8395_vm4, %v1324_v63, %v1544_v31 }
 0x30c   : > { %v1743_v57 = vsel %vm8868_vm10, %v1738_v5, %v1742_v38  ;;  %v1234_v34 = vrot.slane %v1232_v7, 7  ;;  %v1244_v45 = vshll.u32 %v9463_v54, 16  ;;  %v1834_v42 = vrot.slane %v1833_v1, 4  ;;  %v1537_v1 = vld [vmem:[#allocation2 + $0x74] sm:$0x1] }
 0x30d   : > { %v6613_v27 = vcombine.low %v1733_v48, %v1743_v57  ;;  %v1229_v46 = vor.u32 %v1227_v17, %v1226_v14  ;;  %v1230_v40 = vrot.slane %v1226_v14, 4  ;;  %v1243_v21 = vrot.slane %v1241_v23, 7  ;;  %v1540_v38 = vld [vmem:[#allocation2 + $0x78] sm:$0xf]  ;;  %v9621_v23 = vld [vmem:[#allocation2 + $0x64] sm:$0xf] }
 0x30e   : > { %v1237_v13 = vor.u32 %v1235_v16, %v1234_v34  ;;  %v1239_v33 = vrot.slane %v1234_v34, 4  ;;  %7463 = vmatpush3.bf16.msra.mxu0 %v7963_v20  ;;  %v1839_v54 = vsel %vm8868_vm10, %v1834_v42, %v9453_v9  ;;  %v1841_v51 = vshrl.u32 %v9569_v2, 16  ;;  %v1551_v20 = vld [vmem:[#allocation2 + $0x8c] sm:$0x1]  ;;  %1546 = vst [vmem:[#allocation2 + $0x80] sm:$0x1] %v1545_v62 }
 0x30f   : > { %v4329_v44 = vrot.slane %v9481_v30, 5  ;;  %7271 = vmatmul.mubr.msk.bf16.gmra.mrb[8].mxu1 %vm283_vm3, %v6613_v27  ;;  %v1506_v19 = vsel %vm9241_vm13, %v1229_v46, %v1505_v25  ;;  %v1246_v18 = vor.u32 %v1244_v45, %v1243_v21  ;;  %v1247_v56 = vrot.slane %v1243_v21, 4  ;;  %7464 = vmatprep.subr.bf16.mxu0 %v7964_v37 }
 0x310   : > { %v4332_v59 = vrot.slane %v9488_v4, 5  ;;  %v1238_v9 = vsel %vm9220_vm12, %v1230_v40, %v1237_v13  ;;  %1507 = vst [vmem:[#allocation2 + $0x3c] sm:$0xf] %v1506_v19  ;;  %v1510_v26 = vsel %vm8395_vm4, %v1239_v33, %v1509_v43  ;;  %v9600_v47 = vcombine.low %v1829_v10, %v1839_v54 }
 0x311   : > { %v1597_v52 = vld [vmem:[#allocation2 + $0x30] sm:$0xf]  ;;  %1508 = vst.msk [vmem:[#allocation2 + $0x40] sm:$0xf] %vm962_vm7, %v1238_v9  ;;  %1511 = vst [vmem:[#allocation2 + $0x44] sm:$0x1] %v1510_v26  ;;  %v1255_v17 = vsel %vm9220_vm12, %v1247_v56, %v9287_v29  ;;  %v1513_v48 = vsel %vm9241_vm13, %v1246_v18, %v1512_v61  ;;  %v1538_v53 = vsel %vm8395_vm4, %v1307_v35, %v1537_v1 }
 0x312   : > { %v3512_v36 = vld [vmem:[#allocation2 + $0x30] sm:$0xf]  ;;  %v9608_v5 = vrot.slane %v1841_v51, 4  ;;  %v1844_v15 = vshll.u32 %v9569_v2, 16  ;;  %v1598_v7 = vld [vmem:[#allocation2 + $0x34] sm:$0xf]  ;;  %7465 = vmatpush3.bf16.msra.mxu0 %v7964_v37  ;;  %v1552_v32 = vsel %vm8395_vm4, %v1341_v28, %v1551_v20 }
 0x313   : > { %v1745_v6 = vshrl.u32 %v1597_v52, 16  ;;  %v1748_v3 = vshll.u32 %v1597_v52, 16  ;;  %v9611_v10 = vld [vmem:[#allocation2 + $0x34] sm:$0xf]  ;;  %1514 = vst [vmem:[#allocation2 + $0x48] sm:$0xf] %v1513_v48  ;;  %7498 = vmatprep.subr.bf16.mxu0 %v9580_v24 }
 0x314   : > { %1515 = vst.msk [vmem:[#allocation2 + $0x4c] sm:$0xf] %vm962_vm7, %v1255_v17  ;;  %v11168_v29 = vld [vmem:[#allocation20_spill] sm:$0xff]  ;;  %v1633_v49 = vld [vmem:[#allocation2 + $0x38] sm:$0x1]  ;;  %v1754_v14 = vshll.u32 %v1598_v7, 16 }
 0x315   : > { %v1541_v25 = vsel %vm9241_vm13, %v11168_v29, %v1540_v38  ;;  %v1758_v16 = vshrl.u32 %v1598_v7, 16  ;;  %1539 = vst [vmem:[#allocation2 + $0x74] sm:$0x1] %v1538_v53  ;;  %v1747_v35 = vrot.slane %v1745_v6, 4  ;;  %v1750_v37 = vrot.slane %v1748_v3, 5 }
 0x316   : > { %1542 = vst [vmem:[#allocation2 + $0x78] sm:$0xf] %v1541_v25  ;;  %v1764_v57 = vshll.u32 %v1633_v49, 16  ;;  %v9632_v34 = vld [vmem:[#allocation2 + $0x38] sm:$0x1]  ;;  %v3624_v43 = vshrl.u32 %v3512_v36, 16 }
 0x317   : > { %1553 = vst [vmem:[#allocation2 + $0x8c] sm:$0x1] %v1552_v32  ;;  %v1756_v45 = vrot.slane %v1754_v14, 5  ;;  %v1760_v42 = vrot.slane %v1758_v16, 4  ;;  %v3627_v27 = vshll.u32 %v3512_v36, 16  ;;  %v3633_v39 = vshll.u32 %v9611_v10, 16 }
 0x318   : > { %v1751_v46 = vor.u32 %v1750_v37, %v1747_v35  ;;  %v3626_v63 = vrot.slane %v3624_v43, 4  ;;  %v3637_v0 = vshrl.u32 %v9611_v10, 16  ;;  %v1850_v11 = vshll.u32 %v9621_v23, 16  ;;  %v3515_v13 = vld [vmem:[#allocation2 + $0x3c] sm:$0xf] }
 0x319   : > { %v1761_v28 = vor.u32 %v1760_v42, %v1756_v45  ;;  %v3629_v40 = vrot.slane %v3627_v27, 5  ;;  %v3635_v21 = vrot.slane %v3633_v39, 5  ;;  %v3643_v61 = vshll.u32 %v9632_v34, 16  ;;  %v9638_v1 = vld [vmem:[#allocation2 + $0x40] sm:$0xf] }
 0x31a   : > { %v1752_v33 = vrot.slane %v1751_v46, 4  ;;  %v1766_v54 = vrot.slane %v1764_v57, 5  ;;  %v3639_v51 = vrot.slane %v3637_v0, 4  ;;  %v1854_v38 = vshrl.u32 %v9621_v23, 16  ;;  %v9643_v26 = vld [vmem:[#allocation2 + $0x44] sm:$0x1] }
 0x31b   : > { %v1762_v19 = vrot.slane %v1761_v28, 4  ;;  %v3630_v18 = vor.u32 %v3629_v40, %v3626_v63  ;;  %v3645_v56 = vrot.slane %v3643_v61, 5  ;;  %v3648_v31 = vshrl.u32 %v3515_v13, 16  ;;  %v9646_v17 = vld [vmem:[#allocation2 + $0x3c] sm:$0xf] }
 0x31c   : > { %v1757_v20 = vsel %vm8868_vm10, %v1752_v33, %v1756_v45  ;;  %v3640_v9 = vor.u32 %v3639_v51, %v3635_v21  ;;  %v3651_v52 = vshll.u32 %v3515_v13, 16  ;;  %v3657_v36 = vshll.u32 %v9638_v1, 16  ;;  %v9651_v53 = vld [vmem:[#allocation2 + $0x40] sm:$0xf]  ;;  %v1634_v43 = vld [vmem:[#allocation2 + $0x44] sm:$0x1] }
 0x31d   : > { %v1767_v48 = vsel %vm8868_vm10, %v1762_v19, %v1766_v54  ;;  %v3631_v7 = vrot.slane %v3630_v18, 4  ;;  %v3650_v6 = vrot.slane %v3648_v31, 4  ;;  %v3661_v3 = vshrl.u32 %v9638_v1, 16  ;;  %v9662_v27 = vld [vmem:[#allocation2 + $0x48] sm:$0xf] }
 0x31e   : > { %v6614_v29 = vcombine.low %v1757_v20, %v1767_v48  ;;  %v3641_v25 = vrot.slane %v3640_v9, 4  ;;  %v3653_v49 = vrot.slane %v3651_v52, 5  ;;  %v3659_v14 = vrot.slane %v3657_v36, 5  ;;  %v9664_v28 = vld [vmem:[#allocation2 + $0x4c] sm:$0xf] }
 0x31f   : > { %v3636_v16 = vsel %vm8868_vm10, %v3631_v7, %v3635_v21  ;;  %v3663_v62 = vrot.slane %v3661_v3, 4  ;;  %v3667_v32 = vshll.u32 %v9643_v26, 16  ;;  %v1769_v35 = vshrl.u32 %v9646_v17, 16  ;;  %v3518_v9 = vld [vmem:[#allocation2 + $0x48] sm:$0xf] }
 0x320   : > { %7274 = vmatprep.mubr.msk.bf16.mxu1 %vm283_vm3, %v6614_v29  ;;  %v3646_v37 = vsel %vm8868_vm10, %v3641_v25, %v3645_v56  ;;  %v3654_v57 = vor.u32 %v3653_v49, %v3650_v6  ;;  %v1772_v45 = vshll.u32 %v9646_v17, 16  ;;  %v1778_v42 = vshll.u32 %v9651_v53, 16  ;;  %v9675_v6 = vld [vmem:[#allocation2 + $0x4c] sm:$0xf] }
 0x321   : > { %v6773_v39 = vcombine.low %v3636_v16, %v3646_v37  ;;  %v3664_v46 = vor.u32 %v3663_v62, %v3659_v14  ;;  %v3669_v63 = vrot.slane %v3667_v32, 5  ;;  %v1771_v0 = vrot.slane %v1769_v35, 4 }
 0x322   : > { %v3655_v40 = vrot.slane %v3654_v57, 4  ;;  %v1774_v21 = vrot.slane %v1772_v45, 5  ;;  %v1780_v61 = vrot.slane %v1778_v42, 5  ;;  %v1782_v13 = vshrl.u32 %v9651_v53, 16  ;;  %v1637_v45 = vld [vmem:[#allocation2 + $0x68] sm:$0x1] }
 0x323   : > { %7431 = vmatmul.mubr.msk.bf16.gmra.mrb[8].mxu0 %vm283_vm3, %v6773_v39  ;;  %v3665_v33 = vrot.slane %v3664_v46, 4  ;;  %v1788_v54 = vshll.u32 %v1634_v43, 16  ;;  %v1793_v51 = vshrl.u32 %v9662_v27, 16  ;;  %v1796_v19 = vshll.u32 %v9662_v27, 16  ;;  %v3524_v42 = vld [vmem:[#allocation2 + $0x60] sm:$0xf] }
 0x324   : > { %v3660_v18 = vsel %vm8868_vm10, %v3655_v40, %v3659_v14  ;;  %v1775_v56 = vor.u32 %v1774_v21, %v1771_v0  ;;  %v1784_v31 = vrot.slane %v1782_v13, 4  ;;  %v1802_v20 = vshll.u32 %v9664_v28, 16 }
 0x325   : > { %v3670_v52 = vsel %vm8868_vm10, %v3665_v33, %v3669_v63  ;;  %v1790_v36 = vrot.slane %v1788_v54, 5  ;;  %v1795_v48 = vrot.slane %v1793_v51, 4  ;;  %v1798_v7 = vrot.slane %v1796_v19, 5 }
 0x326   : > { %v6774_v3 = vcombine.low %v3660_v18, %v3670_v52  ;;  %v1776_v29 = vrot.slane %v1775_v56, 4  ;;  %v1785_v25 = vor.u32 %v1784_v31, %v1780_v61  ;;  %v1804_v49 = vrot.slane %v1802_v20, 5 }
 0x327   : > { %v1799_v14 = vor.u32 %v1798_v7, %v1795_v48  ;;  %v1806_v16 = vshrl.u32 %v9664_v28, 16  ;;  %v3672_v62 = vshrl.u32 %v3518_v9, 16  ;;  %v3675_v32 = vshll.u32 %v3518_v9, 16 }
 0x328   : > { %7434 = vmatprep.mubr.msk.bf16.mxu0 %vm283_vm3, %v6774_v3  ;;  %v1781_v35 = vsel %vm8868_vm10, %v1776_v29, %v1780_v61  ;;  %v1786_v37 = vrot.slane %v1785_v25, 4  ;;  %v3681_v57 = vshll.u32 %v9675_v6, 16  ;;  %v3685_v43 = vshrl.u32 %v9675_v6, 16  ;;  %v9695_v3 = vld [vmem:[#allocation2 + $0x64] sm:$0xf] }
 0x329   : > { %v1800_v39 = vrot.slane %v1799_v14, 4  ;;  %v1808_v46 = vrot.slane %v1806_v16, 4  ;;  %v3674_v63 = vrot.slane %v3672_v62, 4  ;;  %v3677_v0 = vrot.slane %v3675_v32, 5 }
 0x32a   : > { %v1791_v40 = vsel %vm8868_vm10, %v1786_v37, %v1790_v36  ;;  %v3683_v21 = vrot.slane %v3681_v57, 5  ;;  %v3687_v13 = vrot.slane %v3685_v43, 4  ;;  %v1846_v33 = vrot.slane %v1844_v15, 5  ;;  %v3533_v43 = vld [vmem:[#allocation2 + $0x84] sm:$0xf] }
 0x32b   : > { %v6615_v61 = vcombine.low %v1781_v35, %v1791_v40  ;;  %v1805_v54 = vsel %vm8868_vm10, %v1800_v39, %v1804_v49  ;;  %v1809_v51 = vor.u32 %v1808_v46, %v1804_v49  ;;  %v3678_v19 = vor.u32 %v3677_v0, %v3674_v63  ;;  %v4256_v49 = vld [vmem:[#allocation2 + $0xc] sm:$0xe] }
 0x32c   : > { %v3688_v18 = vor.u32 %v3687_v13, %v3683_v21  ;;  %v1847_v56 = vor.u32 %v1846_v33, %v9608_v5  ;;  %v1852_v31 = vrot.slane %v1850_v11, 5  ;;  %v1856_v20 = vrot.slane %v1854_v38, 4  ;;  %v9702_v38 = vld [vmem:[#allocation2 + $0x68] sm:$0x1]  ;;  %v9722_v46 = vld [vmem:[#allocation2 + $0x6c] sm:$0xf] }
 0x32d   : > { %7275 = vmatmul.mubr.msk.bf16.gmra.mrb[12].mxu1 %vm283_vm3, %v6615_v61  ;;  %v1810_v9 = vrot.slane %v1809_v51, 4  ;;  %v3679_v2 = vrot.slane %v3678_v19, 4  ;;  %v1860_v15 = vshll.u32 %v1637_v45, 16  ;;  %v3720_v52 = vshrl.u32 %v3524_v42, 16  ;;  %v9725_v13 = vld [vmem:[#allocation2 + $0x70] sm:$0xf] }
 0x32e   : > { %v3689_v36 = vrot.slane %v3688_v18, 4  ;;  %v1848_v48 = vrot.slane %v1847_v56, 4  ;;  %v1857_v7 = vor.u32 %v1856_v20, %v1852_v31  ;;  %v3723_v29 = vshll.u32 %v3524_v42, 16  ;;  %v1638_v33 = vld [vmem:[#allocation2 + $0x74] sm:$0x1] }
 0x32f   : > { %v1815_v5 = vsel %vm8868_vm10, %v1810_v9, %v9366_v41  ;;  %v3684_v23 = vsel %vm8868_vm10, %v3679_v2, %v3683_v21  ;;  %v1862_v11 = vrot.slane %v1860_v15, 5  ;;  %v3722_v25 = vrot.slane %v3720_v52, 4  ;;  %v9736_v20 = vld [vmem:[#allocation2 + $0x7c] sm:$0xf]  ;;  %v9743_v15 = vld [vmem:[#allocation2 + $0x78] sm:$0xf] }
 0x330   : > { %v6616_v14 = vcombine.low %v1805_v54, %v1815_v5  ;;  %v3694_v16 = vsel %vm8868_vm10, %v3689_v36, %v9369_v55  ;;  %v1853_v62 = vsel %vm8868_vm10, %v1848_v48, %v1852_v31  ;;  %v1858_v32 = vrot.slane %v1857_v7, 4 }
 0x331   : > { %v6775_v35 = vcombine.low %v3684_v23, %v3694_v16  ;;  %v3725_v37 = vrot.slane %v3723_v29, 5  ;;  %v3729_v41 = vshll.u32 %v9695_v3, 16  ;;  %v3733_v57 = vshrl.u32 %v9695_v3, 16 }
 0x332   : > { %7278 = vmatprep.mubr.msk.bf16.mxu1 %vm283_vm3, %v6616_v14  ;;  %v1863_v55 = vsel %vm8868_vm10, %v1858_v32, %v1862_v11  ;;  %v3739_v45 = vshll.u32 %v9702_v38, 16  ;;  %v6806_v42 = vrot.slane %v4256_v49, 9  ;;  %v4322_v39 = vrot.slane %v9468_v50, 5  ;;  %v9747_v11 = vld [vmem:[#allocation2 + $0x80] sm:$0x1] }
 0x333   : > { %7435 = vmatmul.mubr.msk.bf16.gmra.mrb[12].mxu0 %vm283_vm3, %v6775_v35  ;;  %v6618_v63 = vcombine.low %v1853_v62, %v1863_v55  ;;  %v3726_v0 = vor.u32 %v3725_v37, %v3722_v25  ;;  %v3731_v40 = vrot.slane %v3729_v41, 5  ;;  %v3735_v21 = vrot.slane %v3733_v57, 4  ;;  %v4257_v62 = vld [vmem:[#allocation2 + $0x18] sm:$0xe]  ;;  %v4258_v57 = vld [vmem:[#allocation2 + $0x24] sm:$0xe] }
 0x334   : > { %7438 = vmatprep.mubr.msk.bf16.mxu0 %vm283_vm3, %v9437_v8  ;;  %v3741_v61 = vrot.slane %v3739_v45, 5  ;;  %v4323_v54 = vsel %vm9713_vm0, %v6806_v42, %v4322_v39  ;;  %v4324_v51 = vrot.slane %v4322_v39, 4  ;;  %v4325_v50 = vrot.slane %v9472_v12, 5 }
 0x335   : > { %7279 = vmatmul.mubr.msk.bf16.gmra.mrb[16].mxu1 %vm283_vm3, %v9600_v47  ;;  %v3727_v19 = vrot.slane %v3726_v0, 4  ;;  %v3736_v18 = vor.u32 %v3735_v21, %v3731_v40  ;;  %v1865_v56 = vshrl.u32 %v9722_v46, 16  ;;  %v1868_v31 = vshll.u32 %v9722_v46, 16 }
 0x336   : > { %7282 = vmatprep.mubr.msk.bf16.mxu1 %vm283_vm3, %v6618_v63  ;;  %v4326_v8 = vsel %vm9713_vm0, %v4324_v51, %v4325_v50  ;;  %v1874_v9 = vshll.u32 %v9725_v13, 16  ;;  %v1878_v12 = vshrl.u32 %v9725_v13, 16  ;;  %v1884_v2 = vshll.u32 %v1638_v33, 16  ;;  %v9760_v50 = vld [vmem:[#allocation2 + $0x84] sm:$0xf] }
 0x337   : > { %v3732_v47 = vsel %vm8868_vm10, %v3727_v19, %v3731_v40  ;;  %v3737_v52 = vrot.slane %v3736_v18, 4  ;;  %v6822_v36 = vcombine.low %v4323_v54, %v4326_v8  ;;  %v1867_v48 = vrot.slane %v1865_v56, 4 }
 0x338   : > { %v1870_v7 = vrot.slane %v1868_v31, 5  ;;  %v1876_v29 = vrot.slane %v1874_v9, 5  ;;  %v1880_v5 = vrot.slane %v1878_v12, 4  ;;  %v1886_v23 = vrot.slane %v1884_v2, 5 }
 0x339   : > { %v3742_v25 = vsel %vm8868_vm10, %v3737_v52, %v3741_v61  ;;  %v1889_v49 = vshrl.u32 %v9743_v15, 16  ;;  %v1892_v14 = vshll.u32 %v9743_v15, 16  ;;  %v1898_v16 = vshll.u32 %v9736_v20, 16  ;;  %v1640_v52 = vld [vmem:[#allocation2 + $0x8c] sm:$0x1] }
 0x33a   : > { %v6777_v32 = vcombine.low %v3732_v47, %v3742_v25  ;;  %v1871_v35 = vor.u32 %v1870_v7, %v1867_v48  ;;  %v1881_v37 = vor.u32 %v1880_v5, %v1876_v29  ;;  %v1902_v41 = vshrl.u32 %v9736_v20, 16  ;;  %v9775_v47 = vld [vmem:[#allocation2 + $0x88] sm:$0xf] }
 0x33b   : > { %v1891_v55 = vrot.slane %v1889_v49, 4  ;;  %v1894_v45 = vrot.slane %v1892_v14, 5  ;;  %v1900_v42 = vrot.slane %v1898_v16, 5  ;;  %v1908_v39 = vshll.u32 %v9747_v11, 16  ;;  %v7968_v14 = vld [vmem:[%s11090_s4 + $0xc8] sm:$0xff]  }
 0x33c   : > { %7439 = vmatmul.mubr.msk.bf16.gmra.mrb[16].mxu0 %vm283_vm3, %v6777_v32  ;;  %v1872_v63 = vrot.slane %v1871_v35, 4  ;;  %v1882_v0 = vrot.slane %v1881_v37, 4  ;;  %v1904_v40 = vrot.slane %v1902_v41, 4  ;;  %v6807_v21 = vrot.slane %v4257_v62, 9  ;;  %v1641_v37 = vld [vmem:[#allocation2 + $0x98] sm:$0x1] }
 0x33d   : > { %7466 = vmatprep.mubr.msk.bf16.mxu0 %vm283_vm3, %v6822_v36  ;;  %v1895_v33 = vor.u32 %v1894_v45, %v1891_v55  ;;  %v1910_v61 = vrot.slane %v1908_v39, 5  ;;  %v4331_v54 = vrot.slane %v4329_v44, 4  ;;  %v6808_v51 = vrot.slane %v4258_v57, 9  ;;  %v9777_v36 = vld [vmem:[#allocation2 + $0x90] sm:$0xf] }
 0x33e   : > { %v1877_v19 = vsel %vm8868_vm10, %v1872_v63, %v1876_v29  ;;  %v1887_v18 = vsel %vm8868_vm10, %v1882_v0, %v1886_v23  ;;  %v1905_v56 = vor.u32 %v1904_v40, %v1900_v42  ;;  %v4330_v31 = vsel %vm9713_vm0, %v6807_v21, %v4329_v44  ;;  %v9781_v29 = vld [vmem:[#allocation2 + $0x94] sm:$0xf] }
 0x33f   : > { %v6619_v8 = vcombine.low %v1877_v19, %v1887_v18  ;;  %v1896_v9 = vrot.slane %v1895_v33, 4  ;;  %v4333_v12 = vsel %vm9713_vm0, %v4331_v54, %v4332_v59  ;;  %v4336_v2 = vrot.slane %v9499_v22, 5  ;;  %v7970_v19 = vld [vmem:[%s11090_s4 + $0xd0] sm:$0xff]  }
 0x340   : > { %v1906_v48 = vrot.slane %v1905_v56, 4  ;;  %v6823_v7 = vcombine.low %v4330_v31, %v4333_v12  ;;  %v4339_v30 = vrot.slane %v9511_v58, 5  ;;  %v1913_v44 = vshrl.u32 %v9760_v50, 16 }
 0x341   : > { %7283 = vmatmul.mubr.msk.bf16.gmra.mrb[20].mxu1 %vm283_vm3, %v6619_v8  ;;  %v1901_v4 = vsel %vm8868_vm10, %v1896_v9, %v1900_v42  ;;  %v4337_v22 = vsel %vm9713_vm0, %v6808_v51, %v4336_v2  ;;  %v4338_v59 = vrot.slane %v4336_v2, 4  ;;  %v1916_v5 = vshll.u32 %v9760_v50, 16  ;;  %v4259_v42 = vld [vmem:[#allocation2 + $0x30] sm:$0xe]  ;;  %v4260_v51 = vld [vmem:[#allocation2 + $0x3c] sm:$0xe] }
 0x342   : > { %v1911_v23 = vsel %vm8868_vm10, %v1906_v48, %v1910_v61  ;;  %v1915_v25 = vrot.slane %v1913_v44, 4  ;;  %v1922_v58 = vshll.u32 %v9775_v47, 16  ;;  %v1926_v49 = vshrl.u32 %v9775_v47, 16  ;;  %v9809_v8 = vld [vmem:[#allocation2 + $0x9c] sm:$0xf] }
 0x343   : > { %v6620_v16 = vcombine.low %v1901_v4, %v1911_v23  ;;  %v4340_v62 = vsel %vm9713_vm0, %v4338_v59, %v4339_v30  ;;  %v1918_v32 = vrot.slane %v1916_v5, 5  ;;  %v1932_v35 = vshll.u32 %v1640_v52, 16 }
 0x344   : > { %7467 = vmatmul.mubr.msk.bf16.vlgmr.msra.gmra.mrb[4].mxu0 %vm283_vm3, %v6823_v7  ;;  %v6824_v41 = vcombine.low %v4337_v22, %v4340_v62  ;;  %v1924_v57 = vrot.slane %v1922_v58, 5  ;;  %v1928_v55 = vrot.slane %v1926_v49, 4  ;;  %v1937_v45 = vshrl.u32 %v9777_v36, 16  ;;  %v9824_v49 = vld [vmem:[#allocation2 + $0xa0] sm:$0xf] }
 0x345   : > { %7286 = vmatprep.mubr.msk.bf16.mxu1 %vm283_vm3, %v6620_v16  ;;  %7499 = vmatpush3.bf16.msra.mxu0 %v9580_v24  ;;  %v1919_v39 = vor.u32 %v1918_v32, %v1915_v25  ;;  %v1934_v63 = vrot.slane %v1932_v35, 5  ;;  %v1940_v0 = vshll.u32 %v9777_v36, 16  ;;  %v1946_v40 = vshll.u32 %v9781_v29, 16  ;;  %v1642_v62 = vld [vmem:[#allocation2 + $0xa4] sm:$0x1] }
 0x346   : > { %7470 = vmatprep.mubr.msk.bf16.mxu0 %vm283_vm3, %v6824_v41  ;;  %v1929_v21 = vor.u32 %v1928_v55, %v1924_v57  ;;  %v1939_v33 = vrot.slane %v1937_v45, 4  ;;  %v1950_v61 = vshrl.u32 %v9781_v29, 16  ;;  %v1956_v54 = vshll.u32 %v1641_v37, 16  ;;  %7500 = vmatprep.subr.bf16.mxu0 %v7968_v14  ;;  %v9837_v55 = vld [vmem:[#allocation2 + $0xac] sm:$0xf] }
 0x347   : > { %v1920_v24 = vrot.slane %v1919_v39, 4  ;;  %v1942_v18 = vrot.slane %v1940_v0, 5  ;;  %v1948_v56 = vrot.slane %v1946_v40, 5  ;;  %v6809_v31 = vrot.slane %v4259_v42, 9  ;;  %v1643_v0 = vld [vmem:[#allocation2 + $0xb0] sm:$0x1] }
 0x348   : > { %v1930_v9 = vrot.slane %v1929_v21, 4  ;;  %v1952_v12 = vrot.slane %v1950_v61, 4  ;;  %v1958_v2 = vrot.slane %v1956_v54, 5  ;;  %v4343_v52 = vrot.slane %v9611_v10, 5  ;;  %v7972_v10 = vld [vmem:[%s11090_s4 + $0xd8] sm:$0xff]   ;;  %v9845_v40 = vld [vmem:[%s11090_s4 + $0xe0] sm:$0xff]  }
 0x349   : > { %v1925_v48 = vsel %vm8868_vm10, %v1920_v24, %v1924_v57  ;;  %v1943_v7 = vor.u32 %v1942_v18, %v1939_v33  ;;  %v4346_v30 = vrot.slane %v9632_v34, 5  ;;  %v6810_v44 = vrot.slane %v4260_v51, 9  ;;  %7501 = vmatpush3.bf16.msra.mxu0 %v7968_v14  ;;  %v9835_v57 = vld [vmem:[#allocation2 + $0xa8] sm:$0xf] }
 0x34a   : > { %v1935_v4 = vsel %vm8868_vm10, %v1930_v9, %v1934_v63  ;;  %v1953_v22 = vor.u32 %v1952_v12, %v1948_v56  ;;  %v4344_v59 = vsel %vm9713_vm0, %v6809_v31, %v4343_v52  ;;  %v4345_v5 = vrot.slane %v4343_v52, 4  ;;  %7502 = vmatprep.subr.bf16.mxu0 %v7970_v19  ;;  %v4261_v51 = vld [vmem:[#allocation2 + $0x48] sm:$0xe] }
 0x34b   : > { %v6621_v23 = vcombine.low %v1925_v48, %v1935_v4  ;;  %v1944_v25 = vrot.slane %v1943_v7, 4  ;;  %v4350_v58 = vrot.slane %v9638_v1, 5  ;;  %v4353_v34 = vrot.slane %v9643_v26, 5 }
 0x34c   : > { %v1954_v14 = vrot.slane %v1953_v22, 4  ;;  %v4347_v16 = vsel %vm9713_vm0, %v4345_v5, %v4346_v30  ;;  %v1961_v32 = vshrl.u32 %v9809_v8, 16  ;;  %v1964_v35 = vshll.u32 %v9809_v8, 16 }
 0x34d   : > { %7287 = vmatmul.mubr.msk.bf16.gmra.mrb[24].mxu1 %vm283_vm3, %v6621_v23  ;;  %v1949_v37 = vsel %vm8868_vm10, %v1944_v25, %v1948_v56  ;;  %v6825_v41 = vcombine.low %v4344_v59, %v4347_v16  ;;  %v4351_v1 = vsel %vm9713_vm0, %v6810_v44, %v4350_v58  ;;  %v4352_v26 = vrot.slane %v4350_v58, 4  ;;  %7503 = vmatpush3.bf16.msra.mxu0 %v7970_v19  ;;  %v4262_v59 = vld [vmem:[#allocation2 + $0x54] sm:$0xe] }
 0x34e   : > { %v1959_v45 = vsel %vm8868_vm10, %v1954_v14, %v1958_v2  ;;  %v1963_v42 = vrot.slane %v1961_v32, 4  ;;  %v1966_v39 = vrot.slane %v1964_v35, 5  ;;  %v1970_v63 = vshll.u32 %v9824_v49, 16  ;;  %7504 = vmatprep.subr.bf16.mxu0 %v7972_v10  ;;  %v9861_v58 = vld [vmem:[#allocation2 + $0xb4] sm:$0xf] }
 0x34f   : > { %v6622_v21 = vcombine.low %v1949_v37, %v1959_v45  ;;  %7471 = vmatmul.mubr.msk.bf16.gmra.mrb[8].mxu0 %vm283_vm3, %v6825_v41  ;;  %v4354_v33 = vsel %vm9713_vm0, %v4352_v26, %v4353_v34  ;;  %v1974_v61 = vshrl.u32 %v9824_v49, 16  ;;  %v1980_v54 = vshll.u32 %v1642_v62, 16  ;;  %v8156_v62 = vld [vmem:[#allocation2 + $0x50] sm:$0x1]  ;;  %v9863_v45 = vld [vmem:[#allocation2 + $0xb8] sm:$0xf] }
 0x350   : > { %v6826_v19 = vcombine.low %v4351_v1, %v4354_v33  ;;  %v1967_v24 = vor.u32 %v1966_v39, %v1963_v42  ;;  %v1972_v18 = vrot.slane %v1970_v63, 5  ;;  %v1985_v56 = vshrl.u32 %v9835_v57, 16  ;;  %v8157_v1 = vld [vmem:[#allocation2 + $0x58] sm:$0xf]  ;;  %v1644_v63 = vld [vmem:[#allocation2 + $0xbc] sm:$0x1] }
 0x351   : > { %7290 = vmatprep.mubr.msk.bf16.mxu1 %vm283_vm3, %v6622_v21  ;;  %v1976_v31 = vrot.slane %v1974_v61, 4  ;;  %v1988_v9 = vshll.u32 %v9835_v57, 16  ;;  %v1994_v12 = vshll.u32 %v9837_v55, 16  ;;  %7505 = vmatpush3.bf16.msra.mxu0 %v7972_v10  ;;  %v1998_v48 = vshrl.u32 %v9837_v55, 16 }
 0x352   : > { %7474 = vmatprep.mubr.msk.bf16.mxu0 %vm283_vm3, %v6826_v19  ;;  %v1968_v2 = vrot.slane %v1967_v24, 4  ;;  %v1987_v52 = vrot.slane %v1985_v56, 4  ;;  %v2004_v7 = vshll.u32 %v1643_v0, 16  ;;  %7538 = vmatprep.subr.bf16.mxu0 %v9845_v40  ;;  %v6811_v22 = vrot.slane %v4261_v51, 9  ;;  %v4263_v19 = vld [vmem:[#allocation2 + $0x60] sm:$0xe] }
 0x353   : > { %v1977_v30 = vor.u32 %v1976_v31, %v1972_v18  ;;  %v1990_v44 = vrot.slane %v1988_v9, 5  ;;  %v1996_v4 = vrot.slane %v1994_v12, 5  ;;  %v1982_v23 = vrot.slane %v1980_v54, 5  ;;  %v8158_v54 = vld [vmem:[#allocation2 + $0x5c] sm:$0x1] }
 0x354   : > { %v1973_v5 = vsel %vm8868_vm10, %v1968_v2, %v1972_v18  ;;  %v2000_v25 = vrot.slane %v1998_v48, 4  ;;  %v4357_v10 = vrot.slane %v9675_v6, 5  ;;  %v2006_v16 = vrot.slane %v2004_v7, 5  ;;  %v3528_v9 = vld [vmem:[#allocation2 + $0x70] sm:$0xf] }
 0x355   : > { %v1978_v34 = vrot.slane %v1977_v30, 4  ;;  %v1991_v14 = vor.u32 %v1990_v44, %v1987_v52  ;;  %v4360_v32 = vrot.slane %v8156_v62, 5  ;;  %v6812_v41 = vrot.slane %v4262_v59, 9  ;;  %v4264_v12 = vld [vmem:[#allocation2 + $0x6c] sm:$0xe] }
 0x356   : > { %v2001_v35 = vor.u32 %v2000_v25, %v1996_v4  ;;  %v4359_v37 = vrot.slane %v4357_v10, 4  ;;  %v4364_v26 = vrot.slane %v8157_v1, 5  ;;  %v4358_v6 = vsel %vm9713_vm0, %v6811_v22, %v4357_v10 }
 0x357   : > { %v1983_v42 = vsel %vm8868_vm10, %v1978_v34, %v1982_v23  ;;  %v1992_v39 = vrot.slane %v1991_v14, 4  ;;  %v2009_v0 = vshrl.u32 %v9861_v58, 16  ;;  %v4367_v51 = vrot.slane %v8158_v54, 5  ;;  %v3529_v14 = vld [vmem:[#allocation2 + $0x74] sm:$0x1] }
 0x358   : > { %v6623_v21 = vcombine.low %v1973_v5, %v1983_v42  ;;  %v2002_v33 = vrot.slane %v2001_v35, 4  ;;  %v4361_v61 = vsel %vm9713_vm0, %v4359_v37, %v4360_v32  ;;  %v4366_v56 = vrot.slane %v4364_v26, 4  ;;  %v9898_v54 = vld [vmem:[#allocation2 + $0x7c] sm:$0xf] }
 0x359   : > { %v1997_v24 = vsel %vm8868_vm10, %v1992_v39, %v1996_v4  ;;  %v6827_v18 = vcombine.low %v4358_v6, %v4361_v61  ;;  %v2011_v31 = vrot.slane %v2009_v0, 4  ;;  %v2012_v52 = vshll.u32 %v9861_v58, 16 }
 0x35a   : > { %7291 = vmatmul.mubr.msk.bf16.gmra.mrb[28].mxu1 %vm283_vm3, %v6623_v21  ;;  %v2007_v2 = vsel %vm8868_vm10, %v2002_v33, %v2006_v16  ;;  %v2018_v48 = vshll.u32 %v9863_v45, 16  ;;  %v2022_v7 = vshrl.u32 %v9863_v45, 16  ;;  %v4365_v44 = vsel %vm9713_vm0, %v6812_v41, %v4364_v26  ;;  %v8159_v21 = vld [vmem:[#allocation2] sm:$0xf]  ;;  %v9895_v33 = vld [vmem:[#allocation2 + $0x4] sm:$0xf] }
 0x35b   : > { %v6624_v30 = vcombine.low %v1997_v24, %v2007_v2  ;;  %7475 = vmatmul.mubr.msk.bf16.gmra.mrb[12].mxu0 %vm283_vm3, %v6827_v18  ;;  %v4368_v4 = vsel %vm9713_vm0, %v4366_v56, %v4367_v51  ;;  %v2028_v22 = vshll.u32 %v1644_v63, 16  ;;  %v2014_v5 = vrot.slane %v2012_v52, 5  ;;  %v3534_v51 = vld [vmem:[#allocation2 + $0x88] sm:$0xf]  ;;  %v4266_v2 = vld [vmem:[#allocation2 + $0x84] sm:$0xe] }
 0x35c   : > { %v6828_v59 = vcombine.low %v4365_v44, %v4368_v4  ;;  %v2020_v23 = vrot.slane %v2018_v48, 5  ;;  %v2024_v25 = vrot.slane %v2022_v7, 4  ;;  %v6813_v10 = vrot.slane %v4263_v19, 9  ;;  %v3537_v52 = vld [vmem:[#allocation2 + $0x94] sm:$0xf] }
 0x35d   : > { %7294 = vmatprep.mubr.msk.bf16.mxu1 %vm283_vm3, %v6624_v30  ;;  %v4371_v34 = vrot.slane %v9695_v3, 5  ;;  %v6814_v16 = vrot.slane %v4264_v12, 9  ;;  %v2015_v62 = vor.u32 %v2014_v5, %v2011_v31  ;;  %v2030_v35 = vrot.slane %v2028_v22, 5  ;;  %v9906_v12 = vld [vmem:[#allocation2 + $0x80] sm:$0x1] }
 0x35e   : > { %7478 = vmatprep.mubr.msk.bf16.mxu0 %vm283_vm3, %v6828_v59  ;;  %v2025_v32 = vor.u32 %v2024_v25, %v2020_v23  ;;  %v4378_v37 = vrot.slane %v3528_v9, 5  ;;  %v4374_v1 = vrot.slane %v9702_v38, 5  ;;  %v4381_v6 = vrot.slane %v3529_v14, 5  ;;  %v4265_v38 = vld [vmem:[#allocation2 + $0x78] sm:$0xe] }
 0x35f   : > { %v4373_v41 = vrot.slane %v4371_v34, 4  ;;  %v2016_v26 = vrot.slane %v2015_v62, 4  ;;  %v4372_v63 = vsel %vm9713_vm0, %v6813_v10, %v4371_v34  ;;  %v6646_v61 = vcombine.low %v8159_v21, %v9895_v33  ;;  %v3535_v7 = vld [vmem:[#allocation2 + $0x8c] sm:$0x1]  ;;  %v3540_v4 = vld [vmem:[#allocation2 + $0xa0] sm:$0xf] }
 0x360   : > { %v2026_v42 = vrot.slane %v2025_v32, 4  ;;  %v4380_v39 = vrot.slane %v4378_v37, 4  ;;  %v4379_v0 = vsel %vm9713_vm0, %v6814_v16, %v4378_v37  ;;  %v4385_v48 = vrot.slane %v9898_v54, 5  ;;  %v3538_v37 = vld [vmem:[#allocation2 + $0x98] sm:$0x1] }
 0x361   : > { %v4375_v3 = vsel %vm9713_vm0, %v4373_v41, %v4374_v1  ;;  %v2021_v19 = vsel %vm8868_vm10, %v2016_v26, %v2020_v23  ;;  %v6815_v30 = vrot.slane %v4265_v38, 9  ;;  %v4392_v44 = vrot.slane %v3534_v51, 5  ;;  %v4267_v41 = vld [vmem:[#allocation2 + $0x90] sm:$0xe]  ;;  %v8161_v1 = vld [vmem:[#allocation2 + $0xc] sm:$0xf] }
 0x362   : > { %v2031_v24 = vsel %vm8868_vm10, %v2026_v42, %v2030_v35  ;;  %v6829_v18 = vcombine.low %v4372_v63, %v4375_v3  ;;  %v4382_v56 = vsel %vm9713_vm0, %v4380_v39, %v4381_v6  ;;  %v4387_v22 = vrot.slane %v4385_v48, 4  ;;  %v9922_v26 = vld [vmem:[#allocation2 + $0x10] sm:$0xf]  ;;  %v3541_v63 = vld [vmem:[#allocation2 + $0xa4] sm:$0x1] }
 0x363   : > { %v6625_v31 = vcombine.low %v2021_v19, %v2031_v24  ;;  %v6830_v9 = vcombine.low %v4379_v0, %v4382_v56  ;;  %v4388_v59 = vrot.slane %v9906_v12, 5  ;;  %v6816_v5 = vrot.slane %v4266_v2, 9  ;;  %v4268_v3 = vld [vmem:[#allocation2 + $0x9c] sm:$0xe]  ;;  %v7971_v0 = vld [vmem:[%s11090_s4 + $0x48] sm:$0xff]  }
 0x364   : > { %7479 = vmatmul.mubr.msk.bf16.gmra.mrb[16].mxu0 %vm283_vm3, %v6829_v18  ;;  %v4394_v23 = vrot.slane %v4392_v44, 4  ;;  %v4395_v25 = vrot.slane %v3535_v7, 5  ;;  %v4399_v10 = vrot.slane %v3537_v52, 5  ;;  %v4406_v14 = vrot.slane %v3540_v4, 5  ;;  %v8163_v21 = vld [vmem:[#allocation2 + $0x18] sm:$0xf] }
 0x365   : > { %7295 = vmatmul.mubr.msk.bf16.gmra.mrb[32].mxu1 %vm283_vm3, %v6625_v31  ;;  %7482 = vmatprep.mubr.msk.bf16.mxu0 %vm283_vm3, %v6830_v9  ;;  %v4389_v34 = vsel %vm9713_vm0, %v4387_v22, %v4388_v59  ;;  %v4386_v16 = vsel %vm9713_vm0, %v6815_v30, %v4385_v48  ;;  %v4393_v35 = vsel %vm9713_vm0, %v6816_v5, %v4392_v44  ;;  %v3543_v19 = vld [vmem:[#allocation2 + $0xac] sm:$0xf]  ;;  %v6817_v24 = vrot.slane %v4267_v41, 9  ;;  %v3546_v56 = vld [vmem:[#allocation2 + $0xb8] sm:$0xf]  ;;  %v8165_v31 = vld [vmem:[%s11090_s4 + $0x40] sm:$0xff]  }
 0x366   : > { %7306 = vmatprep.mubr.msk.bf16.mxu1 %vm283_vm3, %v6646_v61  ;;  %v4396_v62 = vsel %vm9713_vm0, %v4394_v23, %v4395_v25  ;;  %v6831_v32 = vcombine.low %v4386_v16, %v4389_v34  ;;  %v6647_v42 = vcombine.low %v8161_v1, %v9922_v26  ;;  %v4401_v6 = vrot.slane %v4399_v10, 4  ;;  %v9928_v61 = vld [vmem:[#allocation2 + $0x1c] sm:$0xf]  ;;  %v7974_v7 = vld [vmem:[%s11090_s4 + $0x50] sm:$0xff]   ;;  %v4269_v23 = vld [vmem:[#allocation2 + $0xa8] sm:$0xe] }
 0x367   : > { %v6832_v39 = vcombine.low %v4393_v35, %v4396_v62  ;;  %v6648_v38 = vcombine.low %v8163_v21, %v9928_v61  ;;  %v4408_v51 = vrot.slane %v4406_v14, 4  ;;  %v4402_v18 = vrot.slane %v3538_v37, 5  ;;  %v3544_v5 = vld [vmem:[#allocation2 + $0xb0] sm:$0x1]  ;;  %v8166_v25 = vld [vmem:[#allocation2 + $0x24] sm:$0xf] }
 0x368   : > { %v6818_v9 = vrot.slane %v4268_v3, 9  ;;  %v4409_v2 = vrot.slane %v3541_v63, 5  ;;  %v4413_v48 = vrot.slane %v3543_v19, 5  ;;  %v4420_v44 = vrot.slane %v3546_v56, 5  ;;  %v9949_v34 = vld [vmem:[#allocation2 + $0x28] sm:$0xf] }
 0x369   : > { %v4403_v52 = vsel %vm9713_vm0, %v4401_v6, %v4402_v18  ;;  %v4400_v4 = vsel %vm9713_vm0, %v6817_v24, %v4399_v10  ;;  %v6649_v16 = vcombine.low %v8166_v25, %v9949_v34  ;;  %v3547_v35 = vld [vmem:[#allocation2 + $0xbc] sm:$0x1]  ;;  %v4270_v37 = vld [vmem:[#allocation2 + $0xb4] sm:$0xe]  ;;  %v8168_v41 = vld [vmem:[#allocation2 + $0x30] sm:$0xf] }
 0x36a   : > { %v4410_v30 = vsel %vm9713_vm0, %v4408_v51, %v4409_v2  ;;  %v6833_v22 = vcombine.low %v4400_v4, %v4403_v52  ;;  %v4407_v59 = vsel %vm9713_vm0, %v6818_v9, %v4406_v14  ;;  %v7983_v10 = vld [vmem:[%s11090_s4 + $0x58] sm:$0xff]   ;;  %v9955_v1 = vld [vmem:[#allocation2 + $0x34] sm:$0xf]  ;;  %v6819_v6 = vrot.slane %v4269_v23, 9  ;;  %v9967_v51 = vld [vmem:[%s11090_s4 + $0x60] sm:$0xff]  }
 0x36b   : > { %v6834_v62 = vcombine.low %v4407_v59, %v4410_v30  ;;  %v6650_v14 = vcombine.low %v8168_v41, %v9955_v1  ;;  %v4416_v63 = vrot.slane %v3544_v5, 5  ;;  %v6820_v3 = vrot.slane %v4270_v37, 9  ;;  %v4271_v9 = vld [vmem:[#allocation2 + $0xc0] sm:$0xe]  ;;  %v8170_v5 = vld [vmem:[#allocation2 + $0x54] sm:$0xf] }
 0x36c   : > { %7483 = vmatmul.mubr.msk.bf16.gmra.mrb[20].mxu0 %vm283_vm3, %v6831_v32  ;;  %v4415_v32 = vrot.slane %v4413_v48, 4  ;;  %v4414_v24 = vsel %vm9713_vm0, %v6819_v6, %v4413_v48  ;;  %v6651_v2 = vcombine.low %v9646_v17, %v9651_v53  ;;  %v6652_v30 = vcombine.low %v9662_v27, %v9664_v28  ;;  %v7973_v25 = vld [vmem:[#allocation2 + $0x18] sm:$0xff]   ;;  %v8174_v6 = vld [vmem:[#allocation2 + $0x14] sm:$0x1] }
 0x36d   : > { %7307 = vmatmul.mubr.msk.bf16.vlgmr.msra.gmra.mrb[4].mxu1 %vm283_vm3, %v6647_v42  ;;  %7486 = vmatprep.mubr.msk.bf16.mxu0 %vm283_vm3, %v6832_v39  ;;  %v4422_v42 = vrot.slane %v4420_v44, 4  ;;  %v3549_v39 = vld [vmem:[#allocation2 + $0xc4] sm:$0xf]  ;;  %v4421_v56 = vsel %vm9713_vm0, %v6820_v3, %v4420_v44  ;;  %v3777_v48 = vshll.u32 %v9898_v54, 16  ;;  %v3781_v4 = vshrl.u32 %v9898_v54, 16 }
 0x36e   : > { %7310 = vmatprep.mubr.msk.bf16.mxu1 %vm283_vm3, %v6648_v38  ;;  %7339 = vmatpush3.bf16.msra.mxu1 %v8165_v31  ;;  %v4417_v21 = vsel %vm9713_vm0, %v4415_v32, %v4416_v63  ;;  %v4427_v38 = vrot.slane %v3549_v39, 5  ;;  %v3550_v31 = vld [vmem:[#allocation2 + $0xc8] sm:$0x1]  ;;  %v6821_v44 = vrot.slane %v4271_v9, 9  ;;  %v9992_v54 = vld [vmem:[#allocation2 + $0x58] sm:$0xf]  ;;  %v6657_v9 = vcombine.low %v9760_v50, %v9775_v47 }
 0x36f   : > { %7340 = vmatprep.subr.bf16.mxu1 %v7971_v0  ;;  %v6835_v18 = vcombine.low %v4414_v24, %v4417_v21  ;;  %v9988_v53 = vrot.slane %v3777_v48, 5  ;;  %v3783_v27 = vrot.slane %v3781_v4, 4  ;;  %v6653_v23 = vcombine.low %v8170_v5, %v9992_v54  ;;  %v2635_v3 = vld [vmem:[#allocation2 + $0xc] sm:$0xe]  ;;  %v7976_v21 = vld [vmem:[#allocation2 + $0x24] sm:$0xff]  }
 0x370   : > { %v4428_v28 = vsel %vm9713_vm0, %v6821_v44, %v4427_v38  ;;  %v3787_v37 = vshll.u32 %v9906_v12, 16  ;;  %v2687_v41 = vrot.slane %v9895_v33, 5  ;;  %v2708_v39 = vrot.slane %v9949_v34, 5 }
 0x371   : > { %11171 = vst [vmem:[#allocation21_spill] sm:$0xff] %v9988_v53  ;;  %v2697_v63 = vrot.slane %v8174_v6, 5  ;;  %v6656_v34 = vcombine.low %v9743_v15, %v9736_v20  ;;  %v6683_v48 = vrot.slane %v2635_v3, 9  ;;  %v6659_v15 = vcombine.low %v9809_v8, %v9824_v49  ;;  %v10054_v6 = vld [vmem:[#allocation2 + $0x4c] sm:$0xf] }
 0x372   : > { %7341 = vmatpush3.bf16.msra.mxu1 %v7971_v0  ;;  %v4423_v0 = vrot.slane %v3547_v35, 5  ;;  %v3784_v35 = vor.u32 %v3783_v27, %v9988_v53  ;;  %v10010_v12 = vrot.slane %v3787_v37, 5  ;;  %v2689_v24 = vrot.slane %v2687_v41, 4 }
 0x373   : > { %7342 = vmatprep.subr.bf16.mxu1 %v7974_v7  ;;  %v6660_v3 = vcombine.low %v9835_v57, %v9837_v55  ;;  %v2760_v57 = vrot.slane %v9747_v11, 5 }
 0x374   : > { %7487 = vmatmul.mubr.msk.bf16.gmra.mrb[24].mxu0 %vm283_vm3, %v6833_v22  ;;  %v4424_v19 = vsel %vm9713_vm0, %v4422_v42, %v4423_v0  ;;  %v4430_v22 = vrot.slane %v3550_v31, 5  ;;  %v2701_v42 = vrot.slane %v9928_v61, 5  ;;  %v10008_v0 = vrot.slane %v3784_v35, 4  ;;  %11173 = vst [vmem:[#allocation22_spill] sm:$0xff] %v10010_v12 }
 0x375   : > { %7311 = vmatmul.mubr.msk.bf16.gmra.mrb[8].mxu1 %vm283_vm3, %v6649_v16  ;;  %7490 = vmatprep.mubr.msk.bf16.mxu0 %vm283_vm3, %v6834_v62  ;;  %v6836_v52 = vcombine.low %v4421_v56, %v4424_v19  ;;  %v8172_v16 = vld [vmem:[#allocation2 + $0x60] sm:$0xf]  ;;  %v9995_v62 = vld [vmem:[#allocation2 + $0x64] sm:$0xf]  ;;  %v2636_v19 = vld [vmem:[#allocation2 + $0x18] sm:$0xe]  ;;  %v6655_v61 = vcombine.low %v9722_v46, %v9725_v13 }
 0x376   : > { %7314 = vmatprep.mubr.msk.bf16.mxu1 %vm283_vm3, %v6650_v14  ;;  %7343 = vmatpush3.bf16.msra.mxu1 %v7974_v7  ;;  %v4429_v7 = vrot.slane %v4427_v38, 4  ;;  %v6654_v32 = vcombine.low %v8172_v16, %v9995_v62  ;;  %v2694_v14 = vrot.slane %v9922_v26, 5  ;;  %11172 = vst [vmem:[#allocation23_spill] sm:$0xff] %v10008_v0  ;;  %v2703_v31 = vrot.slane %v2701_v42, 4  ;;  %v2637_v26 = vld [vmem:[#allocation2 + $0x24] sm:$0xe] }
 0x377   : > { %7344 = vmatprep.subr.bf16.mxu1 %v7983_v10  ;;  %v6684_v4 = vrot.slane %v2636_v19, 9  ;;  %v8176_v46 = vld [vmem:[#allocation2 + $0x20] sm:$0x1]  ;;  %v6685_v27 = vrot.slane %v2637_v26, 9  ;;  %v2715_v16 = vrot.slane %v9955_v1, 5 }
 0x378   : > { %v4431_v17 = vsel %vm9713_vm0, %v4429_v7, %v4430_v22  ;;  %v2696_v33 = vrot.slane %v2694_v14, 4  ;;  %v7977_v7 = vld [vmem:[#allocation2 + $0x30] sm:$0xff]   ;;  %v2704_v44 = vrot.slane %v8176_v46, 5  ;;  %v10063_v1 = vsel %vm9713_vm0, %v6683_v48, %v2694_v14  ;;  %v5140_v14 = vld [vmem:[#allocation2 + $0x1c] sm:$0xf]  ;;  %v7981_v48 = vld [vmem:[#allocation2 + $0x48] sm:$0xff]  }
 0x379   : > { %v6837_v59 = vcombine.low %v4428_v28, %v4431_v17  ;;  %v2638_v22 = vld [vmem:[#allocation2 + $0x30] sm:$0xe]  ;;  %v8177_v28 = vld [vmem:[#allocation2 + $0x2c] sm:$0x1]  ;;  %v7980_v26 = vld [vmem:[#allocation2 + $0x3c] sm:$0xff]  }
 0x37a   : > { %7345 = vmatpush3.bf16.msra.mxu1 %v7983_v10  ;;  %v2634_v10 = vld [vmem:[#allocation2] sm:$0xe]  ;;  %v6686_v37 = vrot.slane %v2638_v22, 9  ;;  %v7998_v46 = vld [vmem:[%s11090_s4 + $0xf8] sm:$0xff]   ;;  %v2736_v22 = vrot.slane %v9992_v54, 5 }
 0x37b   : > { %7378 = vmatprep.subr.bf16.mxu1 %v9967_v51  ;;  %v6682_v38 = vrot.slane %v2634_v10, 9  ;;  %v8178_v10 = vld [vmem:[#allocation2 + $0x40] sm:$0xf]  ;;  %v5144_v19 = vld [vmem:[#allocation2 + $0x2c] sm:$0x1] }
 0x37c   : > { %7491 = vmatmul.mubr.msk.bf16.gmra.mrb[28].mxu0 %vm283_vm3, %v6835_v18  ;;  %v8175_v18 = vld [vmem:[#allocation2 + $0x8] sm:$0x1] }
 0x37d   : > { %7315 = vmatmul.mubr.msk.bf16.gmra.mrb[12].mxu1 %vm283_vm3, %v6651_v2  ;;  %7494 = vmatprep.mubr.msk.bf16.mxu0 %vm283_vm3, %v6836_v52  ;;  %v2690_v56 = vrot.slane %v8175_v18, 5  ;;  %v7984_v2 = vld [vmem:[%s11090_s4 + $0xe8] sm:$0xff]   ;;  %v2710_v52 = vrot.slane %v2708_v39, 4  ;;  %v10030_v17 = vsel %vm9713_vm0, %v6682_v38, %v2687_v41  ;;  %v2722_v41 = vrot.slane %v8178_v10, 5 }
 0x37e   : > { %7318 = vmatprep.mubr.msk.bf16.mxu1 %vm283_vm3, %v6652_v30  ;;  %v6658_v30 = vcombine.low %v9777_v36, %v9781_v29  ;;  %v10067_v38 = vsel %vm9713_vm0, %v6684_v4, %v2701_v42  ;;  %v10075_v18 = vsel %vm9713_vm0, %v6685_v27, %v2708_v39  ;;  %v10083_v39 = vsel %vm9713_vm0, %v6686_v37, %v2715_v16  ;;  %v2642_v27 = vld [vmem:[#allocation2 + $0x60] sm:$0xe]  ;;  %v8181_v37 = vld [vmem:[#allocation2 + $0x44] sm:$0x1] }
 0x37f   : > { %v10036_v5 = vsel %vm9713_vm0, %v2689_v24, %v2690_v56  ;;  %v2724_v4 = vrot.slane %v2722_v41, 4  ;;  %v5201_v10 = vshrl.u32 %v5140_v14, 16  ;;  %v2725_v54 = vrot.slane %v8181_v37, 5 }
 0x384   : > { %7495 = vmatmul.mubr.msk.bf16.gmra.mrb[32].mxu0 %vm283_vm3, %v6837_v59  ;;  %v2711_v59 = vrot.slane %v8177_v28, 5 }
 0x385   : > { %7319 = vmatmul.mubr.msk.bf16.gmra.mrb[16].mxu1 %vm283_vm3, %v6653_v23  ;;  %7506 = vmatprep.mubr.msk.bf16.mxu0 %vm283_vm3, %v7973_v25  ;;  %v7992_v23 = vld [vmem:[%s11090_s4 + $0xf0] sm:$0xff]   ;;  %v10047_v25 = vsel %vm9713_vm0, %v2703_v31, %v2704_v44  ;;  %v5139_v31 = vld [vmem:[#allocation2 + $0x18] sm:$0xf] }
 0x386   : > { %7322 = vmatprep.mubr.msk.bf16.mxu1 %vm283_vm3, %v6654_v32  ;;  %v2639_v32 = vld [vmem:[#allocation2 + $0x3c] sm:$0xe]  ;;  %v10052_v35 = vsel %vm9713_vm0, %v2710_v52, %v2711_v59  ;;  %v5188_v28 = vshrl.u32 %v5139_v31, 16  ;;  %v5191_v59 = vshll.u32 %v5139_v31, 16  ;;  %v8183_v31 = vld [vmem:[#allocation2 + $0x5c] sm:$0x1] }
 0x387   : > { %v6687_v56 = vrot.slane %v2639_v32, 9  ;;  %v5197_v32 = vshll.u32 %v5140_v14, 16  ;;  %v2739_v14 = vrot.slane %v8183_v31, 5  ;;  %v7987_v31 = vld [vmem:[#allocation2 + $0x60] sm:$0xff]  }
 0x38c   : > { %7507 = vmatmul.mubr.msk.bf16.vlgmr.msra.gmra.mrb[4].mxu0 %vm283_vm3, %v7976_v21 }
 0x38d   : > { %7323 = vmatmul.mubr.msk.bf16.gmra.mrb[20].mxu1 %vm283_vm3, %v6655_v61  ;;  %7539 = vmatpush3.bf16.msra.mxu0 %v9845_v40  ;;  %v10040_v40 = vsel %vm9713_vm0, %v2696_v33, %v2697_v63  ;;  %v2729_v63 = vrot.slane %v10054_v6, 5  ;;  %v2641_v33 = vld [vmem:[#allocation2 + $0x54] sm:$0xe]  ;;  %v2643_v61 = vld [vmem:[#allocation2 + $0x6c] sm:$0xe] }
 0x38e   : > { %7326 = vmatprep.mubr.msk.bf16.mxu1 %vm283_vm3, %v6656_v34  ;;  %7510 = vmatprep.mubr.msk.bf16.mxu0 %vm283_vm3, %v7977_v7  ;;  %v2717_v34 = vrot.slane %v2715_v16, 4  ;;  %v2640_v7 = vld [vmem:[#allocation2 + $0x48] sm:$0xe]  ;;  %v10097_v16 = vsel %vm9713_vm0, %v6687_v56, %v2722_v41  ;;  %v2743_v41 = vrot.slane %v9995_v62, 5  ;;  %v5142_v56 = vld [vmem:[#allocation2 + $0x24] sm:$0xf] }
 0x38f   : > { %7540 = vmatprep.subr.bf16.mxu0 %v7984_v2  ;;  %v2731_v44 = vrot.slane %v2729_v63, 4  ;;  %v6688_v6 = vrot.slane %v2640_v7, 9  ;;  %v10110_v7 = vsel %vm9713_vm0, %v2724_v4, %v2725_v54  ;;  %v10121_v62 = vrot.slane %v5197_v32, 5 }
 0x390   : > { %v5212_v54 = vshrl.u32 %v5142_v56, 16  ;;  %v2750_v32 = vrot.slane %v9725_v13, 5 }
 0x391   : > { %7541 = vmatpush3.bf16.msra.mxu0 %v7984_v2  ;;  %v8180_v2 = vld [vmem:[#allocation2 + $0x38] sm:$0x1]  ;;  %v10127_v37 = vsel %vm9713_vm0, %v6688_v6, %v2729_v63 }
 0x392   : > { %7542 = vmatprep.subr.bf16.mxu0 %v7992_v23  ;;  %v2718_v52 = vrot.slane %v8180_v2, 5 }
 0x394   : > { %7511 = vmatmul.mubr.msk.bf16.gmra.mrb[8].mxu0 %vm283_vm3, %v7980_v26  ;;  %v8182_v26 = vld [vmem:[#allocation2 + $0x50] sm:$0x1]  ;;  %v10105_v50 = vsel %vm9713_vm0, %v2717_v34, %v2718_v52  ;;  %v5190_v34 = vrot.slane %v5188_v28, 4  ;;  %v5193_v52 = vrot.slane %v5191_v59, 5  ;;  %v2745_v59 = vrot.slane %v2743_v41, 4 }
 0x395   : > { %7327 = vmatmul.mubr.msk.bf16.gmra.mrb[24].mxu1 %vm283_vm3, %v6657_v9  ;;  %7514 = vmatprep.mubr.msk.bf16.mxu0 %vm283_vm3, %v7981_v48  ;;  %v2732_v2 = vrot.slane %v8182_v26, 5  ;;  %v6689_v9 = vrot.slane %v2641_v33, 9  ;;  %v10119_v33 = vld [vmem:[%s11090_s4 + $0x100] sm:$0xff]   ;;  %v5203_v48 = vrot.slane %v5201_v10, 4  ;;  %v7986_v26 = vld [vmem:[#allocation2 + $0x54] sm:$0xff]  }
 0x396   : > { %7330 = vmatprep.mubr.msk.bf16.mxu1 %vm283_vm3, %v6658_v30  ;;  %7543 = vmatpush3.bf16.msra.mxu0 %v7992_v23  ;;  %v2738_v30 = vrot.slane %v2736_v22, 4  ;;  %v6690_v23 = vrot.slane %v2642_v27, 9  ;;  %v5215_v27 = vshll.u32 %v5142_v56, 16  ;;  %v5143_v10 = vld [vmem:[#allocation2 + $0x28] sm:$0xf] }
 0x397   : > { %7544 = vmatprep.subr.bf16.mxu0 %v7998_v46  ;;  %v10114_v36 = vsel %vm9713_vm0, %v2731_v44, %v2732_v2  ;;  %v5141_v44 = vld [vmem:[#allocation2 + $0x20] sm:$0x1]  ;;  %v10133_v28 = vsel %vm9713_vm0, %v6689_v9, %v2736_v22  ;;  %v8184_v56 = vld [vmem:[#allocation2 + $0x68] sm:$0x1]  ;;  %v5145_v22 = vld [vmem:[#allocation2 + $0x30] sm:$0xf]  ;;  %v5194_v9 = vor.u32 %v5193_v52, %v5190_v34  ;;  %v5204_v63 = vor.u32 %v5203_v48, %v10121_v62 }
 0x398   : > { %v10140_v6 = vsel %vm9713_vm0, %v2738_v30, %v2739_v14  ;;  %v2746_v4 = vrot.slane %v8184_v56, 5  ;;  %v10147_v13 = vsel %vm9713_vm0, %v6690_v23, %v2743_v41  ;;  %v5207_v2 = vshll.u32 %v5141_v44, 16  ;;  %v5146_v14 = vld [vmem:[#allocation2 + $0x34] sm:$0xf] }
 0x399   : > { %v5214_v30 = vrot.slane %v5212_v54, 4  ;;  %v5221_v56 = vshll.u32 %v5143_v10, 16  ;;  %v5225_v42 = vshrl.u32 %v5143_v10, 16  ;;  %v2752_v23 = vrot.slane %v2750_v32, 4 }
 0x39a   : > { %7545 = vmatpush3.bf16.msra.mxu0 %v7998_v46  ;;  %v2757_v46 = vrot.slane %v9736_v20, 5  ;;  %v2644_v20 = vld [vmem:[#allocation2 + $0x78] sm:$0xe]  ;;  %v10161_v41 = vsel %vm9713_vm0, %v2745_v59, %v2746_v4  ;;  %v5236_v8 = vshrl.u32 %v5145_v22, 16  ;;  %v5239_v34 = vshll.u32 %v5145_v22, 16  ;;  %v7989_v59 = vld [vmem:[#allocation2 + $0x6c] sm:$0xff]  }
 0x39b   : > { %7578 = vmatprep.subr.bf16.mxu0 %v10119_v33  ;;  %v5245_v48 = vshll.u32 %v5146_v14, 16  ;;  %v5249_v44 = vshrl.u32 %v5146_v14, 16  ;;  %v5195_v54 = vrot.slane %v5194_v9, 4  ;;  %v6692_v24 = vrot.slane %v2644_v20, 9  ;;  %v7990_v9 = vld [vmem:[#allocation2 + $0x78] sm:$0xff]  }
 0x39c   : > { %7515 = vmatmul.mubr.msk.bf16.gmra.mrb[12].mxu0 %vm283_vm3, %v7986_v26  ;;  %v5217_v26 = vrot.slane %v5215_v27, 5  ;;  %v2759_v52 = vrot.slane %v2757_v46, 4  ;;  %v5205_v27 = vrot.slane %v5204_v63, 4  ;;  %v10164_v21 = vrot.slane %v5221_v56, 5 }
 0x39d   : > { %7331 = vmatmul.mubr.msk.bf16.gmra.mrb[28].mxu1 %vm283_vm3, %v6659_v15  ;;  %7518 = vmatprep.mubr.msk.bf16.mxu0 %vm283_vm3, %v7987_v31  ;;  %v6691_v15 = vrot.slane %v2643_v61, 9  ;;  %v8185_v31 = vld [vmem:[#allocation2 + $0x74] sm:$0x1]  ;;  %v5227_v4 = vrot.slane %v5225_v42, 4  ;;  %v5209_v53 = vrot.slane %v5207_v2, 5  ;;  %v5238_v22 = vrot.slane %v5236_v8, 4 }
 0x39e   : > { %7334 = vmatprep.mubr.msk.bf16.mxu1 %vm283_vm3, %v6660_v3  ;;  %v2753_v10 = vrot.slane %v8185_v31, 5  ;;  %v5218_v3 = vor.u32 %v5217_v26, %v5214_v30  ;;  %v5241_v14 = vrot.slane %v5239_v34, 5  ;;  %v10172_v63 = vsel %vm9713_vm0, %v2759_v52, %v2760_v57  ;;  %v5149_v34 = vld [vmem:[#allocation2 + $0x40] sm:$0xf]  ;;  %v8186_v2 = vld [vmem:[#allocation2 + $0x8c] sm:$0x1] }
 0x39f   : > { %v5231_v20 = vshll.u32 %v5144_v19, 16  ;;  %v10174_v31 = vrot.slane %v5245_v48, 5  ;;  %v5251_v11 = vrot.slane %v5249_v44, 4  ;;  %v5200_v30 = vsel %vm8868_vm10, %v5195_v54, %v10121_v62 }
 0x3a0   : > { %v10168_v61 = vsel %vm9713_vm0, %v2752_v23, %v2753_v10  ;;  %v5210_v26 = vsel %vm8868_vm10, %v5205_v27, %v5209_v53  ;;  %v11174_v19 = vcombine.low %v9861_v58, %v9863_v45  ;;  %v10193_v56 = vsel %vm9713_vm0, %v6691_v15, %v2750_v32  ;;  %v5148_v53 = vld [vmem:[#allocation2 + $0x3c] sm:$0xf]  ;;  %v10210_v15 = vld [vmem:[#allocation2 + $0x38] sm:$0x1] }
 0x3a1   : > { %v10197_v23 = vsel %vm9713_vm0, %v6692_v24, %v2757_v46  ;;  %v10199_v8 = vrot.slane %v5218_v3, 4  ;;  %v5228_v62 = vor.u32 %v5227_v4, %v10164_v21  ;;  %v11175_v58 = vcombine.low %v10030_v17, %v10036_v5  ;;  %11176 = vst [vmem:[#allocation18_spill] sm:$0xff] %v10210_v15  ;;  %v2645_v46 = vld [vmem:[#allocation2 + $0x84] sm:$0xe]  ;;  %v5151_v5 = vld [vmem:[#allocation2 + $0x48] sm:$0xf] }
 0x3a2   : > { %v5242_v24 = vor.u32 %v5241_v14, %v5238_v22  ;;  %v2764_v52 = vrot.slane %v9775_v47, 5  ;;  %v10213_v48 = vcombine.low %v5200_v30, %v5210_v26  ;;  %v5233_v44 = vrot.slane %v5231_v20, 5  ;;  %v10217_v4 = vld [vmem:[#allocation2 + $0x4c] sm:$0xf] }
 0x3a3   : > { %v5252_v54 = vor.u32 %v5251_v11, %v10174_v31  ;;  %v2771_v17 = vrot.slane %v9781_v29, 5  ;;  %v5260_v27 = vshrl.u32 %v5148_v53, 16  ;;  %v5263_v10 = vshll.u32 %v5148_v53, 16  ;;  %v2646_v29 = vld [vmem:[#allocation2 + $0x90] sm:$0xe]  ;;  %v7997_v53 = vld [vmem:[%s11090_s4 + $0x68] sm:$0xff]  }
 0x3a4   : > { %7519 = vmatmul.mubr.msk.bf16.gmra.mrb[16].mxu0 %vm283_vm3, %v7989_v59  ;;  %v5269_v57 = vshll.u32 %v5149_v34, 16  ;;  %v5273_v3 = vshrl.u32 %v5149_v34, 16  ;;  %v7993_v59 = vld [vmem:[#allocation2 + $0x84] sm:$0xff]   ;;  %v5224_v47 = vsel %vm8868_vm10, %v10199_v8, %v10164_v21  ;;  %v5229_v22 = vrot.slane %v5228_v62, 4 }
 0x3a5   : > { %7335 = vmatmul.mubr.msk.bf16.gmra.mrb[32].mxu1 %vm283_vm3, %v11174_v19  ;;  %7522 = vmatprep.mubr.msk.bf16.mxu0 %vm283_vm3, %v7990_v9  ;;  %v5255_v14 = vshll.u32 %v10210_v15, 16  ;;  %v6693_v9 = vrot.slane %v2645_v46, 9  ;;  %v5243_v20 = vrot.slane %v5242_v24, 4  ;;  %v2766_v11 = vrot.slane %v2764_v52, 4  ;;  %v7994_v19 = vld [vmem:[#allocation2 + $0x90] sm:$0xff]  }
 0x3a6   : > { %7346 = vmatprep.mubr.msk.bf16.mxu1 %vm283_vm3, %v11175_v58  ;;  %v5284_v30 = vshrl.u32 %v5151_v5, 16  ;;  %v5287_v26 = vshll.u32 %v5151_v5, 16  ;;  %v5253_v34 = vrot.slane %v5252_v54, 4  ;;  %v2773_v58 = vrot.slane %v2771_v17, 4  ;;  %v10396_v15 = vld [vmem:[#allocation2 + $0x94] sm:$0xf] }
 0x3a7   : > { %v5293_v32 = vshll.u32 %v10217_v4, 16  ;;  %v5297_v21 = vshrl.u32 %v10217_v4, 16  ;;  %v5262_v8 = vrot.slane %v5260_v27, 4  ;;  %v5265_v62 = vrot.slane %v5263_v10, 5  ;;  %v10241_v27 = vld [vmem:[#allocation2 + $0x44] sm:$0x1] }
 0x3a8   : > { %v10230_v24 = vrot.slane %v5269_v57, 5  ;;  %v5275_v46 = vrot.slane %v5273_v3, 4  ;;  %v11177_v5 = vcombine.low %v10063_v1, %v10040_v40  ;;  %v5257_v54 = vrot.slane %v5255_v14, 5  ;;  %11178 = vst [vmem:[#allocation12_spill] sm:$0xff] %v10241_v27  ;;  %v8187_v1 = vld [vmem:[#allocation2 + $0x98] sm:$0x1] }
 0x3a9   : > { %v10239_v45 = vsel %vm9713_vm0, %v6693_v9, %v2764_v52  ;;  %v2767_v42 = vrot.slane %v8186_v2, 5  ;;  %v11179_v10 = vcombine.low %v10067_v38, %v10047_v25  ;;  %v5234_v40 = vsel %vm8868_vm10, %v5229_v22, %v5233_v44  ;;  %v5154_v14 = vld [vmem:[#allocation2 + $0x54] sm:$0xf]  ;;  %v10260_v38 = vld [vmem:[#allocation2 + $0x50] sm:$0x1] }
 0x3aa   : > { %v2774_v57 = vrot.slane %v8187_v1, 5  ;;  %v5286_v3 = vrot.slane %v5284_v30, 4  ;;  %v5289_v52 = vrot.slane %v5287_v26, 5  ;;  %v8002_v2 = vld [vmem:[%s11090_s4 + $0x70] sm:$0xff]   ;;  %v5248_v25 = vsel %vm8868_vm10, %v5243_v20, %v10174_v31  ;;  %v2647_v20 = vld [vmem:[#allocation2 + $0x9c] sm:$0xe] }
 0x3ab   : > { %v10262_v44 = vrot.slane %v5293_v32, 5  ;;  %v5299_v22 = vrot.slane %v5297_v21, 4  ;;  %v5258_v9 = vsel %vm8868_vm10, %v5253_v34, %v5257_v54  ;;  %v5266_v30 = vor.u32 %v5265_v62, %v5262_v8  ;;  %v10280_v62 = vld [vmem:[#allocation2 + $0x58] sm:$0xf]  ;;  %v5157_v1 = vld [vmem:[#allocation2 + $0x60] sm:$0xf] }
 0x3ac   : > { %7523 = vmatmul.mubr.msk.bf16.gmra.mrb[20].mxu0 %vm283_vm3, %v7993_v59  ;;  %v6694_v59 = vrot.slane %v2646_v29, 9  ;;  %v10268_v29 = vsel %vm9713_vm0, %v2773_v58, %v2774_v57  ;;  %v5276_v26 = vor.u32 %v5275_v46, %v10230_v24  ;;  %v10271_v31 = vcombine.low %v5224_v47, %v5234_v40  ;;  %v7996_v47 = vld [vmem:[#allocation2 + $0xa8] sm:$0xff]   ;;  %v8004_v54 = vld [vmem:[%s11090_s4 + $0x78] sm:$0xff]  }
 0x3ad   : > { %7347 = vmatmul.mubr.msk.bf16.vlgmr.msra.gmra.mrb[4].mxu1 %vm283_vm3, %v11177_v5  ;;  %7526 = vmatprep.mubr.msk.bf16.mxu0 %vm283_vm3, %v7994_v19  ;;  %v5308_v32 = vshrl.u32 %v5154_v14, 16  ;;  %v7995_v19 = vld [vmem:[#allocation2 + $0x9c] sm:$0xff]   ;;  %v5279_v34 = vshll.u32 %v10241_v27, 16  ;;  %v5290_v21 = vor.u32 %v5289_v52, %v5286_v3  ;;  %v5303_v58 = vshll.u32 %v10260_v38, 16  ;;  %v2648_v3 = vld [vmem:[#allocation2 + $0xa8] sm:$0xe] }
 0x3ae   : > { %7350 = vmatprep.mubr.msk.bf16.mxu1 %vm283_vm3, %v11179_v10  ;;  %7379 = vmatpush3.bf16.msra.mxu1 %v9967_v51  ;;  %v10258_v51 = vsel %vm9713_vm0, %v2766_v11, %v2767_v42  ;;  %v10275_v42 = vsel %vm9713_vm0, %v6694_v59, %v2771_v17  ;;  %v5311_v11 = vshll.u32 %v5154_v14, 16  ;;  %v2778_v8 = vrot.slane %v9824_v49, 5  ;;  %v8001_v5 = vld [vmem:[#allocation2 + $0xcc] sm:$0xff]  }
 0x3af   : > { %7380 = vmatprep.subr.bf16.mxu1 %v7997_v53  ;;  %v10282_v46 = vcombine.low %v5248_v25, %v5258_v9  ;;  %v5267_v49 = vrot.slane %v5266_v30, 4  ;;  %v5277_v59 = vrot.slane %v5276_v26, 4  ;;  %v6695_v10 = vrot.slane %v2647_v20, 9  ;;  %v8188_v20 = vld [vmem:[#allocation2 + $0xa4] sm:$0x1] }
 0x3b0   : > { %v2785_v40 = vrot.slane %v9837_v55, 5  ;;  %v11180_v57 = vcombine.low %v10075_v18, %v10052_v35  ;;  %v5310_v52 = vrot.slane %v5308_v32, 4  ;;  %v5313_v14 = vrot.slane %v5311_v11, 5  ;;  %v10305_v32 = vld [vmem:[#allocation2 + $0x64] sm:$0xf] }
 0x3b1   : > { %v5317_v25 = vshll.u32 %v10280_v62, 16  ;;  %v11181_v9 = vcombine.low %v10083_v39, %v10105_v50  ;;  %v5281_v55 = vrot.slane %v5279_v34, 5  ;;  %v5291_v30 = vrot.slane %v5290_v21, 4  ;;  %v10316_v34 = vld [vmem:[#allocation2 + $0x5c] sm:$0x1] }
 0x3b2   : > { %7381 = vmatpush3.bf16.msra.mxu1 %v7997_v53  ;;  %v5300_v53 = vor.u32 %v5299_v22, %v10262_v44  ;;  %v5321_v22 = vshrl.u32 %v10280_v62, 16  ;;  %v5305_v35 = vrot.slane %v5303_v58, 5  ;;  %v2780_v18 = vrot.slane %v2778_v8, 4 }
 0x3b3   : > { %7382 = vmatprep.subr.bf16.mxu1 %v8002_v2  ;;  %v5332_v11 = vshrl.u32 %v5157_v1, 16  ;;  %v5282_v39 = vsel %vm8868_vm10, %v5277_v59, %v5281_v55  ;;  %v10314_v50 = vsel %vm9713_vm0, %v6695_v10, %v2778_v8  ;;  %v2787_v21 = vrot.slane %v2785_v40, 4  ;;  %v8189_v8 = vld [vmem:[#allocation2 + $0xb0] sm:$0x1] }
 0x3b4   : > { %7527 = vmatmul.mubr.msk.bf16.gmra.mrb[24].mxu0 %vm283_vm3, %v7995_v19  ;;  %v5301_v26 = vrot.slane %v5300_v53, 4  ;;  %v2781_v19 = vrot.slane %v8188_v20, 5  ;;  %v5314_v58 = vor.u32 %v5313_v14, %v5310_v52  ;;  %v10318_v53 = vrot.slane %v5317_v25, 5  ;;  %v7999_v20 = vld [vmem:[#allocation2 + $0xb4] sm:$0xff]   ;;  %v8000_v52 = vld [vmem:[#allocation2 + $0xc0] sm:$0xff]  }
 0x3b5   : > { %7351 = vmatmul.mubr.msk.bf16.gmra.mrb[8].mxu1 %vm283_vm3, %v11180_v57  ;;  %7530 = vmatprep.mubr.msk.bf16.mxu0 %vm283_vm3, %v7996_v47  ;;  %v5335_v47 = vshll.u32 %v5157_v1, 16  ;;  %v5272_v57 = vsel %vm8868_vm10, %v5267_v49, %v10230_v24  ;;  %v10320_v1 = vld [vmem:[#allocation2 + $0x68] sm:$0x1]  ;;  %v5296_v24 = vsel %vm8868_vm10, %v5291_v30, %v10262_v44  ;;  %v2788_v59 = vrot.slane %v8189_v8, 5  ;;  %v10336_v44 = vld [vmem:[%s11090_s4 + $0x80] sm:$0xff]  }
 0x3b6   : > { %7354 = vmatprep.mubr.msk.bf16.mxu1 %vm283_vm3, %v11181_v9  ;;  %7383 = vmatpush3.bf16.msra.mxu1 %v8002_v2  ;;  %v6696_v2 = vrot.slane %v2648_v3, 9  ;;  %v5323_v9 = vrot.slane %v5321_v22, 4  ;;  %v10327_v49 = vsel %vm9713_vm0, %v2780_v18, %v2781_v19  ;;  %v5341_v10 = vshll.u32 %v10305_v32, 16  ;;  %v5160_v3 = vld [vmem:[#allocation2 + $0x6c] sm:$0xf]  ;;  %11182 = vst [vmem:[#allocation13_spill] sm:$0xff] %v10336_v44 }
 0x3b7   : > { %7384 = vmatprep.subr.bf16.mxu1 %v8004_v54  ;;  %v5306_v14 = vsel %vm8868_vm10, %v5301_v26, %v5305_v35  ;;  %v5334_v25 = vrot.slane %v5332_v11, 4  ;;  %v5337_v22 = vrot.slane %v5335_v47, 5  ;;  %v5345_v55 = vshrl.u32 %v10305_v32, 16  ;;  %v2649_v26 = vld [vmem:[#allocation2 + $0xb4] sm:$0xe] }
 0x3b8   : > { %v10344_v30 = vsel %vm9713_vm0, %v6696_v2, %v2785_v40  ;;  %v5327_v35 = vshll.u32 %v10316_v34, 16  ;;  %v5351_v18 = vshll.u32 %v10320_v1, 16  ;;  %v11183_v19 = vcombine.low %v10097_v16, %v10110_v7  ;;  %v10384_v16 = vld [vmem:[#allocation2 + $0x88] sm:$0xf] }
 0x3b9   : > { %v10355_v11 = vsel %vm9713_vm0, %v2787_v21, %v2788_v59  ;;  %v10357_v47 = vrot.slane %v5314_v58, 4  ;;  %v5324_v40 = vor.u32 %v5323_v9, %v10318_v53  ;;  %v10364_v2 = vcombine.low %v5296_v24, %v5306_v14  ;;  %v8191_v9 = vld [vmem:[#allocation2 + $0xb8] sm:$0xf]  ;;  %v8192_v14 = vld [vmem:[#allocation2 + $0xbc] sm:$0x1]  ;;  %11187 = vst [vmem:[#allocation15_spill] sm:$0xff] %v10384_v16 }
 0x3ba   : > { %7385 = vmatpush3.bf16.msra.mxu1 %v8004_v54  ;;  %v10340_v54 = vcombine.low %v5272_v57, %v5282_v39  ;;  %v5356_v57 = vshrl.u32 %v5160_v3, 16  ;;  %v11184_v39 = vcombine.low %v10127_v37, %v10114_v36  ;;  %v10368_v7 = vrot.slane %v5341_v10, 5  ;;  %v10376_v10 = vld [vmem:[#allocation2 + $0x7c] sm:$0xf] }
 0x3bb   : > { %7642 = vmatprep.subr.bf16.mxu1 %v10336_v44  ;;  %v5359_v21 = vshll.u32 %v5160_v3, 16  ;;  %v5338_v58 = vor.u32 %v5337_v22, %v5334_v25  ;;  %v5347_v8 = vrot.slane %v5345_v55, 4  ;;  %v6697_v59 = vrot.slane %v2649_v26, 9  ;;  %11186 = vst [vmem:[#allocation14_spill] sm:$0xff] %v10376_v10  ;;  %v5166_v26 = vld [vmem:[#allocation2 + $0x84] sm:$0xf] }
 0x3bc   : > { %7531 = vmatmul.mubr.msk.bf16.gmra.mrb[28].mxu0 %vm283_vm3, %v7999_v20  ;;  %v10370_v20 = vld [vmem:[#allocation2 + $0x70] sm:$0xf]  ;;  %v5329_v37 = vrot.slane %v5327_v35, 5  ;;  %v10374_v24 = vrot.slane %v5351_v18, 5  ;;  %v5320_v3 = vsel %vm8868_vm10, %v10357_v47, %v10318_v53  ;;  %v5325_v25 = vrot.slane %v5324_v40, 4 }
 0x3bd   : > { %7355 = vmatmul.mubr.msk.bf16.gmra.mrb[12].mxu1 %vm283_vm3, %v11183_v19  ;;  %7534 = vmatprep.mubr.msk.bf16.mxu0 %vm283_vm3, %v8000_v52  ;;  %11185 = vst [vmem:[#allocation6_spill] sm:$0xff] %v10370_v20  ;;  %v2792_v52 = vrot.slane %v8191_v9, 5  ;;  %v5163_v19 = vld [vmem:[#allocation2 + $0x78] sm:$0xf]  ;;  %v5358_v22 = vrot.slane %v5356_v57, 4  ;;  %v5365_v55 = vshll.u32 %v10370_v20, 16  ;;  %v5348_v17 = vor.u32 %v5347_v8, %v10368_v7 }
 0x3be   : > { %7358 = vmatprep.mubr.msk.bf16.mxu1 %vm283_vm3, %v11184_v39  ;;  %v2795_v39 = vrot.slane %v8192_v14, 5  ;;  %v5361_v9 = vrot.slane %v5359_v21, 5  ;;  %v5369_v36 = vshrl.u32 %v10370_v20, 16  ;;  %v5380_v35 = vshrl.u32 %v5163_v19, 16  ;;  %v5169_v47 = vld [vmem:[#allocation2 + $0x90] sm:$0xf] }
 0x3bf   : > { %v5383_v18 = vshll.u32 %v5163_v19, 16  ;;  %v10386_v14 = vrot.slane %v5338_v58, 4  ;;  %v10391_v27 = vsel %vm9713_vm0, %v6697_v59, %v2792_v52  ;;  %v2794_v53 = vrot.slane %v2792_v52, 4 }
 0x3c0   : > { %v5389_v40 = vshll.u32 %v10376_v10, 16  ;;  %v5393_v57 = vshrl.u32 %v10376_v10, 16  ;;  %v5404_v21 = vshrl.u32 %v5166_v26, 16  ;;  %v5407_v19 = vshll.u32 %v5166_v26, 16 }
 0x3c1   : > { %v11188_v58 = vcombine.low %v10133_v28, %v10140_v6  ;;  %v5330_v8 = vsel %vm8868_vm10, %v5325_v25, %v5329_v37  ;;  %v5413_v59 = vshll.u32 %v10384_v16, 16  ;;  %v5417_v52 = vshrl.u32 %v10384_v16, 16 }
 0x3c2   : > { %v11189_v26 = vcombine.low %v10147_v13, %v10161_v41  ;;  %v5362_v28 = vor.u32 %v5361_v9, %v5358_v22  ;;  %v5371_v6 = vrot.slane %v5369_v36, 4  ;;  %v5385_v44 = vrot.slane %v5383_v18, 5  ;;  %v10422_v41 = vld [vmem:[#allocation2 + $0x74] sm:$0x1] }
 0x3c3   : > { %v5428_v0 = vshrl.u32 %v5169_v47, 16  ;;  %v5437_v12 = vshll.u32 %v10396_v15, 16  ;;  %v5441_v37 = vshrl.u32 %v10396_v15, 16  ;;  %v10416_v25 = vrot.slane %v5389_v40, 5  ;;  %v10437_v40 = vld [vmem:[#allocation2 + $0xa0] sm:$0xf] }
 0x3c4   : > { %7535 = vmatmul.mubr.msk.bf16.gmra.mrb[32].mxu0 %vm283_vm3, %v8001_v5  ;;  %v10406_v5 = vrot.slane %v5365_v55, 5  ;;  %v5395_v55 = vrot.slane %v5393_v57, 4  ;;  %v5406_v10 = vrot.slane %v5404_v21, 4  ;;  %v5409_v16 = vrot.slane %v5407_v19, 5  ;;  %v8005_v57 = vld [vmem:[%s11090_s4 + $0x108] sm:$0xff]  }
 0x3c5   : > { %7359 = vmatmul.mubr.msk.bf16.gmra.mrb[16].mxu1 %vm283_vm3, %v11188_v58  ;;  %7546 = vmatprep.mubr.msk.bf16.mxu0 %vm283_vm3, %v10213_v48  ;;  %v5382_v58 = vrot.slane %v5380_v35, 4  ;;  %v5431_v48 = vshll.u32 %v5169_v47, 16  ;;  %v10418_v20 = vcombine.low %v5320_v3, %v5330_v8  ;;  %v10420_v13 = vrot.slane %v5348_v17, 4  ;;  %v10435_v3 = vld [vmem:[#allocation2 + $0x80] sm:$0x1] }
 0x3c6   : > { %7362 = vmatprep.mubr.msk.bf16.mxu1 %vm283_vm3, %v11189_v26  ;;  %v10424_v36 = vrot.slane %v5413_v59, 5  ;;  %v5419_v22 = vrot.slane %v5417_v52, 4  ;;  %v10432_v35 = vsel %vm9713_vm0, %v2794_v53, %v2795_v39  ;;  %v5372_v18 = vor.u32 %v5371_v6, %v10406_v5  ;;  %v5172_v47 = vld [vmem:[#allocation2 + $0x9c] sm:$0xf]  ;;  %v10450_v52 = vld [vmem:[#allocation2 + $0x8c] sm:$0x1] }
 0x3c7   : > { %v5386_v17 = vor.u32 %v5385_v44, %v5382_v58  ;;  %v5430_v21 = vrot.slane %v5428_v0, 4  ;;  %v5433_v19 = vrot.slane %v5431_v48, 5  ;;  %v10442_v8 = vrot.slane %v5437_v12, 5 }
 0x3c8   : > { %v5443_v59 = vrot.slane %v5441_v37, 4  ;;  %v10446_v39 = vrot.slane %v5362_v28, 4  ;;  %v5375_v53 = vshll.u32 %v10422_v41, 16  ;;  %v5396_v44 = vor.u32 %v5395_v55, %v10416_v25 }
 0x3c9   : > { %v5410_v26 = vor.u32 %v5409_v16, %v5406_v10  ;;  %v11190_v6 = vcombine.low %v10193_v56, %v10168_v61  ;;  %v5354_v0 = vsel %vm8868_vm10, %v10420_v13, %v10374_v24  ;;  %v5420_v12 = vor.u32 %v5419_v22, %v10424_v36  ;;  %v8008_v56 = vld [vmem:[%s11090_s4 + $0x110] sm:$0xff]  }
 0x3ca   : > { %v5452_v28 = vshrl.u32 %v5172_v47, 16  ;;  %v5455_v58 = vshll.u32 %v5172_v47, 16  ;;  %v11191_v16 = vcombine.low %v10197_v23, %v10172_v63  ;;  %v5399_v61 = vshll.u32 %v10435_v3, 16 }
 0x3cb   : > { %v5461_v24 = vshll.u32 %v10437_v40, 16  ;;  %v5465_v10 = vshrl.u32 %v10437_v40, 16  ;;  %v5387_v48 = vrot.slane %v5386_v17, 4  ;;  %v5423_v63 = vshll.u32 %v10450_v52, 16  ;;  %v5175_v17 = vld [vmem:[#allocation2 + $0xa8] sm:$0xf] }
 0x3cc   : > { %7547 = vmatmul.mubr.msk.bf16.vlgmr.msra.gmra.mrb[4].mxu0 %vm283_vm3, %v10271_v31  ;;  %v10462_v31 = vld [vmem:[#allocation2 + $0x98] sm:$0x1]  ;;  %v5434_v23 = vor.u32 %v5433_v19, %v5430_v21  ;;  %v5444_v37 = vor.u32 %v5443_v59, %v10442_v8  ;;  %v5377_v55 = vrot.slane %v5375_v53, 5  ;;  %v5397_v13 = vrot.slane %v5396_v44, 4  ;;  %v10485_v59 = vld [vmem:[#allocation2 + $0xa4] sm:$0x1] }
 0x3cd   : > { %7363 = vmatmul.mubr.msk.bf16.gmra.mrb[20].mxu1 %vm283_vm3, %v11190_v6  ;;  %7579 = vmatpush3.bf16.msra.mxu0 %v10119_v33  ;;  %v5373_v33 = vrot.slane %v5372_v18, 4  ;;  %v5411_v22 = vrot.slane %v5410_v26, 4  ;;  %v5421_v18 = vrot.slane %v5420_v12, 4  ;;  %v5447_v47 = vshll.u32 %v10462_v31, 16  ;;  %v10492_v26 = vld [vmem:[#allocation2 + $0xac] sm:$0xf] }
 0x3ce   : > { %7366 = vmatprep.mubr.msk.bf16.mxu1 %vm283_vm3, %v11191_v16  ;;  %7550 = vmatprep.mubr.msk.bf16.mxu0 %vm283_vm3, %v10282_v46  ;;  %v5368_v46 = vsel %vm8868_vm10, %v10446_v39, %v10406_v5  ;;  %v5454_v6 = vrot.slane %v5452_v28, 4  ;;  %v5457_v16 = vrot.slane %v5455_v58, 5  ;;  %v5401_v19 = vrot.slane %v5399_v61, 5  ;;  %v8013_v12 = vld [vmem:[%s11090_s4 + $0x118] sm:$0xff]  }
 0x3cf   : > { %7580 = vmatprep.subr.bf16.mxu0 %v8005_v57  ;;  %v5378_v21 = vsel %vm8868_vm10, %v5373_v33, %v5377_v55  ;;  %v10487_v9 = vrot.slane %v5461_v24, 5  ;;  %v5467_v5 = vrot.slane %v5465_v10, 4  ;;  %v5425_v39 = vrot.slane %v5423_v63, 5 }
 0x3d0   : > { %v5435_v53 = vrot.slane %v5434_v23, 4  ;;  %v5445_v44 = vrot.slane %v5444_v37, 4  ;;  %v5402_v28 = vsel %vm8868_vm10, %v5397_v13, %v5401_v19  ;;  %v5416_v58 = vsel %vm8868_vm10, %v5411_v22, %v10424_v36  ;;  %v5896_v23 = vld [vmem:[#allocation2 + $0x48] sm:$0xe] }
 0x3d1   : > { %7581 = vmatpush3.bf16.msra.mxu0 %v8005_v57  ;;  %v5392_v57 = vsel %vm8868_vm10, %v5387_v48, %v10416_v25  ;;  %v5476_v25 = vshrl.u32 %v5175_v17, 16  ;;  %v5479_v33 = vshll.u32 %v5175_v17, 16  ;;  %v11192_v61 = vcombine.low %v10239_v45, %v10258_v51 }
 0x3d2   : > { %7582 = vmatprep.subr.bf16.mxu0 %v8008_v56  ;;  %v5449_v24 = vrot.slane %v5447_v47, 5  ;;  %v5458_v10 = vor.u32 %v5457_v16, %v5454_v6  ;;  %v5471_v48 = vshll.u32 %v10485_v59, 16  ;;  %v11193_v36 = vcombine.low %v10275_v42, %v10268_v29  ;;  %v5178_v6 = vld [vmem:[#allocation2 + $0xb4] sm:$0xf] }
 0x3d3   : > { %v6713_v45 = vcombine.low %v10391_v27, %v10432_v35  ;;  %v5468_v51 = vor.u32 %v5467_v5, %v10487_v9  ;;  %v5489_v63 = vshrl.u32 %v10492_v26, 16  ;;  %v11194_v37 = vsel %vm8868_vm10, %v10386_v14, %v10368_v7  ;;  %v5897_v16 = vld [vmem:[#allocation2 + $0x54] sm:$0xe] }
 0x3d4   : > { %7551 = vmatmul.mubr.msk.bf16.gmra.mrb[8].mxu0 %vm283_vm3, %v10340_v54  ;;  %v5426_v54 = vsel %vm8868_vm10, %v5421_v18, %v5425_v39  ;;  %v6900_v55 = vcombine.low %v11194_v37, %v5354_v0  ;;  %v10527_v29 = vcombine.low %v5368_v46, %v5378_v21  ;;  %v5440_v42 = vsel %vm8868_vm10, %v5435_v53, %v10442_v8  ;;  %v5898_v8 = vld [vmem:[#allocation2 + $0x60] sm:$0xe] }
 0x3d5   : > { %7367 = vmatmul.mubr.msk.bf16.gmra.mrb[24].mxu1 %vm283_vm3, %v11192_v61  ;;  %7554 = vmatprep.mubr.msk.bf16.mxu0 %vm283_vm3, %v10364_v2  ;;  %v5485_v2 = vshll.u32 %v10492_v26, 16  ;;  %v10534_v13 = vcombine.low %v5392_v57, %v5402_v28  ;;  %v10536_v22 = vcombine.low %v5416_v58, %v5426_v54  ;;  %v5478_v18 = vrot.slane %v5476_v25, 4  ;;  %v10553_v28 = vld [vmem:[#allocation2 + $0xb0] sm:$0x1] }
 0x3d6   : > { %7370 = vmatprep.mubr.msk.bf16.mxu1 %vm283_vm3, %v11193_v36  ;;  %7583 = vmatpush3.bf16.msra.mxu0 %v8008_v56  ;;  %v5450_v56 = vsel %vm8868_vm10, %v5445_v44, %v5449_v24  ;;  %v5481_v47 = vrot.slane %v5479_v33, 5  ;;  %v10538_v7 = vrot.slane %v5458_v10, 4  ;;  %v10540_v14 = vrot.slane %v5471_v48, 5 }
 0x3d7   : > { %7584 = vmatprep.subr.bf16.mxu0 %v8013_v12  ;;  %v6934_v0 = vrot.slane %v5896_v23, 9  ;;  %v5986_v46 = vrot.slane %v10217_v4, 5  ;;  %v10543_v17 = vcombine.low %v5440_v42, %v5450_v56  ;;  %v10545_v21 = vrot.slane %v5468_v51, 4  ;;  %v5900_v23 = vld [vmem:[#allocation2 + $0x78] sm:$0xe] }
 0x3d8   : > { %v10547_v19 = vrot.slane %v5485_v2, 5  ;;  %v5491_v5 = vrot.slane %v5489_v63, 4  ;;  %v5989_v39 = vrot.slane %v10260_v38, 5  ;;  %v6935_v53 = vrot.slane %v5897_v16, 9  ;;  %v5181_v56 = vld [vmem:[#allocation2 + $0xc0] sm:$0xf] }
 0x3d9   : > { %v5988_v57 = vrot.slane %v5986_v46, 4  ;;  %v5993_v44 = vrot.slane %v10280_v62, 5  ;;  %v5482_v4 = vor.u32 %v5481_v47, %v5478_v18  ;;  %v5500_v58 = vshrl.u32 %v5178_v6, 16  ;;  %v10610_v18 = vld [vmem:[#allocation2 + $0xc4] sm:$0xf] }
 0x3da   : > { %7585 = vmatpush3.bf16.msra.mxu0 %v8013_v12  ;;  %v6936_v25 = vrot.slane %v5898_v8, 9  ;;  %v6000_v33 = vrot.slane %v10305_v32, 5  ;;  %v11195_v61 = vcombine.low %v10314_v50, %v10327_v49  ;;  %v10563_v38 = vsel %vm9713_vm0, %v6934_v0, %v5986_v46  ;;  %v10574_v50 = vld [vmem:[#allocation2 + $0xb8] sm:$0xf] }
 0x3db   : > { %v10567_v62 = vsel %vm9713_vm0, %v5988_v57, %v5989_v39  ;;  %v5996_v12 = vrot.slane %v10316_v34, 5  ;;  %v11196_v32 = vcombine.low %v10344_v30, %v10355_v11  ;;  %v5503_v49 = vshll.u32 %v5178_v6, 16  ;;  %v5899_v11 = vld [vmem:[#allocation2 + $0x6c] sm:$0xe]  ;;  %v11197_v46 = vld [vmem:[#allocation6_spill] sm:$0xff] }
 0x3dc   : > { %7555 = vmatmul.mubr.msk.bf16.gmra.mrb[12].mxu0 %vm283_vm3, %v10418_v20  ;;  %v5995_v20 = vrot.slane %v5993_v44, 4  ;;  %v6950_v54 = vcombine.low %v10563_v38, %v10567_v62  ;;  %v6002_v24 = vrot.slane %v6000_v33, 4  ;;  %v6003_v10 = vrot.slane %v10320_v1, 5  ;;  %v3539_v38 = vld [vmem:[#allocation2 + $0x9c] sm:$0xf]  ;;  %v8022_v62 = vld [vmem:[#allocation2 + $0xb4] sm:$0xff]  }
 0x3dd   : > { %7371 = vmatmul.mubr.msk.bf16.gmra.mrb[28].mxu1 %vm283_vm3, %v11195_v61  ;;  %7558 = vmatprep.mubr.msk.bf16.mxu0 %vm283_vm3, %v6900_v55  ;;  %v5492_v48 = vor.u32 %v5491_v5, %v10547_v19  ;;  %v5495_v36 = vshll.u32 %v10553_v28, 16  ;;  %v10583_v34 = vsel %vm9713_vm0, %v6935_v53, %v5993_v44  ;;  %v5464_v51 = vsel %vm8868_vm10, %v10538_v7, %v10487_v9  ;;  %v3530_v5 = vld [vmem:[#allocation2 + $0x78] sm:$0xf]  ;;  %v8194_v9 = vld [vmem:[%s11090_s4 + $0x90] sm:$0xff]  }
 0x3de   : > { %7374 = vmatprep.mubr.msk.bf16.mxu1 %vm283_vm3, %v11196_v32  ;;  %v10587_v30 = vsel %vm9713_vm0, %v5995_v20, %v5996_v12  ;;  %v10597_v2 = vsel %vm9713_vm0, %v6936_v25, %v6000_v33  ;;  %v10601_v63 = vsel %vm9713_vm0, %v6002_v24, %v6003_v10  ;;  %v5474_v37 = vsel %vm8868_vm10, %v10545_v21, %v10540_v14  ;;  %v11198_v44 = vld [vmem:[#allocation14_spill] sm:$0xff]  ;;  %v8006_v25 = vld [vmem:[#allocation2 + $0xc] sm:$0xff]  }
 0x3df   : > { %v6951_v1 = vcombine.low %v10583_v34, %v10587_v30  ;;  %v10607_v55 = vrot.slane %v5482_v4, 4  ;;  %v5509_v42 = vshll.u32 %v10574_v50, 16  ;;  %v10614_v6 = vrot.slane %v5500_v58, 4 }
 0x3e0   : > { %v10616_v16 = vrot.slane %v5503_v49, 5  ;;  %v6937_v0 = vrot.slane %v5899_v11, 9  ;;  %v6007_v8 = vrot.slane %v11197_v46, 5  ;;  %v10619_v57 = vrot.slane %v5492_v48, 4 }
 0x3e1   : > { %v5513_v39 = vshrl.u32 %v10574_v50, 16  ;;  %v6938_v53 = vrot.slane %v5900_v23, 9  ;;  %v6014_v4 = vrot.slane %v11198_v44, 5  ;;  %v5524_v33 = vshrl.u32 %v5181_v56, 16 }
 0x3e2   : > { %v5527_v58 = vshll.u32 %v5181_v56, 16  ;;  %v6009_v61 = vrot.slane %v6007_v8, 4  ;;  %v6010_v20 = vrot.slane %v10422_v41, 5  ;;  %v5533_v12 = vshll.u32 %v10610_v18, 16 }
 0x3e3   : > { %v6016_v32 = vrot.slane %v6014_v4, 4  ;;  %v6017_v49 = vrot.slane %v10435_v3, 5  ;;  %v3768_v24 = vshrl.u32 %v3530_v5, 16  ;;  %v10639_v41 = vsel %vm9713_vm0, %v6937_v0, %v6007_v8 }
 0x3e4   : > { %7559 = vmatmul.mubr.msk.bf16.gmra.mrb[16].mxu0 %vm283_vm3, %v10527_v29  ;;  %v10635_v29 = vld [vmem:[#allocation2 + $0xbc] sm:$0x1]  ;;  %v10643_v27 = vsel %vm9713_vm0, %v6009_v61, %v6010_v20  ;;  %v3771_v35 = vshll.u32 %v3530_v5, 16  ;;  %v10653_v48 = vsel %vm9713_vm0, %v6938_v53, %v6014_v4  ;;  %v5497_v56 = vrot.slane %v5495_v36, 5  ;;  %v5901_v5 = vld [vmem:[#allocation2 + $0x84] sm:$0xe] }
 0x3e5   : > { %7375 = vmatmul.mubr.msk.bf16.gmra.mrb[32].mxu1 %vm283_vm3, %v6713_v45  ;;  %7562 = vmatprep.mubr.msk.bf16.mxu0 %vm283_vm3, %v10534_v13  ;;  %v11199_v45 = vld [vmem:[#allocation22_spill] sm:$0xff]  ;;  %v11200_v13 = vld [vmem:[#allocation23_spill] sm:$0xff]  ;;  %v10657_v11 = vsel %vm9713_vm0, %v6016_v32, %v6017_v49  ;;  %v3770_v23 = vrot.slane %v3768_v24, 4  ;;  %v5537_v0 = vshrl.u32 %v10610_v18, 16  ;;  %v5488_v44 = vsel %vm8868_vm10, %v10607_v55, %v10547_v19  ;;  %v5184_v36 = vld [vmem:[#allocation2 + $0xcc] sm:$0xf] }
 0x3e6   : > { %7386 = vmatprep.mubr.msk.bf16.mxu1 %vm283_vm3, %v8006_v25  ;;  %v3790_v10 = vsel %vm8868_vm10, %v11200_v13, %v11199_v45  ;;  %v3773_v8 = vrot.slane %v3771_v35, 5  ;;  %v5506_v53 = vor.u32 %v10616_v16, %v10614_v6  ;;  %v10668_v4 = vrot.slane %v5509_v42, 5  ;;  %v8007_v61 = vld [vmem:[#allocation2 + $0x18] sm:$0xff]   ;;  %v10674_v24 = vld [vmem:[#allocation2 + $0xd0] sm:$0xf]  ;;  %v11201_v6 = vld [vmem:[#allocation15_spill] sm:$0xff] }
 0x3e7   : > { %v5519_v25 = vshll.u32 %v10635_v29, 16  ;;  %v5498_v20 = vsel %vm8868_vm10, %v10619_v57, %v5497_v56  ;;  %v5515_v32 = vrot.slane %v5513_v39, 4  ;;  %v5526_v49 = vrot.slane %v5524_v33, 4  ;;  %v5902_v16 = vld [vmem:[#allocation2 + $0x90] sm:$0xe]  ;;  %v8009_v13 = vld [vmem:[#allocation2 + $0x24] sm:$0xff]  }
 0x3e8   : > { %v3774_v35 = vor.u32 %v3773_v8, %v3770_v23  ;;  %v5529_v45 = vrot.slane %v5527_v58, 5  ;;  %v10676_v19 = vrot.slane %v5533_v12, 5  ;;  %v6939_v55 = vrot.slane %v5901_v5, 9  ;;  %v11202_v23 = vld [vmem:[#allocation13_spill] sm:$0xff]  ;;  %v8193_v5 = vld [vmem:[%s11090_s4 + $0x88] sm:$0xff]  }
 0x3e9   : > { %v6021_v42 = vrot.slane %v11201_v6, 5  ;;  %v5539_v46 = vrot.slane %v5537_v0, 4  ;;  %v5548_v3 = vshrl.u32 %v5184_v36, 16  ;;  %v5551_v47 = vshll.u32 %v5184_v36, 16  ;;  %v11203_v56 = vld [vmem:[#allocation21_spill] sm:$0xff] }
 0x3ea   : > { %v3775_v57 = vrot.slane %v3774_v35, 4  ;;  %v5557_v39 = vshll.u32 %v10674_v24, 16  ;;  %v5561_v33 = vshrl.u32 %v10674_v24, 16  ;;  %v6024_v12 = vrot.slane %v10450_v52, 5  ;;  %v10697_v36 = vld [vmem:[#allocation2 + $0xc8] sm:$0x1] }
 0x3eb   : > { %v6023_v58 = vrot.slane %v6021_v42, 4  ;;  %v6940_v8 = vrot.slane %v5902_v16, 9  ;;  %v5530_v52 = vor.u32 %v5529_v45, %v5526_v49  ;;  %v5553_v49 = vrot.slane %v5551_v47, 5 }
 0x3ec   : > { %7563 = vmatmul.mubr.msk.bf16.gmra.mrb[20].mxu0 %vm283_vm3, %v10536_v22  ;;  %v5516_v22 = vor.u32 %v5515_v32, %v10668_v4  ;;  %v3780_v0 = vsel %vm8868_vm10, %v3775_v57, %v11203_v56  ;;  %v10703_v32 = vsel %vm9713_vm0, %v6939_v55, %v6021_v42  ;;  %v10713_v57 = vld [vmem:[#allocation2 + $0xd4] sm:$0x1]  ;;  %v10715_v45 = vrot.slane %v5557_v39, 5 }
 0x3ed   : > { %7387 = vmatmul.mubr.msk.bf16.vlgmr.msra.gmra.mrb[4].mxu1 %vm283_vm3, %v8007_v61  ;;  %7566 = vmatprep.mubr.msk.bf16.mxu0 %vm283_vm3, %v10543_v17  ;;  %v6028_v17 = vrot.slane %v10396_v15, 5  ;;  %v10699_v61 = vcombine.low %v3780_v0, %v3790_v10  ;;  %v10707_v35 = vsel %vm9713_vm0, %v6023_v58, %v6024_v12  ;;  %v5540_v15 = vor.u32 %v5539_v46, %v10676_v19  ;;  %v8010_v42 = vld [vmem:[#allocation2 + $0x30] sm:$0xff]   ;;  %v5903_v12 = vld [vmem:[#allocation2 + $0x9c] sm:$0xe] }
 0x3ee   : > { %7390 = vmatprep.mubr.msk.bf16.mxu1 %vm283_vm3, %v8009_v13  ;;  %7646 = vmatpush3.bf16.msra.mxu1 %v11202_v23  ;;  %v6955_v6 = vcombine.low %v10703_v32, %v10707_v35  ;;  %v6031_v13 = vrot.slane %v10462_v31, 5  ;;  %v5550_v10 = vrot.slane %v5548_v3, 4  ;;  %v5563_v55 = vrot.slane %v5561_v33, 4  ;;  %v8195_v0 = vld [vmem:[%s11090_s4 + $0x98] sm:$0xff]  }
 0x3ef   : > { %7643 = vmatprep.subr.bf16.mxu1 %v8193_v5  ;;  %v6030_v16 = vrot.slane %v6028_v17, 4  ;;  %v6905_v46 = vcombine.low %v5464_v51, %v5474_v37  ;;  %v5543_v31 = vshll.u32 %v10697_v36, 16  ;;  %v10730_v47 = vsel %vm9713_vm0, %v6940_v8, %v6028_v17  ;;  %v8011_v51 = vld [vmem:[#allocation2 + $0x3c] sm:$0xff]   ;;  %v5904_v17 = vld [vmem:[#allocation2 + $0xa8] sm:$0xe] }
 0x3f0   : > { %v6906_v39 = vcombine.low %v5488_v44, %v5498_v20  ;;  %v5507_v14 = vrot.slane %v5506_v53, 4  ;;  %v5517_v21 = vrot.slane %v5516_v22, 4  ;;  %v5531_v37 = vrot.slane %v5530_v52, 4 }
 0x3f1   : > { %v10734_v3 = vsel %vm9713_vm0, %v6030_v16, %v6031_v13  ;;  %v5541_v33 = vrot.slane %v5540_v15, 4  ;;  %v5567_v58 = vshll.u32 %v10713_v57, 16  ;;  %v5521_v44 = vrot.slane %v5519_v25, 5  ;;  %v8196_v15 = vld [vmem:[#allocation2 + $0x1c] sm:$0xf] }
 0x3f2   : > { %7647 = vmatpush3.bf16.msra.mxu1 %v8193_v5  ;;  %v6956_v7 = vcombine.low %v10730_v47, %v10734_v3  ;;  %v5554_v53 = vor.u32 %v5553_v49, %v5550_v10  ;;  %v5564_v20 = vor.u32 %v5563_v55, %v10715_v45  ;;  %v5545_v23 = vrot.slane %v5543_v31, 5 }
 0x3f3   : > { %7644 = vmatprep.subr.bf16.mxu1 %v8194_v9  ;;  %v5512_v22 = vsel %vm8868_vm10, %v5507_v14, %v10668_v4  ;;  %v5522_v56 = vsel %vm8868_vm10, %v5517_v21, %v5521_v44  ;;  %v6941_v25 = vrot.slane %v5903_v12, 9  ;;  %v6035_v8 = vrot.slane %v10437_v40, 5  ;;  %v5892_v14 = vld [vmem:[#allocation2 + $0x18] sm:$0xe]  ;;  %v8197_v44 = vld [vmem:[#allocation2 + $0x20] sm:$0x1] }
 0x3f4   : > { %7567 = vmatmul.mubr.msk.bf16.gmra.mrb[24].mxu0 %vm283_vm3, %v6905_v46  ;;  %v5536_v5 = vsel %vm8868_vm10, %v5531_v37, %v10676_v19  ;;  %v5546_v52 = vsel %vm8868_vm10, %v5541_v33, %v5545_v23  ;;  %v5569_v4 = vrot.slane %v5567_v58, 5  ;;  %v5958_v16 = vrot.slane %v8196_v15, 5  ;;  %v8198_v23 = vld [vmem:[#allocation2 + $0x28] sm:$0xf]  ;;  %v8015_v15 = vld [vmem:[#allocation2 + $0x60] sm:$0xff]  }
 0x3f5   : > { %7391 = vmatmul.mubr.msk.bf16.gmra.mrb[8].mxu1 %vm283_vm3, %v8010_v42  ;;  %7570 = vmatprep.mubr.msk.bf16.mxu0 %vm283_vm3, %v6906_v39  ;;  %v5555_v13 = vrot.slane %v5554_v53, 4  ;;  %v5565_v10 = vrot.slane %v5564_v20, 4  ;;  %v6037_v49 = vrot.slane %v6035_v8, 4  ;;  %v6038_v55 = vrot.slane %v10485_v59, 5  ;;  %v8012_v42 = vld [vmem:[#allocation2 + $0x48] sm:$0xff]  }
 0x3f6   : > { %7394 = vmatprep.mubr.msk.bf16.mxu1 %vm283_vm3, %v8011_v51  ;;  %7648 = vmatpush3.bf16.msra.mxu1 %v8194_v9  ;;  %v6907_v46 = vcombine.low %v5512_v22, %v5522_v56  ;;  %v6942_v31 = vrot.slane %v5904_v17, 9  ;;  %v6042_v40 = vrot.slane %v10492_v26, 5  ;;  %v6908_v39 = vcombine.low %v5536_v5, %v5546_v52  ;;  %v8014_v9 = vld [vmem:[#allocation2 + $0x54] sm:$0xff]   ;;  %v5893_v5 = vld [vmem:[#allocation2 + $0x24] sm:$0xe] }
 0x3f7   : > { %7645 = vmatprep.subr.bf16.mxu1 %v8195_v0  ;;  %v10767_v19 = vsel %vm9713_vm0, %v6941_v25, %v6035_v8  ;;  %v10771_v21 = vsel %vm9713_vm0, %v6037_v49, %v6038_v55  ;;  %v5960_v59 = vrot.slane %v5958_v16, 4  ;;  %v6045_v26 = vrot.slane %v10553_v28, 5  ;;  %v8199_v25 = vld [vmem:[#allocation2 + $0x34] sm:$0xf] }
 0x3f8   : > { %v6957_v51 = vcombine.low %v10767_v19, %v10771_v21  ;;  %v6044_v37 = vrot.slane %v6042_v40, 4  ;;  %v5560_v33 = vsel %vm8868_vm10, %v5555_v13, %v10715_v45  ;;  %v5570_v58 = vsel %vm8868_vm10, %v5565_v10, %v5569_v4  ;;  %v5905_v17 = vld [vmem:[#allocation2 + $0xb4] sm:$0xe]  ;;  %v5894_v4 = vld [vmem:[#allocation2 + $0x30] sm:$0xe] }
 0x3f9   : > { %v6930_v12 = vrot.slane %v5892_v14, 9  ;;  %v5961_v53 = vrot.slane %v8197_v44, 5  ;;  %v10787_v20 = vsel %vm9713_vm0, %v6942_v31, %v6042_v40  ;;  %v5965_v22 = vrot.slane %v8198_v23, 5  ;;  %v8016_v31 = vld [vmem:[#allocation2 + $0x6c] sm:$0xff]  }
 0x3fa   : > { %7649 = vmatpush3.bf16.msra.mxu1 %v8195_v0  ;;  %v10791_v28 = vsel %vm9713_vm0, %v6044_v37, %v6045_v26  ;;  %v6909_v56 = vcombine.low %v5560_v33, %v5570_v58  ;;  %v5972_v8 = vrot.slane %v8199_v25, 5  ;;  %v6943_v49 = vrot.slane %v5905_v17, 9  ;;  %v11204_v37 = vld [vmem:[#allocation18_spill] sm:$0xff]  ;;  %v8201_v26 = vld [vmem:[#allocation2 + $0x40] sm:$0xf] }
 0x3fb   : > { %v6958_v45 = vcombine.low %v10787_v20, %v10791_v28  ;;  %v5962_v0 = vsel %vm9713_vm0, %v5960_v59, %v5961_v53  ;;  %v5959_v52 = vsel %vm9713_vm0, %v6930_v12, %v5958_v16  ;;  %v5967_v10 = vrot.slane %v5965_v22, 4  ;;  %v5907_v25 = vld [vmem:[#allocation2 + $0xcc] sm:$0xe]  ;;  %v8215_v28 = vld [vmem:[#allocation2 + $0xc8] sm:$0x1] }
 0x3fc   : > { %7571 = vmatmul.mubr.msk.bf16.gmra.mrb[28].mxu0 %vm283_vm3, %v6907_v46  ;;  %v6946_v13 = vcombine.low %v5959_v52, %v5962_v0  ;;  %v6049_v55 = vrot.slane %v10574_v50, 5  ;;  %v5906_v46 = vld [vmem:[#allocation2 + $0xc0] sm:$0xe]  ;;  %v6931_v40 = vrot.slane %v5893_v5, 9  ;;  %v6932_v16 = vrot.slane %v5894_v4, 9 }
 0x3fd   : > { %7395 = vmatmul.mubr.msk.bf16.gmra.mrb[12].mxu1 %vm283_vm3, %v8012_v42  ;;  %7574 = vmatprep.mubr.msk.bf16.mxu0 %vm283_vm3, %v6908_v39  ;;  %v5974_v42 = vrot.slane %v5972_v8, 4  ;;  %v8200_v39 = vld [vmem:[#allocation2 + $0x2c] sm:$0x1]  ;;  %v6052_v59 = vrot.slane %v10635_v29, 5  ;;  %v5975_v50 = vrot.slane %v11204_v37, 5  ;;  %v5979_v33 = vrot.slane %v8201_v26, 5 }
 0x3fe   : > { %7398 = vmatprep.mubr.msk.bf16.mxu1 %vm283_vm3, %v8014_v9  ;;  %v5968_v14 = vrot.slane %v8200_v39, 5  ;;  %v6051_v9 = vrot.slane %v6049_v55, 4  ;;  %v6944_v58 = vrot.slane %v5906_v46, 9  ;;  %v6056_v12 = vrot.slane %v10610_v18, 5  ;;  %v5895_v4 = vld [vmem:[#allocation2 + $0x3c] sm:$0xe] }
 0x3ff   : > { %v10811_v53 = vsel %vm9713_vm0, %v6943_v49, %v6049_v55  ;;  %v5976_v29 = vsel %vm9713_vm0, %v5974_v42, %v5975_v50  ;;  %v6059_v18 = vrot.slane %v10697_v36, 5  ;;  %v5966_v17 = vsel %vm9713_vm0, %v6931_v40, %v5965_v22  ;;  %v8017_v49 = vld [vmem:[#allocation2 + $0x78] sm:$0xff]   ;;  %v8018_v46 = vld [vmem:[#allocation2 + $0x84] sm:$0xff]   ;;  %v3527_v40 = vld [vmem:[#allocation2 + $0x6c] sm:$0xf] }
 0x400   : > { %v5969_v44 = vsel %vm9713_vm0, %v5967_v10, %v5968_v14  ;;  %v10815_v23 = vsel %vm9713_vm0, %v6051_v9, %v6052_v59  ;;  %v6058_v0 = vrot.slane %v6056_v12, 4  ;;  %v5973_v5 = vsel %vm9713_vm0, %v6932_v16, %v5972_v8  ;;  %v11205_v8 = vld [vmem:[#allocation12_spill] sm:$0xff] }
 0x401   : > { %v6947_v52 = vcombine.low %v5966_v17, %v5969_v44  ;;  %v6948_v36 = vcombine.low %v5973_v5, %v5976_v29  ;;  %v6945_v22 = vrot.slane %v5907_v25, 9  ;;  %v6063_v42 = vrot.slane %v10674_v24, 5  ;;  %v8202_v24 = vld [vmem:[#allocation2 + $0x70] sm:$0xf] }
 0x402   : > { %v10832_v10 = vsel %vm9713_vm0, %v6058_v0, %v6059_v18  ;;  %v6066_v39 = vrot.slane %v10713_v57, 5  ;;  %v6933_v14 = vrot.slane %v5895_v4, 9  ;;  %v3744_v37 = vshrl.u32 %v3527_v40, 16  ;;  %v8019_v0 = vld [vmem:[#allocation2 + $0x90] sm:$0xff]  }
 0x403   : > { %v10847_v9 = vsel %vm9713_vm0, %v6945_v22, %v6063_v42  ;;  %v6065_v59 = vrot.slane %v6063_v42, 4  ;;  %v3747_v50 = vshll.u32 %v3527_v40, 16  ;;  %v3753_v26 = vshll.u32 %v8202_v24, 16  ;;  %v3536_v40 = vld [vmem:[#allocation2 + $0x90] sm:$0xf]  ;;  %v8021_v42 = vld [vmem:[#allocation2 + $0xa8] sm:$0xff]  }
 0x404   : > { %7575 = vmatmul.mubr.msk.bf16.gmra.mrb[32].mxu0 %vm283_vm3, %v6909_v56  ;;  %v6959_v56 = vcombine.low %v10811_v53, %v10815_v23  ;;  %v3757_v57 = vshrl.u32 %v8202_v24, 16  ;;  %v3746_v18 = vrot.slane %v3744_v37, 4  ;;  %v3795_v22 = vshll.u32 %v3533_v43, 16 }
 0x405   : > { %7399 = vmatmul.mubr.msk.bf16.gmra.mrb[16].mxu1 %vm283_vm3, %v8015_v15  ;;  %7586 = vmatprep.mubr.msk.bf16.mxu0 %vm283_vm3, %v6946_v13  ;;  %v5981_v15 = vrot.slane %v5979_v33, 4  ;;  %v10828_v13 = vsel %vm9713_vm0, %v6944_v58, %v6056_v12  ;;  %v10851_v58 = vsel %vm9713_vm0, %v6065_v59, %v6066_v39  ;;  %v5980_v12 = vsel %vm9713_vm0, %v6933_v14, %v5979_v33 }
 0x406   : > { %7402 = vmatprep.mubr.msk.bf16.mxu1 %vm283_vm3, %v8016_v31  ;;  %v6960_v55 = vcombine.low %v10828_v13, %v10832_v10  ;;  %v5982_v31 = vrot.slane %v11205_v8, 5  ;;  %v6961_v44 = vcombine.low %v10847_v9, %v10851_v58  ;;  %v3749_v25 = vrot.slane %v3747_v50, 5 }
 0x407   : > { %v3755_v17 = vrot.slane %v3753_v26, 5  ;;  %v3759_v5 = vrot.slane %v3757_v57, 4  ;;  %v3797_v59 = vrot.slane %v3795_v22, 5  ;;  %v11206_v24 = vcombine.low %v10597_v2, %v10601_v63 }
 0x408   : > { %v5983_v16 = vsel %vm9713_vm0, %v5981_v15, %v5982_v31  ;;  %v3750_v33 = vor.u32 %v3749_v25, %v3746_v18  ;;  %v8203_v15 = vld [vmem:[#allocation2 + $0x74] sm:$0x1]  ;;  %v3816_v26 = vshrl.u32 %v3536_v40, 16  ;;  %v3819_v57 = vshll.u32 %v3536_v40, 16  ;;  %v8023_v40 = vld [vmem:[#allocation2 + $0xc0] sm:$0xff]  }
 0x409   : > { %v6949_v29 = vcombine.low %v5980_v12, %v5983_v16  ;;  %v3760_v4 = vor.u32 %v3759_v5, %v3755_v17  ;;  %v8205_v12 = vld [vmem:[#allocation2 + $0x94] sm:$0xf]  ;;  %v3840_v34 = vshrl.u32 %v3539_v38, 16  ;;  %v3843_v30 = vshll.u32 %v3539_v38, 16 }
 0x40a   : > { %v3751_v39 = vrot.slane %v3750_v33, 4  ;;  %v11208_v38 = vcombine.low %v10653_v48, %v10657_v11 }
 0x40b   : > { %v3761_v14 = vrot.slane %v3760_v4, 4  ;;  %v3818_v4 = vrot.slane %v3816_v26, 4  ;;  %v3842_v22 = vrot.slane %v3840_v34, 4 }
 0x40c   : > { %7587 = vmatmul.mubr.msk.bf16.vlgmr.msra.gmra.mrb[4].mxu0 %vm283_vm3, %v6947_v52  ;;  %v8020_v52 = vld [vmem:[#allocation2 + $0x9c] sm:$0xff]   ;;  %v3756_v5 = vsel %vm8868_vm10, %v3751_v39, %v3755_v17 }
 0x40d   : > { %7403 = vmatmul.mubr.msk.bf16.gmra.mrb[20].mxu1 %vm283_vm3, %v8017_v49  ;;  %7590 = vmatprep.mubr.msk.bf16.mxu0 %vm283_vm3, %v6948_v36  ;;  %v3763_v49 = vshll.u32 %v8203_v15, 16  ;;  %v3792_v36 = vshrl.u32 %v3533_v43, 16  ;;  %v8207_v43 = vld [vmem:[#allocation2 + $0x8c] sm:$0x1]  ;;  %v3821_v15 = vrot.slane %v3819_v57, 5 }
 0x40e   : > { %7406 = vmatprep.mubr.msk.bf16.mxu1 %vm283_vm3, %v8018_v46  ;;  %v8204_v46 = vld [vmem:[#allocation2 + $0x88] sm:$0xf]  ;;  %v3811_v33 = vshll.u32 %v8207_v43, 16  ;;  %v8208_v57 = vld [vmem:[#allocation2 + $0xac] sm:$0xf] }
 0x40f   : > { %v3801_v8 = vshll.u32 %v8204_v46, 16  ;;  %v3805_v31 = vshrl.u32 %v8204_v46, 16  ;;  %v3765_v16 = vrot.slane %v3763_v49, 5  ;;  %v3845_v46 = vrot.slane %v3843_v30, 5  ;;  %v8210_v30 = vld [vmem:[#allocation2 + $0xa4] sm:$0x1] }
 0x411   : > { %v10868_v37 = vrot.slane %v3801_v8, 5  ;;  %v3807_v50 = vrot.slane %v3805_v31, 4  ;;  %v3766_v2 = vsel %vm8868_vm10, %v3761_v14, %v3765_v16  ;;  %v3542_v16 = vld [vmem:[#allocation2 + $0xa8] sm:$0xf] }
 0x412   : > { %v6778_v17 = vcombine.low %v3756_v5, %v3766_v2  ;;  %v3867_v26 = vshll.u32 %v3542_v16, 16  ;;  %v8211_v5 = vld [vmem:[#allocation2 + $0xb8] sm:$0xf] }
 0x413   : > { %v3897_v2 = vshll.u32 %v8211_v5, 16 }
 0x414   : > { %7591 = vmatmul.mubr.msk.bf16.gmra.mrb[8].mxu0 %vm283_vm3, %v6949_v29  ;;  %v3825_v29 = vshll.u32 %v8205_v12, 16 }
 0x415   : > { %7407 = vmatmul.mubr.msk.bf16.gmra.mrb[24].mxu1 %vm283_vm3, %v8019_v0  ;;  %7594 = vmatprep.mubr.msk.bf16.mxu0 %vm283_vm3, %v6950_v54  ;;  %v3794_v54 = vrot.slane %v3792_v36, 4  ;;  %v3829_v0 = vshrl.u32 %v8205_v12, 16  ;;  %v3873_v12 = vshll.u32 %v8208_v57, 16 }
 0x416   : > { %7410 = vmatprep.mubr.msk.bf16.mxu1 %vm283_vm3, %v8020_v52  ;;  %v3808_v52 = vor.u32 %v3807_v50, %v10868_v37  ;;  %v10881_v49 = vrot.slane %v3825_v29, 5  ;;  %v3846_v50 = vor.u32 %v3845_v46, %v3842_v22  ;;  %v3877_v29 = vshrl.u32 %v8208_v57, 16 }
 0x417   : > { %v3798_v63 = vor.u32 %v3797_v59, %v3794_v54  ;;  %v3831_v36 = vrot.slane %v3829_v0, 4  ;;  %v3822_v54 = vor.u32 %v3821_v15, %v3818_v4  ;;  %v8209_v0 = vld [vmem:[#allocation2 + $0x98] sm:$0x1]  ;;  %v3875_v22 = vrot.slane %v3873_v12, 5 }
 0x418   : > { %v3809_v14 = vrot.slane %v3808_v52, 4  ;;  %v3835_v34 = vshll.u32 %v8209_v0, 16 }
 0x419   : > { %v3799_v39 = vrot.slane %v3798_v63, 4  ;;  %v3832_v59 = vor.u32 %v3831_v36, %v10881_v49  ;;  %v3901_v63 = vshrl.u32 %v8211_v5, 16  ;;  %v3823_v52 = vrot.slane %v3822_v54, 4 }
 0x41a   : > { %v3869_v36 = vrot.slane %v3867_v26, 5 }
 0x41b   : > { %v3804_v48 = vsel %vm8868_vm10, %v3799_v39, %v10868_v37  ;;  %v3833_v43 = vrot.slane %v3832_v59, 4  ;;  %v3879_v37 = vrot.slane %v3877_v29, 4  ;;  %v3899_v39 = vrot.slane %v3897_v2, 5  ;;  %v8214_v29 = vld [vmem:[#allocation2 + $0xbc] sm:$0x1] }
 0x41c   : > { %7595 = vmatmul.mubr.msk.bf16.gmra.mrb[12].mxu0 %vm283_vm3, %v6951_v1  ;;  %v8206_v1 = vld [vmem:[#allocation2 + $0xa0] sm:$0xf]  ;;  %v3828_v32 = vsel %vm8868_vm10, %v3823_v52, %v10881_v49 }
 0x41d   : > { %7411 = vmatmul.mubr.msk.bf16.gmra.mrb[28].mxu1 %vm283_vm3, %v8021_v42  ;;  %7598 = vmatprep.mubr.msk.bf16.mxu0 %vm283_vm3, %v11206_v24  ;;  %v3849_v18 = vshll.u32 %v8206_v1, 16  ;;  %v3853_v25 = vshrl.u32 %v8206_v1, 16  ;;  %v11207_v42 = vcombine.low %v10639_v41, %v10643_v27  ;;  %v3545_v27 = vld [vmem:[#allocation2 + $0xb4] sm:$0xf]  ;;  %v3864_v24 = vshrl.u32 %v3542_v16, 16 }
 0x41e   : > { %7414 = vmatprep.mubr.msk.bf16.mxu1 %vm283_vm3, %v8022_v62  ;;  %v3813_v62 = vrot.slane %v3811_v33, 5  ;;  %v3859_v1 = vshll.u32 %v8210_v30, 16  ;;  %v3847_v33 = vrot.slane %v3846_v50, 4  ;;  %v3548_v16 = vld [vmem:[#allocation2 + $0xc0] sm:$0xf]  ;;  %v3880_v3 = vor.u32 %v3879_v37, %v3875_v22 }
 0x41f   : > { %v10883_v8 = vrot.slane %v3849_v18, 5  ;;  %v3855_v31 = vrot.slane %v3853_v25, 4  ;;  %v3888_v18 = vshrl.u32 %v3545_v27, 16  ;;  %v3891_v25 = vshll.u32 %v3545_v27, 16  ;;  %v8213_v27 = vld [vmem:[#allocation2 + $0xb0] sm:$0x1] }
 0x420   : > { %v3814_v11 = vsel %vm8868_vm10, %v3809_v14, %v3813_v62  ;;  %v3866_v15 = vrot.slane %v3864_v24, 4  ;;  %v3903_v14 = vrot.slane %v3901_v63, 4  ;;  %v8212_v62 = vld [vmem:[#allocation2 + $0xc4] sm:$0xf]  ;;  %v3883_v24 = vshll.u32 %v8213_v27, 16 }
 0x421   : > { %v3856_v41 = vor.u32 %v3855_v31, %v10883_v8  ;;  %v6780_v46 = vcombine.low %v3804_v48, %v3814_v11  ;;  %v3837_v31 = vrot.slane %v3835_v34, 5  ;;  %v3921_v54 = vshll.u32 %v8212_v62, 16 }
 0x422   : > { %v3870_v47 = vor.u32 %v3869_v36, %v3866_v15  ;;  %v3925_v59 = vshrl.u32 %v8212_v62, 16  ;;  %v3881_v12 = vrot.slane %v3880_v3, 4 }
 0x423   : > { %v3857_v4 = vrot.slane %v3856_v41, 4  ;;  %v3838_v35 = vsel %vm8868_vm10, %v3833_v43, %v3837_v31  ;;  %v3904_v41 = vor.u32 %v3903_v14, %v3899_v39  ;;  %v3923_v0 = vrot.slane %v3921_v54, 5  ;;  %v10966_v14 = vld [vmem:[%s11091_s5] ss:$0 sm:$0xff] }
 0x424   : > { %7599 = vmatmul.mubr.msk.bf16.gmra.mrb[16].mxu0 %vm283_vm3, %v11207_v42  ;;  %v3893_v42 = vrot.slane %v3891_v25, 5  ;;  %v6781_v49 = vcombine.low %v3828_v32, %v3838_v35  ;;  %v3871_v57 = vrot.slane %v3870_v47, 4  ;;  %v3927_v34 = vrot.slane %v3925_v59, 4 }
 0x425   : > { %7415 = vmatmul.mubr.msk.bf16.gmra.mrb[32].mxu1 %vm283_vm3, %v8023_v40  ;;  %7602 = vmatprep.mubr.msk.bf16.mxu0 %vm283_vm3, %v11208_v38  ;;  %v3861_v40 = vrot.slane %v3859_v1, 5  ;;  %v3915_v38 = vshll.u32 %v3548_v16, 16  ;;  %v3905_v1 = vrot.slane %v3904_v41, 4 }
 0x426   : > { %7442 = vmatprep.mubr.msk.bf16.mxu1 %vm283_vm3, %v6778_v17  ;;  %v3890_v17 = vrot.slane %v3888_v18, 4  ;;  %v3885_v18 = vrot.slane %v3883_v24, 5  ;;  %v3876_v19 = vsel %vm8868_vm10, %v3871_v57, %v3875_v22  ;;  %v3928_v5 = vor.u32 %v3927_v34, %v3923_v0 }
 0x427   : > { %v3917_v11 = vrot.slane %v3915_v38, 5 }
 0x428   : > { %v3894_v50 = vor.u32 %v3893_v42, %v3890_v17  ;;  %v3886_v21 = vsel %vm8868_vm10, %v3881_v12, %v3885_v18 }
 0x429   : > { %v6783_v63 = vcombine.low %v3876_v19, %v3886_v21 }
 0x42a   : > { %v3895_v30 = vrot.slane %v3894_v50, 4 }
 0x42c   : > { %7603 = vmatmul.mubr.msk.bf16.gmra.mrb[20].mxu0 %vm283_vm3, %v6955_v6  ;;  %v3862_v6 = vsel %vm8868_vm10, %v3857_v4, %v3861_v40  ;;  %v3900_v2 = vsel %vm8868_vm10, %v3895_v30, %v3899_v39 }
 0x42d   : > { %7443 = vmatmul.mubr.msk.bf16.vlgmr.msra.gmra.mrb[20].mxu1 %vm283_vm3, %v10699_v61  ;;  %7606 = vmatprep.mubr.msk.bf16.mxu0 %vm283_vm3, %v6956_v7  ;;  %v3852_v61 = vsel %vm8868_vm10, %v3847_v33, %v10883_v8  ;;  %v3912_v7 = vshrl.u32 %v3548_v16, 16  ;;  %v3907_v8 = vshll.u32 %v8214_v29, 16  ;;  %v3929_v33 = vrot.slane %v3928_v5, 4 }
 0x42e   : > { %7446 = vmatprep.mubr.msk.bf16.mxu1 %vm283_vm3, %v6780_v46  ;;  %v6782_v26 = vcombine.low %v3852_v61, %v3862_v6 }
 0x42f   : > { %v3914_v48 = vrot.slane %v3912_v7, 4  ;;  %v3909_v25 = vrot.slane %v3907_v8, 5 }
 0x431   : > { %v3910_v20 = vsel %vm8868_vm10, %v3905_v1, %v3909_v25 }
 0x432   : > { %v6784_v52 = vcombine.low %v3900_v2, %v3910_v20 }
 0x434   : > { %7607 = vmatmul.mubr.msk.bf16.gmra.mrb[24].mxu0 %vm283_vm3, %v6957_v51  ;;  %v3918_v51 = vor.u32 %v3917_v11, %v3914_v48 }
 0x435   : > { %7447 = vmatmul.mubr.msk.bf16.gmra.mrb[24].mxu1 %vm283_vm3, %v6781_v49  ;;  %7610 = vmatprep.mubr.msk.bf16.mxu0 %vm283_vm3, %v6958_v45  ;;  %v3931_v45 = vshll.u32 %v8215_v28, 16 }
 0x436   : > { %7450 = vmatprep.mubr.msk.bf16.mxu1 %vm283_vm3, %v6782_v26  ;;  %v3919_v43 = vrot.slane %v3918_v51, 4 }
 0x437   : > { %v3933_v4 = vrot.slane %v3931_v45, 5 }
 0x438   : > { %v3924_v15 = vsel %vm8868_vm10, %v3919_v43, %v3923_v0 }
 0x439   : > { %v3934_v53 = vsel %vm8868_vm10, %v3929_v33, %v3933_v4 }
 0x43a   : > { %v6785_v23 = vcombine.low %v3924_v15, %v3934_v53 }
 0x43c   : > { %7611 = vmatmul.mubr.msk.bf16.gmra.mrb[28].mxu0 %vm283_vm3, %v6959_v56 }
 0x43d   : > { %7451 = vmatmul.mubr.msk.bf16.gmra.mrb[28].mxu1 %vm283_vm3, %v6783_v63  ;;  %7614 = vmatprep.mubr.msk.bf16.mxu0 %vm283_vm3, %v6960_v55 }
 0x43e   : > { %7454 = vmatprep.mubr.msk.bf16.mxu1 %vm283_vm3, %v6784_v52 }
 0x444   : > { %7615 = vmatmul.mubr.msk.bf16.gmra.mrb[32].mxu0 %vm283_vm3, %v6961_v44 }
 0x445   : > { %7455 = vmatmul.mubr.msk.bf16.gmra.mrb[32].mxu1 %vm283_vm3, %v6785_v23 }
 0x4c0   : > { %v7388_v56 = vpop.f32.mrb[4].mxu1 }
 0x4c1   : > { %v3344_v13 = vpop.f32.mrb[5].mxu1 }
 0x4c2   : > { %v7389_v10 = vpop.f32.mrb[6].mxu1 }
 0x4c3   : > { %v3347_v55 = vpop.f32.mrb[7].mxu1 }
 0x4c8   : > { %v7392_v36 = vpop.f32.mrb[8].mxu1 }
 0x4c9   : > { %v3360_v22 = vpop.f32.mrb[9].mxu1 }
 0x4ca   : > { %v7393_v37 = vpop.f32.mrb[10].mxu1 }
 0x4cb   : > { %v3363_v46 = vpop.f32.mrb[11].mxu1 }
 0x4d0   : > { %v7396_v60 = vpop.f32.mrb[12].mxu1 }
 0x4d1   : > { %v3376_v31 = vpop.f32.mrb[13].mxu1 }
 0x4d2   : > { %v7397_v40 = vpop.f32.mrb[14].mxu1 }
 0x4d3   : > { %v3379_v17 = vpop.f32.mrb[15].mxu1 }
 0x4d8   : > { %v7400_v42 = vpop.f32.mrb[16].mxu1 }
 0x4d9   : > { %v3392_v9 = vpop.f32.mrb[17].mxu1 }
 0x4da   : > { %v7401_v58 = vpop.f32.mrb[18].mxu1 }
 0x4db   : > { %v3395_v44 = vpop.f32.mrb[19].mxu1 }
 0x4df   : > { %v7588_v39 = vpop.f32.mrb[4].mxu0 }
 0x4e0   : > { %v7650_v16 = vadd.f32 %v7588_v39, %v7388_v56  ;;  %v6230_v32 = vpop.f32.mrb[5].mxu0 }
 0x4e1   : > { %v7651_v35 = vadd.f32 %v6230_v32, %v3344_v13  ;;  %v7589_v61 = vpop.f32.mrb[6].mxu0 }
 0x4e2   : > { %v6398_v6 = vadd.f32 %v7650_v16, %v10966_v14  ;;  %v7652_v47 = vadd.f32 %v7589_v61, %v7389_v10  ;;  %v6233_v3 = vpop.f32.mrb[7].mxu0 }
 0x4e3   : > { %v6396_v7 = vadd.f32 %v7651_v35, %v10966_v14  ;;  %v7653_v38 = vadd.f32 %v6233_v3, %v3347_v55 }
 0x4e4   : > { %6430 = vst [vmem:[%s10970_s19 + $0x10] sm:$0xff] %v6398_v6  ;;  %v6399_v62 = vadd.f32 %v7652_v47, %v10966_v14 }
 0x4e5   : > { %6428 = vst [vmem:[%s10970_s19] sm:$0xff] %v6396_v7  ;;  %v6397_v54 = vadd.f32 %v7653_v38, %v10966_v14 }
 0x4e6   : > { %6431 = vst [vmem:[%s10970_s19 + $0x18] sm:$0xff] %v6399_v62 }
 0x4e7   : > { %6429 = vst [vmem:[%s10970_s19 + $0x8] sm:$0xff] %v6397_v54  ;;  %v7592_v59 = vpop.f32.mrb[8].mxu0 }
 0x4e8   : > { %v7654_v50 = vadd.f32 %v7592_v59, %v7392_v36  ;;  %v6246_v41 = vpop.f32.mrb[9].mxu0 }
 0x4e9   : > { %v7655_v49 = vadd.f32 %v6246_v41, %v3360_v22  ;;  %v7593_v27 = vpop.f32.mrb[10].mxu0 }
 0x4ea   : > { %v6402_v24 = vadd.f32 %v7654_v50, %v10966_v14  ;;  %v7656_v26 = vadd.f32 %v7593_v27, %v7393_v37  ;;  %v6249_v57 = vpop.f32.mrb[11].mxu0 }
 0x4eb   : > { %v6400_v12 = vadd.f32 %v7655_v49, %v10966_v14  ;;  %v7657_v29 = vadd.f32 %v6249_v57, %v3363_v46 }
 0x4ec   : > { %6434 = vst [vmem:[%s10970_s19 + $0x30] sm:$0xff] %v6402_v24  ;;  %v6403_v8 = vadd.f32 %v7656_v26, %v10966_v14 }
 0x4ed   : > { %6432 = vst [vmem:[%s10970_s19 + $0x20] sm:$0xff] %v6400_v12  ;;  %v6401_v48 = vadd.f32 %v7657_v29, %v10966_v14 }
 0x4ee   : > { %6435 = vst [vmem:[%s10970_s19 + $0x38] sm:$0xff] %v6403_v8 }
 0x4ef   : > { %6433 = vst [vmem:[%s10970_s19 + $0x28] sm:$0xff] %v6401_v48  ;;  %v7596_v11 = vpop.f32.mrb[12].mxu0 }
 0x4f0   : > { %v7658_v0 = vadd.f32 %v7596_v11, %v7396_v60  ;;  %v6262_v34 = vpop.f32.mrb[13].mxu0 }
 0x4f1   : > { %v7659_v30 = vadd.f32 %v6262_v34, %v3376_v31  ;;  %v7597_v1 = vpop.f32.mrb[14].mxu0 }
 0x4f2   : > { %v6406_v18 = vadd.f32 %v7658_v0, %v10966_v14  ;;  %v7660_v25 = vadd.f32 %v7597_v1, %v7397_v40  ;;  %v6265_v19 = vpop.f32.mrb[15].mxu0 }
 0x4f3   : > { %v6404_v21 = vadd.f32 %v7659_v30, %v10966_v14  ;;  %v7661_v51 = vadd.f32 %v6265_v19, %v3379_v17 }
 0x4f4   : > { %6438 = vst [vmem:[%s10970_s19 + $0x50] sm:$0xff] %v6406_v18  ;;  %v6407_v5 = vadd.f32 %v7660_v25, %v10966_v14 }
 0x4f5   : > { %6436 = vst [vmem:[%s10970_s19 + $0x40] sm:$0xff] %v6404_v21  ;;  %v6405_v2 = vadd.f32 %v7661_v51, %v10966_v14 }
 0x4f6   : > { %6439 = vst [vmem:[%s10970_s19 + $0x58] sm:$0xff] %v6407_v5 }
 0x4f7   : > { %6437 = vst [vmem:[%s10970_s19 + $0x48] sm:$0xff] %v6405_v2  ;;  %v7600_v20 = vpop.f32.mrb[16].mxu0 }
 0x4f8   : > { %v7662_v28 = vadd.f32 %v7600_v20, %v7400_v42  ;;  %v6278_v45 = vpop.f32.mrb[17].mxu0 }
 0x4f9   : > { %v7663_v63 = vadd.f32 %v6278_v45, %v3392_v9  ;;  %v7601_v52 = vpop.f32.mrb[18].mxu0 }
 0x4fa   : > { %v6410_v43 = vadd.f32 %v7662_v28, %v10966_v14  ;;  %v7664_v33 = vadd.f32 %v7601_v52, %v7401_v58  ;;  %v6281_v4 = vpop.f32.mrb[19].mxu0 }
 0x4fb   : > { %v6408_v15 = vadd.f32 %v7663_v63, %v10966_v14  ;;  %v7665_v53 = vadd.f32 %v6281_v4, %v3395_v44 }
 0x4fc   : > { %6442 = vst [vmem:[%s10970_s19 + $0x70] sm:$0xff] %v6410_v43  ;;  %v6411_v23 = vadd.f32 %v7664_v33, %v10966_v14 }
 0x4fd   : > { %6440 = vst [vmem:[%s10970_s19 + $0x60] sm:$0xff] %v6408_v15  ;;  %v6409_v56 = vadd.f32 %v7665_v53, %v10966_v14 }
 0x4fe   : > { %6443 = vst [vmem:[%s10970_s19 + $0x78] sm:$0xff] %v6411_v23 }
 0x4ff   : > { %6441 = vst [vmem:[%s10970_s19 + $0x68] sm:$0xff] %v6409_v56  ;;  %v7604_v13 = vpop.f32.mrb[20].mxu0 }
 0x500   : > { %v7444_v10 = vpop.f32.mrb[20].mxu1  ;;  %v6294_v55 = vpop.f32.mrb[21].mxu0 }
 0x501   : > { %v4161_v36 = vpop.f32.mrb[21].mxu1  ;;  %v7666_v22 = vadd.f32 %v7604_v13, %v7444_v10  ;;  %v7605_v37 = vpop.f32.mrb[22].mxu0 }
 0x502   : > { %v7445_v46 = vpop.f32.mrb[22].mxu1  ;;  %v7667_v60 = vadd.f32 %v6294_v55, %v4161_v36  ;;  %v6297_v31 = vpop.f32.mrb[23].mxu0 }
 0x503   : > { %v6414_v40 = vadd.f32 %v7666_v22, %v10966_v14  ;;  %v4164_v17 = vpop.f32.mrb[23].mxu1  ;;  %v7668_v42 = vadd.f32 %v7605_v37, %v7445_v46 }
 0x504   : > { %v6412_v9 = vadd.f32 %v7667_v60, %v10966_v14  ;;  %v7669_v58 = vadd.f32 %v6297_v31, %v4164_v17 }
 0x505   : > { %6446 = vst [vmem:[%s10970_s19 + $0x90] sm:$0xff] %v6414_v40  ;;  %v6415_v44 = vadd.f32 %v7668_v42, %v10966_v14 }
 0x506   : > { %6444 = vst [vmem:[%s10970_s19 + $0x80] sm:$0xff] %v6412_v9  ;;  %v6413_v39 = vadd.f32 %v7669_v58, %v10966_v14 }
 0x507   : > { %6447 = vst [vmem:[%s10970_s19 + $0x98] sm:$0xff] %v6415_v44  ;;  %v7608_v16 = vpop.f32.mrb[24].mxu0 }
 0x508   : > { %6445 = vst [vmem:[%s10970_s19 + $0x88] sm:$0xff] %v6413_v39  ;;  %v7448_v32 = vpop.f32.mrb[24].mxu1  ;;  %v6310_v35 = vpop.f32.mrb[25].mxu0 }
 0x509   : > { %v4177_v61 = vpop.f32.mrb[25].mxu1  ;;  %v7670_v6 = vadd.f32 %v7608_v16, %v7448_v32  ;;  %v7609_v47 = vpop.f32.mrb[26].mxu0 }
 0x50a   : > { %v7449_v3 = vpop.f32.mrb[26].mxu1  ;;  %v7671_v7 = vadd.f32 %v6310_v35, %v4177_v61  ;;  %v6313_v38 = vpop.f32.mrb[27].mxu0 }
 0x50b   : > { %v6418_v62 = vadd.f32 %v7670_v6, %v10966_v14  ;;  %v4180_v54 = vpop.f32.mrb[27].mxu1  ;;  %v7672_v59 = vadd.f32 %v7609_v47, %v7449_v3 }
 0x50c   : > { %v6416_v50 = vadd.f32 %v7671_v7, %v10966_v14  ;;  %v7673_v41 = vadd.f32 %v6313_v38, %v4180_v54 }
 0x50d   : > { %6450 = vst [vmem:[%s10970_s19 + $0xb0] sm:$0xff] %v6418_v62  ;;  %v6419_v49 = vadd.f32 %v7672_v59, %v10966_v14 }
 0x50e   : > { %6448 = vst [vmem:[%s10970_s19 + $0xa0] sm:$0xff] %v6416_v50  ;;  %v6417_v27 = vadd.f32 %v7673_v41, %v10966_v14 }
 0x50f   : > { %6451 = vst [vmem:[%s10970_s19 + $0xb8] sm:$0xff] %v6419_v49  ;;  %v7612_v24 = vpop.f32.mrb[28].mxu0 }
 0x510   : > { %6449 = vst [vmem:[%s10970_s19 + $0xa8] sm:$0xff] %v6417_v27  ;;  %v7452_v26 = vpop.f32.mrb[28].mxu1  ;;  %v6326_v57 = vpop.f32.mrb[29].mxu0 }
 0x511   : > { %v4193_v12 = vpop.f32.mrb[29].mxu1  ;;  %v7674_v29 = vadd.f32 %v7612_v24, %v7452_v26  ;;  %v7613_v8 = vpop.f32.mrb[30].mxu0 }
 0x512   : > { %v7453_v48 = vpop.f32.mrb[30].mxu1  ;;  %v7675_v11 = vadd.f32 %v6326_v57, %v4193_v12  ;;  %v6329_v0 = vpop.f32.mrb[31].mxu0 }
 0x513   : > { %v6422_v34 = vadd.f32 %v7674_v29, %v10966_v14  ;;  %v4196_v30 = vpop.f32.mrb[31].mxu1  ;;  %v7676_v1 = vadd.f32 %v7613_v8, %v7453_v48 }
 0x514   : > { %v6420_v18 = vadd.f32 %v7675_v11, %v10966_v14  ;;  %v7677_v25 = vadd.f32 %v6329_v0, %v4196_v30 }
 0x515   : > { %6454 = vst [vmem:[%s10970_s19 + $0xd0] sm:$0xff] %v6422_v34  ;;  %v6423_v19 = vadd.f32 %v7676_v1, %v10966_v14 }
 0x516   : > { %6452 = vst [vmem:[%s10970_s19 + $0xc0] sm:$0xff] %v6420_v18  ;;  %v6421_v21 = vadd.f32 %v7677_v25, %v10966_v14 }
 0x517   : > { %6455 = vst [vmem:[%s10970_s19 + $0xd8] sm:$0xff] %v6423_v19  ;;  %v7616_v51 = vpop.f32.mrb[32].mxu0 }
 0x518   : > { %6453 = vst [vmem:[%s10970_s19 + $0xc8] sm:$0xff] %v6421_v21  ;;  %v7456_v5 = vpop.f32.mrb[32].mxu1  ;;  %v6342_v2 = vpop.f32.mrb[33].mxu0 }
 0x519   : > { %v4209_v20 = vpop.f32.mrb[33].mxu1  ;;  %v7678_v28 = vadd.f32 %v7616_v51, %v7456_v5  ;;  %v7617_v45 = vpop.f32.mrb[34].mxu0 }
 0x51a   : > { %v7457_v63 = vpop.f32.mrb[34].mxu1  ;;  %v7679_v52 = vadd.f32 %v6342_v2, %v4209_v20  ;;  %v6345_v43 = vpop.f32.mrb[35].mxu0 }
 0x51b   : > { %v6426_v33 = vadd.f32 %v7678_v28, %v10966_v14  ;;  %v4212_v4 = vpop.f32.mrb[35].mxu1  ;;  %v7680_v15 = vadd.f32 %v7617_v45, %v7457_v63 }
 0x51c   : > { %v6424_v53 = vadd.f32 %v7679_v52, %v10966_v14  ;;  %v7681_v23 = vadd.f32 %v6345_v43, %v4212_v4 }
 0x51d   : > { %6458 = vst [vmem:[%s10970_s19 + $0xf0] sm:$0xff] %v6426_v33  ;;  %v6427_v56 = vadd.f32 %v7680_v15, %v10966_v14 }
 0x51e   : > { %6456 = vst [vmem:[%s10970_s19 + $0xe0] sm:$0xff] %v6424_v53  ;;  %v6425_v13 = vadd.f32 %v7681_v23, %v10966_v14 }
 0x51f   : > { %6459 = vst [vmem:[%s10970_s19 + $0xf8] sm:$0xff] %v6427_v56 }
 0x520   : > { %6457 = vst [vmem:[%s10970_s19 + $0xe8] sm:$0xff] %v6425_v13 }
 0x521   : > { %8229 = shalt.err (!%p8226_p3)
}
 0x522   : > { %s8230_s14 = scalar_lea.hbm %s11035_s9, 4096  ;;  %s8234_s17 = scalar_lea.hbm %s11092_s6, 8192 }
 0x523   : > { %p8231_p4 = scmp.ne.s32.totalorder %s11035_s9, %s8230_s14  ;;  %p8235_p9 = scmp.lt.u32.totalorder %s11035_s9, %s11092_s6 }
 0x524   : > { %p8236_p10 = scmp.lt.u32.totalorder %s8234_s17, %s8230_s14  ;;  %p8238_p12 = scmp.lt.u32.totalorder %s8230_s14, %s11035_s9 }
 0x525   : > { %p8232_p7 = pnand %p8231_p4, %p8360_p5 }
 0x526   : > { %p8237_p11 = por %p8236_p10, %p8235_p9 }
 0x527   : > { %p8233_p8 = pneg %p8232_p7 }
 0x528   : > { %p8239_p13 = por %p8238_p12, %p8237_p11 }
 0x52a   : > { %p8240_p0 = pnand %p8239_p13, %p8233_p8 }
 0x52c   : > { %8243 = shalt.err (!%p8240_p0)
}
 0x52d   : > { %s8285_s20 = smov 128   ;;  %s8286_s28 = smov 8  }
 0x52e   : > { %7906 = dma.vmem_to_hbm [thread:$0]  (%p8360_p5), %s11037_s26, 4096, %s11035_s9, %s11045_s25, %s8285_s20, %s8285_s20, %s8286_s28  }
 0x52f PF: > { %p7912_p1 = scmp.ge.s32.totalorder %s8278_s24, 2  ;;  %s6489_s29 = sand.u32 1, %s8266_s21  }
 0x530   : > { %s6490_s10 = scalar_lea.sflag [#allocation4], %s6489_s29 }
 0x531   : > { %p7909_p2 = pnand %p7912_p1, %p8364_p6 }
 0x533   : > { %8261 = dma.done.wait (!%p7909_p2), %s6490_s10, 4096  }
 0x534   : > { %8263 = vsyncadd (!%p7909_p2), %s6490_s10, 4294963200  ;;  %p16_p3 = scmp.ge.s32.totalorder %s8347_s27, 4   ;;  %s11209_s21 = smov %s8270_s22 }
 0x535   : > { %s11210_s22 = smov %s8274_s23  ;;  %s11211_s23 = smov %s8358_s30 }
 0x536   : > { %s11212_s24 = smov %s8347_s27  ;;  %18 = sbr.rel (!%p16_p3) target bundleno = 3 (0x3), region = 82 }
 0x53d   :  { %6495 = vsyncpa [#allocation4], 1 }
 0x53e   :  { %6497 = vsyncpa [#allocation4 + $0x1], 1 }

</bundles_post_ra>
